<compile_context>
chip_gen: v6e
topology: v6e:2x2x1
jax: 0.10.0
libtpu: 0.0.40
codegen_flags: <defaults>
</compile_context>

<pallas_src>
import functools

import jax
import jax.numpy as jnp
from jax.experimental import pallas as pl
from jax.experimental.pallas import tpu as pltpu


# --------------------------------------------------------------------------- #
# The fused kernel: stem -> ResBlocks -> head conv -> Flatten -> Linear
# --------------------------------------------------------------------------- #
def _resnet_kernel(*refs, num_blocks, N, L):
    n_in = 6 + 6 * num_blocks
    x_ref, stem_w = refs[0], refs[1]                       # (R, 3*Cin), (3*Cin, C)
    blk_refs = refs[2:2 + 6 * num_blocks]
    head_w, head_b, fc_b, fcw_hbm = refs[n_in - 4:n_in]    # (3,C,32),(1,32),(1,1024),HBM(1088,1024)
    o_ref = refs[n_in]                                     # (N, 1024) f32 output
    fcw_vmem, dma_sem, y_scr, flat_scr = refs[n_in + 1:]   # scratch

    f32 = jnp.float32
    Lp = L + 2                       # each batch chunk: zero row, L data rows, zero row
    R = N * Lp
    HC = head_w.shape[-1]            # 32 head channels

    # Kick off the (large) fc-weight HBM->VMEM copy; the whole conv trunk runs under it.
    fc_copy = pltpu.make_async_copy(fcw_hbm, fcw_vmem, dma_sem.at[0])
    fc_copy.start()

    # ---- per-row constants (hoisted once, reused by every block) ----
    row = jax.lax.broadcasted_iota(jnp.int32, (R, 1), 0)
    pos = row % Lp
    valid = jnp.logical_and(pos >= 1, pos <= L)
    validf = valid.astype(f32)                                            # (R, 1)
    bmasks = [jnp.logical_and(valid,
                              jnp.logical_and(row >= n * Lp, row < (n + 1) * Lp))
              for n in range(N)]                                          # N x (R, 1)

    rN = jax.lax.broadcasted_iota(jnp.int32, (N, R), 1)
    nN = jax.lax.broadcasted_iota(jnp.int32, (N, R), 0)
    pN = rN % Lp
    in_batch = jnp.logical_and(rN >= nN * Lp, rN < nN * Lp + Lp)
    sel_mean = jnp.where(jnp.logical_and(in_batch,
                                         jnp.logical_and(pN >= 1, pN <= L)),
                         1.0 / L, 0.0).astype(f32)                        # (N, R)

    rT = jax.lax.broadcasted_iota(jnp.int32, (R, N), 0)
    nT = jax.lax.broadcasted_iota(jnp.int32, (R, N), 1)
    bsel = jnp.logical_and(rT >= nT * Lp, rT < nT * Lp + Lp).astype(f32)  # (R, N)

    def conv3(h, w_ref, b_ref=None, relu=False):
        # Conv1d(k=3, padding=1) as three accumulated MXU dots; row shifts go through
        # the XLU (pltpu.roll).  Wrapped rows are the zero separator rows, so the roll
        # is bit-identical to a zero-padded shift and needs no extra mask.
        up = pltpu.roll(h, 1, 0)          # up[r] = h[r-1]
        dn = pltpu.roll(h, R - 1, 0)      # dn[r] = h[r+1]
        y = jnp.dot(up, w_ref[0], preferred_element_type=f32)
        y = y + jnp.dot(h, w_ref[1], preferred_element_type=f32)
        y = y + jnp.dot(dn, w_ref[2], preferred_element_type=f32)
        if b_ref is not None:
            y = y + b_ref[...]
        if relu:
            y = jnp.maximum(y, 0.0)
        return y

    # ---- stem: Conv1d(Cin, C, 3, padding=1, bias=False) -> Identity -> ReLU ----
    # (taps pre-shifted wrapper-side into (R, 3*Cin), so this is a single dot)
    h = jnp.maximum(jnp.dot(x_ref[...], stem_w[...], preferred_element_type=f32), 0.0)
    h = h * validf                                   # keep separator/padding rows at 0

    # ---- ResBlocks: conv -> ReLU -> conv, ChannelAttention, +x, ReLU ----
    for b in range(num_blocks):
        c1w, c2w, w1, b1, w2, b2 = blk_refs[6 * b:6 * b + 6]
        u = conv3(h, c1w, relu=True) * validf
        u = conv3(u, c2w) * validf

        # ChannelAttention stats without misaligned slicing:
        #   mean: one constant selection matmul on the idle MXU
        #   max : -inf-masked full-tile sublane reductions (conv2 output is pre-ReLU,
        #         so the zero separator rows must NOT participate)
        means = jnp.dot(sel_mean, u, preferred_element_type=f32)             # (N, C)
        maxes = jnp.concatenate(
            [jnp.max(jnp.where(bmasks[n], u, -jnp.inf), axis=0, keepdims=True)
             for n in range(N)], axis=0)                                     # (N, C)

        def mlp(v):
            t = jnp.maximum(jnp.dot(v, w1[...], preferred_element_type=f32) + b1[...], 0.0)
            return jnp.dot(t, w2[...], preferred_element_type=f32) + b2[...]

        g = 1.0 / (1.0 + jnp.exp(-(mlp(means) + mlp(maxes))))                # (N, C) gate
        gate = jnp.dot(bsel, g, preferred_element_type=f32)                  # (R, C) per-row
        h = jnp.maximum(gate * u + h, 0.0)               # CA scale + residual + ReLU

    # ---- head: Conv1d(C, 32, 3, padding=1, bias=True) -> ReLU ----
    y_scr[...] = conv3(h, head_w, b_ref=head_b, relu=True)                   # (R, 32)

    # ---- Flatten: pack the valid rows lane-wise into (N, L*32) ----
    # (nn.Flatten's channel-major order is folded into fc_w at init time)
    for n in range(N):
        base = n * Lp + 1
        for l in range(L):
            flat_scr[n, pl.ds(l * HC, HC)] = y_scr[base + l, :]

    # ---- Linear(32*34, 1024): bf16 MXU matmul, f32 accumulation ----
    fc_copy.wait()
    flat = flat_scr[...].astype(fcw_vmem.dtype)                              # (N, L*32)
    o_ref[...] = jnp.dot(flat, fcw_vmem[...], preferred_element_type=f32) + fc_b[...]


def _resnet_call(x_cat, kp, *, N, L):
    num_blocks = len(kp["blocks"])
    args = [x_cat, kp["stem_w"]]
    for blk in kp["blocks"]:
        args += [blk["conv1_w"], blk["conv2_w"],
                 blk["ca_w1"], blk["ca_b1"], blk["ca_w2"], blk["ca_b2"]]
    args += [kp["head_w"], kp["head_b"], kp["fc_b"], kp["fc_w"]]

    vmem = pl.BlockSpec(memory_space=pltpu.MemorySpace.VMEM)
    Kfc, Dout = kp["fc_w"].shape
    HC = kp["head_w"].shape[-1]
    kern = functools.partial(_resnet_kernel, num_blocks=num_blocks, N=N, L=L)
    return pl.pallas_call(
        kern,
        out_shape=jax.ShapeDtypeStruct((N, Dout), jnp.float32),
        in_specs=[vmem] * (len(args) - 1) + [pl.BlockSpec(memory_space=pl.ANY)],
        out_specs=vmem,
        scratch_shapes=[
            pltpu.VMEM((Kfc, Dout), kp["fc_w"].dtype),     # fc-weight landing buffer
            pltpu.SemaphoreType.DMA((1,)),
            pltpu.VMEM((N * (L + 2), HC), jnp.float32),    # head conv output rows
            pltpu.VMEM((N, L * HC), jnp.float32),          # flattened activation
        ],
    )(*args)


# --------------------------------------------------------------------------- #
# Parameters: PyTorch-layout synthetic weights + conversion to kernel layout
# --------------------------------------------------------------------------- #
def init_torch_params(key, in_channels, conv_channels, num_blocks, L, ratio=16):
    C = conv_channels
    H = max(C // ratio, 1)
    ks = iter(jax.random.split(key, 8 + 8 * num_blocks))

    def u(shape, bound):
        return jax.random.uniform(next(ks), shape, jnp.float32, -bound, bound)

    def conv_w(cin, cout):
        return u((cout, cin, 3), (cin * 3) ** -0.5)        # PyTorch Conv1d (Cout, Cin, 3)

    tp = {"stem_w": conv_w(in_channels, C)}
    blocks = []
    for _ in range(num_blocks):
        blocks.append(dict(
            conv1_w=conv_w(C, C),
            conv2_w=conv_w(C, C),
            ca_w1=u((H, C), C ** -0.5),                     # Linear(C, C//ratio)
            ca_b1=jnp.zeros((H,), jnp.float32),             # nn.init.constant_(bias, 0)
            ca_w2=u((C, H), H ** -0.5),                     # Linear(C//ratio, C)
            ca_b2=jnp.zeros((C,), jnp.float32),
        ))
    tp["blocks"] = blocks
    tp["head_w"] = conv_w(C, 32)
    tp["head_b"] = u((32,), (C * 3) ** -0.5)
    fan_in = 32 * L
    tp["fc_w"] = u((1024, fan_in), fan_in ** -0.5)          # PyTorch Linear (out, in)
    tp["fc_b"] = u((1024,), fan_in ** -0.5)
    return tp


def to_kernel_params(tp, *, fc_dtype=jnp.bfloat16):
    C = tp["stem_w"].shape[0]
    in_ch = tp["stem_w"].shape[1]
    H = tp["blocks"][0]["ca_w1"].shape[0] if tp["blocks"] else 1
    hpad = max(((H + 7) // 8) * 8, 8)

    def conv_w(w):
        # torch (Cout, Cin, 3) -> (3, Cin, Cout); tap k multiplies x[l + k - 1]
        return jnp.transpose(w, (2, 1, 0))

    kp = {"stem_w": conv_w(tp["stem_w"]).reshape(3 * in_ch, C)}   # stem is pre-im2col'd
    blocks = []
    for blk in tp["blocks"]:
        blocks.append(dict(
            conv1_w=conv_w(blk["conv1_w"]),                        # (3, C, C) unpadded
            conv2_w=conv_w(blk["conv2_w"]),
            ca_w1=jnp.pad(blk["ca_w1"].T, ((0, 0), (0, hpad - H))),   # (C, hpad)
            ca_b1=jnp.pad(blk["ca_b1"], (0, hpad - H)).reshape(1, hpad),
            ca_w2=jnp.pad(blk["ca_w2"].T, ((0, hpad - H), (0, 0))),   # (hpad, C)
            ca_b2=blk["ca_b2"].reshape(1, C),
        ))
    kp["blocks"] = blocks
    kp["head_w"] = conv_w(tp["head_w"])                            # (3, C, 32)
    kp["head_b"] = tp["head_b"].reshape(1, -1)

    # Fold nn.Flatten's channel-major (N, C*L) order into the fc weight so the
    # kernel's row-major (l*32 + c) flatten maps straight onto it.
    n_out, fan_in = tp["fc_w"].shape
    hc = tp["head_w"].shape[0]                                     # 32
    L = fan_in // hc
    wp = tp["fc_w"].reshape(n_out, hc, L)                          # [d, c, l]
    wp = jnp.transpose(wp, (2, 1, 0)).reshape(L * hc, n_out)       # [l*32 + c, d]
    kp["fc_w"] = wp.astype(fc_dtype)
    kp["fc_b"] = tp["fc_b"].reshape(1, n_out).astype(jnp.float32)
    return kp


# --------------------------------------------------------------------------- #
# Forward pass (pre_actv=False, norm=Identity, actv=ReLU)
# --------------------------------------------------------------------------- #
def resnet_forward(x_ncl, kp):
    N, _, L = x_ncl.shape
    x_nlc = jnp.transpose(x_ncl, (0, 2, 1)).astype(jnp.float32)        # channels-last
    # Zero-separated rows double as conv padding AND batch separators; the stem's
    # three taps are pre-shifted here (layout plumbing is free wrapper-side XLA).
    taps = [jnp.pad(x_nlc, ((0, 0), (2 - k, k), (0, 0))) for k in range(3)]
    x_cat = jnp.concatenate(taps, axis=-1).reshape(N * (L + 2), -1)    # (R, 3*Cin)
    return _resnet_call(x_cat, kp, N=N, L=L)                           # (N, 1024)


# --------------------------------------------------------------------------- #
# Pure-JAX reference (PyTorch semantics, channels-first) for a correctness check
# --------------------------------------------------------------------------- #
def resnet_reference(x_ncl, tp):
    f32 = jnp.float32
    hi = jax.lax.Precision.HIGHEST
    x = x_ncl.astype(f32)
    N, _, L = x.shape

    def conv1d(h, w, b=None):                 # h (N, C, L), w (Cout, Cin, 3), padding=1
        hp = jnp.pad(h, ((0, 0), (0, 0), (1, 1)))
        out = sum(jnp.einsum("ncl,oc->nol", hp[:, :, k:k + L], w[:, :, k], precision=hi)
                  for k in range(3))
        if b is not None:
            out = out + b[None, :, None]
        return out

    def ca(h, w1, b1, w2, b2):
        def mlp(v):
            z = jnp.maximum(jnp.dot(v, w1.T, precision=hi) + b1, 0.0)
            return jnp.dot(z, w2.T, precision=hi) + b2
        g = jax.nn.sigmoid(mlp(h.mean(-1)) + mlp(h.max(-1)))
        return g[:, :, None] * h

    h = jnp.maximum(conv1d(x, tp["stem_w"]), 0.0)
    for blk in tp["blocks"]:
        u = jnp.maximum(conv1d(h, blk["conv1_w"]), 0.0)
        u = conv1d(u, blk["conv2_w"])
        h = jnp.maximum(ca(u, blk["ca_w1"], blk["ca_b1"], blk["ca_w2"], blk["ca_b2"]) + h, 0.0)
    h = jnp.maximum(conv1d(h, tp["head_w"], tp["head_b"]), 0.0)   # (N, 32, L)
    flat = h.reshape(N, 32 * L)                                   # PyTorch nn.Flatten order
    wbf = tp["fc_w"].astype(jnp.bfloat16)
    return jnp.dot(flat.astype(jnp.bfloat16), wbf.T,
                   preferred_element_type=f32) + tp["fc_b"]


# --------------------------------------------------------------------------- #
if __name__ == "__main__":
    key = jax.random.PRNGKey(0)
    kx, kw = jax.random.split(key)

    N, IN_CH, CONV_CH, NUM_BLOCKS, L = 2, 4, 32, 2, 34   # L=34 forced by Linear(32*34, 1024)
    x = jax.random.normal(kx, (N, IN_CH, L), jnp.float32)          # PyTorch NCL input

    torch_params = init_torch_params(kw, IN_CH, CONV_CH, NUM_BLOCKS, L)
    kernel_params = to_kernel_params(torch_params)

    out = jax.jit(resnet_forward)(x, kernel_params)
    out = jax.block_until_ready(out)
    assert out.shape == (N, 1024) and out.dtype == jnp.float32

    ref = resnet_reference(x, torch_params)
    max_err = float(jnp.max(jnp.abs(out - ref)))
    assert bool(jnp.allclose(out, ref, atol=2e-2, rtol=2e-2)), max_err

    print("KERNEL_OK")
</pallas_src>

<mosaic_0001>
module attributes {stable_mosaic.version = 11 : i64} {
  func.func @_resnet_kernel(%arg0: memref<72x12xf32, #tpu.memory_space<vmem>>, %arg1: memref<12x32xf32, #tpu.memory_space<vmem>>, %arg2: memref<3x32x32xf32, #tpu.memory_space<vmem>>, %arg3: memref<3x32x32xf32, #tpu.memory_space<vmem>>, %arg4: memref<32x8xf32, #tpu.memory_space<vmem>>, %arg5: memref<1x8xf32, #tpu.memory_space<vmem>>, %arg6: memref<8x32xf32, #tpu.memory_space<vmem>>, %arg7: memref<1x32xf32, #tpu.memory_space<vmem>>, %arg8: memref<3x32x32xf32, #tpu.memory_space<vmem>>, %arg9: memref<3x32x32xf32, #tpu.memory_space<vmem>>, %arg10: memref<32x8xf32, #tpu.memory_space<vmem>>, %arg11: memref<1x8xf32, #tpu.memory_space<vmem>>, %arg12: memref<8x32xf32, #tpu.memory_space<vmem>>, %arg13: memref<1x32xf32, #tpu.memory_space<vmem>>, %arg14: memref<3x32x32xf32, #tpu.memory_space<vmem>>, %arg15: memref<1x32xf32, #tpu.memory_space<vmem>>, %arg16: memref<1x1024xf32, #tpu.memory_space<vmem>>, %arg17: memref<1088x1024xbf16, #tpu.memory_space<any>>, %arg18: memref<2x1024xf32, #tpu.memory_space<vmem>>, %arg19: memref<1088x1024xbf16, #tpu.memory_space<vmem>>, %arg20: memref<1x!tpu.dma_semaphore, #tpu.memory_space<semaphore_mem>>, %arg21: memref<72x32xf32, #tpu.memory_space<vmem>>, %arg22: memref<2x1088xf32, #tpu.memory_space<vmem>>) attributes {dimension_semantics = [], scalar_prefetch = 0 : i64, scratch_operands = 4 : i64, tpu.core_type = #tpu.core_type<tc>} {
    %c0_i32 = arith.constant 0 : i32
    %0 = tpu.memref_slice %arg20[%c0_i32] : memref<1x!tpu.dma_semaphore, #tpu.memory_space<semaphore_mem>> -> memref<1x!tpu.dma_semaphore, #tpu.memory_space<semaphore_mem>>
    %1 = tpu.memref_squeeze %0 : memref<1x!tpu.dma_semaphore, #tpu.memory_space<semaphore_mem>> -> memref<!tpu.dma_semaphore, #tpu.memory_space<semaphore_mem>>
    tpu.enqueue_dma source(%arg17 : memref<1088x1024xbf16, #tpu.memory_space<any>>) target(%arg19 : memref<1088x1024xbf16, #tpu.memory_space<vmem>>) target_semaphore(%1 : memref<!tpu.dma_semaphore, #tpu.memory_space<semaphore_mem>>)
    %2 = tpu.iota {dimensions = array<i32: 0>} : vector<72x1xi32>
    %c36_i32 = arith.constant 36 : i32
    %c0_i32_0 = arith.constant 0 : i32
    %3 = arith.cmpi eq, %c36_i32, %c0_i32_0 : i32
    %c1_i32 = arith.constant 1 : i32
    %4 = arith.select %3, %c1_i32, %c36_i32 : i32
    %5 = vector.broadcast %4 : i32 to vector<72x1xi32>
    %6 = arith.remsi %2, %5 : vector<72x1xi32>
    %c0_i32_1 = arith.constant 0 : i32
    %7 = vector.broadcast %c0_i32_1 : i32 to vector<72x1xi32>
    %8 = arith.cmpi ne, %6, %7 : vector<72x1xi32>
    %c0_i32_2 = arith.constant 0 : i32
    %9 = vector.broadcast %c0_i32_2 : i32 to vector<72x1xi32>
    %10 = arith.cmpi slt, %6, %9 : vector<72x1xi32>
    %c0_i32_3 = arith.constant 0 : i32
    %11 = arith.cmpi slt, %4, %c0_i32_3 : i32
    %12 = vector.broadcast %11 : i1 to vector<72x1xi1>
    %13 = vector.broadcast %12 : vector<72x1xi1> to vector<72x1xi1>
    %14 = arith.xori %10, %13 : vector<72x1xi1>
    %15 = arith.andi %14, %8 : vector<72x1xi1>
    %16 = vector.broadcast %4 : i32 to vector<72x1xi32>
    %17 = arith.addi %6, %16 : vector<72x1xi32>
    %18 = arith.select %15, %17, %6 : vector<72x1xi1>, vector<72x1xi32>
    %c1_i32_4 = arith.constant 1 : i32
    %19 = vector.broadcast %c1_i32_4 : i32 to vector<72x1xi32>
    %20 = arith.cmpi sge, %18, %19 : vector<72x1xi32>
    %c34_i32 = arith.constant 34 : i32
    %21 = vector.broadcast %c34_i32 : i32 to vector<72x1xi32>
    %22 = arith.cmpi sle, %18, %21 : vector<72x1xi32>
    %23 = arith.andi %20, %22 : vector<72x1xi1>
    %24 = arith.extui %23 : vector<72x1xi1> to vector<72x1xi32>
    %25 = arith.sitofp %24 : vector<72x1xi32> to vector<72x1xf32>
    %c0_i32_5 = arith.constant 0 : i32
    %26 = vector.broadcast %c0_i32_5 : i32 to vector<72x1xi32>
    %27 = arith.cmpi sge, %2, %26 : vector<72x1xi32>
    %c36_i32_6 = arith.constant 36 : i32
    %28 = vector.broadcast %c36_i32_6 : i32 to vector<72x1xi32>
    %29 = arith.cmpi slt, %2, %28 : vector<72x1xi32>
    %30 = arith.andi %27, %29 : vector<72x1xi1>
    %31 = arith.andi %23, %30 : vector<72x1xi1>
    %c36_i32_7 = arith.constant 36 : i32
    %32 = vector.broadcast %c36_i32_7 : i32 to vector<72x1xi32>
    %33 = arith.cmpi sge, %2, %32 : vector<72x1xi32>
    %c72_i32 = arith.constant 72 : i32
    %34 = vector.broadcast %c72_i32 : i32 to vector<72x1xi32>
    %35 = arith.cmpi slt, %2, %34 : vector<72x1xi32>
    %36 = arith.andi %33, %35 : vector<72x1xi1>
    %37 = arith.andi %23, %36 : vector<72x1xi1>
    %38 = tpu.iota {dimensions = array<i32: 1>} : vector<2x72xi32>
    %39 = tpu.iota {dimensions = array<i32: 0>} : vector<2x72xi32>
    %c36_i32_8 = arith.constant 36 : i32
    %c0_i32_9 = arith.constant 0 : i32
    %40 = arith.cmpi eq, %c36_i32_8, %c0_i32_9 : i32
    %c1_i32_10 = arith.constant 1 : i32
    %41 = arith.select %40, %c1_i32_10, %c36_i32_8 : i32
    %42 = vector.broadcast %41 : i32 to vector<2x72xi32>
    %43 = arith.remsi %38, %42 : vector<2x72xi32>
    %c0_i32_11 = arith.constant 0 : i32
    %44 = vector.broadcast %c0_i32_11 : i32 to vector<2x72xi32>
    %45 = arith.cmpi ne, %43, %44 : vector<2x72xi32>
    %c0_i32_12 = arith.constant 0 : i32
    %46 = vector.broadcast %c0_i32_12 : i32 to vector<2x72xi32>
    %47 = arith.cmpi slt, %43, %46 : vector<2x72xi32>
    %c0_i32_13 = arith.constant 0 : i32
    %48 = arith.cmpi slt, %41, %c0_i32_13 : i32
    %49 = vector.broadcast %48 : i1 to vector<2x72xi1>
    %50 = vector.broadcast %49 : vector<2x72xi1> to vector<2x72xi1>
    %51 = arith.xori %47, %50 : vector<2x72xi1>
    %52 = arith.andi %51, %45 : vector<2x72xi1>
    %53 = vector.broadcast %41 : i32 to vector<2x72xi32>
    %54 = arith.addi %43, %53 : vector<2x72xi32>
    %55 = arith.select %52, %54, %43 : vector<2x72xi1>, vector<2x72xi32>
    %c36_i32_14 = arith.constant 36 : i32
    %56 = vector.broadcast %c36_i32_14 : i32 to vector<2x72xi32>
    %57 = arith.muli %39, %56 : vector<2x72xi32>
    %58 = arith.cmpi sge, %38, %57 : vector<2x72xi32>
    %c36_i32_15 = arith.constant 36 : i32
    %59 = vector.broadcast %c36_i32_15 : i32 to vector<2x72xi32>
    %60 = arith.muli %39, %59 : vector<2x72xi32>
    %c36_i32_16 = arith.constant 36 : i32
    %61 = vector.broadcast %c36_i32_16 : i32 to vector<2x72xi32>
    %62 = arith.addi %60, %61 : vector<2x72xi32>
    %63 = arith.cmpi slt, %38, %62 : vector<2x72xi32>
    %64 = arith.andi %58, %63 : vector<2x72xi1>
    %c1_i32_17 = arith.constant 1 : i32
    %65 = vector.broadcast %c1_i32_17 : i32 to vector<2x72xi32>
    %66 = arith.cmpi sge, %55, %65 : vector<2x72xi32>
    %c34_i32_18 = arith.constant 34 : i32
    %67 = vector.broadcast %c34_i32_18 : i32 to vector<2x72xi32>
    %68 = arith.cmpi sle, %55, %67 : vector<2x72xi32>
    %69 = arith.andi %66, %68 : vector<2x72xi1>
    %70 = arith.andi %64, %69 : vector<2x72xi1>
    %cst = arith.constant 0.0294117648 : f32
    %cst_19 = arith.constant 0.000000e+00 : f32
    %71 = vector.broadcast %cst : f32 to vector<2x72xf32>
    %72 = vector.broadcast %cst_19 : f32 to vector<2x72xf32>
    %73 = arith.select %70, %71, %72 : vector<2x72xi1>, vector<2x72xf32>
    %74 = tpu.iota {dimensions = array<i32: 0>} : vector<72x2xi32>
    %75 = tpu.iota {dimensions = array<i32: 1>} : vector<72x2xi32>
    %c36_i32_20 = arith.constant 36 : i32
    %76 = vector.broadcast %c36_i32_20 : i32 to vector<72x2xi32>
    %77 = arith.muli %75, %76 : vector<72x2xi32>
    %78 = arith.cmpi sge, %74, %77 : vector<72x2xi32>
    %c36_i32_21 = arith.constant 36 : i32
    %79 = vector.broadcast %c36_i32_21 : i32 to vector<72x2xi32>
    %80 = arith.muli %75, %79 : vector<72x2xi32>
    %c36_i32_22 = arith.constant 36 : i32
    %81 = vector.broadcast %c36_i32_22 : i32 to vector<72x2xi32>
    %82 = arith.addi %80, %81 : vector<72x2xi32>
    %83 = arith.cmpi slt, %74, %82 : vector<72x2xi32>
    %84 = arith.andi %78, %83 : vector<72x2xi1>
    %85 = arith.extui %84 : vector<72x2xi1> to vector<72x2xi32>
    %86 = arith.sitofp %85 : vector<72x2xi32> to vector<72x2xf32>
    %c0 = arith.constant 0 : index
    %c0_23 = arith.constant 0 : index
    %87 = vector.load %arg0[%c0, %c0_23] : memref<72x12xf32, #tpu.memory_space<vmem>>, vector<72x12xf32>
    %c0_24 = arith.constant 0 : index
    %c0_25 = arith.constant 0 : index
    %88 = vector.load %arg1[%c0_24, %c0_25] : memref<12x32xf32, #tpu.memory_space<vmem>>, vector<12x32xf32>
    %cst_26 = arith.constant dense<0.000000e+00> : vector<72x32xf32>
    %89 = tpu.matmul %87, %88, %cst_26 {dimension_numbers = #tpu.dot_dimension_numbers<[1], [0], [0], [1], [0, 0, 1, 1], [], []>} : vector<72x12xf32>, vector<12x32xf32>, vector<72x32xf32> -> vector<72x32xf32>
    %cst_27 = arith.constant 0.000000e+00 : f32
    %90 = vector.broadcast %cst_27 : f32 to vector<72x32xf32>
    %91 = arith.maximumf %89, %90 : vector<72x32xf32>
    %92 = vector.broadcast %25 : vector<72x1xf32> to vector<72x32xf32>
    %93 = arith.mulf %91, %92 : vector<72x32xf32>
    %c1_i32_28 = arith.constant 1 : i32
    %94 = tpu.dynamic_rotate %93 by %c1_i32_28 dim 0 : vector<72x32xf32>, i32 -> vector<72x32xf32>
    %c71_i32 = arith.constant 71 : i32
    %95 = tpu.dynamic_rotate %93 by %c71_i32 dim 0 : vector<72x32xf32>, i32 -> vector<72x32xf32>
    %c0_29 = arith.constant 0 : index
    %c0_30 = arith.constant 0 : index
    %c0_31 = arith.constant 0 : index
    %96 = vector.load %arg2[%c0_29, %c0_30, %c0_31] : memref<3x32x32xf32, #tpu.memory_space<vmem>>, vector<1x32x32xf32>
    %97 = vector.shape_cast %96 : vector<1x32x32xf32> to vector<32x32xf32>
    %cst_32 = arith.constant dense<0.000000e+00> : vector<72x32xf32>
    %98 = tpu.matmul %94, %97, %cst_32 {dimension_numbers = #tpu.dot_dimension_numbers<[1], [0], [0], [1], [0, 0, 1, 1], [], []>} : vector<72x32xf32>, vector<32x32xf32>, vector<72x32xf32> -> vector<72x32xf32>
    %c1 = arith.constant 1 : index
    %c0_33 = arith.constant 0 : index
    %c0_34 = arith.constant 0 : index
    %99 = vector.load %arg2[%c1, %c0_33, %c0_34] : memref<3x32x32xf32, #tpu.memory_space<vmem>>, vector<1x32x32xf32>
    %100 = vector.shape_cast %99 : vector<1x32x32xf32> to vector<32x32xf32>
    %cst_35 = arith.constant dense<0.000000e+00> : vector<72x32xf32>
    %101 = tpu.matmul %93, %100, %cst_35 {dimension_numbers = #tpu.dot_dimension_numbers<[1], [0], [0], [1], [0, 0, 1, 1], [], []>} : vector<72x32xf32>, vector<32x32xf32>, vector<72x32xf32> -> vector<72x32xf32>
    %102 = arith.addf %98, %101 : vector<72x32xf32>
    %c2 = arith.constant 2 : index
    %c0_36 = arith.constant 0 : index
    %c0_37 = arith.constant 0 : index
    %103 = vector.load %arg2[%c2, %c0_36, %c0_37] : memref<3x32x32xf32, #tpu.memory_space<vmem>>, vector<1x32x32xf32>
    %104 = vector.shape_cast %103 : vector<1x32x32xf32> to vector<32x32xf32>
    %cst_38 = arith.constant dense<0.000000e+00> : vector<72x32xf32>
    %105 = tpu.matmul %95, %104, %cst_38 {dimension_numbers = #tpu.dot_dimension_numbers<[1], [0], [0], [1], [0, 0, 1, 1], [], []>} : vector<72x32xf32>, vector<32x32xf32>, vector<72x32xf32> -> vector<72x32xf32>
    %106 = arith.addf %102, %105 : vector<72x32xf32>
    %cst_39 = arith.constant 0.000000e+00 : f32
    %107 = vector.broadcast %cst_39 : f32 to vector<72x32xf32>
    %108 = arith.maximumf %106, %107 : vector<72x32xf32>
    %109 = vector.broadcast %25 : vector<72x1xf32> to vector<72x32xf32>
    %110 = arith.mulf %108, %109 : vector<72x32xf32>
    %c1_i32_40 = arith.constant 1 : i32
    %111 = tpu.dynamic_rotate %110 by %c1_i32_40 dim 0 : vector<72x32xf32>, i32 -> vector<72x32xf32>
    %c71_i32_41 = arith.constant 71 : i32
    %112 = tpu.dynamic_rotate %110 by %c71_i32_41 dim 0 : vector<72x32xf32>, i32 -> vector<72x32xf32>
    %c0_42 = arith.constant 0 : index
    %c0_43 = arith.constant 0 : index
    %c0_44 = arith.constant 0 : index
    %113 = vector.load %arg3[%c0_42, %c0_43, %c0_44] : memref<3x32x32xf32, #tpu.memory_space<vmem>>, vector<1x32x32xf32>
    %114 = vector.shape_cast %113 : vector<1x32x32xf32> to vector<32x32xf32>
    %cst_45 = arith.constant dense<0.000000e+00> : vector<72x32xf32>
    %115 = tpu.matmul %111, %114, %cst_45 {dimension_numbers = #tpu.dot_dimension_numbers<[1], [0], [0], [1], [0, 0, 1, 1], [], []>} : vector<72x32xf32>, vector<32x32xf32>, vector<72x32xf32> -> vector<72x32xf32>
    %c1_46 = arith.constant 1 : index
    %c0_47 = arith.constant 0 : index
    %c0_48 = arith.constant 0 : index
    %116 = vector.load %arg3[%c1_46, %c0_47, %c0_48] : memref<3x32x32xf32, #tpu.memory_space<vmem>>, vector<1x32x32xf32>
    %117 = vector.shape_cast %116 : vector<1x32x32xf32> to vector<32x32xf32>
    %cst_49 = arith.constant dense<0.000000e+00> : vector<72x32xf32>
    %118 = tpu.matmul %110, %117, %cst_49 {dimension_numbers = #tpu.dot_dimension_numbers<[1], [0], [0], [1], [0, 0, 1, 1], [], []>} : vector<72x32xf32>, vector<32x32xf32>, vector<72x32xf32> -> vector<72x32xf32>
    %119 = arith.addf %115, %118 : vector<72x32xf32>
    %c2_50 = arith.constant 2 : index
    %c0_51 = arith.constant 0 : index
    %c0_52 = arith.constant 0 : index
    %120 = vector.load %arg3[%c2_50, %c0_51, %c0_52] : memref<3x32x32xf32, #tpu.memory_space<vmem>>, vector<1x32x32xf32>
    %121 = vector.shape_cast %120 : vector<1x32x32xf32> to vector<32x32xf32>
    %cst_53 = arith.constant dense<0.000000e+00> : vector<72x32xf32>
    %122 = tpu.matmul %112, %121, %cst_53 {dimension_numbers = #tpu.dot_dimension_numbers<[1], [0], [0], [1], [0, 0, 1, 1], [], []>} : vector<72x32xf32>, vector<32x32xf32>, vector<72x32xf32> -> vector<72x32xf32>
    %123 = arith.addf %119, %122 : vector<72x32xf32>
    %124 = vector.broadcast %25 : vector<72x1xf32> to vector<72x32xf32>
    %125 = arith.mulf %123, %124 : vector<72x32xf32>
    %cst_54 = arith.constant dense<0.000000e+00> : vector<2x32xf32>
    %126 = tpu.matmul %73, %125, %cst_54 {dimension_numbers = #tpu.dot_dimension_numbers<[1], [0], [0], [1], [0, 0, 1, 1], [], []>} : vector<2x72xf32>, vector<72x32xf32>, vector<2x32xf32> -> vector<2x32xf32>
    %cst_55 = arith.constant 0xFF800000 : f32
    %127 = vector.shape_cast %31 : vector<72x1xi1> to vector<72x1xi1>
    %128 = vector.broadcast %127 : vector<72x1xi1> to vector<72x32xi1>
    %129 = vector.broadcast %cst_55 : f32 to vector<72x32xf32>
    %130 = arith.select %128, %125, %129 : vector<72x32xi1>, vector<72x32xf32>
    %cst_56 = arith.constant dense<0xFF800000> : vector<32xf32>
    %131 = vector.multi_reduction <maximumf>, %130, %cst_56 [0] : vector<72x32xf32> to vector<32xf32>
    %132 = vector.shape_cast %131 : vector<32xf32> to vector<1x32xf32>
    %cst_57 = arith.constant 0xFF800000 : f32
    %133 = vector.shape_cast %37 : vector<72x1xi1> to vector<72x1xi1>
    %134 = vector.broadcast %133 : vector<72x1xi1> to vector<72x32xi1>
    %135 = vector.broadcast %cst_57 : f32 to vector<72x32xf32>
    %136 = arith.select %134, %125, %135 : vector<72x32xi1>, vector<72x32xf32>
    %cst_58 = arith.constant dense<0xFF800000> : vector<32xf32>
    %137 = vector.multi_reduction <maximumf>, %136, %cst_58 [0] : vector<72x32xf32> to vector<32xf32>
    %138 = vector.shape_cast %137 : vector<32xf32> to vector<1x32xf32>
    %139 = tpu.concatenate %132, %138 in 0 : vector<1x32xf32>, vector<1x32xf32> -> vector<2x32xf32>
    %c0_59 = arith.constant 0 : index
    %c0_60 = arith.constant 0 : index
    %140 = vector.load %arg4[%c0_59, %c0_60] : memref<32x8xf32, #tpu.memory_space<vmem>>, vector<32x8xf32>
    %cst_61 = arith.constant dense<0.000000e+00> : vector<2x8xf32>
    %141 = tpu.matmul %126, %140, %cst_61 {dimension_numbers = #tpu.dot_dimension_numbers<[1], [0], [0], [1], [0, 0, 1, 1], [], []>} : vector<2x32xf32>, vector<32x8xf32>, vector<2x8xf32> -> vector<2x8xf32>
    %c0_62 = arith.constant 0 : index
    %c0_63 = arith.constant 0 : index
    %142 = vector.load %arg5[%c0_62, %c0_63] : memref<1x8xf32, #tpu.memory_space<vmem>>, vector<1x8xf32>
    %143 = vector.broadcast %142 : vector<1x8xf32> to vector<2x8xf32>
    %144 = arith.addf %141, %143 : vector<2x8xf32>
    %cst_64 = arith.constant 0.000000e+00 : f32
    %145 = vector.broadcast %cst_64 : f32 to vector<2x8xf32>
    %146 = arith.maximumf %144, %145 : vector<2x8xf32>
    %c0_65 = arith.constant 0 : index
    %c0_66 = arith.constant 0 : index
    %147 = vector.load %arg6[%c0_65, %c0_66] : memref<8x32xf32, #tpu.memory_space<vmem>>, vector<8x32xf32>
    %cst_67 = arith.constant dense<0.000000e+00> : vector<2x32xf32>
    %148 = tpu.matmul %146, %147, %cst_67 {dimension_numbers = #tpu.dot_dimension_numbers<[1], [0], [0], [1], [0, 0, 1, 1], [], []>} : vector<2x8xf32>, vector<8x32xf32>, vector<2x32xf32> -> vector<2x32xf32>
    %c0_68 = arith.constant 0 : index
    %c0_69 = arith.constant 0 : index
    %149 = vector.load %arg7[%c0_68, %c0_69] : memref<1x32xf32, #tpu.memory_space<vmem>>, vector<1x32xf32>
    %150 = vector.broadcast %149 : vector<1x32xf32> to vector<2x32xf32>
    %151 = arith.addf %148, %150 : vector<2x32xf32>
    %c0_70 = arith.constant 0 : index
    %c0_71 = arith.constant 0 : index
    %152 = vector.load %arg4[%c0_70, %c0_71] : memref<32x8xf32, #tpu.memory_space<vmem>>, vector<32x8xf32>
    %cst_72 = arith.constant dense<0.000000e+00> : vector<2x8xf32>
    %153 = tpu.matmul %139, %152, %cst_72 {dimension_numbers = #tpu.dot_dimension_numbers<[1], [0], [0], [1], [0, 0, 1, 1], [], []>} : vector<2x32xf32>, vector<32x8xf32>, vector<2x8xf32> -> vector<2x8xf32>
    %c0_73 = arith.constant 0 : index
    %c0_74 = arith.constant 0 : index
    %154 = vector.load %arg5[%c0_73, %c0_74] : memref<1x8xf32, #tpu.memory_space<vmem>>, vector<1x8xf32>
    %155 = vector.broadcast %154 : vector<1x8xf32> to vector<2x8xf32>
    %156 = arith.addf %153, %155 : vector<2x8xf32>
    %cst_75 = arith.constant 0.000000e+00 : f32
    %157 = vector.broadcast %cst_75 : f32 to vector<2x8xf32>
    %158 = arith.maximumf %156, %157 : vector<2x8xf32>
    %c0_76 = arith.constant 0 : index
    %c0_77 = arith.constant 0 : index
    %159 = vector.load %arg6[%c0_76, %c0_77] : memref<8x32xf32, #tpu.memory_space<vmem>>, vector<8x32xf32>
    %cst_78 = arith.constant dense<0.000000e+00> : vector<2x32xf32>
    %160 = tpu.matmul %158, %159, %cst_78 {dimension_numbers = #tpu.dot_dimension_numbers<[1], [0], [0], [1], [0, 0, 1, 1], [], []>} : vector<2x8xf32>, vector<8x32xf32>, vector<2x32xf32> -> vector<2x32xf32>
    %c0_79 = arith.constant 0 : index
    %c0_80 = arith.constant 0 : index
    %161 = vector.load %arg7[%c0_79, %c0_80] : memref<1x32xf32, #tpu.memory_space<vmem>>, vector<1x32xf32>
    %162 = vector.broadcast %161 : vector<1x32xf32> to vector<2x32xf32>
    %163 = arith.addf %160, %162 : vector<2x32xf32>
    %164 = arith.addf %151, %163 : vector<2x32xf32>
    %cst_81 = arith.constant 0.000000e+00 : f32
    %165 = vector.broadcast %cst_81 : f32 to vector<2x32xf32>
    %166 = arith.subf %165, %164 : vector<2x32xf32>
    %167 = math.exp %166 : vector<2x32xf32>
    %cst_82 = arith.constant 1.000000e+00 : f32
    %168 = vector.broadcast %cst_82 : f32 to vector<2x32xf32>
    %169 = arith.addf %168, %167 : vector<2x32xf32>
    %cst_83 = arith.constant 1.000000e+00 : f32
    %170 = vector.broadcast %cst_83 : f32 to vector<2x32xf32>
    %171 = arith.divf %170, %169 : vector<2x32xf32>
    %cst_84 = arith.constant dense<0.000000e+00> : vector<72x32xf32>
    %172 = tpu.matmul %86, %171, %cst_84 {dimension_numbers = #tpu.dot_dimension_numbers<[1], [0], [0], [1], [0, 0, 1, 1], [], []>} : vector<72x2xf32>, vector<2x32xf32>, vector<72x32xf32> -> vector<72x32xf32>
    %173 = arith.mulf %172, %125 : vector<72x32xf32>
    %174 = arith.addf %173, %93 : vector<72x32xf32>
    %cst_85 = arith.constant 0.000000e+00 : f32
    %175 = vector.broadcast %cst_85 : f32 to vector<72x32xf32>
    %176 = arith.maximumf %174, %175 : vector<72x32xf32>
    %c1_i32_86 = arith.constant 1 : i32
    %177 = tpu.dynamic_rotate %176 by %c1_i32_86 dim 0 : vector<72x32xf32>, i32 -> vector<72x32xf32>
    %c71_i32_87 = arith.constant 71 : i32
    %178 = tpu.dynamic_rotate %176 by %c71_i32_87 dim 0 : vector<72x32xf32>, i32 -> vector<72x32xf32>
    %c0_88 = arith.constant 0 : index
    %c0_89 = arith.constant 0 : index
    %c0_90 = arith.constant 0 : index
    %179 = vector.load %arg8[%c0_88, %c0_89, %c0_90] : memref<3x32x32xf32, #tpu.memory_space<vmem>>, vector<1x32x32xf32>
    %180 = vector.shape_cast %179 : vector<1x32x32xf32> to vector<32x32xf32>
    %cst_91 = arith.constant dense<0.000000e+00> : vector<72x32xf32>
    %181 = tpu.matmul %177, %180, %cst_91 {dimension_numbers = #tpu.dot_dimension_numbers<[1], [0], [0], [1], [0, 0, 1, 1], [], []>} : vector<72x32xf32>, vector<32x32xf32>, vector<72x32xf32> -> vector<72x32xf32>
    %c1_92 = arith.constant 1 : index
    %c0_93 = arith.constant 0 : index
    %c0_94 = arith.constant 0 : index
    %182 = vector.load %arg8[%c1_92, %c0_93, %c0_94] : memref<3x32x32xf32, #tpu.memory_space<vmem>>, vector<1x32x32xf32>
    %183 = vector.shape_cast %182 : vector<1x32x32xf32> to vector<32x32xf32>
    %cst_95 = arith.constant dense<0.000000e+00> : vector<72x32xf32>
    %184 = tpu.matmul %176, %183, %cst_95 {dimension_numbers = #tpu.dot_dimension_numbers<[1], [0], [0], [1], [0, 0, 1, 1], [], []>} : vector<72x32xf32>, vector<32x32xf32>, vector<72x32xf32> -> vector<72x32xf32>
    %185 = arith.addf %181, %184 : vector<72x32xf32>
    %c2_96 = arith.constant 2 : index
    %c0_97 = arith.constant 0 : index
    %c0_98 = arith.constant 0 : index
    %186 = vector.load %arg8[%c2_96, %c0_97, %c0_98] : memref<3x32x32xf32, #tpu.memory_space<vmem>>, vector<1x32x32xf32>
    %187 = vector.shape_cast %186 : vector<1x32x32xf32> to vector<32x32xf32>
    %cst_99 = arith.constant dense<0.000000e+00> : vector<72x32xf32>
    %188 = tpu.matmul %178, %187, %cst_99 {dimension_numbers = #tpu.dot_dimension_numbers<[1], [0], [0], [1], [0, 0, 1, 1], [], []>} : vector<72x32xf32>, vector<32x32xf32>, vector<72x32xf32> -> vector<72x32xf32>
    %189 = arith.addf %185, %188 : vector<72x32xf32>
    %cst_100 = arith.constant 0.000000e+00 : f32
    %190 = vector.broadcast %cst_100 : f32 to vector<72x32xf32>
    %191 = arith.maximumf %189, %190 : vector<72x32xf32>
    %192 = vector.broadcast %25 : vector<72x1xf32> to vector<72x32xf32>
    %193 = arith.mulf %191, %192 : vector<72x32xf32>
    %c1_i32_101 = arith.constant 1 : i32
    %194 = tpu.dynamic_rotate %193 by %c1_i32_101 dim 0 : vector<72x32xf32>, i32 -> vector<72x32xf32>
    %c71_i32_102 = arith.constant 71 : i32
    %195 = tpu.dynamic_rotate %193 by %c71_i32_102 dim 0 : vector<72x32xf32>, i32 -> vector<72x32xf32>
    %c0_103 = arith.constant 0 : index
    %c0_104 = arith.constant 0 : index
    %c0_105 = arith.constant 0 : index
    %196 = vector.load %arg9[%c0_103, %c0_104, %c0_105] : memref<3x32x32xf32, #tpu.memory_space<vmem>>, vector<1x32x32xf32>
    %197 = vector.shape_cast %196 : vector<1x32x32xf32> to vector<32x32xf32>
    %cst_106 = arith.constant dense<0.000000e+00> : vector<72x32xf32>
    %198 = tpu.matmul %194, %197, %cst_106 {dimension_numbers = #tpu.dot_dimension_numbers<[1], [0], [0], [1], [0, 0, 1, 1], [], []>} : vector<72x32xf32>, vector<32x32xf32>, vector<72x32xf32> -> vector<72x32xf32>
    %c1_107 = arith.constant 1 : index
    %c0_108 = arith.constant 0 : index
    %c0_109 = arith.constant 0 : index
    %199 = vector.load %arg9[%c1_107, %c0_108, %c0_109] : memref<3x32x32xf32, #tpu.memory_space<vmem>>, vector<1x32x32xf32>
    %200 = vector.shape_cast %199 : vector<1x32x32xf32> to vector<32x32xf32>
    %cst_110 = arith.constant dense<0.000000e+00> : vector<72x32xf32>
    %201 = tpu.matmul %193, %200, %cst_110 {dimension_numbers = #tpu.dot_dimension_numbers<[1], [0], [0], [1], [0, 0, 1, 1], [], []>} : vector<72x32xf32>, vector<32x32xf32>, vector<72x32xf32> -> vector<72x32xf32>
    %202 = arith.addf %198, %201 : vector<72x32xf32>
    %c2_111 = arith.constant 2 : index
    %c0_112 = arith.constant 0 : index
    %c0_113 = arith.constant 0 : index
    %203 = vector.load %arg9[%c2_111, %c0_112, %c0_113] : memref<3x32x32xf32, #tpu.memory_space<vmem>>, vector<1x32x32xf32>
    %204 = vector.shape_cast %203 : vector<1x32x32xf32> to vector<32x32xf32>
    %cst_114 = arith.constant dense<0.000000e+00> : vector<72x32xf32>
    %205 = tpu.matmul %195, %204, %cst_114 {dimension_numbers = #tpu.dot_dimension_numbers<[1], [0], [0], [1], [0, 0, 1, 1], [], []>} : vector<72x32xf32>, vector<32x32xf32>, vector<72x32xf32> -> vector<72x32xf32>
    %206 = arith.addf %202, %205 : vector<72x32xf32>
    %207 = vector.broadcast %25 : vector<72x1xf32> to vector<72x32xf32>
    %208 = arith.mulf %206, %207 : vector<72x32xf32>
    %cst_115 = arith.constant dense<0.000000e+00> : vector<2x32xf32>
    %209 = tpu.matmul %73, %208, %cst_115 {dimension_numbers = #tpu.dot_dimension_numbers<[1], [0], [0], [1], [0, 0, 1, 1], [], []>} : vector<2x72xf32>, vector<72x32xf32>, vector<2x32xf32> -> vector<2x32xf32>
    %cst_116 = arith.constant 0xFF800000 : f32
    %210 = vector.shape_cast %31 : vector<72x1xi1> to vector<72x1xi1>
    %211 = vector.broadcast %210 : vector<72x1xi1> to vector<72x32xi1>
    %212 = vector.broadcast %cst_116 : f32 to vector<72x32xf32>
    %213 = arith.select %211, %208, %212 : vector<72x32xi1>, vector<72x32xf32>
    %cst_117 = arith.constant dense<0xFF800000> : vector<32xf32>
    %214 = vector.multi_reduction <maximumf>, %213, %cst_117 [0] : vector<72x32xf32> to vector<32xf32>
    %215 = vector.shape_cast %214 : vector<32xf32> to vector<1x32xf32>
    %cst_118 = arith.constant 0xFF800000 : f32
    %216 = vector.shape_cast %37 : vector<72x1xi1> to vector<72x1xi1>
    %217 = vector.broadcast %216 : vector<72x1xi1> to vector<72x32xi1>
    %218 = vector.broadcast %cst_118 : f32 to vector<72x32xf32>
    %219 = arith.select %217, %208, %218 : vector<72x32xi1>, vector<72x32xf32>
    %cst_119 = arith.constant dense<0xFF800000> : vector<32xf32>
    %220 = vector.multi_reduction <maximumf>, %219, %cst_119 [0] : vector<72x32xf32> to vector<32xf32>
    %221 = vector.shape_cast %220 : vector<32xf32> to vector<1x32xf32>
    %222 = tpu.concatenate %215, %221 in 0 : vector<1x32xf32>, vector<1x32xf32> -> vector<2x32xf32>
    %c0_120 = arith.constant 0 : index
    %c0_121 = arith.constant 0 : index
    %223 = vector.load %arg10[%c0_120, %c0_121] : memref<32x8xf32, #tpu.memory_space<vmem>>, vector<32x8xf32>
    %cst_122 = arith.constant dense<0.000000e+00> : vector<2x8xf32>
    %224 = tpu.matmul %209, %223, %cst_122 {dimension_numbers = #tpu.dot_dimension_numbers<[1], [0], [0], [1], [0, 0, 1, 1], [], []>} : vector<2x32xf32>, vector<32x8xf32>, vector<2x8xf32> -> vector<2x8xf32>
    %c0_123 = arith.constant 0 : index
    %c0_124 = arith.constant 0 : index
    %225 = vector.load %arg11[%c0_123, %c0_124] : memref<1x8xf32, #tpu.memory_space<vmem>>, vector<1x8xf32>
    %226 = vector.broadcast %225 : vector<1x8xf32> to vector<2x8xf32>
    %227 = arith.addf %224, %226 : vector<2x8xf32>
    %cst_125 = arith.constant 0.000000e+00 : f32
    %228 = vector.broadcast %cst_125 : f32 to vector<2x8xf32>
    %229 = arith.maximumf %227, %228 : vector<2x8xf32>
    %c0_126 = arith.constant 0 : index
    %c0_127 = arith.constant 0 : index
    %230 = vector.load %arg12[%c0_126, %c0_127] : memref<8x32xf32, #tpu.memory_space<vmem>>, vector<8x32xf32>
    %cst_128 = arith.constant dense<0.000000e+00> : vector<2x32xf32>
    %231 = tpu.matmul %229, %230, %cst_128 {dimension_numbers = #tpu.dot_dimension_numbers<[1], [0], [0], [1], [0, 0, 1, 1], [], []>} : vector<2x8xf32>, vector<8x32xf32>, vector<2x32xf32> -> vector<2x32xf32>
    %c0_129 = arith.constant 0 : index
    %c0_130 = arith.constant 0 : index
    %232 = vector.load %arg13[%c0_129, %c0_130] : memref<1x32xf32, #tpu.memory_space<vmem>>, vector<1x32xf32>
    %233 = vector.broadcast %232 : vector<1x32xf32> to vector<2x32xf32>
    %234 = arith.addf %231, %233 : vector<2x32xf32>
    %c0_131 = arith.constant 0 : index
    %c0_132 = arith.constant 0 : index
    %235 = vector.load %arg10[%c0_131, %c0_132] : memref<32x8xf32, #tpu.memory_space<vmem>>, vector<32x8xf32>
    %cst_133 = arith.constant dense<0.000000e+00> : vector<2x8xf32>
    %236 = tpu.matmul %222, %235, %cst_133 {dimension_numbers = #tpu.dot_dimension_numbers<[1], [0], [0], [1], [0, 0, 1, 1], [], []>} : vector<2x32xf32>, vector<32x8xf32>, vector<2x8xf32> -> vector<2x8xf32>
    %c0_134 = arith.constant 0 : index
    %c0_135 = arith.constant 0 : index
    %237 = vector.load %arg11[%c0_134, %c0_135] : memref<1x8xf32, #tpu.memory_space<vmem>>, vector<1x8xf32>
    %238 = vector.broadcast %237 : vector<1x8xf32> to vector<2x8xf32>
    %239 = arith.addf %236, %238 : vector<2x8xf32>
    %cst_136 = arith.constant 0.000000e+00 : f32
    %240 = vector.broadcast %cst_136 : f32 to vector<2x8xf32>
    %241 = arith.maximumf %239, %240 : vector<2x8xf32>
    %c0_137 = arith.constant 0 : index
    %c0_138 = arith.constant 0 : index
    %242 = vector.load %arg12[%c0_137, %c0_138] : memref<8x32xf32, #tpu.memory_space<vmem>>, vector<8x32xf32>
    %cst_139 = arith.constant dense<0.000000e+00> : vector<2x32xf32>
    %243 = tpu.matmul %241, %242, %cst_139 {dimension_numbers = #tpu.dot_dimension_numbers<[1], [0], [0], [1], [0, 0, 1, 1], [], []>} : vector<2x8xf32>, vector<8x32xf32>, vector<2x32xf32> -> vector<2x32xf32>
    %c0_140 = arith.constant 0 : index
    %c0_141 = arith.constant 0 : index
    %244 = vector.load %arg13[%c0_140, %c0_141] : memref<1x32xf32, #tpu.memory_space<vmem>>, vector<1x32xf32>
    %245 = vector.broadcast %244 : vector<1x32xf32> to vector<2x32xf32>
    %246 = arith.addf %243, %245 : vector<2x32xf32>
    %247 = arith.addf %234, %246 : vector<2x32xf32>
    %cst_142 = arith.constant 0.000000e+00 : f32
    %248 = vector.broadcast %cst_142 : f32 to vector<2x32xf32>
    %249 = arith.subf %248, %247 : vector<2x32xf32>
    %250 = math.exp %249 : vector<2x32xf32>
    %cst_143 = arith.constant 1.000000e+00 : f32
    %251 = vector.broadcast %cst_143 : f32 to vector<2x32xf32>
    %252 = arith.addf %251, %250 : vector<2x32xf32>
    %cst_144 = arith.constant 1.000000e+00 : f32
    %253 = vector.broadcast %cst_144 : f32 to vector<2x32xf32>
    %254 = arith.divf %253, %252 : vector<2x32xf32>
    %cst_145 = arith.constant dense<0.000000e+00> : vector<72x32xf32>
    %255 = tpu.matmul %86, %254, %cst_145 {dimension_numbers = #tpu.dot_dimension_numbers<[1], [0], [0], [1], [0, 0, 1, 1], [], []>} : vector<72x2xf32>, vector<2x32xf32>, vector<72x32xf32> -> vector<72x32xf32>
    %256 = arith.mulf %255, %208 : vector<72x32xf32>
    %257 = arith.addf %256, %176 : vector<72x32xf32>
    %cst_146 = arith.constant 0.000000e+00 : f32
    %258 = vector.broadcast %cst_146 : f32 to vector<72x32xf32>
    %259 = arith.maximumf %257, %258 : vector<72x32xf32>
    %c1_i32_147 = arith.constant 1 : i32
    %260 = tpu.dynamic_rotate %259 by %c1_i32_147 dim 0 : vector<72x32xf32>, i32 -> vector<72x32xf32>
    %c71_i32_148 = arith.constant 71 : i32
    %261 = tpu.dynamic_rotate %259 by %c71_i32_148 dim 0 : vector<72x32xf32>, i32 -> vector<72x32xf32>
    %c0_149 = arith.constant 0 : index
    %c0_150 = arith.constant 0 : index
    %c0_151 = arith.constant 0 : index
    %262 = vector.load %arg14[%c0_149, %c0_150, %c0_151] : memref<3x32x32xf32, #tpu.memory_space<vmem>>, vector<1x32x32xf32>
    %263 = vector.shape_cast %262 : vector<1x32x32xf32> to vector<32x32xf32>
    %cst_152 = arith.constant dense<0.000000e+00> : vector<72x32xf32>
    %264 = tpu.matmul %260, %263, %cst_152 {dimension_numbers = #tpu.dot_dimension_numbers<[1], [0], [0], [1], [0, 0, 1, 1], [], []>} : vector<72x32xf32>, vector<32x32xf32>, vector<72x32xf32> -> vector<72x32xf32>
    %c1_153 = arith.constant 1 : index
    %c0_154 = arith.constant 0 : index
    %c0_155 = arith.constant 0 : index
    %265 = vector.load %arg14[%c1_153, %c0_154, %c0_155] : memref<3x32x32xf32, #tpu.memory_space<vmem>>, vector<1x32x32xf32>
    %266 = vector.shape_cast %265 : vector<1x32x32xf32> to vector<32x32xf32>
    %cst_156 = arith.constant dense<0.000000e+00> : vector<72x32xf32>
    %267 = tpu.matmul %259, %266, %cst_156 {dimension_numbers = #tpu.dot_dimension_numbers<[1], [0], [0], [1], [0, 0, 1, 1], [], []>} : vector<72x32xf32>, vector<32x32xf32>, vector<72x32xf32> -> vector<72x32xf32>
    %268 = arith.addf %264, %267 : vector<72x32xf32>
    %c2_157 = arith.constant 2 : index
    %c0_158 = arith.constant 0 : index
    %c0_159 = arith.constant 0 : index
    %269 = vector.load %arg14[%c2_157, %c0_158, %c0_159] : memref<3x32x32xf32, #tpu.memory_space<vmem>>, vector<1x32x32xf32>
    %270 = vector.shape_cast %269 : vector<1x32x32xf32> to vector<32x32xf32>
    %cst_160 = arith.constant dense<0.000000e+00> : vector<72x32xf32>
    %271 = tpu.matmul %261, %270, %cst_160 {dimension_numbers = #tpu.dot_dimension_numbers<[1], [0], [0], [1], [0, 0, 1, 1], [], []>} : vector<72x32xf32>, vector<32x32xf32>, vector<72x32xf32> -> vector<72x32xf32>
    %272 = arith.addf %268, %271 : vector<72x32xf32>
    %c0_161 = arith.constant 0 : index
    %c0_162 = arith.constant 0 : index
    %273 = vector.load %arg15[%c0_161, %c0_162] : memref<1x32xf32, #tpu.memory_space<vmem>>, vector<1x32xf32>
    %274 = vector.broadcast %273 : vector<1x32xf32> to vector<72x32xf32>
    %275 = arith.addf %272, %274 : vector<72x32xf32>
    %cst_163 = arith.constant 0.000000e+00 : f32
    %276 = vector.broadcast %cst_163 : f32 to vector<72x32xf32>
    %277 = arith.maximumf %275, %276 : vector<72x32xf32>
    %c0_164 = arith.constant 0 : index
    %c0_165 = arith.constant 0 : index
    %278 = vector.load %arg21[%c0_164, %c0_165] : memref<72x32xf32, #tpu.memory_space<vmem>>, vector<72x32xf32>
    tpu.vector_store %arg21[%c0_164, %c0_165], %277 {strides = array<i32>} : memref<72x32xf32, #tpu.memory_space<vmem>>, vector<72x32xf32>,
    %c1_166 = arith.constant 1 : index
    %c0_167 = arith.constant 0 : index
    %279 = vector.load %arg21[%c1_166, %c0_167] : memref<72x32xf32, #tpu.memory_space<vmem>>, vector<1x32xf32>
    %280 = vector.shape_cast %279 : vector<1x32xf32> to vector<32xf32>
    %c0_168 = arith.constant 0 : index
    %c0_169 = arith.constant 0 : index
    %281 = vector.load %arg22[%c0_168, %c0_169] : memref<2x1088xf32, #tpu.memory_space<vmem>>, vector<1x32xf32>
    %282 = vector.shape_cast %281 : vector<1x32xf32> to vector<32xf32>
    %283 = vector.shape_cast %280 : vector<32xf32> to vector<1x32xf32>
    tpu.vector_store %arg22[%c0_168, %c0_169], %283 {strides = array<i32>} : memref<2x1088xf32, #tpu.memory_space<vmem>>, vector<1x32xf32>,
    %c2_170 = arith.constant 2 : index
    %c0_171 = arith.constant 0 : index
    %284 = vector.load %arg21[%c2_170, %c0_171] : memref<72x32xf32, #tpu.memory_space<vmem>>, vector<1x32xf32>
    %285 = vector.shape_cast %284 : vector<1x32xf32> to vector<32xf32>
    %c0_172 = arith.constant 0 : index
    %c32 = arith.constant 32 : index
    %286 = vector.load %arg22[%c0_172, %c32] : memref<2x1088xf32, #tpu.memory_space<vmem>>, vector<1x32xf32>
    %287 = vector.shape_cast %286 : vector<1x32xf32> to vector<32xf32>
    %288 = vector.shape_cast %285 : vector<32xf32> to vector<1x32xf32>
    tpu.vector_store %arg22[%c0_172, %c32], %288 {strides = array<i32>} : memref<2x1088xf32, #tpu.memory_space<vmem>>, vector<1x32xf32>,
    %c3 = arith.constant 3 : index
    %c0_173 = arith.constant 0 : index
    %289 = vector.load %arg21[%c3, %c0_173] : memref<72x32xf32, #tpu.memory_space<vmem>>, vector<1x32xf32>
    %290 = vector.shape_cast %289 : vector<1x32xf32> to vector<32xf32>
    %c0_174 = arith.constant 0 : index
    %c64 = arith.constant 64 : index
    %291 = vector.load %arg22[%c0_174, %c64] : memref<2x1088xf32, #tpu.memory_space<vmem>>, vector<1x32xf32>
    %292 = vector.shape_cast %291 : vector<1x32xf32> to vector<32xf32>
    %293 = vector.shape_cast %290 : vector<32xf32> to vector<1x32xf32>
    tpu.vector_store %arg22[%c0_174, %c64], %293 {strides = array<i32>} : memref<2x1088xf32, #tpu.memory_space<vmem>>, vector<1x32xf32>,
    %c4 = arith.constant 4 : index
    %c0_175 = arith.constant 0 : index
    %294 = vector.load %arg21[%c4, %c0_175] : memref<72x32xf32, #tpu.memory_space<vmem>>, vector<1x32xf32>
    %295 = vector.shape_cast %294 : vector<1x32xf32> to vector<32xf32>
    %c0_176 = arith.constant 0 : index
    %c96 = arith.constant 96 : index
    %296 = vector.load %arg22[%c0_176, %c96] : memref<2x1088xf32, #tpu.memory_space<vmem>>, vector<1x32xf32>
    %297 = vector.shape_cast %296 : vector<1x32xf32> to vector<32xf32>
    %298 = vector.shape_cast %295 : vector<32xf32> to vector<1x32xf32>
    tpu.vector_store %arg22[%c0_176, %c96], %298 {strides = array<i32>} : memref<2x1088xf32, #tpu.memory_space<vmem>>, vector<1x32xf32>,
    %c5 = arith.constant 5 : index
    %c0_177 = arith.constant 0 : index
    %299 = vector.load %arg21[%c5, %c0_177] : memref<72x32xf32, #tpu.memory_space<vmem>>, vector<1x32xf32>
    %300 = vector.shape_cast %299 : vector<1x32xf32> to vector<32xf32>
    %c0_178 = arith.constant 0 : index
    %c128 = arith.constant 128 : index
    %301 = vector.load %arg22[%c0_178, %c128] : memref<2x1088xf32, #tpu.memory_space<vmem>>, vector<1x32xf32>
    %302 = vector.shape_cast %301 : vector<1x32xf32> to vector<32xf32>
    %303 = vector.shape_cast %300 : vector<32xf32> to vector<1x32xf32>
    tpu.vector_store %arg22[%c0_178, %c128], %303 {strides = array<i32>} : memref<2x1088xf32, #tpu.memory_space<vmem>>, vector<1x32xf32>,
    %c6 = arith.constant 6 : index
    %c0_179 = arith.constant 0 : index
    %304 = vector.load %arg21[%c6, %c0_179] : memref<72x32xf32, #tpu.memory_space<vmem>>, vector<1x32xf32>
    %305 = vector.shape_cast %304 : vector<1x32xf32> to vector<32xf32>
    %c0_180 = arith.constant 0 : index
    %c160 = arith.constant 160 : index
    %306 = vector.load %arg22[%c0_180, %c160] : memref<2x1088xf32, #tpu.memory_space<vmem>>, vector<1x32xf32>
    %307 = vector.shape_cast %306 : vector<1x32xf32> to vector<32xf32>
    %308 = vector.shape_cast %305 : vector<32xf32> to vector<1x32xf32>
    tpu.vector_store %arg22[%c0_180, %c160], %308 {strides = array<i32>} : memref<2x1088xf32, #tpu.memory_space<vmem>>, vector<1x32xf32>,
    %c7 = arith.constant 7 : index
    %c0_181 = arith.constant 0 : index
    %309 = vector.load %arg21[%c7, %c0_181] : memref<72x32xf32, #tpu.memory_space<vmem>>, vector<1x32xf32>
    %310 = vector.shape_cast %309 : vector<1x32xf32> to vector<32xf32>
    %c0_182 = arith.constant 0 : index
    %c192 = arith.constant 192 : index
    %311 = vector.load %arg22[%c0_182, %c192] : memref<2x1088xf32, #tpu.memory_space<vmem>>, vector<1x32xf32>
    %312 = vector.shape_cast %311 : vector<1x32xf32> to vector<32xf32>
    %313 = vector.shape_cast %310 : vector<32xf32> to vector<1x32xf32>
    tpu.vector_store %arg22[%c0_182, %c192], %313 {strides = array<i32>} : memref<2x1088xf32, #tpu.memory_space<vmem>>, vector<1x32xf32>,
    %c8 = arith.constant 8 : index
    %c0_183 = arith.constant 0 : index
    %314 = vector.load %arg21[%c8, %c0_183] : memref<72x32xf32, #tpu.memory_space<vmem>>, vector<1x32xf32>
    %315 = vector.shape_cast %314 : vector<1x32xf32> to vector<32xf32>
    %c0_184 = arith.constant 0 : index
    %c224 = arith.constant 224 : index
    %316 = vector.load %arg22[%c0_184, %c224] : memref<2x1088xf32, #tpu.memory_space<vmem>>, vector<1x32xf32>
    %317 = vector.shape_cast %316 : vector<1x32xf32> to vector<32xf32>
    %318 = vector.shape_cast %315 : vector<32xf32> to vector<1x32xf32>
    tpu.vector_store %arg22[%c0_184, %c224], %318 {strides = array<i32>} : memref<2x1088xf32, #tpu.memory_space<vmem>>, vector<1x32xf32>,
    %c9 = arith.constant 9 : index
    %c0_185 = arith.constant 0 : index
    %319 = vector.load %arg21[%c9, %c0_185] : memref<72x32xf32, #tpu.memory_space<vmem>>, vector<1x32xf32>
    %320 = vector.shape_cast %319 : vector<1x32xf32> to vector<32xf32>
    %c0_186 = arith.constant 0 : index
    %c256 = arith.constant 256 : index
    %321 = vector.load %arg22[%c0_186, %c256] : memref<2x1088xf32, #tpu.memory_space<vmem>>, vector<1x32xf32>
    %322 = vector.shape_cast %321 : vector<1x32xf32> to vector<32xf32>
    %323 = vector.shape_cast %320 : vector<32xf32> to vector<1x32xf32>
    tpu.vector_store %arg22[%c0_186, %c256], %323 {strides = array<i32>} : memref<2x1088xf32, #tpu.memory_space<vmem>>, vector<1x32xf32>,
    %c10 = arith.constant 10 : index
    %c0_187 = arith.constant 0 : index
    %324 = vector.load %arg21[%c10, %c0_187] : memref<72x32xf32, #tpu.memory_space<vmem>>, vector<1x32xf32>
    %325 = vector.shape_cast %324 : vector<1x32xf32> to vector<32xf32>
    %c0_188 = arith.constant 0 : index
    %c288 = arith.constant 288 : index
    %326 = vector.load %arg22[%c0_188, %c288] : memref<2x1088xf32, #tpu.memory_space<vmem>>, vector<1x32xf32>
    %327 = vector.shape_cast %326 : vector<1x32xf32> to vector<32xf32>
    %328 = vector.shape_cast %325 : vector<32xf32> to vector<1x32xf32>
    tpu.vector_store %arg22[%c0_188, %c288], %328 {strides = array<i32>} : memref<2x1088xf32, #tpu.memory_space<vmem>>, vector<1x32xf32>,
    %c11 = arith.constant 11 : index
    %c0_189 = arith.constant 0 : index
    %329 = vector.load %arg21[%c11, %c0_189] : memref<72x32xf32, #tpu.memory_space<vmem>>, vector<1x32xf32>
    %330 = vector.shape_cast %329 : vector<1x32xf32> to vector<32xf32>
    %c0_190 = arith.constant 0 : index
    %c320 = arith.constant 320 : index
    %331 = vector.load %arg22[%c0_190, %c320] : memref<2x1088xf32, #tpu.memory_space<vmem>>, vector<1x32xf32>
    %332 = vector.shape_cast %331 : vector<1x32xf32> to vector<32xf32>
    %333 = vector.shape_cast %330 : vector<32xf32> to vector<1x32xf32>
    tpu.vector_store %arg22[%c0_190, %c320], %333 {strides = array<i32>} : memref<2x1088xf32, #tpu.memory_space<vmem>>, vector<1x32xf32>,
    %c12 = arith.constant 12 : index
    %c0_191 = arith.constant 0 : index
    %334 = vector.load %arg21[%c12, %c0_191] : memref<72x32xf32, #tpu.memory_space<vmem>>, vector<1x32xf32>
    %335 = vector.shape_cast %334 : vector<1x32xf32> to vector<32xf32>
    %c0_192 = arith.constant 0 : index
    %c352 = arith.constant 352 : index
    %336 = vector.load %arg22[%c0_192, %c352] : memref<2x1088xf32, #tpu.memory_space<vmem>>, vector<1x32xf32>
    %337 = vector.shape_cast %336 : vector<1x32xf32> to vector<32xf32>
    %338 = vector.shape_cast %335 : vector<32xf32> to vector<1x32xf32>
    tpu.vector_store %arg22[%c0_192, %c352], %338 {strides = array<i32>} : memref<2x1088xf32, #tpu.memory_space<vmem>>, vector<1x32xf32>,
    %c13 = arith.constant 13 : index
    %c0_193 = arith.constant 0 : index
    %339 = vector.load %arg21[%c13, %c0_193] : memref<72x32xf32, #tpu.memory_space<vmem>>, vector<1x32xf32>
    %340 = vector.shape_cast %339 : vector<1x32xf32> to vector<32xf32>
    %c0_194 = arith.constant 0 : index
    %c384 = arith.constant 384 : index
    %341 = vector.load %arg22[%c0_194, %c384] : memref<2x1088xf32, #tpu.memory_space<vmem>>, vector<1x32xf32>
    %342 = vector.shape_cast %341 : vector<1x32xf32> to vector<32xf32>
    %343 = vector.shape_cast %340 : vector<32xf32> to vector<1x32xf32>
    tpu.vector_store %arg22[%c0_194, %c384], %343 {strides = array<i32>} : memref<2x1088xf32, #tpu.memory_space<vmem>>, vector<1x32xf32>,
    %c14 = arith.constant 14 : index
    %c0_195 = arith.constant 0 : index
    %344 = vector.load %arg21[%c14, %c0_195] : memref<72x32xf32, #tpu.memory_space<vmem>>, vector<1x32xf32>
    %345 = vector.shape_cast %344 : vector<1x32xf32> to vector<32xf32>
    %c0_196 = arith.constant 0 : index
    %c416 = arith.constant 416 : index
    %346 = vector.load %arg22[%c0_196, %c416] : memref<2x1088xf32, #tpu.memory_space<vmem>>, vector<1x32xf32>
    %347 = vector.shape_cast %346 : vector<1x32xf32> to vector<32xf32>
    %348 = vector.shape_cast %345 : vector<32xf32> to vector<1x32xf32>
    tpu.vector_store %arg22[%c0_196, %c416], %348 {strides = array<i32>} : memref<2x1088xf32, #tpu.memory_space<vmem>>, vector<1x32xf32>,
    %c15 = arith.constant 15 : index
    %c0_197 = arith.constant 0 : index
    %349 = vector.load %arg21[%c15, %c0_197] : memref<72x32xf32, #tpu.memory_space<vmem>>, vector<1x32xf32>
    %350 = vector.shape_cast %349 : vector<1x32xf32> to vector<32xf32>
    %c0_198 = arith.constant 0 : index
    %c448 = arith.constant 448 : index
    %351 = vector.load %arg22[%c0_198, %c448] : memref<2x1088xf32, #tpu.memory_space<vmem>>, vector<1x32xf32>
    %352 = vector.shape_cast %351 : vector<1x32xf32> to vector<32xf32>
    %353 = vector.shape_cast %350 : vector<32xf32> to vector<1x32xf32>
    tpu.vector_store %arg22[%c0_198, %c448], %353 {strides = array<i32>} : memref<2x1088xf32, #tpu.memory_space<vmem>>, vector<1x32xf32>,
    %c16 = arith.constant 16 : index
    %c0_199 = arith.constant 0 : index
    %354 = vector.load %arg21[%c16, %c0_199] : memref<72x32xf32, #tpu.memory_space<vmem>>, vector<1x32xf32>
    %355 = vector.shape_cast %354 : vector<1x32xf32> to vector<32xf32>
    %c0_200 = arith.constant 0 : index
    %c480 = arith.constant 480 : index
    %356 = vector.load %arg22[%c0_200, %c480] : memref<2x1088xf32, #tpu.memory_space<vmem>>, vector<1x32xf32>
    %357 = vector.shape_cast %356 : vector<1x32xf32> to vector<32xf32>
    %358 = vector.shape_cast %355 : vector<32xf32> to vector<1x32xf32>
    tpu.vector_store %arg22[%c0_200, %c480], %358 {strides = array<i32>} : memref<2x1088xf32, #tpu.memory_space<vmem>>, vector<1x32xf32>,
    %c17 = arith.constant 17 : index
    %c0_201 = arith.constant 0 : index
    %359 = vector.load %arg21[%c17, %c0_201] : memref<72x32xf32, #tpu.memory_space<vmem>>, vector<1x32xf32>
    %360 = vector.shape_cast %359 : vector<1x32xf32> to vector<32xf32>
    %c0_202 = arith.constant 0 : index
    %c512 = arith.constant 512 : index
    %361 = vector.load %arg22[%c0_202, %c512] : memref<2x1088xf32, #tpu.memory_space<vmem>>, vector<1x32xf32>
    %362 = vector.shape_cast %361 : vector<1x32xf32> to vector<32xf32>
    %363 = vector.shape_cast %360 : vector<32xf32> to vector<1x32xf32>
    tpu.vector_store %arg22[%c0_202, %c512], %363 {strides = array<i32>} : memref<2x1088xf32, #tpu.memory_space<vmem>>, vector<1x32xf32>,
    %c18 = arith.constant 18 : index
    %c0_203 = arith.constant 0 : index
    %364 = vector.load %arg21[%c18, %c0_203] : memref<72x32xf32, #tpu.memory_space<vmem>>, vector<1x32xf32>
    %365 = vector.shape_cast %364 : vector<1x32xf32> to vector<32xf32>
    %c0_204 = arith.constant 0 : index
    %c544 = arith.constant 544 : index
    %366 = vector.load %arg22[%c0_204, %c544] : memref<2x1088xf32, #tpu.memory_space<vmem>>, vector<1x32xf32>
    %367 = vector.shape_cast %366 : vector<1x32xf32> to vector<32xf32>
    %368 = vector.shape_cast %365 : vector<32xf32> to vector<1x32xf32>
    tpu.vector_store %arg22[%c0_204, %c544], %368 {strides = array<i32>} : memref<2x1088xf32, #tpu.memory_space<vmem>>, vector<1x32xf32>,
    %c19 = arith.constant 19 : index
    %c0_205 = arith.constant 0 : index
    %369 = vector.load %arg21[%c19, %c0_205] : memref<72x32xf32, #tpu.memory_space<vmem>>, vector<1x32xf32>
    %370 = vector.shape_cast %369 : vector<1x32xf32> to vector<32xf32>
    %c0_206 = arith.constant 0 : index
    %c576 = arith.constant 576 : index
    %371 = vector.load %arg22[%c0_206, %c576] : memref<2x1088xf32, #tpu.memory_space<vmem>>, vector<1x32xf32>
    %372 = vector.shape_cast %371 : vector<1x32xf32> to vector<32xf32>
    %373 = vector.shape_cast %370 : vector<32xf32> to vector<1x32xf32>
    tpu.vector_store %arg22[%c0_206, %c576], %373 {strides = array<i32>} : memref<2x1088xf32, #tpu.memory_space<vmem>>, vector<1x32xf32>,
    %c20 = arith.constant 20 : index
    %c0_207 = arith.constant 0 : index
    %374 = vector.load %arg21[%c20, %c0_207] : memref<72x32xf32, #tpu.memory_space<vmem>>, vector<1x32xf32>
    %375 = vector.shape_cast %374 : vector<1x32xf32> to vector<32xf32>
    %c0_208 = arith.constant 0 : index
    %c608 = arith.constant 608 : index
    %376 = vector.load %arg22[%c0_208, %c608] : memref<2x1088xf32, #tpu.memory_space<vmem>>, vector<1x32xf32>
    %377 = vector.shape_cast %376 : vector<1x32xf32> to vector<32xf32>
    %378 = vector.shape_cast %375 : vector<32xf32> to vector<1x32xf32>
    tpu.vector_store %arg22[%c0_208, %c608], %378 {strides = array<i32>} : memref<2x1088xf32, #tpu.memory_space<vmem>>, vector<1x32xf32>,
    %c21 = arith.constant 21 : index
    %c0_209 = arith.constant 0 : index
    %379 = vector.load %arg21[%c21, %c0_209] : memref<72x32xf32, #tpu.memory_space<vmem>>, vector<1x32xf32>
    %380 = vector.shape_cast %379 : vector<1x32xf32> to vector<32xf32>
    %c0_210 = arith.constant 0 : index
    %c640 = arith.constant 640 : index
    %381 = vector.load %arg22[%c0_210, %c640] : memref<2x1088xf32, #tpu.memory_space<vmem>>, vector<1x32xf32>
    %382 = vector.shape_cast %381 : vector<1x32xf32> to vector<32xf32>
    %383 = vector.shape_cast %380 : vector<32xf32> to vector<1x32xf32>
    tpu.vector_store %arg22[%c0_210, %c640], %383 {strides = array<i32>} : memref<2x1088xf32, #tpu.memory_space<vmem>>, vector<1x32xf32>,
    %c22 = arith.constant 22 : index
    %c0_211 = arith.constant 0 : index
    %384 = vector.load %arg21[%c22, %c0_211] : memref<72x32xf32, #tpu.memory_space<vmem>>, vector<1x32xf32>
    %385 = vector.shape_cast %384 : vector<1x32xf32> to vector<32xf32>
    %c0_212 = arith.constant 0 : index
    %c672 = arith.constant 672 : index
    %386 = vector.load %arg22[%c0_212, %c672] : memref<2x1088xf32, #tpu.memory_space<vmem>>, vector<1x32xf32>
    %387 = vector.shape_cast %386 : vector<1x32xf32> to vector<32xf32>
    %388 = vector.shape_cast %385 : vector<32xf32> to vector<1x32xf32>
    tpu.vector_store %arg22[%c0_212, %c672], %388 {strides = array<i32>} : memref<2x1088xf32, #tpu.memory_space<vmem>>, vector<1x32xf32>,
    %c23 = arith.constant 23 : index
    %c0_213 = arith.constant 0 : index
    %389 = vector.load %arg21[%c23, %c0_213] : memref<72x32xf32, #tpu.memory_space<vmem>>, vector<1x32xf32>
    %390 = vector.shape_cast %389 : vector<1x32xf32> to vector<32xf32>
    %c0_214 = arith.constant 0 : index
    %c704 = arith.constant 704 : index
    %391 = vector.load %arg22[%c0_214, %c704] : memref<2x1088xf32, #tpu.memory_space<vmem>>, vector<1x32xf32>
    %392 = vector.shape_cast %391 : vector<1x32xf32> to vector<32xf32>
    %393 = vector.shape_cast %390 : vector<32xf32> to vector<1x32xf32>
    tpu.vector_store %arg22[%c0_214, %c704], %393 {strides = array<i32>} : memref<2x1088xf32, #tpu.memory_space<vmem>>, vector<1x32xf32>,
    %c24 = arith.constant 24 : index
    %c0_215 = arith.constant 0 : index
    %394 = vector.load %arg21[%c24, %c0_215] : memref<72x32xf32, #tpu.memory_space<vmem>>, vector<1x32xf32>
    %395 = vector.shape_cast %394 : vector<1x32xf32> to vector<32xf32>
    %c0_216 = arith.constant 0 : index
    %c736 = arith.constant 736 : index
    %396 = vector.load %arg22[%c0_216, %c736] : memref<2x1088xf32, #tpu.memory_space<vmem>>, vector<1x32xf32>
    %397 = vector.shape_cast %396 : vector<1x32xf32> to vector<32xf32>
    %398 = vector.shape_cast %395 : vector<32xf32> to vector<1x32xf32>
    tpu.vector_store %arg22[%c0_216, %c736], %398 {strides = array<i32>} : memref<2x1088xf32, #tpu.memory_space<vmem>>, vector<1x32xf32>,
    %c25 = arith.constant 25 : index
    %c0_217 = arith.constant 0 : index
    %399 = vector.load %arg21[%c25, %c0_217] : memref<72x32xf32, #tpu.memory_space<vmem>>, vector<1x32xf32>
    %400 = vector.shape_cast %399 : vector<1x32xf32> to vector<32xf32>
    %c0_218 = arith.constant 0 : index
    %c768 = arith.constant 768 : index
    %401 = vector.load %arg22[%c0_218, %c768] : memref<2x1088xf32, #tpu.memory_space<vmem>>, vector<1x32xf32>
    %402 = vector.shape_cast %401 : vector<1x32xf32> to vector<32xf32>
    %403 = vector.shape_cast %400 : vector<32xf32> to vector<1x32xf32>
    tpu.vector_store %arg22[%c0_218, %c768], %403 {strides = array<i32>} : memref<2x1088xf32, #tpu.memory_space<vmem>>, vector<1x32xf32>,
    %c26 = arith.constant 26 : index
    %c0_219 = arith.constant 0 : index
    %404 = vector.load %arg21[%c26, %c0_219] : memref<72x32xf32, #tpu.memory_space<vmem>>, vector<1x32xf32>
    %405 = vector.shape_cast %404 : vector<1x32xf32> to vector<32xf32>
    %c0_220 = arith.constant 0 : index
    %c800 = arith.constant 800 : index
    %406 = vector.load %arg22[%c0_220, %c800] : memref<2x1088xf32, #tpu.memory_space<vmem>>, vector<1x32xf32>
    %407 = vector.shape_cast %406 : vector<1x32xf32> to vector<32xf32>
    %408 = vector.shape_cast %405 : vector<32xf32> to vector<1x32xf32>
    tpu.vector_store %arg22[%c0_220, %c800], %408 {strides = array<i32>} : memref<2x1088xf32, #tpu.memory_space<vmem>>, vector<1x32xf32>,
    %c27 = arith.constant 27 : index
    %c0_221 = arith.constant 0 : index
    %409 = vector.load %arg21[%c27, %c0_221] : memref<72x32xf32, #tpu.memory_space<vmem>>, vector<1x32xf32>
    %410 = vector.shape_cast %409 : vector<1x32xf32> to vector<32xf32>
    %c0_222 = arith.constant 0 : index
    %c832 = arith.constant 832 : index
    %411 = vector.load %arg22[%c0_222, %c832] : memref<2x1088xf32, #tpu.memory_space<vmem>>, vector<1x32xf32>
    %412 = vector.shape_cast %411 : vector<1x32xf32> to vector<32xf32>
    %413 = vector.shape_cast %410 : vector<32xf32> to vector<1x32xf32>
    tpu.vector_store %arg22[%c0_222, %c832], %413 {strides = array<i32>} : memref<2x1088xf32, #tpu.memory_space<vmem>>, vector<1x32xf32>,
    %c28 = arith.constant 28 : index
    %c0_223 = arith.constant 0 : index
    %414 = vector.load %arg21[%c28, %c0_223] : memref<72x32xf32, #tpu.memory_space<vmem>>, vector<1x32xf32>
    %415 = vector.shape_cast %414 : vector<1x32xf32> to vector<32xf32>
    %c0_224 = arith.constant 0 : index
    %c864 = arith.constant 864 : index
    %416 = vector.load %arg22[%c0_224, %c864] : memref<2x1088xf32, #tpu.memory_space<vmem>>, vector<1x32xf32>
    %417 = vector.shape_cast %416 : vector<1x32xf32> to vector<32xf32>
    %418 = vector.shape_cast %415 : vector<32xf32> to vector<1x32xf32>
    tpu.vector_store %arg22[%c0_224, %c864], %418 {strides = array<i32>} : memref<2x1088xf32, #tpu.memory_space<vmem>>, vector<1x32xf32>,
    %c29 = arith.constant 29 : index
    %c0_225 = arith.constant 0 : index
    %419 = vector.load %arg21[%c29, %c0_225] : memref<72x32xf32, #tpu.memory_space<vmem>>, vector<1x32xf32>
    %420 = vector.shape_cast %419 : vector<1x32xf32> to vector<32xf32>
    %c0_226 = arith.constant 0 : index
    %c896 = arith.constant 896 : index
    %421 = vector.load %arg22[%c0_226, %c896] : memref<2x1088xf32, #tpu.memory_space<vmem>>, vector<1x32xf32>
    %422 = vector.shape_cast %421 : vector<1x32xf32> to vector<32xf32>
    %423 = vector.shape_cast %420 : vector<32xf32> to vector<1x32xf32>
    tpu.vector_store %arg22[%c0_226, %c896], %423 {strides = array<i32>} : memref<2x1088xf32, #tpu.memory_space<vmem>>, vector<1x32xf32>,
    %c30 = arith.constant 30 : index
    %c0_227 = arith.constant 0 : index
    %424 = vector.load %arg21[%c30, %c0_227] : memref<72x32xf32, #tpu.memory_space<vmem>>, vector<1x32xf32>
    %425 = vector.shape_cast %424 : vector<1x32xf32> to vector<32xf32>
    %c0_228 = arith.constant 0 : index
    %c928 = arith.constant 928 : index
    %426 = vector.load %arg22[%c0_228, %c928] : memref<2x1088xf32, #tpu.memory_space<vmem>>, vector<1x32xf32>
    %427 = vector.shape_cast %426 : vector<1x32xf32> to vector<32xf32>
    %428 = vector.shape_cast %425 : vector<32xf32> to vector<1x32xf32>
    tpu.vector_store %arg22[%c0_228, %c928], %428 {strides = array<i32>} : memref<2x1088xf32, #tpu.memory_space<vmem>>, vector<1x32xf32>,
    %c31 = arith.constant 31 : index
    %c0_229 = arith.constant 0 : index
    %429 = vector.load %arg21[%c31, %c0_229] : memref<72x32xf32, #tpu.memory_space<vmem>>, vector<1x32xf32>
    %430 = vector.shape_cast %429 : vector<1x32xf32> to vector<32xf32>
    %c0_230 = arith.constant 0 : index
    %c960 = arith.constant 960 : index
    %431 = vector.load %arg22[%c0_230, %c960] : memref<2x1088xf32, #tpu.memory_space<vmem>>, vector<1x32xf32>
    %432 = vector.shape_cast %431 : vector<1x32xf32> to vector<32xf32>
    %433 = vector.shape_cast %430 : vector<32xf32> to vector<1x32xf32>
    tpu.vector_store %arg22[%c0_230, %c960], %433 {strides = array<i32>} : memref<2x1088xf32, #tpu.memory_space<vmem>>, vector<1x32xf32>,
    %c32_231 = arith.constant 32 : index
    %c0_232 = arith.constant 0 : index
    %434 = vector.load %arg21[%c32_231, %c0_232] : memref<72x32xf32, #tpu.memory_space<vmem>>, vector<1x32xf32>
    %435 = vector.shape_cast %434 : vector<1x32xf32> to vector<32xf32>
    %c0_233 = arith.constant 0 : index
    %c992 = arith.constant 992 : index
    %436 = vector.load %arg22[%c0_233, %c992] : memref<2x1088xf32, #tpu.memory_space<vmem>>, vector<1x32xf32>
    %437 = vector.shape_cast %436 : vector<1x32xf32> to vector<32xf32>
    %438 = vector.shape_cast %435 : vector<32xf32> to vector<1x32xf32>
    tpu.vector_store %arg22[%c0_233, %c992], %438 {strides = array<i32>} : memref<2x1088xf32, #tpu.memory_space<vmem>>, vector<1x32xf32>,
    %c33 = arith.constant 33 : index
    %c0_234 = arith.constant 0 : index
    %439 = vector.load %arg21[%c33, %c0_234] : memref<72x32xf32, #tpu.memory_space<vmem>>, vector<1x32xf32>
    %440 = vector.shape_cast %439 : vector<1x32xf32> to vector<32xf32>
    %c0_235 = arith.constant 0 : index
    %c1024 = arith.constant 1024 : index
    %441 = vector.load %arg22[%c0_235, %c1024] : memref<2x1088xf32, #tpu.memory_space<vmem>>, vector<1x32xf32>
    %442 = vector.shape_cast %441 : vector<1x32xf32> to vector<32xf32>
    %443 = vector.shape_cast %440 : vector<32xf32> to vector<1x32xf32>
    tpu.vector_store %arg22[%c0_235, %c1024], %443 {strides = array<i32>} : memref<2x1088xf32, #tpu.memory_space<vmem>>, vector<1x32xf32>,
    %c34 = arith.constant 34 : index
    %c0_236 = arith.constant 0 : index
    %444 = vector.load %arg21[%c34, %c0_236] : memref<72x32xf32, #tpu.memory_space<vmem>>, vector<1x32xf32>
    %445 = vector.shape_cast %444 : vector<1x32xf32> to vector<32xf32>
    %c0_237 = arith.constant 0 : index
    %c1056 = arith.constant 1056 : index
    %446 = vector.load %arg22[%c0_237, %c1056] : memref<2x1088xf32, #tpu.memory_space<vmem>>, vector<1x32xf32>
    %447 = vector.shape_cast %446 : vector<1x32xf32> to vector<32xf32>
    %448 = vector.shape_cast %445 : vector<32xf32> to vector<1x32xf32>
    tpu.vector_store %arg22[%c0_237, %c1056], %448 {strides = array<i32>} : memref<2x1088xf32, #tpu.memory_space<vmem>>, vector<1x32xf32>,
    %c37 = arith.constant 37 : index
    %c0_238 = arith.constant 0 : index
    %449 = vector.load %arg21[%c37, %c0_238] : memref<72x32xf32, #tpu.memory_space<vmem>>, vector<1x32xf32>
    %450 = vector.shape_cast %449 : vector<1x32xf32> to vector<32xf32>
    %c1_239 = arith.constant 1 : index
    %c0_240 = arith.constant 0 : index
    %451 = vector.load %arg22[%c1_239, %c0_240] : memref<2x1088xf32, #tpu.memory_space<vmem>>, vector<1x32xf32>
    %452 = vector.shape_cast %451 : vector<1x32xf32> to vector<32xf32>
    %453 = vector.shape_cast %450 : vector<32xf32> to vector<1x32xf32>
    tpu.vector_store %arg22[%c1_239, %c0_240], %453 {strides = array<i32>} : memref<2x1088xf32, #tpu.memory_space<vmem>>, vector<1x32xf32>,
    %c38 = arith.constant 38 : index
    %c0_241 = arith.constant 0 : index
    %454 = vector.load %arg21[%c38, %c0_241] : memref<72x32xf32, #tpu.memory_space<vmem>>, vector<1x32xf32>
    %455 = vector.shape_cast %454 : vector<1x32xf32> to vector<32xf32>
    %c1_242 = arith.constant 1 : index
    %c32_243 = arith.constant 32 : index
    %456 = vector.load %arg22[%c1_242, %c32_243] : memref<2x1088xf32, #tpu.memory_space<vmem>>, vector<1x32xf32>
    %457 = vector.shape_cast %456 : vector<1x32xf32> to vector<32xf32>
    %458 = vector.shape_cast %455 : vector<32xf32> to vector<1x32xf32>
    tpu.vector_store %arg22[%c1_242, %c32_243], %458 {strides = array<i32>} : memref<2x1088xf32, #tpu.memory_space<vmem>>, vector<1x32xf32>,
    %c39 = arith.constant 39 : index
    %c0_244 = arith.constant 0 : index
    %459 = vector.load %arg21[%c39, %c0_244] : memref<72x32xf32, #tpu.memory_space<vmem>>, vector<1x32xf32>
    %460 = vector.shape_cast %459 : vector<1x32xf32> to vector<32xf32>
    %c1_245 = arith.constant 1 : index
    %c64_246 = arith.constant 64 : index
    %461 = vector.load %arg22[%c1_245, %c64_246] : memref<2x1088xf32, #tpu.memory_space<vmem>>, vector<1x32xf32>
    %462 = vector.shape_cast %461 : vector<1x32xf32> to vector<32xf32>
    %463 = vector.shape_cast %460 : vector<32xf32> to vector<1x32xf32>
    tpu.vector_store %arg22[%c1_245, %c64_246], %463 {strides = array<i32>} : memref<2x1088xf32, #tpu.memory_space<vmem>>, vector<1x32xf32>,
    %c40 = arith.constant 40 : index
    %c0_247 = arith.constant 0 : index
    %464 = vector.load %arg21[%c40, %c0_247] : memref<72x32xf32, #tpu.memory_space<vmem>>, vector<1x32xf32>
    %465 = vector.shape_cast %464 : vector<1x32xf32> to vector<32xf32>
    %c1_248 = arith.constant 1 : index
    %c96_249 = arith.constant 96 : index
    %466 = vector.load %arg22[%c1_248, %c96_249] : memref<2x1088xf32, #tpu.memory_space<vmem>>, vector<1x32xf32>
    %467 = vector.shape_cast %466 : vector<1x32xf32> to vector<32xf32>
    %468 = vector.shape_cast %465 : vector<32xf32> to vector<1x32xf32>
    tpu.vector_store %arg22[%c1_248, %c96_249], %468 {strides = array<i32>} : memref<2x1088xf32, #tpu.memory_space<vmem>>, vector<1x32xf32>,
    %c41 = arith.constant 41 : index
    %c0_250 = arith.constant 0 : index
    %469 = vector.load %arg21[%c41, %c0_250] : memref<72x32xf32, #tpu.memory_space<vmem>>, vector<1x32xf32>
    %470 = vector.shape_cast %469 : vector<1x32xf32> to vector<32xf32>
    %c1_251 = arith.constant 1 : index
    %c128_252 = arith.constant 128 : index
    %471 = vector.load %arg22[%c1_251, %c128_252] : memref<2x1088xf32, #tpu.memory_space<vmem>>, vector<1x32xf32>
    %472 = vector.shape_cast %471 : vector<1x32xf32> to vector<32xf32>
    %473 = vector.shape_cast %470 : vector<32xf32> to vector<1x32xf32>
    tpu.vector_store %arg22[%c1_251, %c128_252], %473 {strides = array<i32>} : memref<2x1088xf32, #tpu.memory_space<vmem>>, vector<1x32xf32>,
    %c42 = arith.constant 42 : index
    %c0_253 = arith.constant 0 : index
    %474 = vector.load %arg21[%c42, %c0_253] : memref<72x32xf32, #tpu.memory_space<vmem>>, vector<1x32xf32>
    %475 = vector.shape_cast %474 : vector<1x32xf32> to vector<32xf32>
    %c1_254 = arith.constant 1 : index
    %c160_255 = arith.constant 160 : index
    %476 = vector.load %arg22[%c1_254, %c160_255] : memref<2x1088xf32, #tpu.memory_space<vmem>>, vector<1x32xf32>
    %477 = vector.shape_cast %476 : vector<1x32xf32> to vector<32xf32>
    %478 = vector.shape_cast %475 : vector<32xf32> to vector<1x32xf32>
    tpu.vector_store %arg22[%c1_254, %c160_255], %478 {strides = array<i32>} : memref<2x1088xf32, #tpu.memory_space<vmem>>, vector<1x32xf32>,
    %c43 = arith.constant 43 : index
    %c0_256 = arith.constant 0 : index
    %479 = vector.load %arg21[%c43, %c0_256] : memref<72x32xf32, #tpu.memory_space<vmem>>, vector<1x32xf32>
    %480 = vector.shape_cast %479 : vector<1x32xf32> to vector<32xf32>
    %c1_257 = arith.constant 1 : index
    %c192_258 = arith.constant 192 : index
    %481 = vector.load %arg22[%c1_257, %c192_258] : memref<2x1088xf32, #tpu.memory_space<vmem>>, vector<1x32xf32>
    %482 = vector.shape_cast %481 : vector<1x32xf32> to vector<32xf32>
    %483 = vector.shape_cast %480 : vector<32xf32> to vector<1x32xf32>
    tpu.vector_store %arg22[%c1_257, %c192_258], %483 {strides = array<i32>} : memref<2x1088xf32, #tpu.memory_space<vmem>>, vector<1x32xf32>,
    %c44 = arith.constant 44 : index
    %c0_259 = arith.constant 0 : index
    %484 = vector.load %arg21[%c44, %c0_259] : memref<72x32xf32, #tpu.memory_space<vmem>>, vector<1x32xf32>
    %485 = vector.shape_cast %484 : vector<1x32xf32> to vector<32xf32>
    %c1_260 = arith.constant 1 : index
    %c224_261 = arith.constant 224 : index
    %486 = vector.load %arg22[%c1_260, %c224_261] : memref<2x1088xf32, #tpu.memory_space<vmem>>, vector<1x32xf32>
    %487 = vector.shape_cast %486 : vector<1x32xf32> to vector<32xf32>
    %488 = vector.shape_cast %485 : vector<32xf32> to vector<1x32xf32>
    tpu.vector_store %arg22[%c1_260, %c224_261], %488 {strides = array<i32>} : memref<2x1088xf32, #tpu.memory_space<vmem>>, vector<1x32xf32>,
    %c45 = arith.constant 45 : index
    %c0_262 = arith.constant 0 : index
    %489 = vector.load %arg21[%c45, %c0_262] : memref<72x32xf32, #tpu.memory_space<vmem>>, vector<1x32xf32>
    %490 = vector.shape_cast %489 : vector<1x32xf32> to vector<32xf32>
    %c1_263 = arith.constant 1 : index
    %c256_264 = arith.constant 256 : index
    %491 = vector.load %arg22[%c1_263, %c256_264] : memref<2x1088xf32, #tpu.memory_space<vmem>>, vector<1x32xf32>
    %492 = vector.shape_cast %491 : vector<1x32xf32> to vector<32xf32>
    %493 = vector.shape_cast %490 : vector<32xf32> to vector<1x32xf32>
    tpu.vector_store %arg22[%c1_263, %c256_264], %493 {strides = array<i32>} : memref<2x1088xf32, #tpu.memory_space<vmem>>, vector<1x32xf32>,
    %c46 = arith.constant 46 : index
    %c0_265 = arith.constant 0 : index
    %494 = vector.load %arg21[%c46, %c0_265] : memref<72x32xf32, #tpu.memory_space<vmem>>, vector<1x32xf32>
    %495 = vector.shape_cast %494 : vector<1x32xf32> to vector<32xf32>
    %c1_266 = arith.constant 1 : index
    %c288_267 = arith.constant 288 : index
    %496 = vector.load %arg22[%c1_266, %c288_267] : memref<2x1088xf32, #tpu.memory_space<vmem>>, vector<1x32xf32>
    %497 = vector.shape_cast %496 : vector<1x32xf32> to vector<32xf32>
    %498 = vector.shape_cast %495 : vector<32xf32> to vector<1x32xf32>
    tpu.vector_store %arg22[%c1_266, %c288_267], %498 {strides = array<i32>} : memref<2x1088xf32, #tpu.memory_space<vmem>>, vector<1x32xf32>,
    %c47 = arith.constant 47 : index
    %c0_268 = arith.constant 0 : index
    %499 = vector.load %arg21[%c47, %c0_268] : memref<72x32xf32, #tpu.memory_space<vmem>>, vector<1x32xf32>
    %500 = vector.shape_cast %499 : vector<1x32xf32> to vector<32xf32>
    %c1_269 = arith.constant 1 : index
    %c320_270 = arith.constant 320 : index
    %501 = vector.load %arg22[%c1_269, %c320_270] : memref<2x1088xf32, #tpu.memory_space<vmem>>, vector<1x32xf32>
    %502 = vector.shape_cast %501 : vector<1x32xf32> to vector<32xf32>
    %503 = vector.shape_cast %500 : vector<32xf32> to vector<1x32xf32>
    tpu.vector_store %arg22[%c1_269, %c320_270], %503 {strides = array<i32>} : memref<2x1088xf32, #tpu.memory_space<vmem>>, vector<1x32xf32>,
    %c48 = arith.constant 48 : index
    %c0_271 = arith.constant 0 : index
    %504 = vector.load %arg21[%c48, %c0_271] : memref<72x32xf32, #tpu.memory_space<vmem>>, vector<1x32xf32>
    %505 = vector.shape_cast %504 : vector<1x32xf32> to vector<32xf32>
    %c1_272 = arith.constant 1 : index
    %c352_273 = arith.constant 352 : index
    %506 = vector.load %arg22[%c1_272, %c352_273] : memref<2x1088xf32, #tpu.memory_space<vmem>>, vector<1x32xf32>
    %507 = vector.shape_cast %506 : vector<1x32xf32> to vector<32xf32>
    %508 = vector.shape_cast %505 : vector<32xf32> to vector<1x32xf32>
    tpu.vector_store %arg22[%c1_272, %c352_273], %508 {strides = array<i32>} : memref<2x1088xf32, #tpu.memory_space<vmem>>, vector<1x32xf32>,
    %c49 = arith.constant 49 : index
    %c0_274 = arith.constant 0 : index
    %509 = vector.load %arg21[%c49, %c0_274] : memref<72x32xf32, #tpu.memory_space<vmem>>, vector<1x32xf32>
    %510 = vector.shape_cast %509 : vector<1x32xf32> to vector<32xf32>
    %c1_275 = arith.constant 1 : index
    %c384_276 = arith.constant 384 : index
    %511 = vector.load %arg22[%c1_275, %c384_276] : memref<2x1088xf32, #tpu.memory_space<vmem>>, vector<1x32xf32>
    %512 = vector.shape_cast %511 : vector<1x32xf32> to vector<32xf32>
    %513 = vector.shape_cast %510 : vector<32xf32> to vector<1x32xf32>
    tpu.vector_store %arg22[%c1_275, %c384_276], %513 {strides = array<i32>} : memref<2x1088xf32, #tpu.memory_space<vmem>>, vector<1x32xf32>,
    %c50 = arith.constant 50 : index
    %c0_277 = arith.constant 0 : index
    %514 = vector.load %arg21[%c50, %c0_277] : memref<72x32xf32, #tpu.memory_space<vmem>>, vector<1x32xf32>
    %515 = vector.shape_cast %514 : vector<1x32xf32> to vector<32xf32>
    %c1_278 = arith.constant 1 : index
    %c416_279 = arith.constant 416 : index
    %516 = vector.load %arg22[%c1_278, %c416_279] : memref<2x1088xf32, #tpu.memory_space<vmem>>, vector<1x32xf32>
    %517 = vector.shape_cast %516 : vector<1x32xf32> to vector<32xf32>
    %518 = vector.shape_cast %515 : vector<32xf32> to vector<1x32xf32>
    tpu.vector_store %arg22[%c1_278, %c416_279], %518 {strides = array<i32>} : memref<2x1088xf32, #tpu.memory_space<vmem>>, vector<1x32xf32>,
    %c51 = arith.constant 51 : index
    %c0_280 = arith.constant 0 : index
    %519 = vector.load %arg21[%c51, %c0_280] : memref<72x32xf32, #tpu.memory_space<vmem>>, vector<1x32xf32>
    %520 = vector.shape_cast %519 : vector<1x32xf32> to vector<32xf32>
    %c1_281 = arith.constant 1 : index
    %c448_282 = arith.constant 448 : index
    %521 = vector.load %arg22[%c1_281, %c448_282] : memref<2x1088xf32, #tpu.memory_space<vmem>>, vector<1x32xf32>
    %522 = vector.shape_cast %521 : vector<1x32xf32> to vector<32xf32>
    %523 = vector.shape_cast %520 : vector<32xf32> to vector<1x32xf32>
    tpu.vector_store %arg22[%c1_281, %c448_282], %523 {strides = array<i32>} : memref<2x1088xf32, #tpu.memory_space<vmem>>, vector<1x32xf32>,
    %c52 = arith.constant 52 : index
    %c0_283 = arith.constant 0 : index
    %524 = vector.load %arg21[%c52, %c0_283] : memref<72x32xf32, #tpu.memory_space<vmem>>, vector<1x32xf32>
    %525 = vector.shape_cast %524 : vector<1x32xf32> to vector<32xf32>
    %c1_284 = arith.constant 1 : index
    %c480_285 = arith.constant 480 : index
    %526 = vector.load %arg22[%c1_284, %c480_285] : memref<2x1088xf32, #tpu.memory_space<vmem>>, vector<1x32xf32>
    %527 = vector.shape_cast %526 : vector<1x32xf32> to vector<32xf32>
    %528 = vector.shape_cast %525 : vector<32xf32> to vector<1x32xf32>
    tpu.vector_store %arg22[%c1_284, %c480_285], %528 {strides = array<i32>} : memref<2x1088xf32, #tpu.memory_space<vmem>>, vector<1x32xf32>,
    %c53 = arith.constant 53 : index
    %c0_286 = arith.constant 0 : index
    %529 = vector.load %arg21[%c53, %c0_286] : memref<72x32xf32, #tpu.memory_space<vmem>>, vector<1x32xf32>
    %530 = vector.shape_cast %529 : vector<1x32xf32> to vector<32xf32>
    %c1_287 = arith.constant 1 : index
    %c512_288 = arith.constant 512 : index
    %531 = vector.load %arg22[%c1_287, %c512_288] : memref<2x1088xf32, #tpu.memory_space<vmem>>, vector<1x32xf32>
    %532 = vector.shape_cast %531 : vector<1x32xf32> to vector<32xf32>
    %533 = vector.shape_cast %530 : vector<32xf32> to vector<1x32xf32>
    tpu.vector_store %arg22[%c1_287, %c512_288], %533 {strides = array<i32>} : memref<2x1088xf32, #tpu.memory_space<vmem>>, vector<1x32xf32>,
    %c54 = arith.constant 54 : index
    %c0_289 = arith.constant 0 : index
    %534 = vector.load %arg21[%c54, %c0_289] : memref<72x32xf32, #tpu.memory_space<vmem>>, vector<1x32xf32>
    %535 = vector.shape_cast %534 : vector<1x32xf32> to vector<32xf32>
    %c1_290 = arith.constant 1 : index
    %c544_291 = arith.constant 544 : index
    %536 = vector.load %arg22[%c1_290, %c544_291] : memref<2x1088xf32, #tpu.memory_space<vmem>>, vector<1x32xf32>
    %537 = vector.shape_cast %536 : vector<1x32xf32> to vector<32xf32>
    %538 = vector.shape_cast %535 : vector<32xf32> to vector<1x32xf32>
    tpu.vector_store %arg22[%c1_290, %c544_291], %538 {strides = array<i32>} : memref<2x1088xf32, #tpu.memory_space<vmem>>, vector<1x32xf32>,
    %c55 = arith.constant 55 : index
    %c0_292 = arith.constant 0 : index
    %539 = vector.load %arg21[%c55, %c0_292] : memref<72x32xf32, #tpu.memory_space<vmem>>, vector<1x32xf32>
    %540 = vector.shape_cast %539 : vector<1x32xf32> to vector<32xf32>
    %c1_293 = arith.constant 1 : index
    %c576_294 = arith.constant 576 : index
    %541 = vector.load %arg22[%c1_293, %c576_294] : memref<2x1088xf32, #tpu.memory_space<vmem>>, vector<1x32xf32>
    %542 = vector.shape_cast %541 : vector<1x32xf32> to vector<32xf32>
    %543 = vector.shape_cast %540 : vector<32xf32> to vector<1x32xf32>
    tpu.vector_store %arg22[%c1_293, %c576_294], %543 {strides = array<i32>} : memref<2x1088xf32, #tpu.memory_space<vmem>>, vector<1x32xf32>,
    %c56 = arith.constant 56 : index
    %c0_295 = arith.constant 0 : index
    %544 = vector.load %arg21[%c56, %c0_295] : memref<72x32xf32, #tpu.memory_space<vmem>>, vector<1x32xf32>
    %545 = vector.shape_cast %544 : vector<1x32xf32> to vector<32xf32>
    %c1_296 = arith.constant 1 : index
    %c608_297 = arith.constant 608 : index
    %546 = vector.load %arg22[%c1_296, %c608_297] : memref<2x1088xf32, #tpu.memory_space<vmem>>, vector<1x32xf32>
    %547 = vector.shape_cast %546 : vector<1x32xf32> to vector<32xf32>
    %548 = vector.shape_cast %545 : vector<32xf32> to vector<1x32xf32>
    tpu.vector_store %arg22[%c1_296, %c608_297], %548 {strides = array<i32>} : memref<2x1088xf32, #tpu.memory_space<vmem>>, vector<1x32xf32>,
    %c57 = arith.constant 57 : index
    %c0_298 = arith.constant 0 : index
    %549 = vector.load %arg21[%c57, %c0_298] : memref<72x32xf32, #tpu.memory_space<vmem>>, vector<1x32xf32>
    %550 = vector.shape_cast %549 : vector<1x32xf32> to vector<32xf32>
    %c1_299 = arith.constant 1 : index
    %c640_300 = arith.constant 640 : index
    %551 = vector.load %arg22[%c1_299, %c640_300] : memref<2x1088xf32, #tpu.memory_space<vmem>>, vector<1x32xf32>
    %552 = vector.shape_cast %551 : vector<1x32xf32> to vector<32xf32>
    %553 = vector.shape_cast %550 : vector<32xf32> to vector<1x32xf32>
    tpu.vector_store %arg22[%c1_299, %c640_300], %553 {strides = array<i32>} : memref<2x1088xf32, #tpu.memory_space<vmem>>, vector<1x32xf32>,
    %c58 = arith.constant 58 : index
    %c0_301 = arith.constant 0 : index
    %554 = vector.load %arg21[%c58, %c0_301] : memref<72x32xf32, #tpu.memory_space<vmem>>, vector<1x32xf32>
    %555 = vector.shape_cast %554 : vector<1x32xf32> to vector<32xf32>
    %c1_302 = arith.constant 1 : index
    %c672_303 = arith.constant 672 : index
    %556 = vector.load %arg22[%c1_302, %c672_303] : memref<2x1088xf32, #tpu.memory_space<vmem>>, vector<1x32xf32>
    %557 = vector.shape_cast %556 : vector<1x32xf32> to vector<32xf32>
    %558 = vector.shape_cast %555 : vector<32xf32> to vector<1x32xf32>
    tpu.vector_store %arg22[%c1_302, %c672_303], %558 {strides = array<i32>} : memref<2x1088xf32, #tpu.memory_space<vmem>>, vector<1x32xf32>,
    %c59 = arith.constant 59 : index
    %c0_304 = arith.constant 0 : index
    %559 = vector.load %arg21[%c59, %c0_304] : memref<72x32xf32, #tpu.memory_space<vmem>>, vector<1x32xf32>
    %560 = vector.shape_cast %559 : vector<1x32xf32> to vector<32xf32>
    %c1_305 = arith.constant 1 : index
    %c704_306 = arith.constant 704 : index
    %561 = vector.load %arg22[%c1_305, %c704_306] : memref<2x1088xf32, #tpu.memory_space<vmem>>, vector<1x32xf32>
    %562 = vector.shape_cast %561 : vector<1x32xf32> to vector<32xf32>
    %563 = vector.shape_cast %560 : vector<32xf32> to vector<1x32xf32>
    tpu.vector_store %arg22[%c1_305, %c704_306], %563 {strides = array<i32>} : memref<2x1088xf32, #tpu.memory_space<vmem>>, vector<1x32xf32>,
    %c60 = arith.constant 60 : index
    %c0_307 = arith.constant 0 : index
    %564 = vector.load %arg21[%c60, %c0_307] : memref<72x32xf32, #tpu.memory_space<vmem>>, vector<1x32xf32>
    %565 = vector.shape_cast %564 : vector<1x32xf32> to vector<32xf32>
    %c1_308 = arith.constant 1 : index
    %c736_309 = arith.constant 736 : index
    %566 = vector.load %arg22[%c1_308, %c736_309] : memref<2x1088xf32, #tpu.memory_space<vmem>>, vector<1x32xf32>
    %567 = vector.shape_cast %566 : vector<1x32xf32> to vector<32xf32>
    %568 = vector.shape_cast %565 : vector<32xf32> to vector<1x32xf32>
    tpu.vector_store %arg22[%c1_308, %c736_309], %568 {strides = array<i32>} : memref<2x1088xf32, #tpu.memory_space<vmem>>, vector<1x32xf32>,
    %c61 = arith.constant 61 : index
    %c0_310 = arith.constant 0 : index
    %569 = vector.load %arg21[%c61, %c0_310] : memref<72x32xf32, #tpu.memory_space<vmem>>, vector<1x32xf32>
    %570 = vector.shape_cast %569 : vector<1x32xf32> to vector<32xf32>
    %c1_311 = arith.constant 1 : index
    %c768_312 = arith.constant 768 : index
    %571 = vector.load %arg22[%c1_311, %c768_312] : memref<2x1088xf32, #tpu.memory_space<vmem>>, vector<1x32xf32>
    %572 = vector.shape_cast %571 : vector<1x32xf32> to vector<32xf32>
    %573 = vector.shape_cast %570 : vector<32xf32> to vector<1x32xf32>
    tpu.vector_store %arg22[%c1_311, %c768_312], %573 {strides = array<i32>} : memref<2x1088xf32, #tpu.memory_space<vmem>>, vector<1x32xf32>,
    %c62 = arith.constant 62 : index
    %c0_313 = arith.constant 0 : index
    %574 = vector.load %arg21[%c62, %c0_313] : memref<72x32xf32, #tpu.memory_space<vmem>>, vector<1x32xf32>
    %575 = vector.shape_cast %574 : vector<1x32xf32> to vector<32xf32>
    %c1_314 = arith.constant 1 : index
    %c800_315 = arith.constant 800 : index
    %576 = vector.load %arg22[%c1_314, %c800_315] : memref<2x1088xf32, #tpu.memory_space<vmem>>, vector<1x32xf32>
    %577 = vector.shape_cast %576 : vector<1x32xf32> to vector<32xf32>
    %578 = vector.shape_cast %575 : vector<32xf32> to vector<1x32xf32>
    tpu.vector_store %arg22[%c1_314, %c800_315], %578 {strides = array<i32>} : memref<2x1088xf32, #tpu.memory_space<vmem>>, vector<1x32xf32>,
    %c63 = arith.constant 63 : index
    %c0_316 = arith.constant 0 : index
    %579 = vector.load %arg21[%c63, %c0_316] : memref<72x32xf32, #tpu.memory_space<vmem>>, vector<1x32xf32>
    %580 = vector.shape_cast %579 : vector<1x32xf32> to vector<32xf32>
    %c1_317 = arith.constant 1 : index
    %c832_318 = arith.constant 832 : index
    %581 = vector.load %arg22[%c1_317, %c832_318] : memref<2x1088xf32, #tpu.memory_space<vmem>>, vector<1x32xf32>
    %582 = vector.shape_cast %581 : vector<1x32xf32> to vector<32xf32>
    %583 = vector.shape_cast %580 : vector<32xf32> to vector<1x32xf32>
    tpu.vector_store %arg22[%c1_317, %c832_318], %583 {strides = array<i32>} : memref<2x1088xf32, #tpu.memory_space<vmem>>, vector<1x32xf32>,
    %c64_319 = arith.constant 64 : index
    %c0_320 = arith.constant 0 : index
    %584 = vector.load %arg21[%c64_319, %c0_320] : memref<72x32xf32, #tpu.memory_space<vmem>>, vector<1x32xf32>
    %585 = vector.shape_cast %584 : vector<1x32xf32> to vector<32xf32>
    %c1_321 = arith.constant 1 : index
    %c864_322 = arith.constant 864 : index
    %586 = vector.load %arg22[%c1_321, %c864_322] : memref<2x1088xf32, #tpu.memory_space<vmem>>, vector<1x32xf32>
    %587 = vector.shape_cast %586 : vector<1x32xf32> to vector<32xf32>
    %588 = vector.shape_cast %585 : vector<32xf32> to vector<1x32xf32>
    tpu.vector_store %arg22[%c1_321, %c864_322], %588 {strides = array<i32>} : memref<2x1088xf32, #tpu.memory_space<vmem>>, vector<1x32xf32>,
    %c65 = arith.constant 65 : index
    %c0_323 = arith.constant 0 : index
    %589 = vector.load %arg21[%c65, %c0_323] : memref<72x32xf32, #tpu.memory_space<vmem>>, vector<1x32xf32>
    %590 = vector.shape_cast %589 : vector<1x32xf32> to vector<32xf32>
    %c1_324 = arith.constant 1 : index
    %c896_325 = arith.constant 896 : index
    %591 = vector.load %arg22[%c1_324, %c896_325] : memref<2x1088xf32, #tpu.memory_space<vmem>>, vector<1x32xf32>
    %592 = vector.shape_cast %591 : vector<1x32xf32> to vector<32xf32>
    %593 = vector.shape_cast %590 : vector<32xf32> to vector<1x32xf32>
    tpu.vector_store %arg22[%c1_324, %c896_325], %593 {strides = array<i32>} : memref<2x1088xf32, #tpu.memory_space<vmem>>, vector<1x32xf32>,
    %c66 = arith.constant 66 : index
    %c0_326 = arith.constant 0 : index
    %594 = vector.load %arg21[%c66, %c0_326] : memref<72x32xf32, #tpu.memory_space<vmem>>, vector<1x32xf32>
    %595 = vector.shape_cast %594 : vector<1x32xf32> to vector<32xf32>
    %c1_327 = arith.constant 1 : index
    %c928_328 = arith.constant 928 : index
    %596 = vector.load %arg22[%c1_327, %c928_328] : memref<2x1088xf32, #tpu.memory_space<vmem>>, vector<1x32xf32>
    %597 = vector.shape_cast %596 : vector<1x32xf32> to vector<32xf32>
    %598 = vector.shape_cast %595 : vector<32xf32> to vector<1x32xf32>
    tpu.vector_store %arg22[%c1_327, %c928_328], %598 {strides = array<i32>} : memref<2x1088xf32, #tpu.memory_space<vmem>>, vector<1x32xf32>,
    %c67 = arith.constant 67 : index
    %c0_329 = arith.constant 0 : index
    %599 = vector.load %arg21[%c67, %c0_329] : memref<72x32xf32, #tpu.memory_space<vmem>>, vector<1x32xf32>
    %600 = vector.shape_cast %599 : vector<1x32xf32> to vector<32xf32>
    %c1_330 = arith.constant 1 : index
    %c960_331 = arith.constant 960 : index
    %601 = vector.load %arg22[%c1_330, %c960_331] : memref<2x1088xf32, #tpu.memory_space<vmem>>, vector<1x32xf32>
    %602 = vector.shape_cast %601 : vector<1x32xf32> to vector<32xf32>
    %603 = vector.shape_cast %600 : vector<32xf32> to vector<1x32xf32>
    tpu.vector_store %arg22[%c1_330, %c960_331], %603 {strides = array<i32>} : memref<2x1088xf32, #tpu.memory_space<vmem>>, vector<1x32xf32>,
    %c68 = arith.constant 68 : index
    %c0_332 = arith.constant 0 : index
    %604 = vector.load %arg21[%c68, %c0_332] : memref<72x32xf32, #tpu.memory_space<vmem>>, vector<1x32xf32>
    %605 = vector.shape_cast %604 : vector<1x32xf32> to vector<32xf32>
    %c1_333 = arith.constant 1 : index
    %c992_334 = arith.constant 992 : index
    %606 = vector.load %arg22[%c1_333, %c992_334] : memref<2x1088xf32, #tpu.memory_space<vmem>>, vector<1x32xf32>
    %607 = vector.shape_cast %606 : vector<1x32xf32> to vector<32xf32>
    %608 = vector.shape_cast %605 : vector<32xf32> to vector<1x32xf32>
    tpu.vector_store %arg22[%c1_333, %c992_334], %608 {strides = array<i32>} : memref<2x1088xf32, #tpu.memory_space<vmem>>, vector<1x32xf32>,
    %c69 = arith.constant 69 : index
    %c0_335 = arith.constant 0 : index
    %609 = vector.load %arg21[%c69, %c0_335] : memref<72x32xf32, #tpu.memory_space<vmem>>, vector<1x32xf32>
    %610 = vector.shape_cast %609 : vector<1x32xf32> to vector<32xf32>
    %c1_336 = arith.constant 1 : index
    %c1024_337 = arith.constant 1024 : index
    %611 = vector.load %arg22[%c1_336, %c1024_337] : memref<2x1088xf32, #tpu.memory_space<vmem>>, vector<1x32xf32>
    %612 = vector.shape_cast %611 : vector<1x32xf32> to vector<32xf32>
    %613 = vector.shape_cast %610 : vector<32xf32> to vector<1x32xf32>
    tpu.vector_store %arg22[%c1_336, %c1024_337], %613 {strides = array<i32>} : memref<2x1088xf32, #tpu.memory_space<vmem>>, vector<1x32xf32>,
    %c70 = arith.constant 70 : index
    %c0_338 = arith.constant 0 : index
    %614 = vector.load %arg21[%c70, %c0_338] : memref<72x32xf32, #tpu.memory_space<vmem>>, vector<1x32xf32>
    %615 = vector.shape_cast %614 : vector<1x32xf32> to vector<32xf32>
    %c1_339 = arith.constant 1 : index
    %c1056_340 = arith.constant 1056 : index
    %616 = vector.load %arg22[%c1_339, %c1056_340] : memref<2x1088xf32, #tpu.memory_space<vmem>>, vector<1x32xf32>
    %617 = vector.shape_cast %616 : vector<1x32xf32> to vector<32xf32>
    %618 = vector.shape_cast %615 : vector<32xf32> to vector<1x32xf32>
    tpu.vector_store %arg22[%c1_339, %c1056_340], %618 {strides = array<i32>} : memref<2x1088xf32, #tpu.memory_space<vmem>>, vector<1x32xf32>,
    %c0_i32_341 = arith.constant 0 : i32
    %619 = tpu.memref_slice %arg20[%c0_i32_341] : memref<1x!tpu.dma_semaphore, #tpu.memory_space<semaphore_mem>> -> memref<1x!tpu.dma_semaphore, #tpu.memory_space<semaphore_mem>>
    %620 = tpu.memref_squeeze %619 : memref<1x!tpu.dma_semaphore, #tpu.memory_space<semaphore_mem>> -> memref<!tpu.dma_semaphore, #tpu.memory_space<semaphore_mem>>
    tpu.wait_dma2 semaphore(%620 : memref<!tpu.dma_semaphore, #tpu.memory_space<semaphore_mem>>) src(%arg17 : memref<1088x1024xbf16, #tpu.memory_space<any>>) dst(%arg19 : memref<1088x1024xbf16, #tpu.memory_space<vmem>>)
    %c0_342 = arith.constant 0 : index
    %c0_343 = arith.constant 0 : index
    %621 = vector.load %arg22[%c0_342, %c0_343] : memref<2x1088xf32, #tpu.memory_space<vmem>>, vector<2x1088xf32>
    %622 = arith.truncf %621 : vector<2x1088xf32> to vector<2x1088xbf16>
    %c0_344 = arith.constant 0 : index
    %c0_345 = arith.constant 0 : index
    %623 = vector.load %arg19[%c0_344, %c0_345] : memref<1088x1024xbf16, #tpu.memory_space<vmem>>, vector<1088x1024xbf16>
    %cst_346 = arith.constant dense<0.000000e+00> : vector<2x1024xf32>
    %624 = tpu.matmul %622, %623, %cst_346 {dimension_numbers = #tpu.dot_dimension_numbers<[1], [0], [0], [1], [0, 0, 1, 1], [], []>} : vector<2x1088xbf16>, vector<1088x1024xbf16>, vector<2x1024xf32> -> vector<2x1024xf32>
    %c0_347 = arith.constant 0 : index
    %c0_348 = arith.constant 0 : index
    %625 = vector.load %arg16[%c0_347, %c0_348] : memref<1x1024xf32, #tpu.memory_space<vmem>>, vector<1x1024xf32>
    %626 = vector.broadcast %625 : vector<1x1024xf32> to vector<2x1024xf32>
    %627 = arith.addf %624, %626 : vector<2x1024xf32>
    %c0_349 = arith.constant 0 : index
    %c0_350 = arith.constant 0 : index
    %628 = vector.load %arg18[%c0_349, %c0_350] : memref<2x1024xf32, #tpu.memory_space<vmem>>, vector<2x1024xf32>
    tpu.vector_store %arg18[%c0_349, %c0_350], %627 {strides = array<i32>} : memref<2x1024xf32, #tpu.memory_space<vmem>>, vector<2x1024xf32>,
    return
  }
}

</mosaic_0001>

<bundles_post_ra>
// kernel: resnet_forward.1
= control target key start
LH: loop header
LB: loop body
LE: loop exit
PB: predicated region body
PF: predicated region fallthrough
CT: control target
= control target key end

     0   :  { %s13800_s0 = inlined_call_operand.vmem [shape: f32[72,12], index: 0, kind: input, shape index: {}]   ;;  %s13801_s1 = inlined_call_operand.hbm [shape: f32[12,32], index: 1, kind: input, shape index: {}]   ;;  %s13802_s2 = inlined_call_operand.hbm [shape: f32[3,32,32], index: 2, kind: input, shape index: {}]   ;;  %s13803_s3 = inlined_call_operand.hbm [shape: f32[3,32,32], index: 3, kind: input, shape index: {}]   ;;  %s13804_s4 = inlined_call_operand.vmem [shape: f32[32,8], index: 4, kind: input, shape index: {}]   ;;  %s13805_s5 = inlined_call_operand.hbm [shape: f32[1,8], index: 5, kind: input, shape index: {}]   ;;  %s13806_s6 = inlined_call_operand.hbm [shape: f32[8,32], index: 6, kind: input, shape index: {}]   ;;  %s13807_s7 = inlined_call_operand.hbm [shape: f32[1,32], index: 7, kind: input, shape index: {}]   ;;  %s13808_s8 = inlined_call_operand.hbm [shape: f32[3,32,32], index: 8, kind: input, shape index: {}]   ;;  %s13809_s9 = inlined_call_operand.hbm [shape: f32[3,32,32], index: 9, kind: input, shape index: {}]   ;;  %s13810_s10 = inlined_call_operand.vmem [shape: f32[32,8], index: 10, kind: input, shape index: {}]   ;;  %s13811_s11 = inlined_call_operand.hbm [shape: f32[1,8], index: 11, kind: input, shape index: {}]   ;;  %s13812_s12 = inlined_call_operand.hbm [shape: f32[8,32], index: 12, kind: input, shape index: {}]   ;;  %s13813_s13 = inlined_call_operand.hbm [shape: f32[1,32], index: 13, kind: input, shape index: {}]   ;;  %s13814_s14 = inlined_call_operand.hbm [shape: f32[3,32,32], index: 14, kind: input, shape index: {}]   ;;  %s13815_s15 = inlined_call_operand.hbm [shape: f32[1,32], index: 15, kind: input, shape index: {}]   ;;  %s13816_s16 = inlined_call_operand.hbm [shape: f32[1,1024], index: 16, kind: input, shape index: {}]   ;;  %s13817_s17 = inlined_call_operand.hbm [shape: bf16[1088,1024], index: 17, kind: input, shape index: {}]   ;;  %s13818_s18 = inlined_call_operand.hbm [shape: f32[2,1024], index: 18, kind: output, shape index: {}]  }
   0x1   :  { %13879 = sst [smem:[#allocation62_spill]] %s13800_s0 }
   0x2   :  { %13880 = sst [smem:[#allocation63_spill]] %s13801_s1 }
   0x3   :  { %13881 = sst [smem:[#allocation64_spill]] %s13802_s2 }
   0x4   :  { %23 = vsyncpa [#allocation7], 0 }
   0x5   :  { %24 = vsyncpa [#allocation10], 0 }
   0x6   :  { %25 = vsyncpa [#allocation13], 0 }
   0x7   :  { %26 = vsyncpa [#allocation16], 0 }
   0x8   :  { %27 = vsyncpa [#allocation19], 0 }
   0x9   :  { %28 = vsyncpa [#allocation22], 0 }
   0xa   :  { %29 = vsyncpa [#allocation25], 0 }
   0xb   :  { %30 = vsyncpa [#allocation28], 0 }
   0xc   :  { %31 = vsyncpa [#allocation8], 0  ;;  %s11614_s27 = smov [#allocation9]   ;;  %s11615_s29 = smov [#allocation12]  }
   0xd   :  { %s51_s28 = sshll.u32 %s11614_s27, 4  ;;  %s78_s30 = sshll.u32 %s11615_s29, 4  ;;  %s52_s28 = int_to_ptr.vmem [resolvable:$true] %s51_s28  ;;  %s79_s30 = int_to_ptr.vmem [resolvable:$true] %s78_s30 }
   0xe   :  { %s11282_s0 = scalar_lea.vmem %s52_s28, 1536  ;;  %p11287_p1 = scmp.lt.s32.totalorder %s52_s28, %s52_s28 }
   0xf   :  { %p11283_p0 = scmp.ne.s32.totalorder %s52_s28, %s11282_s0  ;;  %p11288_p2 = scmp.lt.s32.totalorder %s11282_s0, %s11282_s0 }
  0x11   :  { %p11289_p3 = por %p11288_p2, %p11287_p1 }
  0x13   :  { %p11290_p4 = pnand %p11289_p3, %p11283_p0 }
  0x15   :  { %11293 = shalt.err (!%p11290_p4)
}
  0x16   :  { %s11616_s19 = smov 128   ;;  %s11617_s1 = smov 8  }
  0x17   :  { %s13882_s22 = sld [smem:[#allocation64_spill]]  ;;  %s11302_s2 = scalar_lea.vmem %s79_s30, 16 }
  0x18   :  { %p11303_p5 = scmp.ne.s32.totalorder %s79_s30, %s11302_s2  ;;  %s11306_s23 = scalar_lea.vmem %s79_s30, 32 }
  0x19   :  { %p11307_p6 = scmp.lt.s32.totalorder %s79_s30, %s79_s30  ;;  %p11308_p7 = scmp.lt.s32.totalorder %s11306_s23, %s11302_s2 }
  0x1b   :  { %p11309_p8 = por %p11308_p7, %p11307_p6 }
  0x1d   :  { %57 = dma.hbm_to_vmem [thread:$0]  %s13882_s22, 1536, %s52_s28, [#allocation10], %s11616_s19, %s11616_s19, %s11617_s1  }
  0x1e   :  { %p11310_p9 = pnand %p11309_p8, %p11303_p5 }
  0x20   :  { %11313 = shalt.err (!%p11310_p9)
}
  0x21   :  { %81 = dma.hbm_to_vmem [thread:$0]  %s13805_s5, 16, %s79_s30, [#allocation13]  }
  0x22   :  { %s11618_s26 = smov [#allocation15]   ;;  %s11619_s29 = smov [#allocation18]  }
  0x23   :  { %s98_s27 = sshll.u32 %s11618_s26, 4  ;;  %s119_s0 = sshll.u32 %s11619_s29, 4  ;;  %s99_s27 = int_to_ptr.vmem [resolvable:$true] %s98_s27  ;;  %s120_s0 = int_to_ptr.vmem [resolvable:$true] %s119_s0 }
  0x24   :  { %s11322_s20 = scalar_lea.vmem %s99_s27, 16  ;;  %s11326_s28 = scalar_lea.vmem %s99_s27, 32 }
  0x25   :  { %p11323_p10 = scmp.ne.s32.totalorder %s99_s27, %s11322_s20  ;;  %p11327_p11 = scmp.lt.s32.totalorder %s99_s27, %s99_s27 }
  0x26   :  { %p11328_p12 = scmp.lt.s32.totalorder %s11326_s28, %s11322_s20 }
  0x28   :  { %p11329_p13 = por %p11328_p12, %p11327_p11 }
  0x2a   :  { %p11330_p0 = pnand %p11329_p13, %p11323_p10 }
  0x2c   :  { %11333 = shalt.err (!%p11330_p0)
}
  0x2d   :  { %101 = dma.hbm_to_vmem [thread:$0]  %s13807_s7, 16, %s99_s27, [#allocation16]  }
  0x2e   :  { %s11342_s2 = scalar_lea.vmem %s120_s0, 1536  ;;  %p11347_p2 = scmp.lt.s32.totalorder %s120_s0, %s120_s0 }
  0x2f   :  { %p11343_p1 = scmp.ne.s32.totalorder %s120_s0, %s11342_s2  ;;  %p11348_p3 = scmp.lt.s32.totalorder %s11342_s2, %s11342_s2 }
  0x31   :  { %p11349_p4 = por %p11348_p3, %p11347_p2 }
  0x33   :  { %p11350_p5 = pnand %p11349_p4, %p11343_p1 }
  0x35   :  { %11353 = shalt.err (!%p11350_p5)
}
  0x36   :  { %125 = dma.hbm_to_vmem [thread:$0]  %s13809_s9, 1536, %s120_s0, [#allocation19], %s11616_s19, %s11616_s19, %s11617_s1  }
  0x37   :  { %s11620_s23 = smov [#allocation21]   ;;  %s11621_s25 = smov [#allocation24]  }
  0x38   :  { %s144_s24 = sshll.u32 %s11620_s23, 4  ;;  %s163_s26 = sshll.u32 %s11621_s25, 4  ;;  %s145_s24 = int_to_ptr.vmem [resolvable:$true] %s144_s24  ;;  %s164_s26 = int_to_ptr.vmem [resolvable:$true] %s163_s26 }
  0x39   :  { %s11362_s7 = scalar_lea.vmem %s145_s24, 128  ;;  %p11367_p7 = scmp.lt.s32.totalorder %s145_s24, %s145_s24 }
  0x3a   :  { %p11363_p6 = scmp.ne.s32.totalorder %s145_s24, %s11362_s7  ;;  %p11368_p8 = scmp.lt.s32.totalorder %s11362_s7, %s11362_s7 }
  0x3c   :  { %p11369_p9 = por %p11368_p8, %p11367_p7 }
  0x3e   :  { %p11370_p10 = pnand %p11369_p9, %p11363_p6 }
  0x40   :  { %11373 = shalt.err (!%p11370_p10)
}
  0x41   :  { %147 = dma.hbm_to_vmem [thread:$0]  %s13812_s12, 128, %s145_s24, [#allocation22]  }
  0x42   :  { %s11382_s20 = scalar_lea.vmem %s164_s26, 1536  ;;  %p11387_p12 = scmp.lt.s32.totalorder %s164_s26, %s164_s26 }
  0x43   :  { %p11383_p11 = scmp.ne.s32.totalorder %s164_s26, %s11382_s20  ;;  %p11388_p13 = scmp.lt.s32.totalorder %s11382_s20, %s11382_s20 }
  0x45   :  { %p11389_p0 = por %p11388_p13, %p11387_p12 }
  0x47   :  { %p11390_p1 = pnand %p11389_p0, %p11383_p11 }
  0x49   :  { %11393 = shalt.err (!%p11390_p1)
}
  0x4a   :  { %169 = dma.hbm_to_vmem [thread:$0]  %s13814_s14, 1536, %s164_s26, [#allocation25], %s11616_s19, %s11616_s19, %s11617_s1  }
  0x4b   :  { %s11622_s28 = smov [#allocation6]   ;;  %s11623_s22 = smov [#allocation11]  }
  0x4c   :  { %s39_s21 = sshll.u32 %s11622_s28, 4  ;;  %s63_s2 = sshll.u32 %s11623_s22, 4  ;;  %s40_s21 = int_to_ptr.vmem [resolvable:$true] %s39_s21  ;;  %s64_s2 = int_to_ptr.vmem [resolvable:$true] %s63_s2 }
  0x4d   :  { %s11402_s12 = scalar_lea.vmem %s40_s21, 256  ;;  %p11407_p3 = scmp.lt.s32.totalorder %s40_s21, %s40_s21 }
  0x4e   :  { %p11403_p2 = scmp.ne.s32.totalorder %s40_s21, %s11402_s12  ;;  %p11408_p4 = scmp.lt.s32.totalorder %s11402_s12, %s11402_s12 }
  0x50   :  { %p11409_p5 = por %p11408_p4, %p11407_p3 }
  0x52   :  { %p11410_p6 = pnand %p11409_p5, %p11403_p2 }
  0x54   :  { %11413 = shalt.err (!%p11410_p6)
}
  0x55   :  { %s13883_s23 = sld [smem:[#allocation63_spill]]  ;;  %s11422_s14 = scalar_lea.vmem %s64_s2, 1536 }
  0x56   :  { %p11423_p7 = scmp.ne.s32.totalorder %s64_s2, %s11422_s14  ;;  %p11427_p8 = scmp.lt.s32.totalorder %s64_s2, %s64_s2 }
  0x57   :  { %p11428_p9 = scmp.lt.s32.totalorder %s11422_s14, %s11422_s14 }
  0x59   :  { %p11429_p10 = por %p11428_p9, %p11427_p8 }
  0x5b   :  { %45 = dma.hbm_to_vmem [thread:$0]  %s13883_s23, 256, %s40_s21, [#allocation7], %s11616_s19, %s11616_s19, %s11617_s1  }
  0x5c   :  { %p11430_p11 = pnand %p11429_p10, %p11423_p7 }
  0x5e   :  { %11433 = shalt.err (!%p11430_p11)
}
  0x5f   :  { %69 = dma.hbm_to_vmem [thread:$0]  %s13803_s3, 1536, %s64_s2, [#allocation10], %s11616_s19, %s11616_s19, %s11617_s1  }
  0x60   :  { %s11624_s26 = smov [#allocation14]   ;;  %s11625_s27 = smov [#allocation17]  }
  0x61   :  { %s88_s7 = sshll.u32 %s11624_s26, 4  ;;  %s107_s29 = sshll.u32 %s11625_s27, 4  ;;  %s89_s7 = int_to_ptr.vmem [resolvable:$true] %s88_s7  ;;  %s108_s29 = int_to_ptr.vmem [resolvable:$true] %s107_s29 }
  0x62   :  { %s11442_s20 = scalar_lea.vmem %s89_s7, 128  ;;  %p11447_p13 = scmp.lt.s32.totalorder %s89_s7, %s89_s7 }
  0x63   :  { %p11443_p12 = scmp.ne.s32.totalorder %s89_s7, %s11442_s20  ;;  %p11448_p0 = scmp.lt.s32.totalorder %s11442_s20, %s11442_s20 }
  0x65   :  { %p11449_p1 = por %p11448_p0, %p11447_p13 }
  0x67   :  { %p11450_p2 = pnand %p11449_p1, %p11443_p12 }
  0x69   :  { %11453 = shalt.err (!%p11450_p2)
}
  0x6a   :  { %91 = dma.hbm_to_vmem [thread:$0]  %s13806_s6, 128, %s89_s7, [#allocation13]  }
  0x6b   :  { %s11462_s28 = scalar_lea.vmem %s108_s29, 1536  ;;  %p11467_p4 = scmp.lt.s32.totalorder %s108_s29, %s108_s29 }
  0x6c   :  { %p11463_p3 = scmp.ne.s32.totalorder %s108_s29, %s11462_s28  ;;  %p11468_p5 = scmp.lt.s32.totalorder %s11462_s28, %s11462_s28 }
  0x6e   :  { %p11469_p6 = por %p11468_p5, %p11467_p4 }
  0x70   :  { %p11470_p7 = pnand %p11469_p6, %p11463_p3 }
  0x72   :  { %11473 = shalt.err (!%p11470_p7)
}
  0x73   :  { %113 = dma.hbm_to_vmem [thread:$0]  %s13808_s8, 1536, %s108_s29, [#allocation16], %s11616_s19, %s11616_s19, %s11617_s1  }
  0x74   :  { %s11626_s22 = smov [#allocation20]   ;;  %s11627_s12 = smov [#allocation23]  }
  0x75   :  { %s134_s2 = sshll.u32 %s11626_s22, 4  ;;  %s154_s5 = sshll.u32 %s11627_s12, 4  ;;  %s135_s2 = int_to_ptr.vmem [resolvable:$true] %s134_s2  ;;  %s155_s5 = int_to_ptr.vmem [resolvable:$true] %s154_s5 }
  0x76   :  { %s11482_s6 = scalar_lea.vmem %s135_s2, 16  ;;  %s11486_s30 = scalar_lea.vmem %s135_s2, 32 }
  0x77   :  { %p11483_p8 = scmp.ne.s32.totalorder %s135_s2, %s11482_s6  ;;  %p11487_p9 = scmp.lt.s32.totalorder %s135_s2, %s135_s2 }
  0x78   :  { %p11488_p10 = scmp.lt.s32.totalorder %s11486_s30, %s11482_s6 }
  0x7a   :  { %p11489_p11 = por %p11488_p10, %p11487_p9 }
  0x7c   :  { %p11490_p12 = pnand %p11489_p11, %p11483_p8 }
  0x7e   :  { %11493 = shalt.err (!%p11490_p12)
}
  0x7f   :  { %137 = dma.hbm_to_vmem [thread:$0]  %s13811_s11, 16, %s135_s2, [#allocation19]  }
  0x80   :  { %s11502_s24 = scalar_lea.vmem %s155_s5, 16  ;;  %s11506_s8 = scalar_lea.vmem %s155_s5, 32 }
  0x81   :  { %p11503_p13 = scmp.ne.s32.totalorder %s155_s5, %s11502_s24  ;;  %p11507_p0 = scmp.lt.s32.totalorder %s155_s5, %s155_s5 }
  0x82   :  { %p11508_p1 = scmp.lt.s32.totalorder %s11506_s8, %s11502_s24 }
  0x84   :  { %p11509_p2 = por %p11508_p1, %p11507_p0 }
  0x86   :  { %p11510_p3 = pnand %p11509_p2, %p11503_p13 }
  0x88   :  { %11513 = shalt.err (!%p11510_p3)
}
  0x89   :  { %157 = dma.hbm_to_vmem [thread:$0]  %s13813_s13, 16, %s155_s5, [#allocation22]  }
  0x8a   :  { %s11628_s25 = smov [#allocation26]   ;;  %s11629_s7 = smov [#allocation27]  }
  0x8b   :  { %s176_s26 = sshll.u32 %s11628_s25, 4  ;;  %s186_s27 = sshll.u32 %s11629_s7, 4  ;;  %s177_s26 = int_to_ptr.vmem [resolvable:$true] %s176_s26  ;;  %s187_s27 = int_to_ptr.vmem [resolvable:$true] %s186_s27 }
  0x8c   :  { %s11522_s29 = scalar_lea.vmem %s177_s26, 16  ;;  %s11526_s11 = scalar_lea.vmem %s177_s26, 32 }
  0x8d   :  { %p11523_p4 = scmp.ne.s32.totalorder %s177_s26, %s11522_s29  ;;  %p11527_p5 = scmp.lt.s32.totalorder %s177_s26, %s177_s26 }
  0x8e   :  { %p11528_p6 = scmp.lt.s32.totalorder %s11526_s11, %s11522_s29 }
  0x90   :  { %p11529_p7 = por %p11528_p6, %p11527_p5 }
  0x92   :  { %p11530_p8 = pnand %p11529_p7, %p11523_p4 }
  0x94   :  { %11533 = shalt.err (!%p11530_p8)
}
  0x95   :  { %179 = dma.hbm_to_vmem [thread:$0]  %s13815_s15, 16, %s177_s26, [#allocation25]  }
  0x96   :  { %s11542_s0 = scalar_lea.vmem %s187_s27, 128  ;;  %p11547_p10 = scmp.lt.s32.totalorder %s187_s27, %s187_s27 }
  0x97   :  { %p11543_p9 = scmp.ne.s32.totalorder %s187_s27, %s11542_s0  ;;  %p11548_p11 = scmp.lt.s32.totalorder %s11542_s0, %s11542_s0 }
  0x99   :  { %p11549_p12 = por %p11548_p11, %p11547_p10 }
  0x9b   :  { %p11550_p13 = pnand %p11549_p12, %p11543_p9 }
  0x9d   :  { %11553 = shalt.err (!%p11550_p13)
}
  0x9e   :  { %189 = dma.hbm_to_vmem [thread:$0]  %s13816_s16, 128, %s187_s27, [#allocation28]  }
  0x9f   :  { %11594 = dma.done.wait [#allocation7], 256  }
  0xa0   :  { %11595 = vsyncadd [#allocation7], 4294967040 }
  0xa1   :  { %11596 = dma.done.wait [#allocation10], 3072  }
  0xa2   :  { %11597 = vsyncadd [#allocation10], 4294964224 }
  0xa3   :  { %11598 = dma.done.wait [#allocation13], 144  }
  0xa4   :  { %11599 = vsyncadd [#allocation13], 4294967152 }
  0xa5   :  { %11600 = dma.done.wait [#allocation16], 1552  }
  0xa6   :  { %11601 = vsyncadd [#allocation16], 4294965744 }
  0xa7   :  { %11602 = dma.done.wait [#allocation19], 1552  }
  0xa8   :  { %11603 = vsyncadd [#allocation19], 4294965744 }
  0xa9   :  { %11604 = dma.done.wait [#allocation22], 144  }
  0xaa   :  { %11605 = vsyncadd [#allocation22], 4294967152 }
  0xab   :  { %11606 = dma.done.wait [#allocation25], 1552  }
  0xac   :  { %11607 = vsyncadd [#allocation25], 4294965744 }
  0xad   :  { %11608 = dma.done.wait [#allocation28], 128  }
  0xae   :  { %11609 = vsyncadd [#allocation28], 4294967168  ;;  %v13823_v0 = vmov 0.0   ;;  %vm13854_vm0 = vmmov 0   ;;  %vm629_vm1 = vcmask 1043456   ;;  %v599_v2 = vld [vmem:[#allocation6] sm:$0xff]  ;;  %v13822_v20 = vlaneseq }
  0xaf   :  { %10498 = vmatprep.subr.mxu0 %v13823_v0  ;;  %10502 = vmatprep.mubr.msk.f32.mxu0 %vm13854_vm0, %v13823_v0  ;;  %v600_v1 = vld [vmem:[#allocation6 + $0x8] sm:$0xf]  ;;  %s13884_s3 = sld [smem:[#allocation62_spill]]  ;;  %vm601_vm2 = vcmask 97280   ;;  %v806_v13 = vld [vmem:[#allocation9 + $0x30] sm:$0xff]  ;;  %v805_v14 = vld [vmem:[#allocation9 + $0x28] sm:$0xff] }
  0xb0   :  { %10529 = vmatprep.subr.mxu1 %v13823_v0  ;;  %10537 = vmatprep.mubr.msk.f32.mxu1 %vm13854_vm0, %v13823_v0  ;;  %v807_v4 = vld [vmem:[#allocation9 + $0x38] sm:$0xff]  ;;  %v804_v15 = vld [vmem:[#allocation9 + $0x20] sm:$0xff]  ;;  %v801_v17 = vld [vmem:[#allocation9 + $0x10] sm:$0xff]  ;;  %v11865_v21 = vshrl.u32 %v13822_v20, 7  ;;  %s11633_s5 = smov 32   ;;  %s11634_s6 = smov 64  }
  0xb1   :  { %10499 = vmatpush3.msk.msra.mxu0 %vm629_vm1, %v600_v1  ;;  %10530 = vmatpush3.msra.mxu1 %v807_v4  ;;  %v802_v16 = vld [vmem:[#allocation9 + $0x18] sm:$0xff]  ;;  %v800_v18 = vld [vmem:[#allocation9 + $0x8] sm:$0xff]  ;;  %v799_v19 = vld [vmem:[#allocation9] sm:$0xff]  ;;  %s11635_s30 = smov [#allocation2]  }
  0xb2   :  { %10500 = vmatprep.subr.mxu0 %v13823_v0  ;;  %10531 = vmatprep.subr.mxu1 %v13823_v0  ;;  %13885 = vst [vmem:[#allocation44_spill] sm:$0xff] %v11865_v21  ;;  %v11868_v22 = vmul.u32.u64.low 3817748708, %v11865_v21  ;;  %v11869_v23 = vmul.u32.u64.high 3817748708, %v11865_v21, %v11868_v22  ;;  %v11872_v24 = vadd.s32 8, %v11865_v21  ;;  %v11875_v25 = vadd.s32 16, %v11865_v21  ;;  %s240_s23 = sshll.u32 %s11635_s30, 4  ;;  %s241_s23 = int_to_ptr.vmem [resolvable:$true] %s240_s23 }
  0xb3   :  { %10501 = vmatpush3.msra.mxu0 %v599_v2  ;;  %10532 = vmatpush3.msra.mxu1 %v806_v13  ;;  %v11886_v30 = vadd.s32 24, %v11865_v21  ;;  %v11895_v36 = vadd.s32 32, %v11865_v21  ;;  %v11899_v38 = vadd.s32 40, %v11865_v21  ;;  %v11912_v47 = vadd.s32 48, %v11865_v21  ;;  %s11562_s14 = scalar_lea.vmem %s241_s23, 69632  ;;  %p11567_p1 = scmp.lt.s32.totalorder %s241_s23, %s241_s23 }
  0xb4   :  { %10564 = vmatprep.subr.mxu0 %v13823_v0  ;;  %10533 = vmatprep.subr.mxu1 %v13823_v0  ;;  %13886 = vst [vmem:[#allocation45_spill] sm:$0xff] %v11872_v24  ;;  %13887 = vst [vmem:[#allocation46_spill] sm:$0xff] %v11875_v25  ;;  %v11878_v26 = vmul.u32.u64.low 3817748708, %v11872_v24  ;;  %v11879_v27 = vmul.u32.u64.high 3817748708, %v11872_v24, %v11878_v26  ;;  %v11882_v28 = vmul.u32.u64.low 3817748708, %v11875_v25  ;;  %v11883_v29 = vmul.u32.u64.high 3817748708, %v11875_v25, %v11882_v28  ;;  %p11563_p0 = scmp.ne.s32.totalorder %s241_s23, %s11562_s14  ;;  %p11568_p2 = scmp.lt.s32.totalorder %s11562_s14, %s11562_s14 }
  0xb5   :  { %v590_v3 = vld [vmem:[%s13884_s3] sm:$0xff]  ;;  %v591_v5 = vld [vmem:[%s13884_s3 + $0x8] sm:$0xff]  ;;  %v592_v6 = vld [vmem:[%s13884_s3 + $0x10] sm:$0xff]  ;;  %10534 = vmatpush3.msra.mxu1 %v805_v14  ;;  %13888 = vst [vmem:[#allocation47_spill] sm:$0xff] %v11886_v30  ;;  %v260_v31 = vshrl.u32 %v11869_v23, 5  ;;  %v11922_v55 = vadd.s32 56, %v11865_v21 }
  0xb6   :  { %10503 = vmatmul.mubr.msk.f32.vlgmr.msra.gmra.mxu0 %vm601_vm2, %v590_v3  ;;  %v593_v7 = vld [vmem:[%s13884_s3 + $0x18] sm:$0xff]  ;;  %v594_v8 = vld [vmem:[%s13884_s3 + $0x20] sm:$0xff]  ;;  %v595_v9 = vld [vmem:[%s13884_s3 + $0x28] sm:$0xff]  ;;  %10535 = vmatprep.subr.mxu1 %v13823_v0  ;;  %v11890_v32 = vmul.u32.u64.low 3817748708, %v11886_v30  ;;  %v11891_v33 = vmul.u32.u64.high 3817748708, %v11886_v30, %v11890_v32  ;;  %v271_v35 = vshrl.u32 %v11879_v27, 5  ;;  %p11569_p3 = por %p11568_p2, %p11567_p1 }
  0xb7   :  { %10505 = vmatprep.mubr.msk.f32.mxu0 %vm13854_vm0, %v13823_v0  ;;  %v596_v10 = vld [vmem:[%s13884_s3 + $0x30] sm:$0xff]  ;;  %v597_v11 = vld [vmem:[%s13884_s3 + $0x38] sm:$0xff]  ;;  %v598_v12 = vld [vmem:[%s13884_s3 + $0x40] sm:$0xff]  ;;  %10536 = vmatpush3.msra.mxu1 %v804_v15  ;;  %v261_v34 = vmul.u32 36, %v260_v31  ;;  %v282_v37 = vshrl.u32 %v11883_v29, 5  ;;  %13889 = vst [vmem:[#allocation48_spill] sm:$0xff] %v11899_v38 }
  0xb8   :  { %10599 = vmatprep.subr.mxu1 %v13823_v0  ;;  %10565 = vmatpush3.msra.mxu0 %v802_v16  ;;  %v272_v40 = vmul.u32 36, %v271_v35  ;;  %v11903_v41 = vmul.u32.u64.low 3817748708, %v11895_v36  ;;  %v11904_v42 = vmul.u32.u64.high 3817748708, %v11895_v36, %v11903_v41  ;;  %v293_v44 = vshrl.u32 %v11891_v33, 5  ;;  %13890 = vst [vmem:[#allocation49_spill] sm:$0xff] %v11912_v47  ;;  %13891 = vst [vmem:[#allocation50_spill] sm:$0xff] %v11922_v55  ;;  %p11570_p4 = pnand %p11569_p3, %p11563_p0 }
  0xb9   :  { %10566 = vmatprep.subr.mxu0 %v13823_v0  ;;  %v262_v39 = vsub.s32 %v11865_v21, %v261_v34  ;;  %v283_v43 = vmul.u32 36, %v282_v37  ;;  %v11908_v45 = vmul.u32.u64.low 3817748708, %v11899_v38  ;;  %v11909_v46 = vmul.u32.u64.high 3817748708, %v11899_v38, %v11908_v45  ;;  %v1087_v26 = vld [vmem:[#allocation9 + $0x58] sm:$0xff]  ;;  %v1086_v37 = vld [vmem:[#allocation9 + $0x50] sm:$0xff] }
  0xba   :  { %10506 = vmatmul.mubr.msk.f32.gmra.mxu0 %vm601_vm2, %v591_v5  ;;  %v273_v48 = vsub.s32 %v11872_v24, %v272_v40  ;;  %v294_v51 = vmul.u32 36, %v293_v44  ;;  %v11917_v52 = vmul.u32.u64.low 3817748708, %v11912_v47  ;;  %v11918_v53 = vmul.u32.u64.high 3817748708, %v11912_v47, %v11917_v52 }
  0xbb   :  { %10508 = vmatprep.mubr.msk.f32.mxu0 %vm13854_vm0, %v13823_v0  ;;  %10567 = vmatpush3.msra.mxu0 %v801_v17  ;;  %vm353_vm3 = vcmp.ne.s32.totalorder %v262_v39, 0  ;;  %vm362_vm4 = vcmp.lt.s32.totalorder %v262_v39, 0  ;;  %v380_v49 = vadd.s32 36, %v262_v39  ;;  %v284_v50 = vsub.s32 %v11875_v25, %v283_v43  ;;  %v1085_v43 = vld [vmem:[#allocation9 + $0x48] sm:$0xff]  ;;  %v1084_v52 = vld [vmem:[#allocation9 + $0x40] sm:$0xff] }
  0xbc   :  { %10568 = vmatprep.subr.mxu0 %v13823_v0  ;;  %vm371_vm5 = vmand %vm362_vm4, %vm353_vm3  ;;  %vm354_vm6 = vcmp.ne.s32.totalorder %v273_v48, 0  ;;  %vm363_vm7 = vcmp.lt.s32.totalorder %v273_v48, 0  ;;  %v304_v54 = vshrl.u32 %v11904_v42, 5  ;;  %v381_v57 = vadd.s32 36, %v273_v48 }
  0xbd   :  { %10569 = vmatpush3.msra.mxu0 %v800_v18  ;;  %v389_v56 = vsel %vm371_vm5, %v380_v49, %v262_v39  ;;  %vm372_vm8 = vmand %vm363_vm7, %vm354_vm6  ;;  %vm355_vm9 = vcmp.ne.s32.totalorder %v284_v50, 0  ;;  %vm364_vm10 = vcmp.lt.s32.totalorder %v284_v50, 0  ;;  %v295_v58 = vsub.s32 %v11886_v30, %v294_v51 }
  0xbe   :  { %10509 = vmatmul.mubr.msk.f32.gmra.mxu0 %vm601_vm2, %v592_v6  ;;  %10570 = vmatprep.subr.mxu0 %v13823_v0  ;;  %v315_v59 = vshrl.u32 %v11909_v46, 5  ;;  %v305_v60 = vmul.u32 36, %v304_v54  ;;  %v11927_v61 = vmul.u32.u64.low 3817748708, %v11922_v55  ;;  %v11928_v62 = vmul.u32.u64.high 3817748708, %v11922_v55, %v11927_v61  ;;  %vm373_vm13 = vmand %vm364_vm10, %vm355_vm9 }
  0xbf   :  { %10511 = vmatprep.mubr.msk.f32.mxu0 %vm13854_vm0, %v13823_v0  ;;  %10571 = vmatpush3.msra.mxu0 %v799_v19  ;;  %v11931_v63 = vadd.s32 64, %v11865_v21  ;;  %vm398_vm11 = vcmp.ge.s32.totalorder %v389_v56, 1  ;;  %vm407_vm12 = vcmp.le.s32.totalorder %v389_v56, 34  ;;  %v390_v1 = vsel %vm372_vm8, %v381_v57, %v273_v48 }
  0xc0   :  { %10634 = vmatprep.subr.mxu0 %v13823_v0  ;;  %v382_v2 = vadd.s32 36, %v284_v50  ;;  %vm356_vm14 = vcmp.ne.s32.totalorder %v295_v58, 0  ;;  %v316_v3 = vmul.u32 36, %v315_v59  ;;  %v326_v4 = vshrl.u32 %v11918_v53, 5  ;;  %vm11934_vm15 = vmand %vm398_vm11, %vm407_vm12 }
  0xc1   :  { %13892 = vst [vmem:[#allocation51_spill] sm:$0xff] %v11931_v63  ;;  %vm365_vm1 = vcmp.lt.s32.totalorder %v295_v58, 0  ;;  %v306_v6 = vsub.s32 %v11895_v36, %v305_v60  ;;  %vm408_vm3 = vcmp.le.s32.totalorder %v390_v1, 34  ;;  %v13895_v16 = vmov 0 }
  0xc2   :  { %10512 = vmatmul.mubr.msk.f32.gmra.mxu0 %vm601_vm2, %v593_v7  ;;  %vm374_vm4 = vmand %vm365_vm1, %vm356_vm14  ;;  %v317_v13 = vsub.s32 %v11899_v38, %v316_v3  ;;  %v327_v14 = vmul.u32 36, %v326_v4  ;;  %v337_v17 = vshrl.u32 %v11928_v62, 5  ;;  %vm13853_vm8 = vcmask 261120  }
  0xc3   :  { %10514 = vmatprep.mubr.msk.f32.mxu0 %vm13854_vm0, %v13823_v0  ;;  %vm357_vm6 = vcmp.ne.s32.totalorder %v306_v6, 0  ;;  %vm366_vm7 = vcmp.lt.s32.totalorder %v306_v6, 0  ;;  %v384_v23 = vadd.s32 36, %v306_v6  ;;  %v13900_v33 = vmov 0 }
  0xc4   :  { %vm11962_vm11 = vmand %vm366_vm7, %vm357_vm6  ;;  %vm358_vm12 = vcmp.ne.s32.totalorder %v317_v13, 0  ;;  %v328_v31 = vsub.s32 %v11912_v47, %v327_v14  ;;  %vm367_vm14 = vcmp.lt.s32.totalorder %v317_v13, 0  ;;  %v338_v34 = vmul.u32 36, %v337_v17 }
  0xc5   :  { %v393_v41 = vsel %vm11962_vm11, %v384_v23, %v306_v6  ;;  %v385_v42 = vadd.s32 36, %v317_v13  ;;  %v13905_v49 = vmov 0 }
  0xc6   :  { %10515 = vmatmul.mubr.msk.f32.gmra.mxu0 %vm601_vm2, %v594_v8  ;;  %v11940_v7 = vmul.u32.u64.low 3817748708, %v11931_v63  ;;  %v11941_v8 = vmul.u32.u64.high 3817748708, %v11931_v63, %v11940_v7  ;;  %vm368_vm7 = vcmp.lt.s32.totalorder %v328_v31, 0  ;;  %v386_v57 = vadd.s32 36, %v328_v31 }
  0xc7   :  { %10517 = vmatprep.mubr.msk.f32.mxu0 %vm13854_vm0, %v13823_v0 }
  0xc8   :  { %v348_v35 = vshrl.u32 %v11941_v8, 5 }
  0xca   :  { %10518 = vmatmul.mubr.msk.f32.gmra.mxu0 %vm601_vm2, %v595_v9  ;;  %v391_v9 = vsel %vm373_vm13, %v382_v2, %v284_v50  ;;  %v339_v50 = vsub.s32 %v11922_v55, %v338_v34  ;;  %v349_v51 = vmul.u32 36, %v348_v35 }
  0xcb   :  { %10520 = vmatprep.mubr.msk.f32.mxu0 %vm13854_vm0, %v13823_v0  ;;  %vm400_vm9 = vcmp.ge.s32.totalorder %v391_v9, 1  ;;  %vm409_vm10 = vcmp.le.s32.totalorder %v391_v9, 34 }
  0xcc   :  { %vm11969_vm13 = vmand %vm400_vm9, %vm409_vm10  ;;  %vm402_vm9 = vcmp.ge.s32.totalorder %v393_v41, 1  ;;  %vm411_vm10 = vcmp.le.s32.totalorder %v393_v41, 34  ;;  %v350_v62 = vsub.s32 %v11931_v63, %v349_v51  ;;  %v387_v4 = vadd.s32 36, %v339_v50 }
  0xcd   :  { %v13901_v33 = vsel %vm11969_vm13, 4294967295, %v13900_v33  ;;  %v11985_v44 = vsel %vm11969_vm13, 1.0, %v13823_v0 }
  0xce   :  { %10521 = vmatmul.mubr.msk.f32.gmra.mxu0 %vm601_vm2, %v596_v10  ;;  %v383_v10 = vadd.s32 36, %v295_v58  ;;  %v388_v14 = vadd.s32 36, %v350_v62 }
  0xcf   :  { %10523 = vmatprep.mubr.msk.f32.mxu0 %vm13854_vm0, %v13823_v0 }
  0xd0   :  { %v392_v22 = vsel %vm374_vm4, %v383_v10, %v295_v58  ;;  %vm359_vm4 = vcmp.ne.s32.totalorder %v328_v31, 0 }
  0xd1   :  { %vm401_vm1 = vcmp.ge.s32.totalorder %v392_v22, 1  ;;  %vm377_vm11 = vmand %vm368_vm7, %vm359_vm4 }
  0xd2   :  { %10524 = vmatmul.mubr.msk.f32.gmra.mxu0 %vm601_vm2, %v597_v11  ;;  %v11946_v11 = vsel %vm11934_vm15, 1.0, %v13823_v0  ;;  %v395_v3 = vsel %vm377_vm11, %v386_v57, %v328_v31 }
  0xd3   :  { %10526 = vmatprep.mubr.msk.f32.mxu0 %vm13854_vm0, %v13823_v0  ;;  %vm404_vm11 = vcmp.ge.s32.totalorder %v395_v3, 1  ;;  %vm413_vm13 = vcmp.le.s32.totalorder %v395_v3, 34 }
  0xd6   :  { %10527 = vmatmul.mubr.msk.f32.gmra.mxu0 %vm601_vm2, %v598_v12  ;;  %vm399_vm2 = vcmp.ge.s32.totalorder %v390_v1, 1 }
  0xd7   :  { %10572 = vmatprep.mubr.msk.f32.mxu0 %vm13854_vm0, %v13823_v0  ;;  %vm11949_vm5 = vmand %vm399_vm2, %vm408_vm3  ;;  %vm410_vm2 = vcmp.le.s32.totalorder %v392_v22, 34  ;;  %v13914_v22 = vmov 0 }
  0xd8   :  { %v13896_v16 = vsel %vm11949_vm5, 4294967295, %v13895_v16  ;;  %v11960_v27 = vsel %vm11949_vm5, 1.0, %v13823_v0  ;;  %vm11989_vm3 = vmand %vm367_vm14, %vm358_vm12  ;;  %vm360_vm14 = vcmp.ne.s32.totalorder %v339_v50, 0 }
  0xd9   :  { %vm11996_vm6 = vmand %vm401_vm1, %vm410_vm2  ;;  %v394_v56 = vsel %vm11989_vm3, %v385_v42, %v317_v13  ;;  %vm369_vm1 = vcmp.lt.s32.totalorder %v339_v50, 0 }
  0xda   :  { %v13906_v49 = vsel %vm11996_vm6, 4294967295, %v13905_v49  ;;  %v12013_v58 = vsel %vm11996_vm6, 1.0, %v13823_v0  ;;  %vm12019_vm12 = vmand %vm402_vm9, %vm411_vm10  ;;  %vm403_vm2 = vcmp.ge.s32.totalorder %v394_v56, 1  ;;  %vm412_vm3 = vcmp.le.s32.totalorder %v394_v56, 34 }
  0xdb   :  { %v12033_v6 = vsel %vm12019_vm12, 1.0, %v13823_v0  ;;  %vm378_vm4 = vmand %vm369_vm1, %vm360_vm14  ;;  %vm361_vm9 = vcmp.ne.s32.totalorder %v350_v62, 0  ;;  %vm370_vm10 = vcmp.lt.s32.totalorder %v350_v62, 0 }
  0xdc   :  { %vm12037_vm7 = vmand %vm403_vm2, %vm412_vm3  ;;  %v396_v13 = vsel %vm378_vm4, %v387_v4, %v339_v50 }
  0xdd   :  { %vm379_vm14 = vmand %vm370_vm10, %vm361_vm9  ;;  %vm405_vm2 = vcmp.ge.s32.totalorder %v396_v13, 1  ;;  %vm414_vm3 = vcmp.le.s32.totalorder %v396_v13, 34 }
  0xde   :  { %vm12053_vm1 = vmand %vm404_vm11, %vm413_vm13  ;;  %vm13848_vm11 = vcmp.lt.s32.totalorder %v11865_v21, 7 }
  0xdf   :  { %v13915_v22 = vsel %vm12053_vm1, 4294967295, %v13914_v22  ;;  %v12065_v29 = vsel %vm12053_vm1, 1.0, %v13823_v0  ;;  %vm12069_vm13 = vmand %vm405_vm2, %vm414_vm3 }
 0x176   :  { %v699_v12 = vpop.f32.mrf.mxu0 }
 0x177   :  { %v743_v15 = vmax.f32 %v699_v12, 0.0 }
 0x178   :  { %v10504_v18 = vpop.f32.mrf.mxu0 }
 0x179   :  { %v11955_v19 = vmul.f32 %v11946_v11, %v743_v15  ;;  %v12049_v15 = vsel %vm12037_vm7, 1.0, %v13823_v0 }
 0x17a   :  { %v704_v28 = vpop.f32.mrf.mxu0 }
 0x17b   :  { %13897 = vst [vmem:[#allocation52_spill] sm:$0xff] %v11955_v19  ;;  %v744_v32 = vmax.f32 %v704_v28, 0.0  ;;  %10538 = vmatmul.mubr.msk.f32.vlgmr.msra.gmra.mxu1 %vm13853_vm8, %v11955_v19  ;;  %v397_v28 = vsel %vm379_vm14, %v388_v14, %v350_v62  ;;  %v761_v57 = vrot.slane %v11955_v19, 7  ;;  %vm13849_vm14 = vcmp.lt.s32.totalorder %v11865_v21, 1 }
 0x17c   :  { %v10507_v39 = vpop.f32.mrf.mxu0  ;;  %10540 = vmatprep.mubr.msk.f32.mxu1 %vm13854_vm0, %v13823_v0  ;;  %10600 = vmatpush3.msra.mxu1 %v1087_v26  ;;  %vm406_vm4 = vcmp.ge.s32.totalorder %v397_v28, 1  ;;  %vm415_vm9 = vcmp.le.s32.totalorder %v397_v28, 34 }
 0x17d   :  { %v11977_v40 = vmul.f32 %v11960_v27, %v744_v32  ;;  %10601 = vmatprep.subr.mxu1 %v13823_v0  ;;  %v12081_v39 = vsel %vm12069_vm13, 1.0, %v13823_v0  ;;  %vm12085_vm10 = vmand %vm406_vm4, %vm415_vm9 }
 0x17e   :  { %v709_v45 = vpop.f32.mrf.mxu0  ;;  %10602 = vmatpush3.msra.mxu1 %v1086_v37 }
 0x17f   :  { %13902 = vst [vmem:[#allocation53_spill] sm:$0xff] %v11977_v40  ;;  %v745_v48 = vmax.f32 %v709_v45, 0.0  ;;  %10541 = vmatmul.mubr.msk.f32.gmra.mxu1 %vm13853_vm8, %v11977_v40  ;;  %10603 = vmatprep.subr.mxu1 %v13823_v0  ;;  %v781_v56 = vrot.slane %v11977_v40, 1 }
 0x180   :  { %v10510_v53 = vpop.f32.mrf.mxu0  ;;  %10543 = vmatprep.mubr.msk.f32.mxu1 %vm13854_vm0, %v13823_v0  ;;  %10604 = vmatpush3.msra.mxu1 %v1085_v43 }
 0x181   :  { %v12005_v54 = vmul.f32 %v11985_v44, %v745_v48  ;;  %10605 = vmatprep.subr.mxu1 %v13823_v0  ;;  %v12097_v48 = vsel %vm12085_vm10, 1.0, %v13823_v0 }
 0x182   :  { %v714_v59 = vpop.f32.mrf.mxu0  ;;  %10606 = vmatpush3.msra.mxu1 %v1084_v52 }
 0x183   :  { %13907 = vst [vmem:[#allocation54_spill] sm:$0xff] %v12005_v54  ;;  %v746_v60 = vmax.f32 %v714_v59, 0.0  ;;  %10544 = vmatmul.mubr.msk.f32.gmra.mxu1 %vm13853_vm8, %v12005_v54  ;;  %10669 = vmatprep.subr.mxu1 %v13823_v0  ;;  %v782_v4 = vrot.slane %v12005_v54, 1 }
 0x184   :  { %v10513_v1 = vpop.f32.mrf.mxu0  ;;  %10546 = vmatprep.mubr.msk.f32.mxu1 %vm13854_vm0, %v13823_v0 }
 0x185   :  { %v12028_v2 = vmul.f32 %v12013_v58, %v746_v60  ;;  %v780_v60 = vrot.slane %v11955_v19, 1  ;;  %v762_v1 = vrot.slane %v11977_v40, 7 }
 0x186   :  { %v719_v7 = vpop.f32.mrf.mxu0 }
 0x187   :  { %13910 = vst [vmem:[#allocation55_spill] sm:$0xff] %v12028_v2  ;;  %v747_v8 = vmax.f32 %v719_v7, 0.0  ;;  %10547 = vmatmul.mubr.msk.f32.gmra.mxu1 %vm13853_vm8, %v12028_v2  ;;  %v797_v3 = vsel %vm13848_vm11, %v780_v60, %v781_v56  ;;  %v778_v7 = vsel %vm13849_vm14, %v761_v57, %v762_v1  ;;  %v783_v13 = vrot.slane %v12028_v2, 1 }
 0x188   :  { %v10516_v10 = vpop.f32.mrf.mxu0  ;;  %10549 = vmatprep.mubr.msk.f32.mxu1 %vm13854_vm0, %v13823_v0 }
 0x189   :  { %v12044_v12 = vmul.f32 %v12033_v6, %v747_v8  ;;  %v763_v8 = vrot.slane %v12005_v54, 7  ;;  %v796_v10 = vsel %vm13848_vm11, %v781_v56, %v782_v4 }
 0x18a   :  { %v724_v17 = vpop.f32.mrf.mxu0 }
 0x18b   :  { %13913 = vst [vmem:[#allocation56_spill] sm:$0xff] %v12044_v12  ;;  %v748_v18 = vmax.f32 %v724_v17, 0.0  ;;  %10550 = vmatmul.mubr.msk.f32.gmra.mxu1 %vm13853_vm8, %v12044_v12  ;;  %v777_v14 = vsel %vm13849_vm14, %v762_v1, %v763_v8  ;;  %v764_v17 = vrot.slane %v12028_v2, 7 }
 0x18c   :  { %v10519_v23 = vpop.f32.mrf.mxu0  ;;  %10552 = vmatprep.mubr.msk.f32.mxu1 %vm13854_vm0, %v13823_v0 }
 0x18d   :  { %v12060_v26 = vmul.f32 %v12049_v15, %v748_v18  ;;  %v795_v18 = vsel %vm13848_vm11, %v782_v4, %v783_v13  ;;  %v784_v23 = vrot.slane %v12044_v12, 1  ;;  %v776_v28 = vsel %vm13849_vm14, %v763_v8, %v764_v17 }
 0x18e   :  { %v729_v31 = vpop.f32.mrf.mxu0 }
 0x18f   :  { %13916 = vst [vmem:[#allocation57_spill] sm:$0xff] %v12060_v26  ;;  %v749_v32 = vmax.f32 %v729_v31, 0.0  ;;  %10553 = vmatmul.mubr.msk.f32.gmra.mxu1 %vm13853_vm8, %v12060_v26  ;;  %v765_v31 = vrot.slane %v12044_v12, 7 }
 0x190   :  { %v10522_v35 = vpop.f32.mrf.mxu0  ;;  %10555 = vmatprep.mubr.msk.f32.mxu1 %vm13854_vm0, %v13823_v0 }
 0x191   :  { %v12076_v37 = vmul.f32 %v12065_v29, %v749_v32  ;;  %v794_v32 = vsel %vm13848_vm11, %v783_v13, %v784_v23  ;;  %v785_v35 = vrot.slane %v12060_v26, 1 }
 0x192   :  { %v734_v41 = vpop.f32.mrf.mxu0 }
 0x193   :  { %13919 = vst [vmem:[#allocation58_spill] sm:$0xff] %v12076_v37  ;;  %v750_v42 = vmax.f32 %v734_v41, 0.0  ;;  %10556 = vmatmul.mubr.msk.f32.gmra.mxu1 %vm13853_vm8, %v12076_v37  ;;  %v775_v41 = vsel %vm13849_vm14, %v764_v17, %v765_v31  ;;  %v1294_v17 = vld [vmem:[#allocation11 + $0x28] sm:$0xff] }
 0x194   :  { %v10525_v45 = vpop.f32.mrf.mxu0  ;;  %10558 = vmatprep.mubr.msk.f32.mxu1 %vm13854_vm0, %v13823_v0 }
 0x195   :  { %v12092_v46 = vmul.f32 %v12081_v39, %v750_v42  ;;  %v766_v42 = vrot.slane %v12060_v26, 7  ;;  %v793_v45 = vsel %vm13848_vm11, %v784_v23, %v785_v35  ;;  %v1290_v23 = vld [vmem:[#allocation11 + $0x10] sm:$0xff] }
 0x196   :  { %v739_v50 = vpop.f32.mrf.mxu0 }
 0x197   :  { %13922 = vst [vmem:[#allocation59_spill] sm:$0xff] %v12092_v46  ;;  %v751_v51 = vmax.f32 %v739_v50, 0.0  ;;  %10559 = vmatmul.mubr.msk.f32.gmra.mxu1 %vm13853_vm8, %v12092_v46  ;;  %v786_v50 = vrot.slane %v12076_v37, 1  ;;  %v768_v1 = vrot.slane %v12092_v46, 7 }
 0x198   :  { %v10528_v52 = vpop.f32.mrf.mxu0  ;;  %10561 = vmatprep.mubr.msk.f32.mxu1 %vm13854_vm0, %v13823_v0 }
 0x199   :  { %v12104_v53 = vmul.f32 %v12097_v48, %v751_v51  ;;  %v774_v51 = vsel %vm13849_vm14, %v765_v31, %v766_v42  ;;  %v767_v52 = vrot.slane %v12076_v37, 7  ;;  %v792_v56 = vsel %vm13848_vm11, %v785_v35, %v786_v50  ;;  %v1288_v31 = vld [vmem:[#allocation11] sm:$0xff] }
 0x19b   :  { %13923 = vst [vmem:[#allocation60_spill] sm:$0xff] %v12104_v53  ;;  %v769_v59 = vrot.slane %v12104_v53, 7  ;;  %10562 = vmatmul.mubr.msk.f32.gmra.mxu1 %vm13853_vm8, %v12104_v53  ;;  %v788_v4 = vrot.slane %v12104_v53, 1 }
 0x19c   :  { %10607 = vmatprep.mubr.msk.f32.mxu1 %vm13854_vm0, %v13823_v0 }
 0x19d   :  { %v779_v62 = vsel %vm13849_vm14, %v769_v59, %v761_v57  ;;  %v787_v57 = vrot.slane %v12092_v46, 1  ;;  %v798_v13 = vsel %vm13848_vm11, %v788_v4, %v780_v60  ;;  %v1293_v60 = vld [vmem:[#allocation11 + $0x20] sm:$0xff] }
 0x19e   :  { %10573 = vmatmul.mubr.msk.f32.vlgmr.msra.gmra.mxu0 %vm13853_vm8, %v779_v62  ;;  %v773_v62 = vsel %vm13849_vm14, %v766_v42, %v767_v52 }
 0x19f   :  { %10608 = vmatmul.mubr.msk.f32.vlgmr.msra.gmra.mxu1 %vm13853_vm8, %v797_v3  ;;  %10575 = vmatprep.mubr.msk.f32.mxu0 %vm13854_vm0, %v13823_v0  ;;  %v791_v3 = vsel %vm13848_vm11, %v786_v50, %v787_v57  ;;  %v790_v8 = vsel %vm13848_vm11, %v787_v57, %v788_v4 }
 0x1a0   :  { %10610 = vmatprep.mubr.msk.f32.mxu1 %vm13854_vm0, %v13823_v0 }
 0x1a2   :  { %10576 = vmatmul.mubr.msk.f32.gmra.mxu0 %vm13853_vm8, %v778_v7  ;;  %v772_v7 = vsel %vm13849_vm14, %v767_v52, %v768_v1 }
 0x1a3   :  { %10611 = vmatmul.mubr.msk.f32.gmra.mxu1 %vm13853_vm8, %v796_v10  ;;  %10578 = vmatprep.mubr.msk.f32.mxu0 %vm13854_vm0, %v13823_v0  ;;  %v771_v10 = vsel %vm13849_vm14, %v768_v1, %v769_v59  ;;  %v1295_v59 = vld [vmem:[#allocation11 + $0x30] sm:$0xff] }
 0x1a4   :  { %10613 = vmatprep.mubr.msk.f32.mxu1 %vm13854_vm0, %v13823_v0 }
 0x1a6   :  { %10579 = vmatmul.mubr.msk.f32.gmra.mxu0 %vm13853_vm8, %v777_v14  ;;  %v1296_v14 = vld [vmem:[#allocation11 + $0x38] sm:$0xff] }
 0x1a7   :  { %10614 = vmatmul.mubr.msk.f32.gmra.mxu1 %vm13853_vm8, %v795_v18  ;;  %10581 = vmatprep.mubr.msk.f32.mxu0 %vm13854_vm0, %v13823_v0  ;;  %v1291_v18 = vld [vmem:[#allocation11 + $0x18] sm:$0xff] }
 0x1a8   :  { %10616 = vmatprep.mubr.msk.f32.mxu1 %vm13854_vm0, %v13823_v0  ;;  %10635 = vmatpush3.msra.mxu0 %v1296_v14 }
 0x1a9   :  { %10636 = vmatprep.subr.mxu0 %v13823_v0  ;;  %10670 = vmatpush3.msra.mxu1 %v1291_v18 }
 0x1aa   :  { %10582 = vmatmul.mubr.msk.f32.gmra.mxu0 %vm13853_vm8, %v776_v28  ;;  %10671 = vmatprep.subr.mxu1 %v13823_v0  ;;  %v1289_v28 = vld [vmem:[#allocation11 + $0x8] sm:$0xff] }
 0x1ab   :  { %10617 = vmatmul.mubr.msk.f32.gmra.mxu1 %vm13853_vm8, %v794_v32  ;;  %10584 = vmatprep.mubr.msk.f32.mxu0 %vm13854_vm0, %v13823_v0 }
 0x1ac   :  { %10619 = vmatprep.mubr.msk.f32.mxu1 %vm13854_vm0, %v13823_v0  ;;  %10637 = vmatpush3.msra.mxu0 %v1295_v59 }
 0x1ad   :  { %10638 = vmatprep.subr.mxu0 %v13823_v0  ;;  %10672 = vmatpush3.msra.mxu1 %v1290_v23 }
 0x1ae   :  { %10585 = vmatmul.mubr.msk.f32.gmra.mxu0 %vm13853_vm8, %v775_v41  ;;  %10673 = vmatprep.subr.mxu1 %v13823_v0 }
 0x1af   :  { %10620 = vmatmul.mubr.msk.f32.gmra.mxu1 %vm13853_vm8, %v793_v45  ;;  %10587 = vmatprep.mubr.msk.f32.mxu0 %vm13854_vm0, %v13823_v0 }
 0x1b0   :  { %10622 = vmatprep.mubr.msk.f32.mxu1 %vm13854_vm0, %v13823_v0  ;;  %10639 = vmatpush3.msra.mxu0 %v1294_v17 }
 0x1b1   :  { %10640 = vmatprep.subr.mxu0 %v13823_v0  ;;  %10674 = vmatpush3.msra.mxu1 %v1289_v28 }
 0x1b2   :  { %10588 = vmatmul.mubr.msk.f32.gmra.mxu0 %vm13853_vm8, %v774_v51  ;;  %10675 = vmatprep.subr.mxu1 %v13823_v0 }
 0x1b3   :  { %10623 = vmatmul.mubr.msk.f32.gmra.mxu1 %vm13853_vm8, %v792_v56  ;;  %10590 = vmatprep.mubr.msk.f32.mxu0 %vm13854_vm0, %v13823_v0 }
 0x1b4   :  { %10625 = vmatprep.mubr.msk.f32.mxu1 %vm13854_vm0, %v13823_v0  ;;  %10641 = vmatpush3.msra.mxu0 %v1293_v60 }
 0x1b5   :  { %10704 = vmatprep.subr.mxu0 %v13823_v0  ;;  %10676 = vmatpush3.msra.mxu1 %v1288_v31 }
 0x1b6   :  { %10591 = vmatmul.mubr.msk.f32.gmra.mxu0 %vm13853_vm8, %v773_v62  ;;  %10739 = vmatprep.subr.mxu1 %v13823_v0 }
 0x1b7   :  { %10626 = vmatmul.mubr.msk.f32.gmra.mxu1 %vm13853_vm8, %v791_v3  ;;  %10593 = vmatprep.mubr.msk.f32.mxu0 %vm13854_vm0, %v13823_v0 }
 0x1b8   :  { %10628 = vmatprep.mubr.msk.f32.mxu1 %vm13854_vm0, %v13823_v0 }
 0x1ba   :  { %10594 = vmatmul.mubr.msk.f32.gmra.mxu0 %vm13853_vm8, %v772_v7 }
 0x1bb   :  { %10629 = vmatmul.mubr.msk.f32.gmra.mxu1 %vm13853_vm8, %v790_v8  ;;  %10596 = vmatprep.mubr.msk.f32.mxu0 %vm13854_vm0, %v13823_v0 }
 0x1bc   :  { %10631 = vmatprep.mubr.msk.f32.mxu1 %vm13854_vm0, %v13823_v0 }
 0x1be   :  { %10597 = vmatmul.mubr.msk.f32.gmra.mxu0 %vm13853_vm8, %v771_v10 }
 0x1bf   :  { %10632 = vmatmul.mubr.msk.f32.gmra.mxu1 %vm13853_vm8, %v798_v13  ;;  %10642 = vmatprep.mubr.msk.f32.mxu0 %vm13854_vm0, %v13823_v0 }
 0x1c0   :  { %10677 = vmatprep.mubr.msk.f32.mxu1 %vm13854_vm0, %v13823_v0 }
 0x23b   :  { %v902_v32 = vpop.f32.mrf.mxu1 }
 0x23d   :  { %v10539_v35 = vpop.f32.mrf.mxu1 }
 0x23f   :  { %v907_v41 = vpop.f32.mrf.mxu1 }
 0x241   :  { %v10542_v42 = vpop.f32.mrf.mxu1 }
 0x243   :  { %v912_v45 = vpop.f32.mrf.mxu1 }
 0x245   :  { %v10545_v50 = vpop.f32.mrf.mxu1 }
 0x247   :  { %v917_v51 = vpop.f32.mrf.mxu1 }
 0x249   :  { %v10548_v52 = vpop.f32.mrf.mxu1 }
 0x24b   :  { %v922_v56 = vpop.f32.mrf.mxu1 }
 0x24d   :  { %v10551_v57 = vpop.f32.mrf.mxu1 }
 0x24f   :  { %v12236_v62 = vpop.f32.mrf.mxu1 }
 0x251   :  { %v10554_v1 = vpop.f32.mrf.mxu1 }
 0x253   :  { %v12238_v3 = vpop.f32.mrf.mxu1 }
 0x255   :  { %v10557_v4 = vpop.f32.mrf.mxu1 }
 0x256   :  { %v1575_v4 = vld [vmem:[#allocation11 + $0x58] sm:$0xff] }
 0x257   :  { %v12240_v7 = vpop.f32.mrf.mxu1 }
 0x259   :  { %v10560_v8 = vpop.f32.mrf.mxu1 }
 0x25b   :  { %v12242_v10 = vpop.f32.mrf.mxu1 }
 0x25d   :  { %v10563_v13 = vpop.f32.mrf.mxu1 }
 0x25e   :  { %v1039_v14 = vpop.f32.mrf.mxu0 }
 0x25f   :  { %v1040_v59 = vadd.f32 %v1039_v14, %v902_v32  ;;  %v1181_v17 = vpop.f32.mrf.mxu1  ;;  %v1574_v32 = vld [vmem:[#allocation11 + $0x50] sm:$0xff] }
 0x260   :  { %v10574_v60 = vpop.f32.mrf.mxu0 }
 0x261   :  { %v1225_v18 = vadd.f32 %v1181_v17, %v1040_v59  ;;  %v10609_v23 = vpop.f32.mrf.mxu1  ;;  %v13924_v59 = vmov 0.0  }
 0x262   :  { %v1044_v28 = vpop.f32.mrf.mxu0 }
 0x263   :  { %v1234_v31 = vmax.f32 %v1225_v18, 0.0  ;;  %v1045_v35 = vadd.f32 %v1044_v28, %v907_v41  ;;  %v1186_v42 = vpop.f32.mrf.mxu1  ;;  %v1573_v18 = vld [vmem:[#allocation11 + $0x48] sm:$0xff] }
 0x264   :  { %v10577_v50 = vpop.f32.mrf.mxu0 }
 0x265   :  { %v12245_v52 = vmul.f32 %v11946_v11, %v1234_v31  ;;  %v1226_v57 = vadd.f32 %v1186_v42, %v1045_v35  ;;  %v10612_v1 = vpop.f32.mrf.mxu1  ;;  %v1572_v35 = vld [vmem:[#allocation11 + $0x40] sm:$0xff] }
 0x266   :  { %v1049_v8 = vpop.f32.mrf.mxu0 }
 0x267   :  { %v1235_v20 = vmax.f32 %v1226_v57, 0.0  ;;  %v1050_v13 = vadd.f32 %v1049_v8, %v912_v45  ;;  %v1191_v0 = vpop.f32.mrf.mxu1  ;;  %10643 = vmatmul.mubr.msk.f32.vlgmr.msra.gmra.mxu0 %vm13853_vm8, %v12245_v52 }
 0x268   :  { %v10580_v14 = vpop.f32.mrf.mxu0  ;;  %10645 = vmatprep.mubr.msk.f32.mxu0 %vm13854_vm0, %v13924_v59  ;;  %10705 = vmatpush3.msra.mxu0 %v1575_v4 }
 0x269   :  { %v12252_v41 = vmul.f32 %v11960_v27, %v1235_v20  ;;  %v1227_v17 = vadd.f32 %v1191_v0, %v1050_v13  ;;  %v10615_v60 = vpop.f32.mrf.mxu1  ;;  %10706 = vmatprep.subr.mxu0 %v13924_v59 }
 0x26a   :  { %v1054_v23 = vpop.f32.mrf.mxu0  ;;  %10707 = vmatpush3.msra.mxu0 %v1574_v32 }
 0x26b   :  { %v1236_v45 = vmax.f32 %v1227_v17, 0.0  ;;  %v1055_v28 = vadd.f32 %v1054_v23, %v917_v51  ;;  %v1196_v31 = vpop.f32.mrf.mxu1  ;;  %10646 = vmatmul.mubr.msk.f32.gmra.mxu0 %vm13853_vm8, %v12252_v41  ;;  %10708 = vmatprep.subr.mxu0 %v13924_v59 }
 0x26c   :  { %v10583_v42 = vpop.f32.mrf.mxu0  ;;  %10648 = vmatprep.mubr.msk.f32.mxu0 %vm13854_vm0, %v13924_v59  ;;  %10709 = vmatpush3.msra.mxu0 %v1573_v18 }
 0x26d   :  { %v12261_v0 = vmul.f32 %v11985_v44, %v1236_v45  ;;  %v1228_v20 = vadd.f32 %v1196_v31, %v1055_v28  ;;  %v10618_v50 = vpop.f32.mrf.mxu1  ;;  %10710 = vmatprep.subr.mxu0 %v13924_v59 }
 0x26e   :  { %v1059_v51 = vpop.f32.mrf.mxu0  ;;  %10711 = vmatpush3.msra.mxu0 %v1572_v35 }
 0x26f   :  { %v1237_v57 = vmax.f32 %v1228_v20, 0.0  ;;  %v1060_v1 = vadd.f32 %v1059_v51, %v922_v56  ;;  %v1201_v4 = vpop.f32.mrf.mxu1  ;;  %10649 = vmatmul.mubr.msk.f32.gmra.mxu0 %vm13853_vm8, %v12261_v0  ;;  %10821 = vmatprep.subr.mxu0 %v13924_v59 }
 0x270   :  { %v10586_v8 = vpop.f32.mrf.mxu0  ;;  %10651 = vmatprep.mubr.msk.f32.mxu0 %vm13854_vm0, %v13924_v59 }
 0x271   :  { %v12270_v13 = vmul.f32 %v12013_v58, %v1237_v57  ;;  %v1229_v32 = vadd.f32 %v1201_v4, %v1060_v1  ;;  %v10621_v14 = vpop.f32.mrf.mxu1 }
 0x272   :  { %v1064_v17 = vpop.f32.mrf.mxu0 }
 0x273   :  { %v1238_v60 = vmax.f32 %v1229_v32, 0.0  ;;  %v1065_v18 = vadd.f32 %v1064_v17, %v12236_v62  ;;  %v1206_v56 = vpop.f32.mrf.mxu1  ;;  %10652 = vmatmul.mubr.msk.f32.gmra.mxu0 %vm13853_vm8, %v12270_v13 }
 0x274   :  { %v10589_v23 = vpop.f32.mrf.mxu0  ;;  %10654 = vmatprep.mubr.msk.f32.mxu0 %vm13854_vm0, %v13924_v59 }
 0x275   :  { %v12278_v45 = vmul.f32 %v12033_v6, %v1238_v60  ;;  %v1230_v28 = vadd.f32 %v1206_v56, %v1065_v18  ;;  %v10624_v31 = vpop.f32.mrf.mxu1 }
 0x276   :  { %v1069_v35 = vpop.f32.mrf.mxu0 }
 0x277   :  { %v1239_v42 = vmax.f32 %v1230_v28, 0.0  ;;  %v1070_v20 = vadd.f32 %v1069_v35, %v12238_v3  ;;  %v1211_v50 = vpop.f32.mrf.mxu1  ;;  %10655 = vmatmul.mubr.msk.f32.gmra.mxu0 %vm13853_vm8, %v12278_v45 }
 0x278   :  { %v10592_v62 = vpop.f32.mrf.mxu0  ;;  %10657 = vmatprep.mubr.msk.f32.mxu0 %vm13854_vm0, %v13924_v59 }
 0x279   :  { %v12286_v51 = vmul.f32 %v12049_v15, %v1239_v42  ;;  %v1231_v57 = vadd.f32 %v1211_v50, %v1070_v20  ;;  %v10627_v1 = vpop.f32.mrf.mxu1  ;;  %v1271_v62 = vrot.slane %v12252_v41, 1 }
 0x27a   :  { %v1074_v4 = vpop.f32.mrf.mxu0 }
 0x27b   :  { %v1240_v8 = vmax.f32 %v1231_v57, 0.0  ;;  %v1075_v32 = vadd.f32 %v1074_v4, %v12240_v7  ;;  %v1216_v14 = vpop.f32.mrf.mxu1  ;;  %10658 = vmatmul.mubr.msk.f32.gmra.mxu0 %vm13853_vm8, %v12286_v51  ;;  %v1252_v57 = vrot.slane %v12245_v52, 7  ;;  %v1270_v4 = vrot.slane %v12245_v52, 1 }
 0x27c   :  { %v10595_v3 = vpop.f32.mrf.mxu0  ;;  %10660 = vmatprep.mubr.msk.f32.mxu0 %vm13854_vm0, %v13924_v59 }
 0x27d   :  { %v12294_v17 = vmul.f32 %v12065_v29, %v1240_v8  ;;  %v1232_v60 = vadd.f32 %v1216_v14, %v1075_v32  ;;  %v10630_v18 = vpop.f32.mrf.mxu1  ;;  %v1253_v8 = vrot.slane %v12252_v41, 7  ;;  %v1272_v14 = vrot.slane %v12261_v0, 1 }
 0x27e   :  { %v1079_v56 = vpop.f32.mrf.mxu0  ;;  %v1286_v3 = vsel %vm13848_vm11, %v1270_v4, %v1271_v62  ;;  %v1254_v41 = vrot.slane %v12261_v0, 7  ;;  %v1273_v18 = vrot.slane %v12270_v13, 1  ;;  %v1255_v0 = vrot.slane %v12270_v13, 7 }
 0x27f   :  { %v1241_v23 = vmax.f32 %v1232_v60, 0.0  ;;  %v1080_v28 = vadd.f32 %v1079_v56, %v12242_v10  ;;  %v1221_v31 = vpop.f32.mrf.mxu1  ;;  %10661 = vmatmul.mubr.msk.f32.gmra.mxu0 %vm13853_vm8, %v12294_v17  ;;  %v1268_v60 = vsel %vm13849_vm14, %v1252_v57, %v1253_v8  ;;  %v1285_v56 = vsel %vm13848_vm11, %v1271_v62, %v1272_v14 }
 0x280   :  { %v10598_v7 = vpop.f32.mrf.mxu0  ;;  %10663 = vmatprep.mubr.msk.f32.mxu0 %vm13854_vm0, %v13924_v59  ;;  %v1256_v13 = vrot.slane %v12278_v45, 7  ;;  %v1276_v62 = vrot.slane %v12294_v17, 1 }
 0x281   :  { %v12302_v35 = vmul.f32 %v12081_v39, %v1241_v23  ;;  %v1233_v42 = vadd.f32 %v1221_v31, %v1080_v28  ;;  %v10633_v20 = vpop.f32.mrf.mxu1  ;;  %v1267_v23 = vsel %vm13849_vm14, %v1253_v8, %v1254_v41  ;;  %v1274_v28 = vrot.slane %v12278_v45, 1 }
 0x282   :  { %v1284_v31 = vsel %vm13848_vm11, %v1272_v14, %v1273_v18  ;;  %v1266_v7 = vsel %vm13849_vm14, %v1254_v41, %v1255_v0  ;;  %v1257_v45 = vrot.slane %v12286_v51, 7 }
 0x283   :  { %v1242_v50 = vmax.f32 %v1233_v42, 0.0  ;;  %10664 = vmatmul.mubr.msk.f32.gmra.mxu0 %vm13853_vm8, %v12302_v35  ;;  %v1275_v42 = vrot.slane %v12286_v51, 1  ;;  %v1283_v20 = vsel %vm13848_vm11, %v1273_v18, %v1274_v28  ;;  %v1258_v51 = vrot.slane %v12294_v17, 7 }
 0x284   :  { %10666 = vmatprep.mubr.msk.f32.mxu0 %vm13854_vm0, %v13924_v59  ;;  %v1264_v8 = vsel %vm13849_vm14, %v1256_v13, %v1257_v45  ;;  %v1259_v17 = vrot.slane %v12302_v35, 7 }
 0x285   :  { %v12309_v10 = vmul.f32 %v12097_v48, %v1242_v50  ;;  %v1265_v50 = vsel %vm13849_vm14, %v1255_v0, %v1256_v13  ;;  %v1281_v14 = vsel %vm13848_vm11, %v1275_v42, %v1276_v62 }
 0x287   :  { %v1260_v1 = vrot.slane %v12309_v10, 7  ;;  %10667 = vmatmul.mubr.msk.f32.gmra.mxu0 %vm13853_vm8, %v12309_v10  ;;  %v1278_v41 = vrot.slane %v12309_v10, 1 }
 0x288   :  { %10712 = vmatprep.mubr.msk.f32.mxu0 %vm13854_vm0, %v13924_v59 }
 0x289   :  { %v1269_v32 = vsel %vm13849_vm14, %v1260_v1, %v1252_v57  ;;  %v1282_v57 = vsel %vm13848_vm11, %v1274_v28, %v1275_v42  ;;  %v1287_v0 = vsel %vm13848_vm11, %v1278_v41, %v1270_v4 }
 0x28a   :  { %10678 = vmatmul.mubr.msk.f32.vlgmr.msra.gmra.mxu1 %vm13853_vm8, %v1269_v32  ;;  %v1277_v32 = vrot.slane %v12302_v35, 1  ;;  %v1262_v35 = vsel %vm13849_vm14, %v1258_v51, %v1259_v17 }
 0x28b   :  { %10713 = vmatmul.mubr.msk.f32.vlgmr.msra.gmra.mxu0 %vm13853_vm8, %v1286_v3  ;;  %10680 = vmatprep.mubr.msk.f32.mxu1 %vm13854_vm0, %v13924_v59  ;;  %v1263_v3 = vsel %vm13849_vm14, %v1257_v45, %v1258_v51 }
 0x28c   :  { %10715 = vmatprep.mubr.msk.f32.mxu0 %vm13854_vm0, %v13924_v59  ;;  %v1279_v18 = vsel %vm13848_vm11, %v1277_v32, %v1278_v41 }
 0x28e   :  { %10681 = vmatmul.mubr.msk.f32.gmra.mxu1 %vm13853_vm8, %v1268_v60  ;;  %v1280_v60 = vsel %vm13848_vm11, %v1276_v62, %v1277_v32 }
 0x28f   :  { %10716 = vmatmul.mubr.msk.f32.gmra.mxu0 %vm13853_vm8, %v1285_v56  ;;  %10683 = vmatprep.mubr.msk.f32.mxu1 %vm13854_vm0, %v13924_v59  ;;  %v1261_v56 = vsel %vm13849_vm14, %v1259_v17, %v1260_v1 }
 0x290   :  { %10718 = vmatprep.mubr.msk.f32.mxu0 %vm13854_vm0, %v13924_v59 }
 0x292   :  { %10684 = vmatmul.mubr.msk.f32.gmra.mxu1 %vm13853_vm8, %v1267_v23 }
 0x293   :  { %10719 = vmatmul.mubr.msk.f32.gmra.mxu0 %vm13853_vm8, %v1284_v31  ;;  %10686 = vmatprep.mubr.msk.f32.mxu1 %vm13854_vm0, %v13924_v59 }
 0x294   :  { %10721 = vmatprep.mubr.msk.f32.mxu0 %vm13854_vm0, %v13924_v59 }
 0x296   :  { %10687 = vmatmul.mubr.msk.f32.gmra.mxu1 %vm13853_vm8, %v1266_v7 }
 0x297   :  { %10722 = vmatmul.mubr.msk.f32.gmra.mxu0 %vm13853_vm8, %v1283_v20  ;;  %10689 = vmatprep.mubr.msk.f32.mxu1 %vm13854_vm0, %v13924_v59 }
 0x298   :  { %10724 = vmatprep.mubr.msk.f32.mxu0 %vm13854_vm0, %v13924_v59 }
 0x29a   :  { %10690 = vmatmul.mubr.msk.f32.gmra.mxu1 %vm13853_vm8, %v1265_v50 }
 0x29b   :  { %10725 = vmatmul.mubr.msk.f32.gmra.mxu0 %vm13853_vm8, %v1282_v57  ;;  %10692 = vmatprep.mubr.msk.f32.mxu1 %vm13854_vm0, %v13924_v59 }
 0x29c   :  { %10727 = vmatprep.mubr.msk.f32.mxu0 %vm13854_vm0, %v13924_v59 }
 0x29e   :  { %10693 = vmatmul.mubr.msk.f32.gmra.mxu1 %vm13853_vm8, %v1264_v8 }
 0x29f   :  { %10728 = vmatmul.mubr.msk.f32.gmra.mxu0 %vm13853_vm8, %v1281_v14  ;;  %10695 = vmatprep.mubr.msk.f32.mxu1 %vm13854_vm0, %v13924_v59 }
 0x2a0   :  { %10730 = vmatprep.mubr.msk.f32.mxu0 %vm13854_vm0, %v13924_v59 }
 0x2a2   :  { %10696 = vmatmul.mubr.msk.f32.gmra.mxu1 %vm13853_vm8, %v1263_v3 }
 0x2a3   :  { %10731 = vmatmul.mubr.msk.f32.gmra.mxu0 %vm13853_vm8, %v1280_v60  ;;  %10698 = vmatprep.mubr.msk.f32.mxu1 %vm13854_vm0, %v13924_v59 }
 0x2a4   :  { %10733 = vmatprep.mubr.msk.f32.mxu0 %vm13854_vm0, %v13924_v59 }
 0x2a6   :  { %10699 = vmatmul.mubr.msk.f32.gmra.mxu1 %vm13853_vm8, %v1262_v35 }
 0x2a7   :  { %10734 = vmatmul.mubr.msk.f32.gmra.mxu0 %vm13853_vm8, %v1279_v18  ;;  %10701 = vmatprep.mubr.msk.f32.mxu1 %vm13854_vm0, %v13924_v59 }
 0x2a8   :  { %10736 = vmatprep.mubr.msk.f32.mxu0 %vm13854_vm0, %v13924_v59 }
 0x2aa   :  { %10702 = vmatmul.mubr.msk.f32.gmra.mxu1 %vm13853_vm8, %v1261_v56 }
 0x2ab   :  { %10737 = vmatmul.mubr.msk.f32.gmra.mxu0 %vm13853_vm8, %v1287_v0  ;;  %10757 = vmatprep.mubr.msk.f32.mxu1 %vm13854_vm0, %v13924_v59 }
 0x2ac   :  { %10829 = vmatprep.mubr.msk.f32.mxu0 %vm13854_vm0, %v13924_v59 }
 0x327   :  { %v12431_v23 = vpop.f32.mrf.mxu0 }
 0x329   :  { %v10644_v10 = vpop.f32.mrf.mxu0 }
 0x32b   :  { %v12433_v28 = vpop.f32.mrf.mxu0 }
 0x32d   :  { %v10647_v1 = vpop.f32.mrf.mxu0 }
 0x32f   :  { %v12435_v31 = vpop.f32.mrf.mxu0 }
 0x331   :  { %v10650_v52 = vpop.f32.mrf.mxu0 }
 0x332   :  { %v13925_v52 = vlaneseq }
 0x333   :  { %v12437_v13 = vpop.f32.mrf.mxu0 }
 0x335   :  { %v10653_v4 = vpop.f32.mrf.mxu0 }
 0x336   :  { %v12450_v4 = vand.u32 127, %v13925_v52 }
 0x337   :  { %v1410_v7 = vpop.f32.mrf.mxu0 }
 0x339   :  { %v10656_v42 = vpop.f32.mrf.mxu0 }
 0x33b   :  { %v1415_v20 = vpop.f32.mrf.mxu0 }
 0x33d   :  { %v10659_v45 = vpop.f32.mrf.mxu0 }
 0x33f   :  { %v1420_v50 = vpop.f32.mrf.mxu0 }
 0x341   :  { %v10662_v62 = vpop.f32.mrf.mxu0 }
 0x343   :  { %v1425_v57 = vpop.f32.mrf.mxu0 }
 0x345   :  { %v10665_v51 = vpop.f32.mrf.mxu0 }
 0x347   :  { %v1430_v8 = vpop.f32.mrf.mxu0 }
 0x349   :  { %v10668_v32 = vpop.f32.mrf.mxu0 }
 0x34a   :  { %v12439_v14 = vpop.f32.mrf.mxu1 }
 0x34b   :  { %v12441_v17 = vpop.f32.mrf.mxu0 }
 0x34c   :  { %v10679_v3 = vpop.f32.mrf.mxu1 }
 0x34d   :  { %v10714_v41 = vpop.f32.mrf.mxu0  ;;  %v12453_v32 = vmul.u32.u64.low 3817748708, %v12450_v4  ;;  %v12454_v3 = vmul.u32.u64.high 3817748708, %v12450_v4, %v12453_v32 }
 0x34e   :  { %v12443_v60 = vpop.f32.mrf.mxu1 }
 0x34f   :  { %v12445_v35 = vpop.f32.mrf.mxu0 }
 0x350   :  { %v10682_v18 = vpop.f32.mrf.mxu1 }
 0x351   :  { %v10717_v56 = vpop.f32.mrf.mxu0 }
 0x352   :  { %v1537_v0 = vpop.f32.mrf.mxu1 }
 0x353   :  { %v12447_v10 = vpop.f32.mrf.mxu0 }
 0x354   :  { %v10685_v1 = vpop.f32.mrf.mxu1 }
 0x355   :  { %v10720_v42 = vpop.f32.mrf.mxu0  ;;  %v523_v1 = vshrl.u32 %v12454_v3, 5  ;;  %v533_v3 = vmul.u32 36, %v11865_v21 }
 0x356   :  { %v1542_v45 = vpop.f32.mrf.mxu1 }
 0x357   :  { %v1684_v62 = vpop.f32.mrf.mxu0  ;;  %v524_v40 = vmul.u32 36, %v523_v1  ;;  %vm534_vm9 = vcmp.ge.s32.totalorder %v12450_v4, %v533_v3 }
 0x358   :  { %v10688_v51 = vpop.f32.mrf.mxu1 }
 0x359   :  { %v10723_v41 = vpop.f32.mrf.mxu0  ;;  %v525_v32 = vsub.s32 %v12450_v4, %v524_v40 }
 0x35a   :  { %v1547_v53 = vpop.f32.mrf.mxu1 }
 0x35b   :  { %v1689_v46 = vpop.f32.mrf.mxu0  ;;  %vm528_vm2 = vcmp.ne.s32.totalorder %v525_v32, 0  ;;  %vm529_vm3 = vcmp.lt.s32.totalorder %v525_v32, 0 }
 0x35c   :  { %v10691_v18 = vpop.f32.mrf.mxu1  ;;  %vm530_vm4 = vmand %vm529_vm3, %vm528_vm2 }
 0x35d   :  { %v10726_v56 = vpop.f32.mrf.mxu0 }
 0x35e   :  { %v1552_v37 = vpop.f32.mrf.mxu1 }
 0x35f   :  { %v1694_v26 = vpop.f32.mrf.mxu0 }
 0x360   :  { %v10694_v12 = vpop.f32.mrf.mxu1 }
 0x361   :  { %v10729_v52 = vpop.f32.mrf.mxu0 }
 0x362   :  { %v1557_v2 = vpop.f32.mrf.mxu1  ;;  %v1553_v52 = vadd.f32 %v1552_v37, %v1415_v20  ;;  %v535_v37 = vadd.s32 36, %v533_v3 }
 0x363   :  { %v1699_v42 = vpop.f32.mrf.mxu0  ;;  %v1558_v56 = vadd.f32 %v1557_v2, %v1420_v50 }
 0x364   :  { %v10697_v54 = vpop.f32.mrf.mxu1  ;;  %v1718_v40 = vadd.f32 %v1694_v26, %v1553_v52  ;;  %vm536_vm2 = vcmp.lt.s32.totalorder %v12450_v4, %v535_v37 }
 0x365   :  { %v10732_v51 = vpop.f32.mrf.mxu0  ;;  %v1719_v24 = vadd.f32 %v1699_v42, %v1558_v56 }
 0x366   :  { %v1562_v19 = vpop.f32.mrf.mxu1  ;;  %v1548_v51 = vadd.f32 %v1547_v53, %v1410_v7 }
 0x367   :  { %v1704_v63 = vpop.f32.mrf.mxu0  ;;  %v1563_v41 = vadd.f32 %v1562_v19, %v1425_v57  ;;  %v531_v19 = vadd.s32 36, %v525_v32 }
 0x368   :  { %v10700_v55 = vpop.f32.mrf.mxu1 }
 0x369   :  { %v10735_v47 = vpop.f32.mrf.mxu0  ;;  %v1720_v25 = vadd.f32 %v1704_v63, %v1563_v41  ;;  %v12470_v63 = vmul.f32 %v12065_v29, %v1719_v24  ;;  %v532_v53 = vsel %vm530_vm4, %v531_v19, %v525_v32  ;;  %v1528_v24 = vadd.f32 %v12439_v14, %v12431_v23  ;;  %vm12491_vm4 = vmand %vm534_vm9, %vm536_vm2 }
 0x36a   :  { %v1567_v18 = vpop.f32.mrf.mxu1  ;;  %v1543_v47 = vadd.f32 %v1542_v45, %v12437_v13  ;;  %v12478_v13 = vmul.f32 %v12049_v15, %v1718_v40  ;;  %vm538_vm3 = vcmp.ge.s32.totalorder %v532_v53, 1  ;;  %vm539_vm11 = vcmp.le.s32.totalorder %v532_v53, 34 }
 0x36b   :  { %v1568_v38 = vadd.f32 %v1567_v18, %v1430_v8  ;;  %v1709_v30 = vpop.f32.mrf.mxu0  ;;  %v12464_v2 = vmul.f32 %v12081_v39, %v1720_v25  ;;  %v1533_v25 = vadd.f32 %v12443_v60, %v12433_v28  ;;  %vm540_vm14 = vmand %vm538_vm3, %vm539_vm11  ;;  %v1713_v23 = vadd.f32 %v12441_v17, %v1528_v24  ;;  %v12525_v17 = vld [vmem:[%s13804_s4 + $0x18] sm:$0xff]  ;;  %v12534_v60 = vld [vmem:[%s13804_s4 + $0x10] sm:$0xff] }
 0x36c   :  { %v10703_v12 = vpop.f32.mrf.mxu1  ;;  %v1716_v26 = vadd.f32 %v1684_v62, %v1543_v47  ;;  %vm541_vm9 = vmand %vm12491_vm4, %vm540_vm14  ;;  %vm13852_vm11 = vcmask 588800   ;;  %v12559_v62 = vld [vmem:[#allocation14] sm:$0xff]  ;;  %vm456_vm14 = vcmp.lt.s32.totalorder %v11895_v36, 36  ;;  %vm483_vm2 = vcmp.ge.s32.totalorder %v11895_v36, 36 }
 0x36d   :  { %v1721_v54 = vadd.f32 %v1709_v30, %v1568_v38  ;;  %v10738_v1 = vpop.f32.mrf.mxu0  ;;  %v1538_v30 = vadd.f32 %v1537_v0, %v12435_v31  ;;  %v1717_v38 = vadd.f32 %v1689_v46, %v1548_v51  ;;  %v1714_v7 = vadd.f32 %v12445_v35, %v1533_v25  ;;  %v12543_v35 = vld [vmem:[%s13804_s4 + $0x8] sm:$0xff]  ;;  %v12552_v0 = vld [vmem:[%s13804_s4] sm:$0xff]  ;;  %vm12567_vm3 = vmand %vm12019_vm12, %vm456_vm14 }
 0x36e   :  { %v12497_v20 = vmul.f32 %v12013_v58, %v1716_v26  ;;  %v12515_v8 = vmul.f32 %v11946_v11, %v1713_v23  ;;  %v12519_v14 = vsel %vm541_vm9, 0.029411765, %v13924_v59  ;;  %vm12573_vm4 = vmand %vm12019_vm12, %vm483_vm2  ;;  %v1880_v1 = vsel %vm12069_vm13, %v12464_v2, -inf }
 0x36f   :  { %v12460_v55 = vmul.f32 %v12097_v48, %v1721_v54  ;;  %v1715_v46 = vadd.f32 %v12447_v10, %v1538_v30  ;;  %v12487_v31 = vmul.f32 %v12033_v6, %v1717_v38  ;;  %v12510_v57 = vmul.f32 %v11960_v27, %v1714_v7 }
 0x370   :  { %v1823_v61 = vsel %vm11934_vm15, %v12515_v8, -inf  ;;  %v1878_v54 = vsel %vm12037_vm7, %v12478_v13, -inf  ;;  %v1826_v40 = vsel %vm11996_vm6, %v12497_v20, -inf  ;;  %v1879_v30 = vsel %vm12053_vm1, %v12470_v63, -inf }
 0x371   :  { %10740 = vmatpush3.msra.mxu1 %v12460_v55  ;;  %v12503_v50 = vmul.f32 %v11985_v44, %v1715_v46  ;;  %v1881_v41 = vsel %vm12085_vm10, %v12460_v55, -inf  ;;  %v1827_v18 = vsel %vm12567_vm3, %v12487_v31, -inf  ;;  %v1877_v56 = vsel %vm12573_vm4, %v12487_v31, -inf }
 0x372   :  { %10741 = vmatprep.subr.mxu1 %v13924_v59  ;;  %v1894_v12 = vsel %vm13853_vm8, %v1881_v41, -inf  ;;  %v1836_v3 = vsel %vm13853_vm8, %v1827_v18, -inf  ;;  %v1886_v52 = vsel %vm13853_vm8, %v1877_v56, -inf  ;;  %v1832_v19 = vsel %vm13853_vm8, %v1823_v61, -inf }
 0x373   :  { %10742 = vmatpush3.msra.mxu1 %v12464_v2  ;;  %v1895_v51 = vmax.f32 %v1886_v52, %v1894_v12  ;;  %v1824_v47 = vsel %vm11949_vm5, %v12510_v57, -inf  ;;  %v1837_v37 = vmax.f32 %v1832_v19, %v1836_v3  ;;  %v1888_v38 = vsel %vm13853_vm8, %v1878_v54, -inf  ;;  %v9509_v54 = vld [vmem:[#allocation12] ss:$0 sm:$0xff] }
 0x374   :  { %10743 = vmatprep.subr.mxu1 %v13924_v59  ;;  %v1892_v53 = vsel %vm13853_vm8, %v1880_v1, -inf  ;;  %vm13932_vm12 = vnez %v13901_v33  ;;  %v1833_v24 = vsel %vm13853_vm8, %v1824_v47, -inf  ;;  %v1835_v46 = vsel %vm13853_vm8, %v1826_v40, -inf }
 0x375   :  { %10744 = vmatpush3.msra.mxu1 %v12470_v63  ;;  %v1825_v25 = vsel %vm13932_vm12, %v12503_v50, -inf  ;;  %v1896_v26 = vmax.f32 %v1895_v51, %v1888_v38  ;;  %v1890_v28 = vsel %vm13853_vm8, %v1879_v30, -inf  ;;  %v1846_v7 = vmax.f32 %v1837_v37, %v1833_v24 }
 0x376   :  { %10745 = vmatprep.subr.mxu1 %v13924_v59  ;;  %v1897_v23 = vmax.f32 %v1890_v28, %v1892_v53  ;;  %vm13851_vm9 = vcmask 64512   ;;  %vm13850_vm14 = vcmask 1040384   ;;  %vm2228_vm12 = vcmask 15360  }
 0x377   :  { %10746 = vmatpush3.msra.mxu1 %v12478_v13 }
 0x378   :  { %10747 = vmatprep.subr.mxu1 %v13924_v59  ;;  %v1898_v41 = vmax.f32 %v1896_v26, %v1897_v23 }
 0x379   :  { %10748 = vmatpush3.msra.mxu1 %v12487_v31 }
 0x37a   :  { %10749 = vmatprep.subr.mxu1 %v13924_v59  ;;  %v1899_v56 = vrot.slane %v1898_v41, 4 }
 0x37b   :  { %10750 = vmatpush3.msra.mxu1 %v12497_v20 }
 0x37c   :  { %10751 = vmatprep.subr.mxu1 %v13924_v59  ;;  %v1900_v61 = vmax.f32 %v1898_v41, %v1899_v56 }
 0x37d   :  { %10752 = vmatpush3.msra.mxu1 %v12503_v50 }
 0x37e   :  { %10753 = vmatprep.subr.mxu1 %v13924_v59  ;;  %v1901_v52 = vrot.slane %v1900_v61, 2 }
 0x37f   :  { %10754 = vmatpush3.msra.mxu1 %v12510_v57 }
 0x380   :  { %10755 = vmatprep.subr.mxu1 %v13924_v59  ;;  %v1902_v19 = vmax.f32 %v1900_v61, %v1901_v52 }
 0x381   :  { %10756 = vmatpush3.msra.mxu1 %v12515_v8 }
 0x382   :  { %10758 = vmatmul.mubr.msk.f32.vlgmr.msra.gmra.mxu1 %vm13852_vm11, %v12519_v14  ;;  %10760 = vmatprep.subr.mxu1 %v13924_v59  ;;  %v1903_v38 = vrot.slane %v1902_v19, 1 }
 0x383   :  { %10761 = vmatpush3.msra.mxu1 %v12525_v17  ;;  %10768 = vmatprep.mubr.msk.f32.mxu1 %vm13854_vm0, %v13924_v59 }
 0x384   :  { %10762 = vmatprep.subr.mxu1 %v13924_v59 }
 0x385   :  { %10763 = vmatpush3.msra.mxu1 %v12534_v60 }
 0x386   :  { %10764 = vmatprep.subr.mxu1 %v13924_v59 }
 0x387   :  { %10765 = vmatpush3.msra.mxu1 %v12543_v35 }
 0x388   :  { %10766 = vmatprep.subr.mxu1 %v13924_v59 }
 0x389   :  { %10767 = vmatpush3.msra.mxu1 %v12552_v0 }
 0x38a   :  { %10771 = vmatprep.subr.mxu1 %v13924_v59 }
 0x442   :  { %v1801_v10 = vpop.f32.mrf.mxu1 }
 0x443   :  { %10769 = vmatmul.mubr.msk.f32.vlgmr.msra.gmra.mxu1 %vm13853_vm8, %v1801_v10  ;;  %v1834_v10 = vsel %vm13853_vm8, %v1825_v25, -inf  ;;  %v1904_v25 = vmax.f32 %v1902_v19, %v1903_v38  ;;  %v13940_v38 = vld [vmem:[#allocation48_spill] sm:$0xff] }
 0x444   :  { %v10759_v45 = vpop.f32.mrf.mxu1  ;;  %10773 = vmatprep.mubr.msk.f32.mxu1 %vm13854_vm0, %v13924_v59  ;;  %10772 = vmatpush3.msra.mxu1 %v12559_v62 }
 0x445   :  { %10776 = vmatprep.subr.mxu1 %v13924_v59  ;;  %v1847_v45 = vmax.f32 %v1834_v10, %v1835_v46 }
 0x447   :  { %v1848_v18 = vmax.f32 %v1846_v7, %v1847_v45 }
 0x449   :  { %v1849_v12 = vrot.slane %v1848_v18, 4 }
 0x44b   :  { %v1850_v3 = vmax.f32 %v1848_v18, %v1849_v12 }
 0x44d   :  { %v1851_v1 = vrot.slane %v1850_v3, 2 }
 0x44f   :  { %v1852_v30 = vmax.f32 %v1850_v3, %v1851_v1  ;;  %v543_v3 = vmul.u32 36, %v12450_v4  ;;  %v13933_v1 = vld [vmem:[#allocation45_spill] sm:$0xff]  ;;  %v13934_v4 = vld [vmem:[#allocation46_spill] sm:$0xff] }
 0x451   :  { %v1853_v53 = vrot.slane %v1852_v30, 1  ;;  %vm544_vm2 = vcmp.ge.s32.totalorder %v11865_v21, %v543_v3  ;;  %vm545_vm11 = vcmp.ge.s32.totalorder %v13933_v1, %v543_v3  ;;  %vm546_vm6 = vcmp.ge.s32.totalorder %v13934_v4, %v543_v3 }
 0x453   :  { %v1854_v26 = vmax.f32 %v1852_v30, %v1853_v53  ;;  %v13942_v53 = vld [vmem:[#allocation49_spill] sm:$0xff] }
 0x503   :  { %v1987_v51 = vpop.f32.mrf.mxu1 }
 0x504   :  { %v1988_v47 = vadd.f32 %v9509_v54, %v1987_v51 }
 0x505   :  { %v10770_v40 = vpop.f32.mrf.mxu1 }
 0x506   :  { %v1991_v37 = vmax.f32 %v1988_v47, 0.0  ;;  %v13937_v40 = vld [vmem:[#allocation47_spill] sm:$0xff] }
 0x508   :  { %10774 = vmatmul.mubr.msk.f32.vlgmr.msra.gmra.mxu1 %vm13851_vm9, %v1991_v37 }
 0x509   :  { %10777 = vmatpush3.msra.mxu1 %v12525_v17  ;;  %10784 = vmatprep.mubr.msk.f32.mxu1 %vm13854_vm0, %v13924_v59  ;;  %v1906_v17 = vsel %vm13850_vm14, %v1854_v26, %v1904_v25  ;;  %v13944_v26 = vld [vmem:[#allocation50_spill] sm:$0xff] }
 0x50a   :  { %10778 = vmatprep.subr.mxu1 %v13924_v59 }
 0x50b   :  { %10779 = vmatpush3.msra.mxu1 %v12534_v60 }
 0x50c   :  { %10780 = vmatprep.subr.mxu1 %v13924_v59 }
 0x50d   :  { %10781 = vmatpush3.msra.mxu1 %v12543_v35 }
 0x50e   :  { %10782 = vmatprep.subr.mxu1 %v13924_v59 }
 0x50f   :  { %10783 = vmatpush3.msra.mxu1 %v12552_v0  ;;  %v2441_v0 = vld [vmem:[#allocation17 + $0x38] sm:$0xff] }
 0x510   :  { %10785 = vmatmul.mubr.msk.f32.vlgmr.msra.gmra.mxu1 %vm13853_vm8, %v1906_v17  ;;  %10787 = vmatprep.subr.mxu1 %v13924_v59 }
 0x511   :  { %10788 = vmatpush3.msra.mxu1 %v12559_v62  ;;  %10789 = vmatprep.mubr.msk.f32.mxu1 %vm13854_vm0, %v13924_v59  ;;  %v9511_v62 = vld [vmem:[#allocation15] ss:$0 sm:$0xff] }
 0x512   :  { %10792 = vmatprep.subr.mxu1 %v13924_v59  ;;  %10822 = vmatpush3.msra.mxu0 %v2441_v0  ;;  %v2436_v0 = vld [vmem:[#allocation17 + $0x18] sm:$0xff] }
 0x513   :  { %10823 = vmatprep.subr.mxu0 %v13924_v59 }
 0x5c8   :  { %v2070_v60 = vpop.f32.mrf.mxu1 }
 0x5c9   :  { %v2071_v10 = vadd.f32 %v9511_v62, %v2070_v60  ;;  %v13946_v60 = vld [vmem:[#allocation51_spill] sm:$0xff] }
 0x5ca   :  { %v10775_v35 = vpop.f32.mrf.mxu1 }
 0x5d0   :  { %v2143_v24 = vpop.f32.mrf.mxu1 }
 0x5d1   :  { %v2144_v46 = vadd.f32 %v9509_v54, %v2143_v24  ;;  %v553_v54 = vadd.s32 36, %v543_v3 }
 0x5d2   :  { %v10786_v28 = vpop.f32.mrf.mxu1 }
 0x5d3   :  { %v2147_v7 = vmax.f32 %v2144_v46, 0.0  ;;  %vm554_vm14 = vcmp.lt.s32.totalorder %v11865_v21, %v553_v54  ;;  %vm555_vm8 = vcmp.lt.s32.totalorder %v13933_v1, %v553_v54  ;;  %vm556_vm5 = vcmp.lt.s32.totalorder %v13934_v4, %v553_v54  ;;  %v2440_v46 = vld [vmem:[#allocation17 + $0x30] sm:$0xff]  ;;  %v2439_v28 = vld [vmem:[#allocation17 + $0x28] sm:$0xff] }
 0x5d4   :  { %vm564_vm1 = vmand %vm545_vm11, %vm555_vm8  ;;  %vm547_vm8 = vcmp.ge.s32.totalorder %v13937_v40, %v543_v3  ;;  %vm557_vm11 = vcmp.lt.s32.totalorder %v13937_v40, %v553_v54  ;;  %10824 = vmatpush3.msra.mxu0 %v2440_v46  ;;  %v2719_v40 = vld [vmem:[#allocation17 + $0x50] sm:$0xff] }
 0x5d5   :  { %10790 = vmatmul.mubr.msk.f32.vlgmr.msra.gmra.mxu1 %vm13851_vm9, %v2147_v7  ;;  %vm563_vm9 = vmand %vm544_vm2, %vm554_vm14  ;;  %vm13935_vm14 = vmmov 0   ;;  %v12655_v47 = vsel %vm564_vm1, 1.0, %v13924_v59  ;;  %vm558_vm1 = vcmp.lt.s32.totalorder %v11895_v36, %v553_v54  ;;  %10825 = vmatprep.subr.mxu0 %v13924_v59  ;;  %v2438_v7 = vld [vmem:[#allocation17 + $0x20] sm:$0xff] }
 0x5d6   :  { %10794 = vmatprep.mubr.msk.f32.mxu1 %vm13854_vm0, %v13924_v59  ;;  %vm13859_vm0 = vcmask 1041408   ;;  %v12644_v51 = vsel %vm563_vm9, 1.0, %v13924_v59  ;;  %13936 = vst [vmem:[#allocation45_spill] sm:$0xff] %v12655_v47  ;;  %vm565_vm9 = vmand %vm546_vm6, %vm556_vm5  ;;  %vm549_vm6 = vcmp.ge.s32.totalorder %v13940_v38, %v543_v3  ;;  %10826 = vmatpush3.msra.mxu0 %v2439_v28  ;;  %v2717_v28 = vld [vmem:[#allocation17 + $0x40] sm:$0xff] }
 0x5d7   :  { %v12664_v30 = vsel %vm565_vm9, 1.0, %v13924_v59  ;;  %vm566_vm2 = vmand %vm547_vm8, %vm557_vm11  ;;  %vm559_vm9 = vcmp.lt.s32.totalorder %v13940_v38, %v553_v54  ;;  %vm550_vm11 = vcmp.ge.s32.totalorder %v13942_v53, %v543_v3  ;;  %10827 = vmatprep.subr.mxu0 %v13924_v59 }
 0x5d8   :  { %13938 = vst [vmem:[#allocation46_spill] sm:$0xff] %v12664_v30  ;;  %v12673_v37 = vsel %vm566_vm2, 1.0, %v13924_v59  ;;  %vm568_vm8 = vmand %vm549_vm6, %vm559_vm9  ;;  %vm560_vm2 = vcmp.lt.s32.totalorder %v13942_v53, %v553_v54  ;;  %vm552_vm9 = vcmp.ge.s32.totalorder %v13946_v60, %v543_v3  ;;  %10828 = vmatpush3.msra.mxu0 %v2438_v7 }
 0x5d9   :  { %13939 = vst [vmem:[#allocation47_spill] sm:$0xff] %v12673_v37  ;;  %v12691_v25 = vsel %vm568_vm8, 1.0, %v13924_v59  ;;  %vm562_vm8 = vcmp.lt.s32.totalorder %v13946_v60, %v553_v54  ;;  %10891 = vmatprep.subr.mxu0 %v13924_v59  ;;  %v13954_v60 = vld [vmem:[#allocation54_spill] sm:$0xff] }
 0x5da   :  { %13943 = vst [vmem:[#allocation49_spill] sm:$0xff] %v12691_v25 }
 0x695   :  { %v2217_v23 = vpop.f32.mrf.mxu1 }
 0x696   :  { %v2218_v45 = vadd.f32 %v9511_v62, %v2217_v23  ;;  %v2435_v62 = vld [vmem:[#allocation17 + $0x10] sm:$0xff]  ;;  %v2434_v23 = vld [vmem:[#allocation17 + $0x8] sm:$0xff] }
 0x697   :  { %v10791_v41 = vpop.f32.mrf.mxu1 }
 0x698   :  { %v2221_v18 = vadd.f32 %v2218_v45, %v2071_v10  ;;  %v2433_v10 = vld [vmem:[#allocation17] sm:$0xff] }
 0x69a   :  { %v2222_v56 = vsub.f32 0.0, %v2221_v18 }
 0x69c   :  { %v2223_v12 = vmul.f32 1.442695, %v2222_v56  ;;  %v13949_v56 = vld [vmem:[#allocation52_spill] sm:$0xff] }
 0x69e   :  { %11263 = vpow2.f32 %v2223_v12 }
 0x6ab   :  { %v11264_v61 = vpop.eup %11263 }
 0x6ac   :  { %v2225_v52 = vadd.f32 1.0, %v11264_v61 }
 0x6ae   :  { %11265 = vrcp.f32 %v2225_v52 }
 0x6bb   :  { %v11266_v19 = vpop.eup %11265 }
 0x6bc   :  { %10793 = vmatpush3.msk.msra.mxu1 %vm13859_vm0, %v11266_v19  ;;  %vm548_vm0 = vcmp.ge.s32.totalorder %v11895_v36, %v543_v3  ;;  %v13951_v19 = vld [vmem:[#allocation53_spill] sm:$0xff] }
 0x6bd   :  { %10795 = vmatmul.mubr.msk.f32.vlgmr.msra.gmra.mxu1 %vm2228_vm12, %v12644_v51  ;;  %10856 = vmatprep.subr.mxu1 %v13924_v59  ;;  %vm567_vm5 = vmand %vm548_vm0, %vm558_vm1  ;;  %vm551_vm1 = vcmp.ge.s32.totalorder %v13944_v26, %v543_v3 }
 0x6be   :  { %10797 = vmatprep.mubr.msk.f32.mxu1 %vm13935_vm14, %v13924_v59  ;;  %v12682_v36 = vsel %vm567_vm5, 1.0, %v13924_v59  ;;  %vm569_vm0 = vmand %vm550_vm11, %vm560_vm2  ;;  %vm561_vm5 = vcmp.lt.s32.totalorder %v13944_v26, %v553_v54  ;;  %10857 = vmatpush3.msra.mxu1 %v2436_v0  ;;  %v2720_v54 = vld [vmem:[#allocation17 + $0x58] sm:$0xff]  ;;  %vm13952_vm2 = vcmask 261120  }
 0x6bf   :  { %13941 = vst [vmem:[#allocation48_spill] sm:$0xff] %v12682_v36  ;;  %v12700_v17 = vsel %vm569_vm0, 1.0, %v13924_v59  ;;  %vm570_vm6 = vmand %vm551_vm1, %vm561_vm5  ;;  %10858 = vmatprep.subr.mxu1 %v13924_v59 }
 0x6c0   :  { %13945 = vst [vmem:[#allocation50_spill] sm:$0xff] %v12700_v17  ;;  %v12709_v35 = vsel %vm570_vm6, 1.0, %v13924_v59  ;;  %vm571_vm11 = vmand %vm552_vm9, %vm562_vm8  ;;  %10859 = vmatpush3.msra.mxu1 %v2435_v62 }
 0x6c1   :  { %10798 = vmatmul.mubr.msk.f32.gmra.mxu1 %vm2228_vm12, %v12655_v47  ;;  %13947 = vst [vmem:[#allocation51_spill] sm:$0xff] %v12709_v35  ;;  %v12716_v24 = vsel %vm571_vm11, 1.0, %v13924_v59  ;;  %10860 = vmatprep.subr.mxu1 %v13924_v59  ;;  %vm13955_vm0 = vmmov %vm13952_vm2 }
 0x6c2   :  { %10800 = vmatprep.mubr.msk.f32.mxu1 %vm13935_vm14, %v13924_v59  ;;  %13948 = vst [vmem:[#allocation61_spill] sm:$0xff] %v12716_v24  ;;  %10861 = vmatpush3.msra.mxu1 %v2434_v23  ;;  %v13957_v23 = vld [vmem:[#allocation55_spill] sm:$0xff]  ;;  %vm13958_vm1 = vmmov %vm13955_vm0 }
 0x6c3   :  { %10862 = vmatprep.subr.mxu1 %v13924_v59  ;;  %vm13961_vm5 = vmmov %vm13955_vm0 }
 0x6c4   :  { %10863 = vmatpush3.msra.mxu1 %v2433_v10  ;;  %vm13964_vm6 = vmmov %vm13955_vm0 }
 0x6c5   :  { %10801 = vmatmul.mubr.msk.f32.gmra.mxu1 %vm2228_vm12, %v12664_v30  ;;  %10926 = vmatprep.subr.mxu1 %v13924_v59  ;;  %vm13967_vm9 = vmmov %vm13955_vm0 }
 0x6c6   :  { %10803 = vmatprep.mubr.msk.f32.mxu1 %vm13935_vm14, %v13924_v59  ;;  %vm13970_vm8 = vmmov %vm13955_vm0 }
 0x6c7   :  { %vm13973_vm11 = vmmov %vm13955_vm0 }
 0x6c9   :  { %10804 = vmatmul.mubr.msk.f32.gmra.mxu1 %vm2228_vm12, %v12673_v37 }
 0x6ca   :  { %10806 = vmatprep.mubr.msk.f32.mxu1 %vm13935_vm14, %v13924_v59 }
 0x6cd   :  { %10807 = vmatmul.mubr.msk.f32.gmra.mxu1 %vm2228_vm12, %v12682_v36 }
 0x6ce   :  { %10809 = vmatprep.mubr.msk.f32.mxu1 %vm13935_vm14, %v13924_v59 }
 0x6d1   :  { %10810 = vmatmul.mubr.msk.f32.gmra.mxu1 %vm2228_vm12, %v12691_v25 }
 0x6d2   :  { %10812 = vmatprep.mubr.msk.f32.mxu1 %vm13935_vm14, %v13924_v59 }
 0x6d5   :  { %10813 = vmatmul.mubr.msk.f32.gmra.mxu1 %vm2228_vm12, %v12700_v17 }
 0x6d6   :  { %10815 = vmatprep.mubr.msk.f32.mxu1 %vm13935_vm14, %v13924_v59 }
 0x6d9   :  { %10816 = vmatmul.mubr.msk.f32.gmra.mxu1 %vm2228_vm12, %v12709_v35 }
 0x6da   :  { %10818 = vmatprep.mubr.msk.f32.mxu1 %vm13935_vm14, %v13924_v59 }
 0x6dd   :  { %10819 = vmatmul.mubr.msk.f32.gmra.mxu1 %vm2228_vm12, %v12716_v24 }
 0x6de   :  { %10864 = vmatprep.mubr.msk.f32.mxu1 %vm13935_vm14, %v13924_v59 }
 0x77d   :  { %v2326_v45 = vpop.f32.mrf.mxu1 }
 0x77e   :  { %v2370_v41 = vmul.f32 %v2326_v45, %v12515_v8 }
 0x77f   :  { %v10796_v18 = vpop.f32.mrf.mxu1 }
 0x780   :  { %v2379_v12 = vadd.f32 %v2370_v41, %v13949_v56  ;;  %v13960_v56 = vld [vmem:[#allocation56_spill] sm:$0xff] }
 0x781   :  { %v2331_v61 = vpop.f32.mrf.mxu1 }
 0x782   :  { %v12731_v3 = vmax.f32 %v2379_v12, 0.0  ;;  %v2371_v52 = vmul.f32 %v2331_v61, %v12510_v57  ;;  %v2718_v57 = vld [vmem:[#allocation17 + $0x48] sm:$0xff] }
 0x783   :  { %v10799_v1 = vpop.f32.mrf.mxu1 }
 0x784   :  { %13950 = vst [vmem:[#allocation52_spill] sm:$0xff] %v12731_v3  ;;  %v2380_v4 = vadd.f32 %v2371_v52, %v13951_v19  ;;  %10830 = vmatmul.mubr.msk.f32.vlgmr.msra.gmra.mxu0 %vm13952_vm2, %v12731_v3  ;;  %v13963_v19 = vld [vmem:[#allocation57_spill] sm:$0xff]  ;;  %vm13975_vm2 = vmmov %vm13955_vm0 }
 0x785   :  { %v2336_v38 = vpop.f32.mrf.mxu1  ;;  %10832 = vmatprep.mubr.msk.f32.mxu0 %vm13935_vm14, %v13924_v59  ;;  %10892 = vmatpush3.msra.mxu0 %v2720_v54 }
 0x786   :  { %v12739_v8 = vmax.f32 %v2380_v4, 0.0  ;;  %v2372_v53 = vmul.f32 %v2336_v38, %v12503_v50  ;;  %10893 = vmatprep.subr.mxu0 %v13924_v59 }
 0x787   :  { %v10802_v26 = vpop.f32.mrf.mxu1  ;;  %10894 = vmatpush3.msra.mxu0 %v2719_v40 }
 0x788   :  { %13953 = vst [vmem:[#allocation53_spill] sm:$0xff] %v12739_v8  ;;  %v2381_v46 = vadd.f32 %v2372_v53, %v13954_v60  ;;  %10833 = vmatmul.mubr.msk.f32.gmra.mxu0 %vm13955_vm0, %v12739_v8  ;;  %10895 = vmatprep.subr.mxu0 %v13924_v59  ;;  %vm13976_vm0 = vcmp.lt.s32.totalorder %v11865_v21, 1 }
 0x789   :  { %v2341_v7 = vpop.f32.mrf.mxu1  ;;  %10835 = vmatprep.mubr.msk.f32.mxu0 %vm13935_vm14, %v13924_v59  ;;  %10896 = vmatpush3.msra.mxu0 %v2718_v57  ;;  %v13966_v57 = vld [vmem:[#allocation58_spill] sm:$0xff] }
 0x78a   :  { %v12749_v0 = vmax.f32 %v2381_v46, 0.0  ;;  %v2373_v50 = vmul.f32 %v2341_v7, %v12497_v20  ;;  %10897 = vmatprep.subr.mxu0 %v13924_v59  ;;  %v13969_v7 = vld [vmem:[#allocation59_spill] sm:$0xff] }
 0x78b   :  { %v10805_v62 = vpop.f32.mrf.mxu1  ;;  %10898 = vmatpush3.msra.mxu0 %v2717_v28 }
 0x78c   :  { %13956 = vst [vmem:[#allocation54_spill] sm:$0xff] %v12749_v0  ;;  %v2382_v10 = vadd.f32 %v2373_v50, %v13957_v23  ;;  %10836 = vmatmul.mubr.msk.f32.gmra.mxu0 %vm13958_vm1, %v12749_v0  ;;  %10961 = vmatprep.subr.mxu0 %v13924_v59 }
 0x78d   :  { %v2346_v45 = vpop.f32.mrf.mxu1  ;;  %10838 = vmatprep.mubr.msk.f32.mxu0 %vm13935_vm14, %v13924_v59 }
 0x78e   :  { %v12759_v41 = vmax.f32 %v2382_v10, 0.0  ;;  %v2374_v18 = vmul.f32 %v2346_v45, %v12487_v31  ;;  %v13972_v45 = vld [vmem:[#allocation60_spill] sm:$0xff] }
 0x78f   :  { %v10808_v20 = vpop.f32.mrf.mxu1 }
 0x790   :  { %13959 = vst [vmem:[#allocation55_spill] sm:$0xff] %v12759_v41  ;;  %v2383_v12 = vadd.f32 %v2374_v18, %v13960_v56  ;;  %10839 = vmatmul.mubr.msk.f32.gmra.mxu0 %vm13961_vm5, %v12759_v41  ;;  %v2416_v20 = vrot.slane %v12739_v8, 1  ;;  %v2397_v56 = vrot.slane %v12731_v3, 7  ;;  %vm13977_vm5 = vcmp.lt.s32.totalorder %v11865_v21, 7 }
 0x791   :  { %v2351_v61 = vpop.f32.mrf.mxu1  ;;  %10841 = vmatprep.mubr.msk.f32.mxu0 %vm13935_vm14, %v13924_v59 }
 0x792   :  { %v12767_v52 = vmax.f32 %v2383_v12, 0.0  ;;  %v2375_v54 = vmul.f32 %v2351_v61, %v12478_v13 }
 0x793   :  { %v10811_v1 = vpop.f32.mrf.mxu1 }
 0x794   :  { %13962 = vst [vmem:[#allocation56_spill] sm:$0xff] %v12767_v52  ;;  %v2384_v4 = vadd.f32 %v2375_v54, %v13963_v19  ;;  %10842 = vmatmul.mubr.msk.f32.gmra.mxu0 %vm13964_vm6, %v12767_v52  ;;  %v2398_v54 = vrot.slane %v12739_v8, 7  ;;  %v2417_v19 = vrot.slane %v12749_v0, 1  ;;  %vm13978_vm6 = vmmov %vm13958_vm1 }
 0x795   :  { %v2356_v31 = vpop.f32.mrf.mxu1  ;;  %10844 = vmatprep.mubr.msk.f32.mxu0 %vm13935_vm14, %v13924_v59 }
 0x796   :  { %v12775_v40 = vmax.f32 %v2384_v4, 0.0  ;;  %v2376_v38 = vmul.f32 %v2356_v31, %v12470_v63  ;;  %v2399_v31 = vrot.slane %v12749_v0, 7 }
 0x797   :  { %v10814_v53 = vpop.f32.mrf.mxu1 }
 0x798   :  { %13965 = vst [vmem:[#allocation57_spill] sm:$0xff] %v12775_v40  ;;  %v2385_v26 = vadd.f32 %v2376_v38, %v13966_v57  ;;  %10845 = vmatmul.mubr.msk.f32.gmra.mxu0 %vm13967_vm9, %v12775_v40  ;;  %vm13979_vm9 = vmmov %vm13976_vm0  ;;  %v2418_v53 = vrot.slane %v12759_v41, 1  ;;  %v2412_v57 = vsel %vm13976_vm0, %v2398_v54, %v2399_v31 }
 0x799   :  { %v2361_v13 = vpop.f32.mrf.mxu1  ;;  %10847 = vmatprep.mubr.msk.f32.mxu0 %vm13935_vm14, %v13924_v59  ;;  %v2413_v4 = vsel %vm13979_vm9, %v2397_v56, %v2398_v54  ;;  %vm13984_vm9 = vmmov %vm13976_vm0 }
 0x79a   :  { %v12783_v60 = vmax.f32 %v2385_v26, 0.0  ;;  %v2377_v46 = vmul.f32 %v2361_v13, %v12464_v2  ;;  %v2400_v26 = vrot.slane %v12759_v41, 7  ;;  %v2429_v13 = vsel %vm13977_vm5, %v2417_v19, %v2418_v53 }
 0x79b   :  { %v10817_v28 = vpop.f32.mrf.mxu1 }
 0x79c   :  { %13968 = vst [vmem:[#allocation58_spill] sm:$0xff] %v12783_v60  ;;  %v2386_v50 = vadd.f32 %v2377_v46, %v13969_v7  ;;  %10848 = vmatmul.mubr.msk.f32.gmra.mxu0 %vm13970_vm8, %v12783_v60  ;;  %vm13980_vm8 = vmmov %vm13958_vm1  ;;  %v2419_v46 = vrot.slane %v12767_v52, 1  ;;  %v2411_v28 = vsel %vm13984_vm9, %v2399_v31, %v2400_v26  ;;  %v2401_v7 = vrot.slane %v12767_v52, 7 }
 0x79d   :  { %v2366_v63 = vpop.f32.mrf.mxu1  ;;  %10850 = vmatprep.mubr.msk.f32.mxu0 %vm13935_vm14, %v13924_v59  ;;  %vm13989_vm9 = vmmov %vm13976_vm0 }
 0x79e   :  { %v12791_v62 = vmax.f32 %v2386_v50, 0.0  ;;  %v2378_v23 = vmul.f32 %v2366_v63, %v12460_v55  ;;  %v2415_v55 = vrot.slane %v12731_v3, 1  ;;  %v2420_v63 = vrot.slane %v12775_v40, 1 }
 0x79f   :  { %v10820_v10 = vpop.f32.mrf.mxu1 }
 0x7a0   :  { %13971 = vst [vmem:[#allocation59_spill] sm:$0xff] %v12791_v62  ;;  %v2387_v18 = vadd.f32 %v2378_v23, %v13972_v45  ;;  %10851 = vmatmul.mubr.msk.f32.gmra.mxu0 %vm13973_vm11, %v12791_v62  ;;  %v2431_v1 = vsel %vm13977_vm5, %v2415_v55, %v2416_v20  ;;  %vm13981_vm11 = vmmov %vm13977_vm5  ;;  %v2410_v23 = vsel %vm13976_vm0, %v2400_v26, %v2401_v7  ;;  %v2402_v10 = vrot.slane %v12775_v40, 7 }
 0x7a1   :  { %10853 = vmatprep.mubr.msk.f32.mxu0 %vm13935_vm14, %v13924_v59  ;;  %v2430_v38 = vsel %vm13981_vm11, %v2416_v20, %v2417_v19  ;;  %vm13986_vm11 = vmmov %vm13977_vm5  ;;  %v2427_v45 = vsel %vm13977_vm5, %v2419_v46, %v2420_v63  ;;  %v2422_v54 = vrot.slane %v12791_v62, 1  ;;  %v2404_v19 = vrot.slane %v12791_v62, 7 }
 0x7a2   :  { %v12799_v2 = vmax.f32 %v2387_v18, 0.0  ;;  %v2428_v50 = vsel %vm13986_vm11, %v2418_v53, %v2419_v46  ;;  %v2421_v18 = vrot.slane %v12783_v60, 1  ;;  %v2409_v20 = vsel %vm13989_vm9, %v2401_v7, %v2402_v10  ;;  %vm13991_vm11 = vmmov %vm13977_vm5  ;;  %v2927_v46 = vld [vmem:[#allocation18 + $0x28] sm:$0xff]  ;;  %v2923_v7 = vld [vmem:[#allocation18 + $0x10] sm:$0xff] }
 0x7a3   :  { %vm13994_vm9 = vmmov %vm13976_vm0 }
 0x7a4   :  { %13974 = vst [vmem:[#allocation60_spill] sm:$0xff] %v12799_v2  ;;  %v2405_v12 = vrot.slane %v12799_v2, 7  ;;  %10854 = vmatmul.mubr.msk.f32.gmra.mxu0 %vm13975_vm2, %v12799_v2  ;;  %vm13982_vm2 = vmmov %vm13958_vm1  ;;  %v2423_v31 = vrot.slane %v12799_v2, 1 }
 0x7a5   :  { %10899 = vmatprep.mubr.msk.f32.mxu0 %vm13935_vm14, %v13924_v59 }
 0x7a6   :  { %v2414_v61 = vsel %vm13976_vm0, %v2405_v12, %v2397_v56  ;;  %v2403_v56 = vrot.slane %v12783_v60, 7  ;;  %v2432_v26 = vsel %vm13977_vm5, %v2423_v31, %v2415_v55  ;;  %v2926_v55 = vld [vmem:[#allocation18 + $0x20] sm:$0xff] }
 0x7a7   :  { %10865 = vmatmul.mubr.msk.f32.vlgmr.msra.gmra.mxu1 %vm13958_vm1, %v2414_v61  ;;  %v2426_v61 = vsel %vm13991_vm11, %v2420_v63, %v2421_v18  ;;  %vm13996_vm11 = vmmov %vm13977_vm5  ;;  %v2921_v63 = vld [vmem:[#allocation18] sm:$0xff] }
 0x7a8   :  { %10900 = vmatmul.mubr.msk.f32.vlgmr.msra.gmra.mxu0 %vm13978_vm6, %v2431_v1  ;;  %10867 = vmatprep.mubr.msk.f32.mxu1 %vm13935_vm14, %v13924_v59  ;;  %vm13983_vm6 = vmmov %vm13958_vm1  ;;  %v2408_v1 = vsel %vm13976_vm0, %v2402_v10, %v2403_v56  ;;  %v2424_v53 = vsel %vm13996_vm11, %v2422_v54, %v2423_v31 }
 0x7a9   :  { %10902 = vmatprep.mubr.msk.f32.mxu0 %vm13935_vm14, %v13924_v59  ;;  %vm14001_vm11 = vmmov %vm13958_vm1 }
 0x7ab   :  { %10868 = vmatmul.mubr.msk.f32.gmra.mxu1 %vm13980_vm8, %v2413_v4  ;;  %vm13985_vm8 = vmmov %vm13958_vm1  ;;  %v2425_v4 = vsel %vm13977_vm5, %v2421_v18, %v2422_v54 }
 0x7ac   :  { %10903 = vmatmul.mubr.msk.f32.gmra.mxu0 %vm13982_vm2, %v2430_v38  ;;  %10870 = vmatprep.mubr.msk.f32.mxu1 %vm13935_vm14, %v13924_v59  ;;  %vm13987_vm2 = vmmov %vm13958_vm1  ;;  %v2407_v38 = vsel %vm13994_vm9, %v2403_v56, %v2404_v19 }
 0x7ad   :  { %10905 = vmatprep.mubr.msk.f32.mxu0 %vm13935_vm14, %v13924_v59  ;;  %vm13999_vm9 = vmmov %vm13958_vm1 }
 0x7af   :  { %10871 = vmatmul.mubr.msk.f32.gmra.mxu1 %vm13958_vm1, %v2412_v57  ;;  %v2406_v57 = vsel %vm13976_vm0, %v2404_v19, %v2405_v12  ;;  %v2928_v12 = vld [vmem:[#allocation18 + $0x30] sm:$0xff]  ;;  %vm14003_vm0 = vmmov %vm13958_vm1 }
 0x7b0   :  { %10906 = vmatmul.mubr.msk.f32.gmra.mxu0 %vm13983_vm6, %v2429_v13  ;;  %10873 = vmatprep.mubr.msk.f32.mxu1 %vm13935_vm14, %v13924_v59  ;;  %vm13988_vm6 = vmmov %vm13958_vm1  ;;  %v2929_v13 = vld [vmem:[#allocation18 + $0x38] sm:$0xff] }
 0x7b1   :  { %10908 = vmatprep.mubr.msk.f32.mxu0 %vm13935_vm14, %v13924_v59  ;;  %10927 = vmatpush3.msra.mxu1 %v2929_v13  ;;  %vm14005_vm5 = vmmov %vm14003_vm0 }
 0x7b2   :  { %10928 = vmatprep.subr.mxu1 %v13924_v59 }
 0x7b3   :  { %10874 = vmatmul.mubr.msk.f32.gmra.mxu1 %vm13985_vm8, %v2411_v28  ;;  %vm13990_vm8 = vmmov %vm13958_vm1  ;;  %v2924_v28 = vld [vmem:[#allocation18 + $0x18] sm:$0xff] }
 0x7b4   :  { %10909 = vmatmul.mubr.msk.f32.gmra.mxu0 %vm13987_vm2, %v2428_v50  ;;  %10876 = vmatprep.mubr.msk.f32.mxu1 %vm13935_vm14, %v13924_v59  ;;  %vm13992_vm2 = vmmov %vm13958_vm1  ;;  %v2922_v50 = vld [vmem:[#allocation18 + $0x8] sm:$0xff] }
 0x7b5   :  { %10911 = vmatprep.mubr.msk.f32.mxu0 %vm13935_vm14, %v13924_v59  ;;  %10929 = vmatpush3.msra.mxu1 %v2928_v12 }
 0x7b6   :  { %10930 = vmatprep.subr.mxu1 %v13924_v59  ;;  %10962 = vmatpush3.msra.mxu0 %v2924_v28 }
 0x7b7   :  { %10877 = vmatmul.mubr.msk.f32.gmra.mxu1 %vm13958_vm1, %v2410_v23  ;;  %10963 = vmatprep.subr.mxu0 %v13924_v59 }
 0x7b8   :  { %10912 = vmatmul.mubr.msk.f32.gmra.mxu0 %vm13988_vm6, %v2427_v45  ;;  %10879 = vmatprep.mubr.msk.f32.mxu1 %vm13935_vm14, %v13924_v59  ;;  %vm13993_vm6 = vmmov %vm13958_vm1 }
 0x7b9   :  { %10914 = vmatprep.mubr.msk.f32.mxu0 %vm13935_vm14, %v13924_v59  ;;  %10931 = vmatpush3.msra.mxu1 %v2927_v46 }
 0x7ba   :  { %10932 = vmatprep.subr.mxu1 %v13924_v59  ;;  %10964 = vmatpush3.msra.mxu0 %v2923_v7 }
 0x7bb   :  { %10880 = vmatmul.mubr.msk.f32.gmra.mxu1 %vm13990_vm8, %v2409_v20  ;;  %vm13995_vm8 = vmmov %vm13958_vm1  ;;  %10965 = vmatprep.subr.mxu0 %v13924_v59 }
 0x7bc   :  { %10915 = vmatmul.mubr.msk.f32.gmra.mxu0 %vm13992_vm2, %v2426_v61  ;;  %10882 = vmatprep.mubr.msk.f32.mxu1 %vm13935_vm14, %v13924_v59  ;;  %vm13997_vm2 = vmmov %vm13958_vm1 }
 0x7bd   :  { %10917 = vmatprep.mubr.msk.f32.mxu0 %vm13935_vm14, %v13924_v59  ;;  %10933 = vmatpush3.msra.mxu1 %v2926_v55 }
 0x7be   :  { %10996 = vmatprep.subr.mxu1 %v13924_v59  ;;  %10966 = vmatpush3.msra.mxu0 %v2922_v50 }
 0x7bf   :  { %10883 = vmatmul.mubr.msk.f32.gmra.mxu1 %vm13958_vm1, %v2408_v1  ;;  %10967 = vmatprep.subr.mxu0 %v13924_v59 }
 0x7c0   :  { %10918 = vmatmul.mubr.msk.f32.gmra.mxu0 %vm13993_vm6, %v2425_v4  ;;  %10885 = vmatprep.mubr.msk.f32.mxu1 %vm13935_vm14, %v13924_v59  ;;  %vm13998_vm6 = vmmov %vm13958_vm1 }
 0x7c1   :  { %10920 = vmatprep.mubr.msk.f32.mxu0 %vm13935_vm14, %v13924_v59  ;;  %10968 = vmatpush3.msra.mxu0 %v2921_v63 }
 0x7c2   :  { %11031 = vmatprep.subr.mxu0 %v13924_v59 }
 0x7c3   :  { %10886 = vmatmul.mubr.msk.f32.gmra.mxu1 %vm13995_vm8, %v2407_v38  ;;  %vm14000_vm8 = vmmov %vm13958_vm1 }
 0x7c4   :  { %10921 = vmatmul.mubr.msk.f32.gmra.mxu0 %vm13997_vm2, %v2424_v53  ;;  %10888 = vmatprep.mubr.msk.f32.mxu1 %vm13935_vm14, %v13924_v59  ;;  %vm14002_vm2 = vmmov %vm13958_vm1 }
 0x7c5   :  { %10923 = vmatprep.mubr.msk.f32.mxu0 %vm13935_vm14, %v13924_v59 }
 0x7c7   :  { %10889 = vmatmul.mubr.msk.f32.gmra.mxu1 %vm13958_vm1, %v2406_v57  ;;  %vm14004_vm1 = vmmov %vm14003_vm0 }
 0x7c8   :  { %10924 = vmatmul.mubr.msk.f32.gmra.mxu0 %vm13998_vm6, %v2432_v26  ;;  %10934 = vmatprep.mubr.msk.f32.mxu1 %vm13935_vm14, %v13924_v59  ;;  %vm14006_vm6 = vmmov %vm14003_vm0 }
 0x7c9   :  { %10969 = vmatprep.mubr.msk.f32.mxu0 %vm13935_vm14, %v13924_v59 }
 0x844   :  { %v2535_v23 = vpop.f32.mrf.mxu0 }
 0x846   :  { %v10831_v10 = vpop.f32.mrf.mxu0 }
 0x848   :  { %v2540_v45 = vpop.f32.mrf.mxu0 }
 0x84a   :  { %v10834_v18 = vpop.f32.mrf.mxu0 }
 0x84c   :  { %v2545_v20 = vpop.f32.mrf.mxu0 }
 0x84e   :  { %v10837_v56 = vpop.f32.mrf.mxu0 }
 0x850   :  { %v2550_v61 = vpop.f32.mrf.mxu0 }
 0x852   :  { %v10840_v54 = vpop.f32.mrf.mxu0 }
 0x854   :  { %v2555_v1 = vpop.f32.mrf.mxu0 }
 0x856   :  { %v10843_v19 = vpop.f32.mrf.mxu0 }
 0x858   :  { %v12929_v4 = vpop.f32.mrf.mxu0 }
 0x85a   :  { %v10846_v31 = vpop.f32.mrf.mxu0 }
 0x85c   :  { %v12931_v38 = vpop.f32.mrf.mxu0 }
 0x85e   :  { %v10849_v53 = vpop.f32.mrf.mxu0 }
 0x860   :  { %v12933_v57 = vpop.f32.mrf.mxu0 }
 0x862   :  { %v10852_v26 = vpop.f32.mrf.mxu0 }
 0x863   :  { %v3208_v26 = vld [vmem:[#allocation18 + $0x58] sm:$0xff] }
 0x864   :  { %v12935_v13 = vpop.f32.mrf.mxu0 }
 0x866   :  { %v10855_v12 = vpop.f32.mrf.mxu0 }
 0x867   :  { %v2672_v46 = vpop.f32.mrf.mxu1 }
 0x868   :  { %v2673_v55 = vadd.f32 %v2672_v46, %v2535_v23  ;;  %v2814_v28 = vpop.f32.mrf.mxu0  ;;  %v3207_v23 = vld [vmem:[#allocation18 + $0x50] sm:$0xff] }
 0x869   :  { %v10866_v7 = vpop.f32.mrf.mxu1 }
 0x86a   :  { %v2858_v50 = vadd.f32 %v2814_v28, %v2673_v55  ;;  %v10901_v63 = vpop.f32.mrf.mxu0 }
 0x86b   :  { %v2677_v10 = vpop.f32.mrf.mxu1  ;;  %v3205_v63 = vld [vmem:[#allocation18 + $0x40] sm:$0xff] }
 0x86c   :  { %v2867_v18 = vmax.f32 %v2858_v50, 0.0  ;;  %v2678_v56 = vadd.f32 %v2677_v10, %v2540_v45  ;;  %v2819_v54 = vpop.f32.mrf.mxu0 }
 0x86d   :  { %v10869_v19 = vpop.f32.mrf.mxu1 }
 0x86e   :  { %v12938_v31 = vmul.f32 %v11946_v11, %v2867_v18  ;;  %v2859_v53 = vadd.f32 %v2819_v54, %v2678_v56  ;;  %v10904_v2 = vpop.f32.mrf.mxu0 }
 0x86f   :  { %v2682_v62 = vpop.f32.mrf.mxu1  ;;  %v3206_v2 = vld [vmem:[#allocation18 + $0x48] sm:$0xff] }
 0x870   :  { %v2868_v60 = vmax.f32 %v2859_v53, 0.0  ;;  %v2683_v12 = vadd.f32 %v2682_v62, %v2545_v20  ;;  %v2824_v40 = vpop.f32.mrf.mxu0  ;;  %10935 = vmatmul.mubr.msk.f32.vlgmr.msra.gmra.mxu1 %vm13999_vm9, %v12938_v31  ;;  %vm14007_vm9 = vmmov %vm14003_vm0 }
 0x871   :  { %v10872_v46 = vpop.f32.mrf.mxu1  ;;  %10937 = vmatprep.mubr.msk.f32.mxu1 %vm13935_vm14, %v13924_v59  ;;  %10997 = vmatpush3.msra.mxu1 %v3208_v26 }
 0x872   :  { %v12945_v45 = vmul.f32 %v11960_v27, %v2868_v60  ;;  %v2860_v55 = vadd.f32 %v2824_v40, %v2683_v12  ;;  %v10907_v28 = vpop.f32.mrf.mxu0  ;;  %10998 = vmatprep.subr.mxu1 %v13924_v59 }
 0x873   :  { %v2687_v7 = vpop.f32.mrf.mxu1  ;;  %10999 = vmatpush3.msra.mxu1 %v3207_v23 }
 0x874   :  { %v2869_v62 = vmax.f32 %v2860_v55, 0.0  ;;  %v2688_v20 = vadd.f32 %v2687_v7, %v2550_v61  ;;  %v2829_v50 = vpop.f32.mrf.mxu0  ;;  %10938 = vmatmul.mubr.msk.f32.gmra.mxu1 %vm14000_vm8, %v12945_v45  ;;  %11000 = vmatprep.subr.mxu1 %v13924_v59  ;;  %vm14008_vm8 = vcmp.lt.s32.totalorder %v11865_v21, 1 }
 0x875   :  { %v10875_v10 = vpop.f32.mrf.mxu1  ;;  %10940 = vmatprep.mubr.msk.f32.mxu1 %vm13935_vm14, %v13924_v59  ;;  %11001 = vmatpush3.msra.mxu1 %v3206_v2 }
 0x876   :  { %v12954_v40 = vmul.f32 %v11985_v44, %v2869_v62  ;;  %v2861_v60 = vadd.f32 %v2829_v50, %v2688_v20  ;;  %v10910_v18 = vpop.f32.mrf.mxu0  ;;  %11002 = vmatprep.subr.mxu1 %v13924_v59 }
 0x877   :  { %v2692_v61 = vpop.f32.mrf.mxu1  ;;  %11003 = vmatpush3.msra.mxu1 %v3205_v63 }
 0x878   :  { %v2870_v56 = vmax.f32 %v2861_v60, 0.0  ;;  %v2693_v54 = vadd.f32 %v2692_v61, %v2555_v1  ;;  %v2834_v19 = vpop.f32.mrf.mxu0  ;;  %10941 = vmatmul.mubr.msk.f32.gmra.mxu1 %vm14001_vm11, %v12954_v40  ;;  %11113 = vmatprep.subr.mxu1 %v13924_v59  ;;  %vm14009_vm11 = vmmov %vm14003_vm0 }
 0x879   :  { %v10878_v53 = vpop.f32.mrf.mxu1  ;;  %10943 = vmatprep.mubr.msk.f32.mxu1 %vm13935_vm14, %v13924_v59 }
 0x87a   :  { %v12963_v26 = vmul.f32 %v12013_v58, %v2870_v56  ;;  %v2862_v12 = vadd.f32 %v2834_v19, %v2693_v54  ;;  %v10913_v23 = vpop.f32.mrf.mxu0 }
 0x87b   :  { %v2697_v46 = vpop.f32.mrf.mxu1 }
 0x87c   :  { %v2871_v55 = vmax.f32 %v2862_v12, 0.0  ;;  %v2698_v28 = vadd.f32 %v2697_v46, %v12929_v4  ;;  %v2839_v1 = vpop.f32.mrf.mxu0  ;;  %10944 = vmatmul.mubr.msk.f32.gmra.mxu1 %vm14002_vm2, %v12963_v26  ;;  %vm14010_vm2 = vcmp.lt.s32.totalorder %v11865_v21, 7 }
 0x87d   :  { %v10881_v2 = vpop.f32.mrf.mxu1  ;;  %10946 = vmatprep.mubr.msk.f32.mxu1 %vm13935_vm14, %v13924_v59 }
 0x87e   :  { %v12971_v7 = vmul.f32 %v12033_v6, %v2871_v55  ;;  %v2863_v62 = vadd.f32 %v2839_v1, %v2698_v28  ;;  %v10916_v20 = vpop.f32.mrf.mxu0 }
 0x87f   :  { %v2702_v50 = vpop.f32.mrf.mxu1 }
 0x880   :  { %v2872_v63 = vmax.f32 %v2863_v62, 0.0  ;;  %v2703_v10 = vadd.f32 %v2702_v50, %v12931_v38  ;;  %v2844_v60 = vpop.f32.mrf.mxu0  ;;  %10947 = vmatmul.mubr.msk.f32.gmra.mxu1 %vm14003_vm0, %v12971_v7 }
 0x881   :  { %v10884_v4 = vpop.f32.mrf.mxu1  ;;  %10949 = vmatprep.mubr.msk.f32.mxu1 %vm13935_vm14, %v13924_v59 }
 0x882   :  { %v12979_v18 = vmul.f32 %v12049_v15, %v2872_v63  ;;  %v2864_v61 = vadd.f32 %v2844_v60, %v2703_v10  ;;  %v10919_v56 = vpop.f32.mrf.mxu0  ;;  %v2904_v60 = vrot.slane %v12945_v45, 1  ;;  %v2885_v4 = vrot.slane %v12938_v31, 7 }
 0x883   :  { %v2707_v54 = vpop.f32.mrf.mxu1  ;;  %v2903_v56 = vrot.slane %v12938_v31, 1 }
 0x884   :  { %v2873_v19 = vmax.f32 %v2864_v61, 0.0  ;;  %v2708_v53 = vadd.f32 %v2707_v54, %v12933_v57  ;;  %v2849_v12 = vpop.f32.mrf.mxu0  ;;  %10950 = vmatmul.mubr.msk.f32.gmra.mxu1 %vm14004_vm1, %v12979_v18  ;;  %v2886_v54 = vrot.slane %v12945_v45, 7  ;;  %v2887_v45 = vrot.slane %v12954_v40, 7  ;;  %vm14011_vm1 = vmmov %vm14008_vm8 }
 0x885   :  { %v10887_v38 = vpop.f32.mrf.mxu1  ;;  %10952 = vmatprep.mubr.msk.f32.mxu1 %vm13935_vm14, %v13924_v59 }
 0x886   :  { %v12987_v23 = vmul.f32 %v12065_v29, %v2873_v19  ;;  %v2865_v46 = vadd.f32 %v2849_v12, %v2708_v53  ;;  %v10922_v55 = vpop.f32.mrf.mxu0  ;;  %v2905_v53 = vrot.slane %v12954_v40, 1  ;;  %v2919_v12 = vsel %vm14010_vm2, %v2903_v56, %v2904_v60 }
 0x887   :  { %v2712_v28 = vpop.f32.mrf.mxu1  ;;  %v2901_v38 = vsel %vm14011_vm1, %v2885_v4, %v2886_v54  ;;  %v2888_v40 = vrot.slane %v12963_v26, 7 }
 0x888   :  { %v2874_v1 = vmax.f32 %v2865_v46, 0.0  ;;  %v2713_v2 = vadd.f32 %v2712_v28, %v12935_v13  ;;  %v2854_v62 = vpop.f32.mrf.mxu0  ;;  %10953 = vmatmul.mubr.msk.f32.gmra.mxu1 %vm14005_vm5, %v12987_v23  ;;  %v2906_v46 = vrot.slane %v12963_v26, 1  ;;  %vm14012_vm5 = vmmov %vm14003_vm0  ;;  %v2889_v26 = vrot.slane %v12971_v7, 7 }
 0x889   :  { %v10890_v57 = vpop.f32.mrf.mxu1  ;;  %10955 = vmatprep.mubr.msk.f32.mxu1 %vm13935_vm14, %v13924_v59 }
 0x88a   :  { %v12995_v20 = vmul.f32 %v12081_v39, %v2874_v1  ;;  %v2866_v50 = vadd.f32 %v2854_v62, %v2713_v2  ;;  %v10925_v63 = vpop.f32.mrf.mxu0  ;;  %v2907_v1 = vrot.slane %v12971_v7, 1  ;;  %v2917_v2 = vsel %vm14010_vm2, %v2905_v53, %v2906_v46 }
 0x88b   :  { %v2899_v62 = vsel %vm14011_vm1, %v2887_v45, %v2888_v40  ;;  %v2908_v57 = vrot.slane %v12979_v18, 1  ;;  %v2890_v7 = vrot.slane %v12979_v18, 7  ;;  %v2891_v18 = vrot.slane %v12987_v23, 7 }
 0x88c   :  { %v2875_v10 = vmax.f32 %v2866_v50, 0.0  ;;  %10956 = vmatmul.mubr.msk.f32.gmra.mxu1 %vm14006_vm6, %v12995_v20  ;;  %vm14013_vm6 = vmmov %vm14010_vm2 }
 0x88d   :  { %10958 = vmatprep.mubr.msk.f32.mxu1 %vm13935_vm14, %v13924_v59  ;;  %v2918_v55 = vsel %vm14013_vm6, %v2904_v60, %v2905_v53  ;;  %vm14018_vm6 = vmmov %vm14010_vm2  ;;  %v2915_v60 = vsel %vm14010_vm2, %v2907_v1, %v2908_v57 }
 0x88e   :  { %v13002_v13 = vmul.f32 %v12097_v48, %v2875_v10  ;;  %v2916_v50 = vsel %vm14018_vm6, %v2906_v46, %v2907_v1  ;;  %v2909_v10 = vrot.slane %v12987_v23, 1  ;;  %vm14023_vm6 = vmmov %vm14010_vm2  ;;  %v2892_v23 = vrot.slane %v12995_v20, 7 }
 0x890   :  { %v2893_v61 = vrot.slane %v13002_v13, 7  ;;  %10959 = vmatmul.mubr.msk.f32.gmra.mxu1 %vm14007_vm9, %v13002_v13  ;;  %vm14014_vm9 = vmmov %vm14003_vm0 }
 0x891   :  { %11004 = vmatprep.mubr.msk.f32.mxu1 %vm13935_vm14, %v13924_v59 }
 0x892   :  { %v2902_v19 = vsel %vm14008_vm8, %v2893_v61, %v2885_v4  ;;  %vm14015_vm8 = vmmov %vm14011_vm1  ;;  %v2897_v4 = vsel %vm14011_vm1, %v2889_v26, %v2890_v7 }
 0x893   :  { %10970 = vmatmul.mubr.msk.f32.vlgmr.msra.gmra.mxu0 %vm14009_vm11, %v2902_v19  ;;  %v2900_v28 = vsel %vm14015_vm8, %v2886_v54, %v2887_v45  ;;  %vm14016_vm11 = vmmov %vm14003_vm0  ;;  %v2910_v54 = vrot.slane %v12995_v20, 1  ;;  %v2914_v19 = vsel %vm14023_vm6, %v2908_v57, %v2909_v10  ;;  %v2895_v20 = vsel %vm14011_vm1, %v2891_v18, %v2892_v23 }
 0x894   :  { %11005 = vmatmul.mubr.msk.f32.vlgmr.msra.gmra.mxu1 %vm14003_vm0, %v2919_v12  ;;  %10972 = vmatprep.mubr.msk.f32.mxu0 %vm13935_vm14, %v13924_v59  ;;  %vm14020_vm8 = vmmov %vm14011_vm1  ;;  %v2911_v12 = vrot.slane %v13002_v13, 1 }
 0x895   :  { %11007 = vmatprep.mubr.msk.f32.mxu1 %vm13935_vm14, %v13924_v59  ;;  %v2898_v63 = vsel %vm14020_vm8, %v2888_v40, %v2889_v26  ;;  %vm14025_vm8 = vmmov %vm14011_vm1  ;;  %v2913_v45 = vsel %vm14010_vm2, %v2909_v10, %v2910_v54 }
 0x896   :  { %v2896_v53 = vsel %vm14025_vm8, %v2890_v7, %v2891_v18  ;;  %vm14028_vm6 = vmmov %vm14010_vm2 }
 0x897   :  { %10973 = vmatmul.mubr.msk.f32.gmra.mxu0 %vm14012_vm5, %v2901_v38  ;;  %vm14017_vm5 = vmmov %vm14003_vm0  ;;  %v2912_v38 = vsel %vm14028_vm6, %v2910_v54, %v2911_v12 }
 0x898   :  { %11008 = vmatmul.mubr.msk.f32.gmra.mxu1 %vm14014_vm9, %v2918_v55  ;;  %10975 = vmatprep.mubr.msk.f32.mxu0 %vm13935_vm14, %v13924_v59  ;;  %vm14019_vm9 = vmmov %vm14003_vm0  ;;  %v2920_v55 = vsel %vm14010_vm2, %v2911_v12, %v2903_v56 }
 0x899   :  { %11010 = vmatprep.mubr.msk.f32.mxu1 %vm13935_vm14, %v13924_v59  ;;  %vm14030_vm8 = vmmov %vm14011_vm1  ;;  %vm14032_vm1 = vcmask 588800  }
 0x89a   :  { %v2894_v46 = vsel %vm14030_vm8, %v2892_v23, %v2893_v61  ;;  %vm14034_vm6 = vmmov %vm14003_vm0 }
 0x89b   :  { %10976 = vmatmul.mubr.msk.f32.gmra.mxu0 %vm14016_vm11, %v2900_v28  ;;  %vm14021_vm11 = vmmov %vm14003_vm0 }
 0x89c   :  { %11011 = vmatmul.mubr.msk.f32.gmra.mxu1 %vm14003_vm0, %v2917_v2  ;;  %10978 = vmatprep.mubr.msk.f32.mxu0 %vm13935_vm14, %v13924_v59  ;;  %vm14036_vm8 = vmmov %vm14003_vm0 }
 0x89d   :  { %11013 = vmatprep.mubr.msk.f32.mxu1 %vm13935_vm14, %v13924_v59  ;;  %vm14044_vm2 = vmmov %vm14003_vm0 }
 0x89f   :  { %10979 = vmatmul.mubr.msk.f32.gmra.mxu0 %vm14017_vm5, %v2899_v62  ;;  %vm14022_vm5 = vmmov %vm14003_vm0 }
 0x8a0   :  { %11014 = vmatmul.mubr.msk.f32.gmra.mxu1 %vm14019_vm9, %v2916_v50  ;;  %10981 = vmatprep.mubr.msk.f32.mxu0 %vm13935_vm14, %v13924_v59  ;;  %vm14024_vm9 = vmmov %vm14003_vm0 }
 0x8a1   :  { %11016 = vmatprep.mubr.msk.f32.mxu1 %vm13935_vm14, %v13924_v59 }
 0x8a3   :  { %10982 = vmatmul.mubr.msk.f32.gmra.mxu0 %vm14021_vm11, %v2898_v63  ;;  %vm14026_vm11 = vmmov %vm14003_vm0 }
 0x8a4   :  { %11017 = vmatmul.mubr.msk.f32.gmra.mxu1 %vm14003_vm0, %v2915_v60  ;;  %10984 = vmatprep.mubr.msk.f32.mxu0 %vm13935_vm14, %v13924_v59 }
 0x8a5   :  { %11019 = vmatprep.mubr.msk.f32.mxu1 %vm13935_vm14, %v13924_v59 }
 0x8a7   :  { %10985 = vmatmul.mubr.msk.f32.gmra.mxu0 %vm14022_vm5, %v2897_v4  ;;  %vm14027_vm5 = vmmov %vm14003_vm0 }
 0x8a8   :  { %11020 = vmatmul.mubr.msk.f32.gmra.mxu1 %vm14024_vm9, %v2914_v19  ;;  %10987 = vmatprep.mubr.msk.f32.mxu0 %vm13935_vm14, %v13924_v59  ;;  %vm14029_vm9 = vmmov %vm14003_vm0 }
 0x8a9   :  { %11022 = vmatprep.mubr.msk.f32.mxu1 %vm13935_vm14, %v13924_v59 }
 0x8ab   :  { %10988 = vmatmul.mubr.msk.f32.gmra.mxu0 %vm14026_vm11, %v2896_v53  ;;  %vm14031_vm11 = vmmov %vm14003_vm0 }
 0x8ac   :  { %11023 = vmatmul.mubr.msk.f32.gmra.mxu1 %vm14003_vm0, %v2913_v45  ;;  %10990 = vmatprep.mubr.msk.f32.mxu0 %vm13935_vm14, %v13924_v59 }
 0x8ad   :  { %11025 = vmatprep.mubr.msk.f32.mxu1 %vm13935_vm14, %v13924_v59 }
 0x8af   :  { %10991 = vmatmul.mubr.msk.f32.gmra.mxu0 %vm14027_vm5, %v2895_v20  ;;  %vm14033_vm5 = vmmov %vm14003_vm0 }
 0x8b0   :  { %11026 = vmatmul.mubr.msk.f32.gmra.mxu1 %vm14029_vm9, %v2912_v38  ;;  %10993 = vmatprep.mubr.msk.f32.mxu0 %vm13935_vm14, %v13924_v59  ;;  %vm14035_vm9 = vmmov %vm14003_vm0 }
 0x8b1   :  { %11028 = vmatprep.mubr.msk.f32.mxu1 %vm13935_vm14, %v13924_v59 }
 0x8b3   :  { %10994 = vmatmul.mubr.msk.f32.gmra.mxu0 %vm14031_vm11, %v2894_v46  ;;  %vm14042_vm11 = vmmov %vm14003_vm0 }
 0x8b4   :  { %11029 = vmatmul.mubr.msk.f32.gmra.mxu1 %vm14003_vm0, %v2920_v55  ;;  %11049 = vmatprep.mubr.msk.f32.mxu0 %vm13935_vm14, %v13924_v59 }
 0x8b5   :  { %11121 = vmatprep.mubr.msk.f32.mxu1 %vm13935_vm14, %v13924_v59 }
 0x930   :  { %v13124_v40 = vpop.f32.mrf.mxu1 }
 0x932   :  { %v10936_v13 = vpop.f32.mrf.mxu1 }
 0x934   :  { %v13126_v28 = vpop.f32.mrf.mxu1 }
 0x936   :  { %v10939_v61 = vpop.f32.mrf.mxu1 }
 0x938   :  { %v13128_v1 = vpop.f32.mrf.mxu1 }
 0x93a   :  { %v10942_v31 = vpop.f32.mrf.mxu1 }
 0x93c   :  { %v3038_v2 = vpop.f32.mrf.mxu1 }
 0x93e   :  { %v10945_v26 = vpop.f32.mrf.mxu1 }
 0x940   :  { %v3043_v56 = vpop.f32.mrf.mxu1 }
 0x942   :  { %v10948_v62 = vpop.f32.mrf.mxu1 }
 0x944   :  { %v3048_v57 = vpop.f32.mrf.mxu1 }
 0x946   :  { %v10951_v50 = vpop.f32.mrf.mxu1 }
 0x948   :  { %v3053_v7 = vpop.f32.mrf.mxu1 }
 0x94a   :  { %v10954_v63 = vpop.f32.mrf.mxu1 }
 0x94c   :  { %v3058_v10 = vpop.f32.mrf.mxu1 }
 0x94e   :  { %v10957_v60 = vpop.f32.mrf.mxu1 }
 0x950   :  { %v3063_v18 = vpop.f32.mrf.mxu1 }
 0x952   :  { %v10960_v4 = vpop.f32.mrf.mxu1 }
 0x953   :  { %v3160_v54 = vpop.f32.mrf.mxu0 }
 0x954   :  { %v13130_v19 = vpop.f32.mrf.mxu1 }
 0x955   :  { %v10971_v23 = vpop.f32.mrf.mxu0 }
 0x956   :  { %v11006_v53 = vpop.f32.mrf.mxu1 }
 0x957   :  { %v3165_v12 = vpop.f32.mrf.mxu0 }
 0x958   :  { %v3307_v45 = vpop.f32.mrf.mxu1 }
 0x959   :  { %v10974_v20 = vpop.f32.mrf.mxu0 }
 0x95a   :  { %v11009_v38 = vpop.f32.mrf.mxu1 }
 0x95b   :  { %v3170_v46 = vpop.f32.mrf.mxu0 }
 0x95c   :  { %v3312_v55 = vpop.f32.mrf.mxu1 }
 0x95d   :  { %v10977_v13 = vpop.f32.mrf.mxu0 }
 0x95e   :  { %v11012_v61 = vpop.f32.mrf.mxu1 }
 0x95f   :  { %v3175_v31 = vpop.f32.mrf.mxu0 }
 0x960   :  { %v3317_v26 = vpop.f32.mrf.mxu1 }
 0x961   :  { %v10980_v62 = vpop.f32.mrf.mxu0 }
 0x962   :  { %v11015_v50 = vpop.f32.mrf.mxu1 }
 0x963   :  { %v3180_v63 = vpop.f32.mrf.mxu0 }
 0x964   :  { %v3322_v60 = vpop.f32.mrf.mxu1 }
 0x965   :  { %v10983_v4 = vpop.f32.mrf.mxu0 }
 0x966   :  { %v11018_v21 = vpop.f32.mrf.mxu1 }
 0x967   :  { %v3185_v52 = vpop.f32.mrf.mxu0 }
 0x968   :  { %v3327_v41 = vpop.f32.mrf.mxu1  ;;  %v3186_v4 = vadd.f32 %v3185_v52, %v3048_v57  ;;  %v3584_v52 = vld [vmem:[#allocation21] sm:$0xff] }
 0x969   :  { %v10986_v23 = vpop.f32.mrf.mxu0 }
 0x96a   :  { %v11021_v53 = vpop.f32.mrf.mxu1  ;;  %v3181_v23 = vadd.f32 %v3180_v63, %v3043_v56 }
 0x96b   :  { %v3190_v0 = vpop.f32.mrf.mxu0 }
 0x96c   :  { %v3332_v8 = vpop.f32.mrf.mxu1  ;;  %v3191_v62 = vadd.f32 %v3190_v0, %v3053_v7 }
 0x96d   :  { %v10989_v20 = vpop.f32.mrf.mxu0 }
 0x96e   :  { %v11024_v38 = vpop.f32.mrf.mxu1  ;;  %v3352_v53 = vadd.f32 %v3332_v8, %v3191_v62  ;;  %v3176_v20 = vadd.f32 %v3175_v31, %v3038_v2 }
 0x96f   :  { %v3195_v3 = vpop.f32.mrf.mxu0  ;;  %v3351_v38 = vadd.f32 %v3327_v41, %v3186_v4 }
 0x970   :  { %v3337_v24 = vpop.f32.mrf.mxu1  ;;  %v3196_v61 = vadd.f32 %v3195_v3, %v3058_v10 }
 0x971   :  { %v10992_v13 = vpop.f32.mrf.mxu0 }
 0x972   :  { %v11027_v35 = vpop.f32.mrf.mxu1  ;;  %v3353_v21 = vadd.f32 %v3337_v24, %v3196_v61 }
 0x973   :  { %v3200_v17 = vpop.f32.mrf.mxu0 }
 0x974   :  { %v3201_v50 = vadd.f32 %v3200_v17, %v3063_v18  ;;  %v3342_v25 = vpop.f32.mrf.mxu1  ;;  %v13136_v13 = vmul.f32 %v12081_v39, %v3353_v21  ;;  %v3350_v17 = vadd.f32 %v3322_v60, %v3181_v23  ;;  %v13148_v39 = vmul.f32 %v12049_v15, %v3351_v38  ;;  %v9580_v21 = vld [vmem:[#allocation20] ss:$0 sm:$0xff] }
 0x975   :  { %v10995_v36 = vpop.f32.mrf.mxu0 }
 0x976   :  { %v3354_v37 = vadd.f32 %v3342_v25, %v3201_v50  ;;  %v11030_v30 = vpop.f32.mrf.mxu1  ;;  %v3171_v36 = vadd.f32 %v3170_v46, %v13128_v1  ;;  %v13142_v25 = vmul.f32 %v12065_v29, %v3352_v53  ;;  %v13154_v29 = vmul.f32 %v12033_v6, %v3350_v17 }
 0x977   :  { %v3349_v30 = vadd.f32 %v3317_v26, %v3176_v20  ;;  %v3471_v43 = vsel %vm12037_vm7, %v13148_v39, -inf  ;;  %v3473_v42 = vsel %vm12069_vm13, %v13136_v13, -inf  ;;  %vm14041_vm7 = vmmov %vm14003_vm0  ;;  %vm14043_vm13 = vnez %v13901_v33 }
 0x978   :  { %v13133_v47 = vmul.f32 %v12097_v48, %v3354_v37  ;;  %v3166_v48 = vadd.f32 %v3165_v12, %v13126_v28  ;;  %v3161_v37 = vadd.f32 %v3160_v54, %v13124_v40  ;;  %v3348_v35 = vadd.f32 %v3312_v55, %v3171_v36 }
 0x979   :  { %v13159_v3 = vmul.f32 %v12013_v58, %v3349_v30  ;;  %v3438_v28 = vsel %vm12567_vm3, %v13154_v29, -inf  ;;  %v3470_v1 = vsel %vm12573_vm4, %v13154_v29, -inf  ;;  %vm14038_vm3 = vnez %v13896_v16 }
 0x97a   :  { %11032 = vmatpush3.msra.mxu0 %v13133_v47  ;;  %v3347_v24 = vadd.f32 %v3307_v45, %v3166_v48  ;;  %v3346_v15 = vadd.f32 %v13130_v19, %v3161_v37  ;;  %v13165_v8 = vmul.f32 %v11985_v44, %v3348_v35  ;;  %v13182_v44 = vld [vmem:[%s13810_s10 + $0x18] sm:$0xff]  ;;  %v3474_v40 = vsel %vm12085_vm10, %v13133_v47, -inf  ;;  %vm14037_vm10 = vmmov %vm14003_vm0 }
 0x97b   :  { %11033 = vmatprep.subr.mxu0 %v13924_v59  ;;  %v3487_v2 = vsel %vm14034_vm6, %v3474_v40, -inf  ;;  %v3447_v57 = vsel %vm14035_vm9, %v3438_v28, -inf  ;;  %v3479_v7 = vsel %vm14036_vm8, %v3470_v1, -inf  ;;  %vm14040_vm4 = vnez %v13915_v22  ;;  %vm14049_vm8 = vmmov %vm14003_vm0 }
 0x97c   :  { %11034 = vmatpush3.msra.mxu0 %v13136_v13  ;;  %v13170_v6 = vmul.f32 %v11960_v27, %v3347_v24  ;;  %v13175_v58 = vmul.f32 %v11946_v11, %v3346_v15  ;;  %v13191_v11 = vld [vmem:[%s13810_s10 + $0x10] sm:$0xff]  ;;  %v13200_v27 = vld [vmem:[%s13810_s10 + $0x8] sm:$0xff]  ;;  %v3488_v32 = vmax.f32 %v3479_v7, %v3487_v2  ;;  %v3472_v9 = vsel %vm14040_vm4, %v13142_v25, -inf  ;;  %vm14066_vm4 = vmmov %vm14003_vm0 }
 0x97d   :  { %11035 = vmatprep.subr.mxu0 %v13924_v59  ;;  %v3481_v19 = vsel %vm14041_vm7, %v3471_v43, -inf  ;;  %v3485_v34 = vsel %vm14042_vm11, %v3473_v42, -inf  ;;  %v3436_v12 = vsel %vm14043_vm13, %v13165_v8, -inf  ;;  %vm14047_vm6 = vcmask 64512   ;;  %vm14068_vm7 = vmmov %vm14003_vm0 }
 0x97e   :  { %11036 = vmatpush3.msra.mxu0 %v13142_v25  ;;  %v3434_v56 = vsel %vm11934_vm15, %v13175_v58, -inf  ;;  %v3435_v5 = vsel %vm14038_vm3, %v13170_v6, -inf  ;;  %vm14039_vm15 = vnez %v13906_v49  ;;  %v3489_v45 = vmax.f32 %v3488_v32, %v3481_v19  ;;  %v14057_v19 = vld [vmem:[#allocation50_spill] sm:$0xff]  ;;  %vm14070_vm11 = vmmov %vm14003_vm0 }
 0x97f   :  { %11037 = vmatprep.subr.mxu0 %v13924_v59  ;;  %v3443_v10 = vsel %vm14037_vm10, %v3434_v56, -inf  ;;  %v3437_v18 = vsel %vm14039_vm15, %v13159_v3, -inf  ;;  %v3444_v16 = vsel %vm14044_vm2, %v3435_v5, -inf  ;;  %vm14048_vm9 = vcmask 1040384   ;;  %vm14050_vm10 = vmmov %vm14047_vm6  ;;  %v14052_v5 = vld [vmem:[#allocation45_spill] sm:$0xff] }
 0x980   :  { %11038 = vmatpush3.msra.mxu0 %v13148_v39  ;;  %v3448_v54 = vmax.f32 %v3443_v10, %v3447_v57  ;;  %v3446_v46 = vsel %vm14003_vm0, %v3437_v18, -inf  ;;  %vm14051_vm3 = vcmask 1041408   ;;  %v14053_v18 = vld [vmem:[#allocation46_spill] sm:$0xff]  ;;  %vm14064_vm15 = vmmov %vm14003_vm0 }
 0x981   :  { %11039 = vmatprep.subr.mxu0 %v13924_v59  ;;  %vm14072_vm13 = vmmov %vm14003_vm0 }
 0x982   :  { %11040 = vmatpush3.msra.mxu0 %v13154_v29  ;;  %v3457_v55 = vmax.f32 %v3448_v54, %v3444_v16  ;;  %v14054_v54 = vld [vmem:[#allocation47_spill] sm:$0xff]  ;;  %v4001_v16 = vld [vmem:[#allocation24 + $0x28] sm:$0xff]  ;;  %vm14074_vm2 = vmmov %vm14003_vm0 }
 0x983   :  { %11041 = vmatprep.subr.mxu0 %v13924_v59 }
 0x984   :  { %11042 = vmatpush3.msra.mxu0 %v13159_v3 }
 0x985   :  { %11043 = vmatprep.subr.mxu0 %v13924_v59 }
 0x986   :  { %11044 = vmatpush3.msra.mxu0 %v13165_v8 }
 0x987   :  { %11045 = vmatprep.subr.mxu0 %v13924_v59 }
 0x988   :  { %11046 = vmatpush3.msra.mxu0 %v13170_v6 }
 0x989   :  { %11047 = vmatprep.subr.mxu0 %v13924_v59 }
 0x98a   :  { %11048 = vmatpush3.msra.mxu0 %v13175_v58 }
 0x98b   :  { %11050 = vmatmul.mubr.msk.f32.vlgmr.msra.gmra.mxu0 %vm14032_vm1, %v12519_v14  ;;  %11052 = vmatprep.subr.mxu0 %v13924_v59  ;;  %v3499_v14 = vld [vmem:[%s13810_s10] sm:$0xff]  ;;  %vm14045_vm1 = vmmov %vm14003_vm0  ;;  %s11632_s10 = smov 96  }
 0x98c   :  { %11053 = vmatpush3.msra.mxu0 %v13182_v44  ;;  %11060 = vmatprep.mubr.msk.f32.mxu0 %vm13935_vm14, %v13924_v59  ;;  %v3483_v49 = vsel %vm14045_vm1, %v3472_v9, -inf  ;;  %v14056_v9 = vld [vmem:[#allocation49_spill] sm:$0xff]  ;;  %vm14076_vm1 = vmmov %vm14003_vm0 }
 0x98d   :  { %11054 = vmatprep.subr.mxu0 %v13924_v59  ;;  %v3490_v31 = vmax.f32 %v3483_v49, %v3485_v34  ;;  %v14058_v34 = vld [vmem:[#allocation51_spill] sm:$0xff] }
 0x98e   :  { %11055 = vmatpush3.msra.mxu0 %v13191_v11  ;;  %v3998_v49 = vld [vmem:[#allocation24 + $0x18] sm:$0xff] }
 0x98f   :  { %11056 = vmatprep.subr.mxu0 %v13924_v59  ;;  %v3491_v63 = vmax.f32 %v3489_v45, %v3490_v31  ;;  %v4002_v45 = vld [vmem:[#allocation24 + $0x30] sm:$0xff]  ;;  %v3996_v31 = vld [vmem:[#allocation24 + $0x8] sm:$0xff] }
 0x990   :  { %11057 = vmatpush3.msra.mxu0 %v13200_v27 }
 0x991   :  { %11058 = vmatprep.subr.mxu0 %v13924_v59  ;;  %v3492_v61 = vrot.slane %v3491_v63, 4 }
 0x992   :  { %11059 = vmatpush3.msra.mxu0 %v3499_v14 }
 0x993   :  { %11063 = vmatprep.subr.mxu0 %v13924_v59  ;;  %v3493_v50 = vmax.f32 %v3491_v63, %v3492_v61  ;;  %v14060_v61 = vld [vmem:[#allocation52_spill] sm:$0xff] }
 0x995   :  { %v3494_v33 = vrot.slane %v3493_v50, 2 }
 0x997   :  { %v3495_v20 = vmax.f32 %v3493_v50, %v3494_v33 }
 0x999   :  { %v3496_v30 = vrot.slane %v3495_v20, 1 }
 0x99b   :  { %v3497_v35 = vmax.f32 %v3495_v20, %v3496_v30  ;;  %v14063_v30 = vld [vmem:[#allocation54_spill] sm:$0xff] }
 0xa4b   :  { %v3430_v0 = vpop.f32.mrf.mxu0 }
 0xa4c   :  { %11061 = vmatmul.mubr.msk.f32.vlgmr.msra.gmra.mxu0 %vm14033_vm5, %v3430_v0  ;;  %vm14046_vm5 = vmmov %vm14003_vm0 }
 0xa4d   :  { %v11051_v41 = vpop.f32.mrf.mxu0  ;;  %11065 = vmatprep.mubr.msk.f32.mxu0 %vm13935_vm14, %v13924_v59  ;;  %11064 = vmatpush3.msra.mxu0 %v3584_v52  ;;  %v3445_v22 = vsel %vm14046_vm5, %v3436_v12, -inf  ;;  %v14059_v12 = vld [vmem:[#allocation61_spill] sm:$0xff] }
 0xa4e   :  { %11068 = vmatprep.subr.mxu0 %v13924_v59  ;;  %v3458_v26 = vmax.f32 %v3445_v22, %v3446_v46  ;;  %v4000_v46 = vld [vmem:[#allocation24 + $0x20] sm:$0xff] }
 0xa4f   :  { %v3995_v22 = vld [vmem:[#allocation24] sm:$0xff] }
 0xa50   :  { %v3459_v60 = vmax.f32 %v3457_v55, %v3458_v26  ;;  %v3997_v55 = vld [vmem:[#allocation24 + $0x10] sm:$0xff] }
 0xa52   :  { %v3460_v62 = vrot.slane %v3459_v60, 4 }
 0xa54   :  { %v3461_v4 = vmax.f32 %v3459_v60, %v3460_v62 }
 0xa56   :  { %v3462_v23 = vrot.slane %v3461_v4, 2 }
 0xa58   :  { %v3463_v36 = vmax.f32 %v3461_v4, %v3462_v23 }
 0xa5a   :  { %v3464_v37 = vrot.slane %v3463_v36, 1 }
 0xa5c   :  { %v3465_v24 = vmax.f32 %v3463_v36, %v3464_v37 }
 0xa5e   :  { %v3498_v15 = vsel %vm14048_vm9, %v3465_v24, %v3497_v35  ;;  %v4279_v35 = vld [vmem:[#allocation24 + $0x40] sm:$0xff] }
 0xb0c   :  { %v3579_v53 = vpop.f32.mrf.mxu0 }
 0xb0d   :  { %v3580_v38 = vadd.f32 %v9580_v21, %v3579_v53  ;;  %v14061_v53 = vld [vmem:[#allocation53_spill] sm:$0xff] }
 0xb0e   :  { %v11062_v17 = vpop.f32.mrf.mxu0 }
 0xb0f   :  { %v3583_v48 = vmax.f32 %v3580_v38, 0.0  ;;  %v4281_v38 = vld [vmem:[#allocation24 + $0x50] sm:$0xff] }
 0xb11   :  { %11066 = vmatmul.mubr.msk.f32.vlgmr.msra.gmra.mxu0 %vm14047_vm6, %v3583_v48  ;;  %vm14079_vm6 = vmmov %vm14003_vm0 }
 0xb12   :  { %11069 = vmatpush3.msra.mxu0 %v13182_v44  ;;  %11076 = vmatprep.mubr.msk.f32.mxu0 %vm13935_vm14, %v13924_v59 }
 0xb13   :  { %11070 = vmatprep.subr.mxu0 %v13924_v59 }
 0xb14   :  { %11071 = vmatpush3.msra.mxu0 %v13191_v11 }
 0xb15   :  { %11072 = vmatprep.subr.mxu0 %v13924_v59 }
 0xb16   :  { %11073 = vmatpush3.msra.mxu0 %v13200_v27 }
 0xb17   :  { %11074 = vmatprep.subr.mxu0 %v13924_v59 }
 0xb18   :  { %11075 = vmatpush3.msra.mxu0 %v3499_v14  ;;  %v4003_v14 = vld [vmem:[#allocation24 + $0x38] sm:$0xff] }
 0xb19   :  { %11077 = vmatmul.mubr.msk.f32.vlgmr.msra.gmra.mxu0 %vm14049_vm8, %v3498_v15  ;;  %11079 = vmatprep.subr.mxu0 %v13924_v59  ;;  %vm14081_vm8 = vmmov %vm14003_vm0 }
 0xb1a   :  { %11080 = vmatpush3.msra.mxu0 %v3584_v52  ;;  %11081 = vmatprep.mubr.msk.f32.mxu0 %vm13935_vm14, %v13924_v59  ;;  %v9582_v52 = vld [vmem:[#allocation23] ss:$0 sm:$0xff] }
 0xb1b   :  { %11084 = vmatprep.subr.mxu0 %v13924_v59  ;;  %11114 = vmatpush3.msra.mxu1 %v4003_v14 }
 0xb1c   :  { %11115 = vmatprep.subr.mxu1 %v13924_v59 }
 0xb1d   :  { %11116 = vmatpush3.msra.mxu1 %v4002_v45 }
 0xb1e   :  { %11117 = vmatprep.subr.mxu1 %v13924_v59 }
 0xb1f   :  { %11118 = vmatpush3.msra.mxu1 %v4001_v16  ;;  %v14075_v16 = vld [vmem:[#allocation60_spill] sm:$0xff] }
 0xb20   :  { %11119 = vmatprep.subr.mxu1 %v13924_v59 }
 0xb21   :  { %11120 = vmatpush3.msra.mxu1 %v4000_v46 }
 0xb22   :  { %11183 = vmatprep.subr.mxu1 %v13924_v59 }
 0xbd1   :  { %v3661_v44 = vpop.f32.mrf.mxu0 }
 0xbd2   :  { %v3662_v1 = vadd.f32 %v9582_v52, %v3661_v44 }
 0xbd3   :  { %v11067_v11 = vpop.f32.mrf.mxu0 }
 0xbd4   :  { %v14065_v11 = vld [vmem:[#allocation55_spill] sm:$0xff] }
 0xbd9   :  { %v3734_v0 = vpop.f32.mrf.mxu0 }
 0xbda   :  { %v3735_v27 = vadd.f32 %v9580_v21, %v3734_v0  ;;  %v4282_v21 = vld [vmem:[#allocation24 + $0x58] sm:$0xff] }
 0xbdb   :  { %v11078_v41 = vpop.f32.mrf.mxu0 }
 0xbdc   :  { %v3738_v40 = vmax.f32 %v3735_v27, 0.0 }
 0xbde   :  { %11082 = vmatmul.mubr.msk.f32.vlgmr.msra.gmra.mxu0 %vm14050_vm10, %v3738_v40 }
 0xbdf   :  { %11086 = vmatprep.mubr.msk.f32.mxu0 %vm13935_vm14, %v13924_v59 }
 0xc9e   :  { %v3808_v28 = vpop.f32.mrf.mxu0 }
 0xc9f   :  { %v3809_v2 = vadd.f32 %v9582_v52, %v3808_v28  ;;  %v14067_v52 = vld [vmem:[#allocation56_spill] sm:$0xff] }
 0xca0   :  { %v11083_v56 = vpop.f32.mrf.mxu0 }
 0xca1   :  { %v3812_v57 = vadd.f32 %v3809_v2, %v3662_v1 }
 0xca3   :  { %v3813_v7 = vsub.f32 0.0, %v3812_v57  ;;  %v14069_v57 = vld [vmem:[#allocation57_spill] sm:$0xff] }
 0xca5   :  { %v3814_v43 = vmul.f32 1.442695, %v3813_v7 }
 0xca7   :  { %11267 = vpow2.f32 %v3814_v43 }
 0xcb4   :  { %v11268_v42 = vpop.eup %11267 }
 0xcb5   :  { %v3816_v32 = vadd.f32 1.0, %v11268_v42 }
 0xcb7   :  { %11269 = vrcp.f32 %v3816_v32 }
 0xcc4   :  { %v11270_v10 = vpop.eup %11269 }
 0xcc5   :  { %11085 = vmatpush3.msk.msra.mxu0 %vm14051_vm3, %v11270_v10  ;;  %v14071_v10 = vld [vmem:[#allocation58_spill] sm:$0xff]  ;;  %vm14083_vm3 = vmmov %vm14003_vm0 }
 0xcc6   :  { %11087 = vmatmul.mubr.msk.f32.vlgmr.msra.gmra.mxu0 %vm2228_vm12, %v12644_v51  ;;  %11148 = vmatprep.subr.mxu0 %v13924_v59  ;;  %v14055_v51 = vld [vmem:[#allocation48_spill] sm:$0xff] }
 0xcc7   :  { %11089 = vmatprep.mubr.msk.f32.mxu0 %vm13935_vm14, %v13924_v59  ;;  %11149 = vmatpush3.msra.mxu0 %v3998_v49 }
 0xcc8   :  { %11150 = vmatprep.subr.mxu0 %v13924_v59 }
 0xcc9   :  { %11151 = vmatpush3.msra.mxu0 %v3997_v55 }
 0xcca   :  { %11090 = vmatmul.mubr.msk.f32.gmra.mxu0 %vm2228_vm12, %v14052_v5  ;;  %11152 = vmatprep.subr.mxu0 %v13924_v59 }
 0xccb   :  { %11092 = vmatprep.mubr.msk.f32.mxu0 %vm13935_vm14, %v13924_v59  ;;  %11153 = vmatpush3.msra.mxu0 %v3996_v31 }
 0xccc   :  { %11154 = vmatprep.subr.mxu0 %v13924_v59 }
 0xccd   :  { %11155 = vmatpush3.msra.mxu0 %v3995_v22 }
 0xcce   :  { %11093 = vmatmul.mubr.msk.f32.gmra.mxu0 %vm2228_vm12, %v14053_v18 }
 0xccf   :  { %11095 = vmatprep.mubr.msk.f32.mxu0 %vm13935_vm14, %v13924_v59 }
 0xcd2   :  { %11096 = vmatmul.mubr.msk.f32.gmra.mxu0 %vm2228_vm12, %v14054_v54 }
 0xcd3   :  { %11098 = vmatprep.mubr.msk.f32.mxu0 %vm13935_vm14, %v13924_v59 }
 0xcd6   :  { %11099 = vmatmul.mubr.msk.f32.gmra.mxu0 %vm2228_vm12, %v14055_v51 }
 0xcd7   :  { %11101 = vmatprep.mubr.msk.f32.mxu0 %vm13935_vm14, %v13924_v59 }
 0xcda   :  { %11102 = vmatmul.mubr.msk.f32.gmra.mxu0 %vm2228_vm12, %v14056_v9  ;;  %v14073_v9 = vld [vmem:[#allocation59_spill] sm:$0xff] }
 0xcdb   :  { %11104 = vmatprep.mubr.msk.f32.mxu0 %vm13935_vm14, %v13924_v59 }
 0xcde   :  { %11105 = vmatmul.mubr.msk.f32.gmra.mxu0 %vm2228_vm12, %v14057_v19 }
 0xcdf   :  { %11107 = vmatprep.mubr.msk.f32.mxu0 %vm13935_vm14, %v13924_v59 }
 0xce2   :  { %11108 = vmatmul.mubr.msk.f32.gmra.mxu0 %vm2228_vm12, %v14058_v34 }
 0xce3   :  { %11110 = vmatprep.mubr.msk.f32.mxu0 %vm13935_vm14, %v13924_v59 }
 0xce6   :  { %11111 = vmatmul.mubr.msk.f32.gmra.mxu0 %vm2228_vm12, %v14059_v12  ;;  %vm14062_vm12 = vmmov %vm14003_vm0 }
 0xce7   :  { %11156 = vmatprep.mubr.msk.f32.mxu0 %vm13935_vm14, %v13924_v59 }
 0xd86   :  { %v3888_v26 = vpop.f32.mrf.mxu0 }
 0xd87   :  { %v3932_v63 = vmul.f32 %v3888_v26, %v13175_v58  ;;  %v14077_v26 = vld [vmem:[#allocation44_spill] sm:$0xff] }
 0xd88   :  { %v11088_v60 = vpop.f32.mrf.mxu0  ;;  %vm14078_vm5 = vcmp.lt.s32.totalorder %v14077_v26, 1  ;;  %vm14080_vm9 = vcmp.lt.s32.totalorder %v14077_v26, 7 }
 0xd89   :  { %v3941_v62 = vadd.f32 %v3932_v63, %v14060_v61  ;;  %vm14082_vm10 = vmmov %vm14078_vm5 }
 0xd8a   :  { %v3893_v50 = vpop.f32.mrf.mxu0 }
 0xd8b   :  { %v13319_v4 = vmax.f32 %v3941_v62, 0.0  ;;  %v3933_v33 = vmul.f32 %v3893_v50, %v13170_v6  ;;  %v4280_v6 = vld [vmem:[#allocation24 + $0x48] sm:$0xff] }
 0xd8c   :  { %v11091_v23 = vpop.f32.mrf.mxu0 }
 0xd8d   :  { %v3942_v20 = vadd.f32 %v3933_v33, %v14061_v53  ;;  %11122 = vmatmul.mubr.msk.f32.vlgmr.msra.gmra.mxu1 %vm14062_vm12, %v13319_v4  ;;  %v3959_v55 = vrot.slane %v13319_v4, 7  ;;  %vm14084_vm12 = vmmov %vm14080_vm9 }
 0xd8e   :  { %v3898_v36 = vpop.f32.mrf.mxu0  ;;  %11124 = vmatprep.mubr.msk.f32.mxu1 %vm13935_vm14, %v13924_v59  ;;  %11184 = vmatpush3.msra.mxu1 %v4282_v21 }
 0xd8f   :  { %v13327_v58 = vmax.f32 %v3942_v20, 0.0  ;;  %v3934_v17 = vmul.f32 %v3898_v36, %v13165_v8  ;;  %11185 = vmatprep.subr.mxu1 %v13924_v59 }
 0xd90   :  { %v11094_v48 = vpop.f32.mrf.mxu0  ;;  %11186 = vmatpush3.msra.mxu1 %v4281_v38 }
 0xd91   :  { %v3943_v37 = vadd.f32 %v3934_v17, %v14063_v30  ;;  %11125 = vmatmul.mubr.msk.f32.gmra.mxu1 %vm14064_vm15, %v13327_v58  ;;  %11187 = vmatprep.subr.mxu1 %v13924_v59  ;;  %v3978_v49 = vrot.slane %v13327_v58, 1  ;;  %v3960_v22 = vrot.slane %v13327_v58, 7  ;;  %vm14085_vm15 = vmmov %vm14003_vm0 }
 0xd92   :  { %v3903_v24 = vpop.f32.mrf.mxu0  ;;  %11127 = vmatprep.mubr.msk.f32.mxu1 %vm13935_vm14, %v13924_v59  ;;  %11188 = vmatpush3.msra.mxu1 %v4280_v6 }
 0xd93   :  { %v13337_v15 = vmax.f32 %v3943_v37, 0.0  ;;  %v3935_v8 = vmul.f32 %v3903_v24, %v13159_v3  ;;  %11189 = vmatprep.subr.mxu1 %v13924_v59  ;;  %v3975_v50 = vsel %vm14082_vm10, %v3959_v55, %v3960_v22  ;;  %vm14096_vm10 = vmmov %vm14003_vm0 }
 0xd94   :  { %v11097_v44 = vpop.f32.mrf.mxu0  ;;  %11190 = vmatpush3.msra.mxu1 %v4279_v35 }
 0xd95   :  { %v3944_v0 = vadd.f32 %v3935_v8, %v14065_v11  ;;  %11128 = vmatmul.mubr.msk.f32.gmra.mxu1 %vm14066_vm4, %v13337_v15  ;;  %v3979_v60 = vrot.slane %v13337_v15, 1  ;;  %v3961_v62 = vrot.slane %v13337_v15, 7  ;;  %vm14086_vm4 = vmmov %vm14078_vm5 }
 0xd96   :  { %v3908_v27 = vpop.f32.mrf.mxu0  ;;  %11130 = vmatprep.mubr.msk.f32.mxu1 %vm13935_vm14, %v13924_v59 }
 0xd97   :  { %v13346_v41 = vmax.f32 %v3944_v0, 0.0  ;;  %v3936_v40 = vmul.f32 %v3908_v27, %v13154_v29  ;;  %v3992_v21 = vsel %vm14084_vm12, %v3978_v49, %v3979_v60  ;;  %v3974_v53 = vsel %vm14086_vm4, %v3960_v22, %v3961_v62  ;;  %vm14098_vm12 = vmmov %vm14003_vm0 }
 0xd98   :  { %v11100_v14 = vpop.f32.mrf.mxu0 }
 0xd99   :  { %v3945_v3 = vadd.f32 %v3936_v40, %v14067_v52  ;;  %11131 = vmatmul.mubr.msk.f32.gmra.mxu1 %vm14068_vm7, %v13346_v41  ;;  %v3980_v33 = vrot.slane %v13346_v41, 1  ;;  %v3962_v23 = vrot.slane %v13346_v41, 7  ;;  %vm14087_vm7 = vmmov %vm14003_vm0 }
 0xd9a   :  { %v3913_v28 = vpop.f32.mrf.mxu0  ;;  %11133 = vmatprep.mubr.msk.f32.mxu1 %vm13935_vm14, %v13924_v59 }
 0xd9b   :  { %v13354_v1 = vmax.f32 %v3945_v3, 0.0  ;;  %v3937_v2 = vmul.f32 %v3913_v28, %v13148_v39 }
 0xd9c   :  { %v11103_v56 = vpop.f32.mrf.mxu0 }
 0xd9d   :  { %v3946_v7 = vadd.f32 %v3937_v2, %v14069_v57  ;;  %11134 = vmatmul.mubr.msk.f32.gmra.mxu1 %vm14070_vm11, %v13354_v1  ;;  %v3981_v20 = vrot.slane %v13354_v1, 1  ;;  %vm14088_vm11 = vmmov %vm14080_vm9  ;;  %v3963_v36 = vrot.slane %v13354_v1, 7 }
 0xd9e   :  { %v3918_v29 = vpop.f32.mrf.mxu0  ;;  %11136 = vmatprep.mubr.msk.f32.mxu1 %vm13935_vm14, %v13924_v59  ;;  %v3991_v38 = vsel %vm14088_vm11, %v3979_v60, %v3980_v33  ;;  %vm14102_vm11 = vmmov %vm14003_vm0 }
 0xd9f   :  { %v13362_v43 = vmax.f32 %v3946_v7, 0.0  ;;  %v3938_v42 = vmul.f32 %v3918_v29, %v13142_v25 }
 0xda0   :  { %v11106_v32 = vpop.f32.mrf.mxu0 }
 0xda1   :  { %v3947_v5 = vadd.f32 %v3938_v42, %v14071_v10  ;;  %11137 = vmatmul.mubr.msk.f32.gmra.mxu1 %vm14072_vm13, %v13362_v43  ;;  %vm14089_vm13 = vmmov %vm14003_vm0  ;;  %v3982_v17 = vrot.slane %v13362_v43, 1  ;;  %v3964_v48 = vrot.slane %v13362_v43, 7 }
 0xda2   :  { %v3923_v39 = vpop.f32.mrf.mxu0  ;;  %11139 = vmatprep.mubr.msk.f32.mxu1 %vm13935_vm14, %v13924_v59 }
 0xda3   :  { %v13370_v18 = vmax.f32 %v3947_v5, 0.0  ;;  %v3939_v54 = vmul.f32 %v3923_v39, %v13136_v13 }
 0xda4   :  { %v11109_v51 = vpop.f32.mrf.mxu0 }
 0xda5   :  { %v3948_v19 = vadd.f32 %v3939_v54, %v14073_v9  ;;  %11140 = vmatmul.mubr.msk.f32.gmra.mxu1 %vm14074_vm2, %v13370_v18  ;;  %vm14090_vm2 = vmmov %vm14086_vm4  ;;  %v3983_v37 = vrot.slane %v13370_v18, 1  ;;  %v3965_v24 = vrot.slane %v13370_v18, 7 }
 0xda6   :  { %v3928_v25 = vpop.f32.mrf.mxu0  ;;  %11142 = vmatprep.mubr.msk.f32.mxu1 %vm13935_vm14, %v13924_v59  ;;  %v3973_v58 = vsel %vm14090_vm2, %v3961_v62, %v3962_v23  ;;  %vm14100_vm4 = vmmov %vm14003_vm0 }
 0xda7   :  { %v13378_v34 = vmax.f32 %v3948_v19, 0.0  ;;  %v3940_v12 = vmul.f32 %v3928_v25, %v13133_v47  ;;  %v3977_v47 = vrot.slane %v13319_v4, 1 }
 0xda8   :  { %v11112_v45 = vpop.f32.mrf.mxu0 }
 0xda9   :  { %v3949_v46 = vadd.f32 %v3940_v12, %v14075_v16  ;;  %11143 = vmatmul.mubr.msk.f32.gmra.mxu1 %vm14003_vm0, %v13378_v34  ;;  %v3993_v61 = vsel %vm14080_vm9, %v3977_v47, %v3978_v49  ;;  %v3984_v8 = vrot.slane %v13378_v34, 1  ;;  %v3966_v11 = vrot.slane %v13378_v34, 7  ;;  %v13512_v34 = vld [vmem:[#allocation26] ss:$0 sm:$0xff] }
 0xdaa   :  { %11145 = vmatprep.mubr.msk.f32.mxu1 %vm13935_vm14, %v13924_v59 }
 0xdab   :  { %v13386_v13 = vmax.f32 %v3949_v46, 0.0 }
 0xdad   :  { %v3967_v31 = vrot.slane %v13386_v13, 7  ;;  %11146 = vmatmul.mubr.msk.f32.gmra.mxu1 %vm14076_vm1, %v13386_v13  ;;  %vm14091_vm1 = vmmov %vm14080_vm9  ;;  %v3985_v27 = vrot.slane %v13386_v13, 1 }
 0xdae   :  { %11191 = vmatprep.mubr.msk.f32.mxu1 %vm13935_vm14, %v13924_v59  ;;  %v3990_v6 = vsel %vm14091_vm1, %v3980_v33, %v3981_v20  ;;  %vm14094_vm9 = vmmov %vm14003_vm0 }
 0xdaf   :  { %v3976_v63 = vsel %vm14078_vm5, %v3967_v31, %v3959_v55  ;;  %vm14092_vm5 = vmmov %vm14003_vm0 }
 0xdb0   :  { %11157 = vmatmul.mubr.msk.f32.vlgmr.msra.gmra.mxu0 %vm14079_vm6, %v3976_v63  ;;  %vm14093_vm6 = vmmov %vm14090_vm2 }
 0xdb1   :  { %11192 = vmatmul.mubr.msk.f32.vlgmr.msra.gmra.mxu1 %vm14081_vm8, %v3993_v61  ;;  %11159 = vmatprep.mubr.msk.f32.mxu0 %vm13935_vm14, %v13924_v59  ;;  %v3972_v30 = vsel %vm14093_vm6, %v3962_v23, %v3963_v36  ;;  %vm14095_vm8 = vmmov %vm14091_vm1 }
 0xdb2   :  { %11194 = vmatprep.mubr.msk.f32.mxu1 %vm13935_vm14, %v13924_v59  ;;  %v3989_v35 = vsel %vm14095_vm8, %v3981_v20, %v3982_v17 }
 0xdb4   :  { %11160 = vmatmul.mubr.msk.f32.gmra.mxu0 %vm14083_vm3, %v3975_v50  ;;  %vm14097_vm3 = vmmov %vm14090_vm2 }
 0xdb5   :  { %11195 = vmatmul.mubr.msk.f32.gmra.mxu1 %vm14085_vm15, %v3992_v21  ;;  %11162 = vmatprep.mubr.msk.f32.mxu0 %vm13935_vm14, %v13924_v59  ;;  %v3971_v15 = vsel %vm14097_vm3, %v3963_v36, %v3964_v48  ;;  %vm14099_vm15 = vmmov %vm14091_vm1 }
 0xdb6   :  { %11197 = vmatprep.mubr.msk.f32.mxu1 %vm13935_vm14, %v13924_v59  ;;  %v3988_v44 = vsel %vm14099_vm15, %v3982_v17, %v3983_v37  ;;  %vm4464_vm15 = vcmask 253952  }
 0xdb8   :  { %11163 = vmatmul.mubr.msk.f32.gmra.mxu0 %vm14087_vm7, %v3974_v53  ;;  %vm14101_vm7 = vmmov %vm14090_vm2 }
 0xdb9   :  { %11198 = vmatmul.mubr.msk.f32.gmra.mxu1 %vm14089_vm13, %v3991_v38  ;;  %11165 = vmatprep.mubr.msk.f32.mxu0 %vm13935_vm14, %v13924_v59  ;;  %v3970_v0 = vsel %vm14101_vm7, %v3964_v48, %v3965_v24  ;;  %vm14103_vm13 = vmmov %vm14091_vm1 }
 0xdba   :  { %11200 = vmatprep.mubr.msk.f32.mxu1 %vm13935_vm14, %v13924_v59  ;;  %v3987_v41 = vsel %vm14103_vm13, %v3983_v37, %v3984_v8  ;;  %vm14104_vm2 = vmmov %vm14003_vm0 }
 0xdbb   :  { %vm14106_vm1 = vmmov %vm14104_vm2 }
 0xdbc   :  { %11166 = vmatmul.mubr.msk.f32.gmra.mxu0 %vm14003_vm0, %v3973_v58  ;;  %vm14105_vm0 = vmmov %vm14097_vm3 }
 0xdbd   :  { %11201 = vmatmul.mubr.msk.f32.gmra.mxu1 %vm14092_vm5, %v3990_v6  ;;  %11168 = vmatprep.mubr.msk.f32.mxu0 %vm13935_vm14, %v13924_v59  ;;  %v3969_v40 = vsel %vm14105_vm0, %v3965_v24, %v3966_v11  ;;  %vm14107_vm5 = vmmov %vm14095_vm8 }
 0xdbe   :  { %11203 = vmatprep.mubr.msk.f32.mxu1 %vm13935_vm14, %v13924_v59  ;;  %v3986_v14 = vsel %vm14107_vm5, %v3984_v8, %v3985_v27  ;;  %vm14108_vm6 = vmmov %vm14106_vm1 }
 0xdbf   :  { %vm14110_vm8 = vmmov %vm14106_vm1 }
 0xdc0   :  { %11169 = vmatmul.mubr.msk.f32.gmra.mxu0 %vm14094_vm9, %v3972_v30  ;;  %vm14109_vm9 = vmmov %vm14105_vm0 }
 0xdc1   :  { %11204 = vmatmul.mubr.msk.f32.gmra.mxu1 %vm14096_vm10, %v3989_v35  ;;  %11171 = vmatprep.mubr.msk.f32.mxu0 %vm13935_vm14, %v13924_v59  ;;  %v3968_v52 = vsel %vm14109_vm9, %v3966_v11, %v3967_v31  ;;  %vm14111_vm10 = vmmov %vm14107_vm5 }
 0xdc2   :  { %11206 = vmatprep.mubr.msk.f32.mxu1 %vm13935_vm14, %v13924_v59  ;;  %v3994_v3 = vsel %vm14111_vm10, %v3985_v27, %v3977_v47  ;;  %vm14112_vm3 = vmmov %vm14106_vm1 }
 0xdc3   :  { %vm14116_vm7 = vmmov %vm14106_vm1 }
 0xdc4   :  { %11172 = vmatmul.mubr.msk.f32.gmra.mxu0 %vm14098_vm12, %v3971_v15  ;;  %vm14114_vm12 = vmmov %vm14106_vm1 }
 0xdc5   :  { %11207 = vmatmul.mubr.msk.f32.gmra.mxu1 %vm14100_vm4, %v3988_v44  ;;  %11174 = vmatprep.mubr.msk.f32.mxu0 %vm13935_vm14, %v13924_v59  ;;  %vm14115_vm4 = vmmov %vm14106_vm1 }
 0xdc6   :  { %11209 = vmatprep.mubr.msk.f32.mxu1 %vm13935_vm14, %v13924_v59  ;;  %vm14118_vm13 = vmmov %vm14106_vm1 }
 0xdc7   :  { %vm14120_vm0 = vmmov %vm14106_vm1 }
 0xdc8   :  { %11175 = vmatmul.mubr.msk.f32.gmra.mxu0 %vm14102_vm11, %v3970_v0  ;;  %vm14117_vm11 = vmmov %vm14106_vm1 }
 0xdc9   :  { %11210 = vmatmul.mubr.msk.f32.gmra.mxu1 %vm14104_vm2, %v3987_v41  ;;  %11177 = vmatprep.mubr.msk.f32.mxu0 %vm13935_vm14, %v13924_v59  ;;  %vm14119_vm2 = vmmov %vm14106_vm1 }
 0xdca   :  { %11212 = vmatprep.mubr.msk.f32.mxu1 %vm13935_vm14, %v13924_v59 }
 0xdcc   :  { %11178 = vmatmul.mubr.msk.f32.gmra.mxu0 %vm14106_vm1, %v3969_v40 }
 0xdcd   :  { %11213 = vmatmul.mubr.msk.f32.gmra.mxu1 %vm14108_vm6, %v3986_v14  ;;  %11180 = vmatprep.mubr.msk.f32.mxu0 %vm13935_vm14, %v13924_v59 }
 0xdce   :  { %11215 = vmatprep.mubr.msk.f32.mxu1 %vm13935_vm14, %v13924_v59  ;;  %vm14113_vm14 = vmmov %vm14106_vm1 }
 0xdcf   :  { %vm14121_vm1 = vmmov %vm14120_vm0 }
 0xdd0   :  { %11181 = vmatmul.mubr.msk.f32.gmra.mxu0 %vm14110_vm8, %v3968_v52 }
 0xdd1   :  { %11216 = vmatmul.mubr.msk.f32.gmra.mxu1 %vm14112_vm3, %v3994_v3 }
 0xe4d   :  { %v4097_v28 = vpop.f32.mrf.mxu1 }
 0xe4f   :  { %v11123_v1 = vpop.f32.mrf.mxu1 }
 0xe51   :  { %v4102_v2 = vpop.f32.mrf.mxu1 }
 0xe53   :  { %v11126_v56 = vpop.f32.mrf.mxu1 }
 0xe55   :  { %v4107_v57 = vpop.f32.mrf.mxu1 }
 0xe57   :  { %v11129_v59 = vpop.f32.mrf.mxu1 }
 0xe59   :  { %v4112_v7 = vpop.f32.mrf.mxu1 }
 0xe5b   :  { %v11132_v29 = vpop.f32.mrf.mxu1 }
 0xe5d   :  { %v4117_v43 = vpop.f32.mrf.mxu1 }
 0xe5f   :  { %v11135_v42 = vpop.f32.mrf.mxu1 }
 0xe61   :  { %v13504_v32 = vpop.f32.mrf.mxu1 }
 0xe63   :  { %v11138_v10 = vpop.f32.mrf.mxu1 }
 0xe65   :  { %v13506_v5 = vpop.f32.mrf.mxu1 }
 0xe67   :  { %v11141_v4 = vpop.f32.mrf.mxu1 }
 0xe69   :  { %v13508_v39 = vpop.f32.mrf.mxu1 }
 0xe6b   :  { %v11144_v18 = vpop.f32.mrf.mxu1 }
 0xe6d   :  { %v13510_v54 = vpop.f32.mrf.mxu1 }
 0xe6f   :  { %v11147_v51 = vpop.f32.mrf.mxu1 }
 0xe70   :  { %v4234_v9 = vpop.f32.mrf.mxu0 }
 0xe71   :  { %v4235_v19 = vadd.f32 %v4234_v9, %v4097_v28  ;;  %v4376_v25 = vpop.f32.mrf.mxu1 }
 0xe72   :  { %v11158_v12 = vpop.f32.mrf.mxu0 }
 0xe73   :  { %v4420_v45 = vadd.f32 %v4376_v25, %v4235_v19  ;;  %v11193_v16 = vpop.f32.mrf.mxu1 }
 0xe74   :  { %v4239_v46 = vpop.f32.mrf.mxu0 }
 0xe75   :  { %v4436_v13 = vadd.f32 %v13512_v34, %v4420_v45  ;;  %v4240_v49 = vadd.f32 %v4239_v46, %v4102_v2  ;;  %v4381_v55 = vpop.f32.mrf.mxu1 }
 0xe76   :  { %v11161_v31 = vpop.f32.mrf.mxu0 }
 0xe77   :  { %v4445_v47 = vmax.f32 %v4436_v13, 0.0  ;;  %v4421_v22 = vadd.f32 %v4381_v55, %v4240_v49  ;;  %v11196_v63 = vpop.f32.mrf.mxu1 }
 0xe78   :  { %v4244_v60 = vpop.f32.mrf.mxu0 }
 0xe79   :  { %4454 = vst.msk [vmem:[#allocation4] sm:$0xff] %vm14113_vm14, %v4445_v47  ;;  %v4437_v61 = vadd.f32 %v13512_v34, %v4421_v22  ;;  %v4245_v62 = vadd.f32 %v4244_v60, %v4107_v57  ;;  %v4386_v50 = vpop.f32.mrf.mxu1 }
 0xe7a   :  { %v11164_v33 = vpop.f32.mrf.mxu0 }
 0xe7b   :  { %v4446_v21 = vmax.f32 %v4437_v61, 0.0  ;;  %v4422_v23 = vadd.f32 %v4386_v50, %v4245_v62  ;;  %v11199_v53 = vpop.f32.mrf.mxu1 }
 0xe7c   :  { %v4249_v20 = vpop.f32.mrf.mxu0 }
 0xe7d   :  { %4455 = vst.msk [vmem:[#allocation4 + $0x8] sm:$0xff] %vm14114_vm12, %v4446_v21  ;;  %v4438_v38 = vadd.f32 %v13512_v34, %v4422_v23  ;;  %v4250_v36 = vadd.f32 %v4249_v20, %v4112_v7  ;;  %v4391_v58 = vpop.f32.mrf.mxu1 }
 0xe7e   :  { %v11167_v17 = vpop.f32.mrf.mxu0 }
 0xe7f   :  { %v4447_v6 = vmax.f32 %v4438_v38, 0.0  ;;  %v4423_v48 = vadd.f32 %v4391_v58, %v4250_v36  ;;  %v11202_v30 = vpop.f32.mrf.mxu1 }
 0xe80   :  { %v4254_v37 = vpop.f32.mrf.mxu0  ;;  %v9626_v35 = vld.sshfl [vmem:[#allocation4 + $0x4] sm:$0x1 pattern:$0x76325410]  ;;  %v4463_v24 = vld [vmem:[#allocation4 + $0x1] sm:$0x1] }
 0xe81   :  { %4456 = vst.msk [vmem:[#allocation4 + $0x10] sm:$0xff] %vm14115_vm4, %v4447_v6  ;;  %v4439_v15 = vadd.f32 %v13512_v34, %v4423_v48  ;;  %v4255_v8 = vadd.f32 %v4254_v37, %v4117_v43  ;;  %v4396_v44 = vpop.f32.mrf.mxu1  ;;  %4503 = vrot.lane.b32.xlu1 %v9626_v35, %s11632_s10  ;;  %v9624_v11 = vld.sshfl [vmem:[#allocation4 + $0x2] sm:$0x1 pattern:$0x76325410] }
 0xe82   :  { %4465 = vst.msk [vmem:[#allocation5] sm:$0x1] %vm4464_vm15, %v4463_v24  ;;  %v4508_v0 = vld [vmem:[#allocation4 + $0x5] sm:$0x1]  ;;  %4475 = vrot.lane.b32.xlu0 %v9624_v11, %s11633_s5  ;;  %v11170_v27 = vpop.f32.mrf.mxu0 }
 0xe83   :  { %4509 = vst.msk [vmem:[#allocation5 + $0x2] sm:$0x1] %vm4464_vm15, %v4508_v0  ;;  %v4448_v41 = vmax.f32 %v4439_v15, 0.0  ;;  %v4424_v40 = vadd.f32 %v4396_v44, %v4255_v8  ;;  %v11205_v14 = vpop.f32.mrf.mxu1 }
 0xe84   :  { %v4259_v52 = vpop.f32.mrf.mxu0  ;;  %v9627_v3 = vld.sshfl [vmem:[#allocation4 + $0x6] sm:$0x1 pattern:$0x76325410]  ;;  %v4549_v28 = vld [vmem:[#allocation4 + $0x9] sm:$0x1] }
 0xe85   :  { %4457 = vst.msk [vmem:[#allocation4 + $0x18] sm:$0xff] %vm14116_vm7, %v4448_v41  ;;  %v4440_v1 = vadd.f32 %v13512_v34, %v4424_v40  ;;  %v4260_v2 = vadd.f32 %v4259_v52, %v13504_v32  ;;  %v4401_v56 = vpop.f32.mrf.mxu1  ;;  %4519 = vrot.lane.b32.xlu1 %v9627_v3, %s11633_s5  ;;  %v9625_v57 = vld.sshfl [vmem:[#allocation4 + $0x3] sm:$0x1 pattern:$0x76325410] }
 0xe86   :  { %4550 = vst.msk [vmem:[#allocation5 + $0x4] sm:$0x1] %vm4464_vm15, %v4549_v28  ;;  %v4590_v59 = vld [vmem:[#allocation4 + $0xd] sm:$0x1]  ;;  %4489 = vrot.lane.b32.xlu0 %v9625_v57, %s11634_s6  ;;  %v11173_v7 = vpop.f32.mrf.mxu0 }
 0xe87   :  { %4591 = vst.msk [vmem:[#allocation5 + $0x6] sm:$0x1] %vm4464_vm15, %v4590_v59  ;;  %v4449_v29 = vmax.f32 %v4440_v1, 0.0  ;;  %v4425_v43 = vadd.f32 %v4401_v56, %v4260_v2  ;;  %v11208_v42 = vpop.f32.mrf.mxu1 }
 0xe88   :  { %v4264_v10 = vpop.f32.mrf.mxu0  ;;  %v9629_v4 = vld.sshfl [vmem:[#allocation4 + $0x8] sm:$0x1 pattern:$0x76325410]  ;;  %v4631_v18 = vld [vmem:[#allocation4 + $0x11] sm:$0x1] }
 0xe89   :  { %4458 = vst.msk [vmem:[#allocation4 + $0x20] sm:$0xff] %vm14117_vm11, %v4449_v29  ;;  %v4441_v32 = vadd.f32 %v13512_v34, %v4425_v43  ;;  %v4265_v51 = vadd.f32 %v4264_v10, %v13506_v5  ;;  %v4406_v9 = vpop.f32.mrf.mxu1  ;;  %v9628_v19 = vld.sshfl [vmem:[#allocation4 + $0x7] sm:$0x1 pattern:$0x76325410]  ;;  %4545 = vrot.lane.b32.xlu1 %v9629_v4, %s11632_s10 }
 0xe8a   :  { %4632 = vst.msk [vmem:[#allocation5 + $0x8] sm:$0x1] %vm4464_vm15, %v4631_v18  ;;  %v4672_v25 = vld [vmem:[#allocation4 + $0x15] sm:$0x1]  ;;  %4532 = vrot.lane.b32.xlu0 %v9628_v19, %s11634_s6  ;;  %v11176_v12 = vpop.f32.mrf.mxu0 }
 0xe8b   :  { %4673 = vst.msk [vmem:[#allocation5 + $0xa] sm:$0x1] %vm4464_vm15, %v4672_v25  ;;  %v4450_v45 = vmax.f32 %v4441_v32, 0.0  ;;  %v4426_v16 = vadd.f32 %v4406_v9, %v4265_v51  ;;  %v11211_v46 = vpop.f32.mrf.mxu1 }
 0xe8c   :  { %v4269_v13 = vpop.f32.mrf.mxu0  ;;  %v9631_v49 = vld.sshfl [vmem:[#allocation4 + $0xb] sm:$0x1 pattern:$0x76325410]  ;;  %v4713_v55 = vld [vmem:[#allocation4 + $0x19] sm:$0x1] }
 0xe8d   :  { %4459 = vst.msk [vmem:[#allocation4 + $0x28] sm:$0xff] %vm14118_vm13, %v4450_v45  ;;  %v4442_v5 = vadd.f32 %v13512_v34, %v4426_v16  ;;  %v4270_v31 = vadd.f32 %v4269_v13, %v13508_v39  ;;  %v4411_v47 = vpop.f32.mrf.mxu1  ;;  %v9630_v22 = vld.sshfl [vmem:[#allocation4 + $0xa] sm:$0x1 pattern:$0x76325410]  ;;  %4573 = vrot.lane.b32.xlu1 %v9631_v49, %s11634_s6 }
 0xe8e   :  { %4714 = vst.msk [vmem:[#allocation5 + $0xc] sm:$0x1] %vm4464_vm15, %v4713_v55  ;;  %v4754_v63 = vld [vmem:[#allocation4 + $0x1d] sm:$0x1]  ;;  %4560 = vrot.lane.b32.xlu0 %v9630_v22, %s11633_s5  ;;  %v11179_v60 = vpop.f32.mrf.mxu0 }
 0xe8f   :  { %4755 = vst.msk [vmem:[#allocation5 + $0xe] sm:$0x1] %vm4464_vm15, %v4754_v63  ;;  %v4451_v61 = vmax.f32 %v4442_v5, 0.0  ;;  %v4427_v62 = vadd.f32 %v4411_v47, %v4270_v31  ;;  %v11214_v50 = vpop.f32.mrf.mxu1 }
 0xe90   :  { %v4274_v33 = vpop.f32.mrf.mxu0  ;;  %v9633_v21 = vld.sshfl [vmem:[#allocation4 + $0xe] sm:$0x1 pattern:$0x76325410]  ;;  %v4810_v23 = vld [vmem:[#allocation4 + $0x25] sm:$0x1] }
 0xe91   :  { %4460 = vst.msk [vmem:[#allocation4 + $0x30] sm:$0xff] %vm14119_vm2, %v4451_v61  ;;  %v4443_v39 = vadd.f32 %v13512_v34, %v4427_v62  ;;  %v4275_v53 = vadd.f32 %v4274_v33, %v13510_v54  ;;  %v4416_v20 = vpop.f32.mrf.mxu1  ;;  %v9632_v38 = vld.sshfl [vmem:[#allocation4 + $0xc] sm:$0x1 pattern:$0x76325410]  ;;  %4601 = vrot.lane.b32.xlu1 %v9633_v21, %s11633_s5 }
 0xe92   :  { %4811 = vst.msk [vmem:[#allocation5 + $0x1] sm:$0x1] %vm4464_vm15, %v4810_v23  ;;  %v4795_v36 = vld [vmem:[#allocation4 + $0x21] sm:$0x1]  ;;  %4586 = vrot.lane.b32.xlu0 %v9632_v38, %s11632_s10  ;;  %v11182_v58 = vpop.f32.mrf.mxu0 }
 0xe93   :  { %4796 = vst.msk [vmem:[#allocation5 + $0x10] sm:$0x1] %vm4464_vm15, %v4795_v36  ;;  %v4452_v17 = vmax.f32 %v4443_v39, 0.0  ;;  %v4428_v6 = vadd.f32 %v4416_v20, %v4275_v53  ;;  %v11217_v48 = vpop.f32.mrf.mxu1 }
 0xe94   :  { %v9635_v30 = vld.sshfl [vmem:[#allocation4 + $0x10] sm:$0x1 pattern:$0x76325410]  ;;  %v4892_v37 = vld [vmem:[#allocation4 + $0x2d] sm:$0x1] }
 0xe95   :  { %4461 = vst.msk [vmem:[#allocation4 + $0x38] sm:$0xff] %vm14120_vm0, %v4452_v17  ;;  %v4444_v54 = vadd.f32 %v13512_v34, %v4428_v6  ;;  %v9634_v35 = vld.sshfl [vmem:[#allocation4 + $0xf] sm:$0x1 pattern:$0x76325410]  ;;  %4627 = vrot.lane.b32.xlu1 %v9635_v30, %s11632_s10 }
 0xe96   :  { %4893 = vst.msk [vmem:[#allocation5 + $0x5] sm:$0x1] %vm4464_vm15, %v4892_v37  ;;  %v4851_v24 = vld [vmem:[#allocation4 + $0x29] sm:$0x1]  ;;  %4614 = vrot.lane.b32.xlu0 %v9634_v35, %s11634_s6 }
 0xe97   :  { %4852 = vst.msk [vmem:[#allocation5 + $0x3] sm:$0x1] %vm4464_vm15, %v4851_v24  ;;  %v4453_v15 = vmax.f32 %v4444_v54, 0.0 }
 0xe98   :  { %v9637_v8 = vld.sshfl [vmem:[#allocation4 + $0x13] sm:$0x1 pattern:$0x76325410]  ;;  %v4974_v44 = vld [vmem:[#allocation4 + $0x35] sm:$0x1] }
 0xe99   :  { %4462 = vst.msk [vmem:[#allocation4 + $0x40] sm:$0xff] %vm14121_vm1, %v4453_v15  ;;  %v9636_v11 = vld.sshfl [vmem:[#allocation4 + $0x12] sm:$0x1 pattern:$0x76325410]  ;;  %4655 = vrot.lane.b32.xlu1 %v9637_v8, %s11634_s6 }
 0xe9a   :  { %4975 = vst.msk [vmem:[#allocation5 + $0x9] sm:$0x1] %vm4464_vm15, %v4974_v44  ;;  %v4933_v34 = vld [vmem:[#allocation4 + $0x31] sm:$0x1]  ;;  %4642 = vrot.lane.b32.xlu0 %v9636_v11, %s11633_s5 }
 0xe9b   :  { %4934 = vst.msk [vmem:[#allocation5 + $0x7] sm:$0x1] %vm4464_vm15, %v4933_v34  ;;  %v9639_v0 = vld.sshfl [vmem:[#allocation4 + $0x16] sm:$0x1 pattern:$0x76325410] }
 0xe9c   :  { %v5056_v27 = vld [vmem:[#allocation4 + $0x3d] sm:$0x1]  ;;  %v9638_v41 = vld.sshfl [vmem:[#allocation4 + $0x14] sm:$0x1 pattern:$0x76325410] }
 0xe9d   :  { %4683 = vrot.lane.b32.xlu1 %v9639_v0, %s11633_s5  ;;  %5057 = vst.msk [vmem:[#allocation5 + $0xd] sm:$0x1] %vm4464_vm15, %v5056_v27  ;;  %v5015_v40 = vld [vmem:[#allocation4 + $0x39] sm:$0x1] }
 0xe9e   :  { %4668 = vrot.lane.b32.xlu0 %v9638_v41, %s11632_s10  ;;  %5016 = vst.msk [vmem:[#allocation5 + $0xb] sm:$0x1] %vm4464_vm15, %v5015_v40  ;;  %v9641_v14 = vld.sshfl [vmem:[#allocation4 + $0x18] sm:$0x1 pattern:$0x76325410] }
 0xe9f   :  { %v9640_v3 = vld.sshfl [vmem:[#allocation4 + $0x17] sm:$0x1 pattern:$0x76325410] }
 0xea0   :  { %v5097_v52 = vld [vmem:[#allocation4 + $0x41] sm:$0x1]  ;;  %v5138_v28 = vld [vmem:[#allocation4 + $0x45] sm:$0x1] }
 0xea1   :  { %4709 = vrot.lane.b32.xlu1 %v9641_v14, %s11632_s10  ;;  %5098 = vst.msk [vmem:[#allocation5 + $0xf] sm:$0x1] %vm4464_vm15, %v5097_v52  ;;  %5139 = vst.msk [vmem:[#allocation5 + $0x11] sm:$0x1] %vm4464_vm15, %v5138_v28 }
 0xea2   :  { %4696 = vrot.lane.b32.xlu0 %v9640_v3, %s11634_s6  ;;  %v9643_v1 = vld.sshfl [vmem:[#allocation4 + $0x1b] sm:$0x1 pattern:$0x76325410] }
 0xea3   :  { %v9642_v2 = vld.sshfl [vmem:[#allocation4 + $0x1a] sm:$0x1 pattern:$0x76325410] }
 0xea4   :  { %v9646_v56 = vld.sshfl [vmem:[#allocation4 + $0x1f] sm:$0x1 pattern:$0x76325410] }
 0xea5   :  { %4737 = vrot.lane.b32.xlu1 %v9643_v1, %s11634_s6  ;;  %v9645_v57 = vld.sshfl [vmem:[#allocation4 + $0x1e] sm:$0x1 pattern:$0x76325410] }
 0xea6   :  { %4724 = vrot.lane.b32.xlu0 %v9642_v2, %s11633_s5  ;;  %v9649_v59 = vld.sshfl [vmem:[#allocation4 + $0x26] sm:$0x1 pattern:$0x76325410] }
 0xea7   :  { %v9644_v7 = vld.sshfl [vmem:[#allocation4 + $0x1c] sm:$0x1 pattern:$0x76325410] }
 0xea8   :  { %v9647_v29 = vld.sshfl [vmem:[#allocation4 + $0x20] sm:$0x1 pattern:$0x76325410] }
 0xea9   :  { %4778 = vrot.lane.b32.xlu1 %v9646_v56, %s11634_s6  ;;  %v9650_v43 = vld.sshfl [vmem:[#allocation4 + $0x27] sm:$0x1 pattern:$0x76325410] }
 0xeaa   :  { %4765 = vrot.lane.b32.xlu0 %v9645_v57, %s11633_s5  ;;  %v9655_v42 = vld.sshfl [vmem:[#allocation4 + $0x2e] sm:$0x1 pattern:$0x76325410] }
 0xeab   :  { %v9648_v10 = vld.sshfl [vmem:[#allocation4 + $0x22] sm:$0x1 pattern:$0x76325410] }
 0xeac   :  { %v9653_v4 = vld.sshfl [vmem:[#allocation4 + $0x2b] sm:$0x1 pattern:$0x76325410] }
 0xead   :  { %4821 = vrot.lane.b32.xlu1 %v9649_v59, %s11633_s5  ;;  %v9652_v18 = vld.sshfl [vmem:[#allocation4 + $0x2a] sm:$0x1 pattern:$0x76325410] }
 0xeae   :  { %4750 = vrot.lane.b32.xlu0 %v9644_v7, %s11632_s10  ;;  %v9651_v32 = vld.sshfl [vmem:[#allocation4 + $0x28] sm:$0x1 pattern:$0x76325410] }
 0xeaf   :  { %v9656_v51 = vld.sshfl [vmem:[#allocation4 + $0x2f] sm:$0x1 pattern:$0x76325410] }
 0xeb0   :  { %v9661_v9 = vld.sshfl [vmem:[#allocation4 + $0x36] sm:$0x1 pattern:$0x76325410] }
 0xeb1   :  { %4791 = vrot.lane.b32.xlu1 %v9647_v29, %s11632_s10  ;;  %v9654_v19 = vld.sshfl [vmem:[#allocation4 + $0x2c] sm:$0x1 pattern:$0x76325410] }
 0xeb2   :  { %4834 = vrot.lane.b32.xlu0 %v9650_v43, %s11634_s6  ;;  %v9659_v25 = vld.sshfl [vmem:[#allocation4 + $0x33] sm:$0x1 pattern:$0x76325410] }
 0xeb3   :  { %v9658_v12 = vld.sshfl [vmem:[#allocation4 + $0x32] sm:$0x1 pattern:$0x76325410] }
 0xeb4   :  { %v9657_v45 = vld.sshfl [vmem:[#allocation4 + $0x30] sm:$0x1 pattern:$0x76325410] }
 0xeb5   :  { %4903 = vrot.lane.b32.xlu1 %v9655_v42, %s11633_s5  ;;  %v9662_v16 = vld.sshfl [vmem:[#allocation4 + $0x37] sm:$0x1 pattern:$0x76325410] }
 0xeb6   :  { %4806 = vrot.lane.b32.xlu0 %v9648_v10, %s11633_s5  ;;  %v9667_v46 = vld.sshfl [vmem:[#allocation4 + $0x3e] sm:$0x1 pattern:$0x76325410] }
 0xeb7   :  { %v9660_v13 = vld.sshfl [vmem:[#allocation4 + $0x34] sm:$0x1 pattern:$0x76325410] }
 0xeb8   :  { %v9665_v49 = vld.sshfl [vmem:[#allocation4 + $0x3b] sm:$0x1 pattern:$0x76325410] }
 0xeb9   :  { %4875 = vrot.lane.b32.xlu1 %v9653_v4, %s11634_s6  ;;  %v9664_v55 = vld.sshfl [vmem:[#allocation4 + $0x3a] sm:$0x1 pattern:$0x76325410] }
 0xeba   :  { %4862 = vrot.lane.b32.xlu0 %v9652_v18, %s11633_s5  ;;  %v9663_v5 = vld.sshfl [vmem:[#allocation4 + $0x38] sm:$0x1 pattern:$0x76325410] }
 0xebb   :  { %v9668_v31 = vld.sshfl [vmem:[#allocation4 + $0x3f] sm:$0x1 pattern:$0x76325410] }
 0xebc   :  { %v9671_v47 = vld.sshfl [vmem:[#allocation4 + $0x43] sm:$0x1 pattern:$0x76325410] }
 0xebd   :  { %4847 = vrot.lane.b32.xlu1 %v9651_v32, %s11632_s10 }
 0xebe   :  { %4916 = vrot.lane.b32.xlu0 %v9656_v51, %s11634_s6 }
 0xec1   :  { %4985 = vrot.lane.b32.xlu1 %v9661_v9, %s11633_s5 }
 0xec2   :  { %4888 = vrot.lane.b32.xlu0 %v9654_v19, %s11632_s10 }
 0xec5   :  { %4957 = vrot.lane.b32.xlu1 %v9659_v25, %s11634_s6 }
 0xec6   :  { %4944 = vrot.lane.b32.xlu0 %v9658_v12, %s11633_s5 }
 0xec9   :  { %4929 = vrot.lane.b32.xlu1 %v9657_v45, %s11632_s10 }
 0xeca   :  { %4998 = vrot.lane.b32.xlu0 %v9662_v16, %s11634_s6 }
 0xecd   :  { %5067 = vrot.lane.b32.xlu1 %v9667_v46, %s11633_s5 }
 0xece   :  { %4970 = vrot.lane.b32.xlu0 %v9660_v13, %s11632_s10 }
 0xed1   :  { %5039 = vrot.lane.b32.xlu1 %v9665_v49, %s11634_s6 }
 0xed2   :  { %5026 = vrot.lane.b32.xlu0 %v9664_v55, %s11633_s5 }
 0xed5   :  { %5011 = vrot.lane.b32.xlu1 %v9663_v5, %s11632_s10 }
 0xed6   :  { %5080 = vrot.lane.b32.xlu0 %v9668_v31, %s11634_s6 }
 0xed7   :  { %11573 = shalt.err (!%p11570_p4)  }
 0xed8   :  { %243 = dma.hbm_to_vmem [thread:$0]  %s13817_s17, 69632, %s241_s23, [#allocation3]  ;;  %v9666_v22 = vld.sshfl [vmem:[#allocation4 + $0x3c] sm:$0x1 pattern:$0x76325410] }
 0xed9   :  { %5121 = vrot.lane.b32.xlu1 %v9671_v47, %s11634_s6  ;;  %v9669_v63 = vld.sshfl [vmem:[#allocation4 + $0x40] sm:$0x1 pattern:$0x76325410]  ;;  %vm4478_vm5 = vcmask 516352   ;;  %vm4492_vm6 = vcmask 778752  }
 0xeda   :  { %5052 = vrot.lane.b32.xlu0 %v9666_v22, %s11632_s10  ;;  %v9670_v60 = vld.sshfl [vmem:[#allocation4 + $0x42] sm:$0x1 pattern:$0x76325410]  ;;  %vm4506_vm9 = vcmask 1041152  }
 0xedb   :  { %v9673_v61 = vld.sshfl [vmem:[#allocation4 + $0x46] sm:$0x1 pattern:$0x76325410] }
 0xedc   :  { %v9672_v62 = vld.sshfl [vmem:[#allocation4 + $0x44] sm:$0x1 pattern:$0x76325410] }
 0xedd   :  { %5093 = vrot.lane.b32.xlu1 %v9669_v63, %s11632_s10 }
 0xede   :  { %5108 = vrot.lane.b32.xlu0 %v9670_v60, %s11633_s5 }
 0xee1   :  { %5149 = vrot.lane.b32.xlu1 %v9673_v61, %s11633_s5 }
 0xee2   :  { %5134 = vrot.lane.b32.xlu0 %v9672_v62, %s11632_s10 }
 0xef3   :  { %v4504_v50 = vpop.permute.xlu1 %4503 }
 0xef4   :  { %v4476_v33 = vpop.permute.xlu0 %4475 }
 0xef5   :  { %4479 = vst.msk [vmem:[#allocation5] sm:$0x1] %vm4478_vm5, %v4476_v33 }
 0xef7   :  { %v4520_v21 = vpop.permute.xlu1 %4519 }
 0xef8   :  { %4522 = vst.msk [vmem:[#allocation5 + $0x2] sm:$0x1] %vm4478_vm5, %v4520_v21  ;;  %v4490_v23 = vpop.permute.xlu0 %4489 }
 0xef9   :  { %4493 = vst.msk [vmem:[#allocation5] sm:$0x1] %vm4492_vm6, %v4490_v23 }
 0xefa   :  { %4507 = vst.msk [vmem:[#allocation5] sm:$0x1] %vm4506_vm9, %v4504_v50 }
 0xefb   :  { %v4546_v39 = vpop.permute.xlu1 %4545 }
 0xefc   :  { %v4533_v53 = vpop.permute.xlu0 %4532 }
 0xefd   :  { %4535 = vst.msk [vmem:[#allocation5 + $0x2] sm:$0x1] %vm4492_vm6, %v4533_v53 }
 0xefe   :  { %4548 = vst.msk [vmem:[#allocation5 + $0x2] sm:$0x1] %vm4506_vm9, %v4546_v39 }
 0xeff   :  { %v4574_v20 = vpop.permute.xlu1 %4573 }
 0xf00   :  { %v4561_v38 = vpop.permute.xlu0 %4560 }
 0xf01   :  { %4563 = vst.msk [vmem:[#allocation5 + $0x4] sm:$0x1] %vm4478_vm5, %v4561_v38 }
 0xf02   :  { %4576 = vst.msk [vmem:[#allocation5 + $0x4] sm:$0x1] %vm4492_vm6, %v4574_v20 }
 0xf03   :  { %v4602_v36 = vpop.permute.xlu1 %4601 }
 0xf04   :  { %v4587_v58 = vpop.permute.xlu0 %4586  ;;  %4604 = vst.msk [vmem:[#allocation5 + $0x6] sm:$0x1] %vm4478_vm5, %v4602_v36 }
 0xf05   :  { %4589 = vst.msk [vmem:[#allocation5 + $0x4] sm:$0x1] %vm4506_vm9, %v4587_v58 }
 0xf07   :  { %v4628_v17 = vpop.permute.xlu1 %4627 }
 0xf08   :  { %v4615_v6 = vpop.permute.xlu0 %4614 }
 0xf09   :  { %4617 = vst.msk [vmem:[#allocation5 + $0x6] sm:$0x1] %vm4492_vm6, %v4615_v6 }
 0xf0a   :  { %4630 = vst.msk [vmem:[#allocation5 + $0x6] sm:$0x1] %vm4506_vm9, %v4628_v17 }
 0xf0b   :  { %v4656_v48 = vpop.permute.xlu1 %4655 }
 0xf0c   :  { %v4643_v30 = vpop.permute.xlu0 %4642 }
 0xf0d   :  { %4645 = vst.msk [vmem:[#allocation5 + $0x8] sm:$0x1] %vm4478_vm5, %v4643_v30 }
 0xf0e   :  { %4658 = vst.msk [vmem:[#allocation5 + $0x8] sm:$0x1] %vm4492_vm6, %v4656_v48 }
 0xf0f   :  { %v4684_v37 = vpop.permute.xlu1 %4683 }
 0xf10   :  { %v4669_v54 = vpop.permute.xlu0 %4668  ;;  %4686 = vst.msk [vmem:[#allocation5 + $0xa] sm:$0x1] %vm4478_vm5, %v4684_v37 }
 0xf11   :  { %4671 = vst.msk [vmem:[#allocation5 + $0x8] sm:$0x1] %vm4506_vm9, %v4669_v54 }
 0xf13   :  { %v4710_v35 = vpop.permute.xlu1 %4709 }
 0xf14   :  { %v4697_v24 = vpop.permute.xlu0 %4696 }
 0xf15   :  { %4699 = vst.msk [vmem:[#allocation5 + $0xa] sm:$0x1] %vm4492_vm6, %v4697_v24 }
 0xf16   :  { %4712 = vst.msk [vmem:[#allocation5 + $0xa] sm:$0x1] %vm4506_vm9, %v4710_v35 }
 0xf17   :  { %v4738_v15 = vpop.permute.xlu1 %4737 }
 0xf18   :  { %v4725_v8 = vpop.permute.xlu0 %4724 }
 0xf19   :  { %4727 = vst.msk [vmem:[#allocation5 + $0xc] sm:$0x1] %vm4478_vm5, %v4725_v8 }
 0xf1a   :  { %4740 = vst.msk [vmem:[#allocation5 + $0xc] sm:$0x1] %vm4492_vm6, %v4738_v15 }
 0xf1b   :  { %v4779_v44 = vpop.permute.xlu1 %4778 }
 0xf1c   :  { %v4766_v11 = vpop.permute.xlu0 %4765 }
 0xf1d   :  { %4768 = vst.msk [vmem:[#allocation5 + $0xe] sm:$0x1] %vm4478_vm5, %v4766_v11 }
 0xf1e   :  { %4781 = vst.msk [vmem:[#allocation5 + $0xe] sm:$0x1] %vm4492_vm6, %v4779_v44 }
 0xf1f   :  { %v4822_v34 = vpop.permute.xlu1 %4821 }
 0xf20   :  { %v4751_v0 = vpop.permute.xlu0 %4750  ;;  %4824 = vst.msk [vmem:[#allocation5 + $0x1] sm:$0x1] %vm4478_vm5, %v4822_v34 }
 0xf21   :  { %4753 = vst.msk [vmem:[#allocation5 + $0xc] sm:$0x1] %vm4506_vm9, %v4751_v0 }
 0xf23   :  { %v4792_v27 = vpop.permute.xlu1 %4791 }
 0xf24   :  { %v4835_v41 = vpop.permute.xlu0 %4834  ;;  %4794 = vst.msk [vmem:[#allocation5 + $0xe] sm:$0x1] %vm4506_vm9, %v4792_v27 }
 0xf25   :  { %4837 = vst.msk [vmem:[#allocation5 + $0x1] sm:$0x1] %vm4492_vm6, %v4835_v41 }
 0xf27   :  { %v4904_v40 = vpop.permute.xlu1 %4903 }
 0xf28   :  { %v4807_v14 = vpop.permute.xlu0 %4806  ;;  %4906 = vst.msk [vmem:[#allocation5 + $0x5] sm:$0x1] %vm4478_vm5, %v4904_v40 }
 0xf29   :  { %4809 = vst.msk [vmem:[#allocation5 + $0x10] sm:$0x1] %vm4478_vm5, %v4807_v14 }
 0xf2b   :  { %v4876_v52 = vpop.permute.xlu1 %4875 }
 0xf2c   :  { %v4863_v3 = vpop.permute.xlu0 %4862 }
 0xf2d   :  { %4865 = vst.msk [vmem:[#allocation5 + $0x3] sm:$0x1] %vm4478_vm5, %v4863_v3 }
 0xf2e   :  { %4878 = vst.msk [vmem:[#allocation5 + $0x3] sm:$0x1] %vm4492_vm6, %v4876_v52 }
 0xf2f   :  { %v4848_v28 = vpop.permute.xlu1 %4847 }
 0xf30   :  { %v4917_v1 = vpop.permute.xlu0 %4916  ;;  %4850 = vst.msk [vmem:[#allocation5 + $0x1] sm:$0x1] %vm4506_vm9, %v4848_v28 }
 0xf31   :  { %4919 = vst.msk [vmem:[#allocation5 + $0x5] sm:$0x1] %vm4492_vm6, %v4917_v1 }
 0xf33   :  { %v4986_v2 = vpop.permute.xlu1 %4985 }
 0xf34   :  { %v4889_v56 = vpop.permute.xlu0 %4888  ;;  %4988 = vst.msk [vmem:[#allocation5 + $0x9] sm:$0x1] %vm4478_vm5, %v4986_v2 }
 0xf35   :  { %4891 = vst.msk [vmem:[#allocation5 + $0x3] sm:$0x1] %vm4506_vm9, %v4889_v56 }
 0xf37   :  { %v4958_v57 = vpop.permute.xlu1 %4957 }
 0xf38   :  { %v4945_v59 = vpop.permute.xlu0 %4944 }
 0xf39   :  { %4947 = vst.msk [vmem:[#allocation5 + $0x7] sm:$0x1] %vm4478_vm5, %v4945_v59 }
 0xf3a   :  { %4960 = vst.msk [vmem:[#allocation5 + $0x7] sm:$0x1] %vm4492_vm6, %v4958_v57 }
 0xf3b   :  { %v4930_v7 = vpop.permute.xlu1 %4929 }
 0xf3c   :  { %v4999_v29 = vpop.permute.xlu0 %4998  ;;  %4932 = vst.msk [vmem:[#allocation5 + $0x5] sm:$0x1] %vm4506_vm9, %v4930_v7 }
 0xf3d   :  { %5001 = vst.msk [vmem:[#allocation5 + $0x9] sm:$0x1] %vm4492_vm6, %v4999_v29 }
 0xf3f   :  { %v5068_v43 = vpop.permute.xlu1 %5067 }
 0xf40   :  { %v4971_v42 = vpop.permute.xlu0 %4970  ;;  %5070 = vst.msk [vmem:[#allocation5 + $0xd] sm:$0x1] %vm4478_vm5, %v5068_v43 }
 0xf41   :  { %4973 = vst.msk [vmem:[#allocation5 + $0x7] sm:$0x1] %vm4506_vm9, %v4971_v42 }
 0xf43   :  { %v5040_v10 = vpop.permute.xlu1 %5039 }
 0xf44   :  { %v5027_v4 = vpop.permute.xlu0 %5026 }
 0xf45   :  { %5029 = vst.msk [vmem:[#allocation5 + $0xb] sm:$0x1] %vm4478_vm5, %v5027_v4 }
 0xf46   :  { %5042 = vst.msk [vmem:[#allocation5 + $0xb] sm:$0x1] %vm4492_vm6, %v5040_v10 }
 0xf47   :  { %v5012_v18 = vpop.permute.xlu1 %5011 }
 0xf48   :  { %v5081_v32 = vpop.permute.xlu0 %5080  ;;  %5014 = vst.msk [vmem:[#allocation5 + $0x9] sm:$0x1] %vm4506_vm9, %v5012_v18 }
 0xf49   :  { %5083 = vst.msk [vmem:[#allocation5 + $0xd] sm:$0x1] %vm4492_vm6, %v5081_v32 }
 0xf4b   :  { %v5122_v51 = vpop.permute.xlu1 %5121 }
 0xf4c   :  { %v5053_v9 = vpop.permute.xlu0 %5052 }
 0xf4d   :  { %5055 = vst.msk [vmem:[#allocation5 + $0xb] sm:$0x1] %vm4506_vm9, %v5053_v9 }
 0xf4f   :  { %v5094_v19 = vpop.permute.xlu1 %5093 }
 0xf50   :  { %v5109_v25 = vpop.permute.xlu0 %5108  ;;  %5096 = vst.msk [vmem:[#allocation5 + $0xd] sm:$0x1] %vm4506_vm9, %v5094_v19 }
 0xf51   :  { %5111 = vst.msk [vmem:[#allocation5 + $0xf] sm:$0x1] %vm4478_vm5, %v5109_v25 }
 0xf52   :  { %5124 = vst.msk [vmem:[#allocation5 + $0xf] sm:$0x1] %vm4492_vm6, %v5122_v51 }
 0xf53   :  { %v5150_v12 = vpop.permute.xlu1 %5149 }
 0xf54   :  { %v5135_v45 = vpop.permute.xlu0 %5134  ;;  %5152 = vst.msk [vmem:[#allocation5 + $0x11] sm:$0x1] %vm4478_vm5, %v5150_v12 }
 0xf55   :  { %5137 = vst.msk [vmem:[#allocation5 + $0xf] sm:$0x1] %vm4506_vm9, %v5135_v45 }
 0xf56   :  { %11610 = dma.done.wait [#allocation3], 69632 }
 0xf57   :  { %11611 = vsyncadd [#allocation3], 4294897664  ;;  %v5278_v16 = vld [vmem:[#allocation2 + $0x1c0] sm:$0xff]  ;;  %v11636_v8 = vmov 1983009808   ;;  %v5157_v51 = vld [vmem:[#allocation5] sm:$0xff] }
 0xf58   :  { %v5282_v46 = vld [vmem:[#allocation2 + $0x1e0] sm:$0xff]  ;;  %v5165_v44 = vunpack.c.l.s4 %v11636_v8  ;;  %v5163_v45 = vcombine.high %v5157_v51, %v5157_v51  ;;  %vm8528_vm8 = vcmask 523264   ;;  %s11638_s17 = smov [#allocation29]  }
 0xf59   :  { %v5406_v13 = vld [vmem:[#allocation2 + $0x5c0] sm:$0xff]  ;;  %v9732_v49 = vcombine.high %v5278_v16, %v5282_v46  ;;  %v9731_v5 = vcombine.low %v5278_v16, %v5282_v46  ;;  %s9404_s19 = sshll.u32 %s11638_s17, 4  ;;  %s9405_s19 = int_to_ptr.vmem [resolvable:$true] %s9404_s19 }
 0xf5a   :  { %v5410_v55 = vld [vmem:[#allocation2 + $0x5e0] sm:$0xff]  ;;  %v5166_v3 = vunpack.c.0.s8 %v5165_v44  ;;  %s11574_s1 = scalar_lea.vmem %s9405_s19, 256  ;;  %p11579_p6 = scmp.lt.s32.totalorder %s9405_s19, %s9405_s19 }
 0xf5b   :  { %v5270_v31 = vld [vmem:[#allocation2 + $0x180] sm:$0xff]  ;;  %v9860_v22 = vcombine.high %v5406_v13, %v5410_v55  ;;  %v9859_v63 = vcombine.low %v5406_v13, %v5410_v55  ;;  %8532 = vmatprep.subr.bf16.mxu0 %v9732_v49  ;;  %p11575_p5 = scmp.ne.s32.totalorder %s9405_s19, %s11574_s1  ;;  %p11580_p7 = scmp.lt.s32.totalorder %s11574_s1, %s11574_s1 }
 0xf5c   :  { %v5274_v47 = vld [vmem:[#allocation2 + $0x1a0] sm:$0xff]  ;;  %8533 = vmatpush1.bf16.msra.mxu0 %v9731_v5  ;;  %v13658_v43 = vsub.s32 %v5166_v3, %v14077_v26 }
 0xf5d   :  { %v9724_v60 = vcombine.high %v5270_v31, %v5274_v47  ;;  %v5398_v61 = vld [vmem:[#allocation2 + $0x580] sm:$0xff]  ;;  %8573 = vmatprep.subr.bf16.mxu1 %v9860_v22  ;;  %v9723_v53 = vcombine.low %v5270_v31, %v5274_v47  ;;  %p11581_p8 = por %p11580_p7, %p11579_p6 }
 0xf5e   :  { %v5402_v62 = vld [vmem:[#allocation2 + $0x5a0] sm:$0xff]  ;;  %8574 = vmatpush1.bf16.msra.mxu1 %v9859_v63  ;;  %v13661_v12 = vrot.slane %v5157_v51, %v13658_v43  ;;  %v13666_v55 = vrot.slane %v5163_v45, %v13658_v43 }
 0xf5f   :  { %v5262_v50 = vld [vmem:[#allocation2 + $0x140] sm:$0xff]  ;;  %v9852_v33 = vcombine.high %v5398_v61, %v5402_v62  ;;  %8534 = vmatprep.subr.bf16.mxu0 %v9724_v60  ;;  %v9851_v20 = vcombine.low %v5398_v61, %v5402_v62  ;;  %p11582_p9 = pnand %p11581_p8, %p11575_p5 }
 0xf60   :  { %v5266_v21 = vld [vmem:[#allocation2 + $0x160] sm:$0xff]  ;;  %8535 = vmatpush1.bf16.msra.mxu0 %v9723_v53  ;;  %v5178_v49 = vcombine.high %v13661_v12, %v13661_v12  ;;  %v5179_v61 = vcombine.high %v13666_v55, %v13666_v55 }
 0xf61   :  { %v5390_v23 = vld [vmem:[#allocation2 + $0x540] sm:$0xff]  ;;  %v9716_v38 = vcombine.high %v5262_v50, %v5266_v21  ;;  %8575 = vmatprep.subr.bf16.mxu1 %v9852_v33  ;;  %v9715_v30 = vcombine.low %v5262_v50, %v5266_v21 }
 0xf62   :  { %v5394_v39 = vld [vmem:[#allocation2 + $0x560] sm:$0xff]  ;;  %8576 = vmatpush1.bf16.msra.mxu1 %v9851_v20  ;;  %v13668_v60 = vpack.c.bf16 %v5178_v49, %v5178_v49  ;;  %v13673_v21 = vpack.c.bf16 %v5179_v61, %v5179_v61  ;;  %v5158_v49 = vld [vmem:[#allocation5 + $0x8] sm:$0xff] }
 0xf63   :  { %v9844_v36 = vcombine.high %v5390_v23, %v5394_v39  ;;  %v5254_v58 = vld [vmem:[#allocation2 + $0x100] sm:$0xff]  ;;  %8536 = vmatprep.subr.bf16.mxu0 %v9716_v38  ;;  %v9843_v37 = vcombine.low %v5390_v23, %v5394_v39 }
 0xf64   :  { %v5258_v17 = vld [vmem:[#allocation2 + $0x120] sm:$0xff]  ;;  %8537 = vmatpush1.bf16.msra.mxu0 %v9715_v30  ;;  %8564 = vmatprep.mubr.bf16.mxu0 %v13668_v60 }
 0xf65   :  { %v5382_v6 = vld [vmem:[#allocation2 + $0x500] sm:$0xff]  ;;  %v9708_v54 = vcombine.high %v5254_v58, %v5258_v17  ;;  %8577 = vmatprep.subr.bf16.mxu1 %v9844_v36  ;;  %v9707_v0 = vcombine.low %v5254_v58, %v5258_v17  ;;  %8605 = vmatprep.mubr.bf16.mxu1 %v13673_v21 }
 0xf66   :  { %v5386_v48 = vld [vmem:[#allocation2 + $0x520] sm:$0xff]  ;;  %8578 = vmatpush1.bf16.msra.mxu1 %v9843_v37 }
 0xf67   :  { %v9836_v35 = vcombine.high %v5382_v6, %v5386_v48  ;;  %v5246_v24 = vld [vmem:[#allocation2 + $0xc0] sm:$0xff]  ;;  %8538 = vmatprep.subr.bf16.mxu0 %v9708_v54  ;;  %v9835_v27 = vcombine.low %v5382_v6, %v5386_v48 }
 0xf68   :  { %v5250_v15 = vld [vmem:[#allocation2 + $0xe0] sm:$0xff]  ;;  %8539 = vmatpush1.bf16.msra.mxu0 %v9707_v0 }
 0xf69   :  { %v5374_v11 = vld [vmem:[#allocation2 + $0x4c0] sm:$0xff]  ;;  %v9700_v41 = vcombine.high %v5246_v24, %v5250_v15  ;;  %8579 = vmatprep.subr.bf16.mxu1 %v9836_v35  ;;  %v9699_v2 = vcombine.low %v5246_v24, %v5250_v15 }
 0xf6a   :  { %v5378_v34 = vld [vmem:[#allocation2 + $0x4e0] sm:$0xff]  ;;  %8580 = vmatpush1.bf16.msra.mxu1 %v9835_v27 }
 0xf6b   :  { %v9828_v40 = vcombine.high %v5374_v11, %v5378_v34  ;;  %v5238_v14 = vld [vmem:[#allocation2 + $0x80] sm:$0xff]  ;;  %8540 = vmatprep.subr.bf16.mxu0 %v9700_v41  ;;  %v9827_v56 = vcombine.low %v5374_v11, %v5378_v34 }
 0xf6c   :  { %v5242_v52 = vld [vmem:[#allocation2 + $0xa0] sm:$0xff]  ;;  %8541 = vmatpush1.bf16.msra.mxu0 %v9699_v2 }
 0xf6d   :  { %v5366_v28 = vld [vmem:[#allocation2 + $0x480] sm:$0xff]  ;;  %v9692_v57 = vcombine.high %v5238_v14, %v5242_v52  ;;  %8581 = vmatprep.subr.bf16.mxu1 %v9828_v40  ;;  %v9691_v4 = vcombine.low %v5238_v14, %v5242_v52 }
 0xf6e   :  { %v5370_v1 = vld [vmem:[#allocation2 + $0x4a0] sm:$0xff]  ;;  %8582 = vmatpush1.bf16.msra.mxu1 %v9827_v56 }
 0xf6f   :  { %v9820_v59 = vcombine.high %v5366_v28, %v5370_v1  ;;  %v5230_v7 = vld [vmem:[#allocation2 + $0x40] sm:$0xff]  ;;  %8542 = vmatprep.subr.bf16.mxu0 %v9692_v57  ;;  %v9819_v18 = vcombine.low %v5366_v28, %v5370_v1 }
 0xf70   :  { %v5234_v29 = vld [vmem:[#allocation2 + $0x60] sm:$0xff]  ;;  %8543 = vmatpush1.bf16.msra.mxu0 %v9691_v4 }
 0xf71   :  { %v5358_v42 = vld [vmem:[#allocation2 + $0x440] sm:$0xff]  ;;  %v9684_v32 = vcombine.high %v5230_v7, %v5234_v29  ;;  %8583 = vmatprep.subr.bf16.mxu1 %v9820_v59  ;;  %v9683_v13 = vcombine.low %v5230_v7, %v5234_v29 }
 0xf72   :  { %v5362_v10 = vld [vmem:[#allocation2 + $0x460] sm:$0xff]  ;;  %8584 = vmatpush1.bf16.msra.mxu1 %v9819_v18 }
 0xf73   :  { %v9812_v9 = vcombine.high %v5358_v42, %v5362_v10  ;;  %v5222_v19 = vld [vmem:[#allocation2] sm:$0xff]  ;;  %8544 = vmatprep.subr.bf16.mxu0 %v9684_v32  ;;  %v9811_v5 = vcombine.low %v5358_v42, %v5362_v10 }
 0xf74   :  { %v5226_v25 = vld [vmem:[#allocation2 + $0x20] sm:$0xff]  ;;  %8545 = vmatpush1.bf16.msra.mxu0 %v9683_v13 }
 0xf75   :  { %v5350_v16 = vld [vmem:[#allocation2 + $0x400] sm:$0xff]  ;;  %v9676_v31 = vcombine.high %v5222_v19, %v5226_v25  ;;  %8585 = vmatprep.subr.bf16.mxu1 %v9812_v9  ;;  %v9675_v33 = vcombine.low %v5222_v19, %v5226_v25 }
 0xf76   :  { %v5354_v46 = vld [vmem:[#allocation2 + $0x420] sm:$0xff]  ;;  %8586 = vmatpush1.bf16.msra.mxu1 %v9811_v5 }
 0xf77   :  { %v9804_v47 = vcombine.high %v5350_v16, %v5354_v46  ;;  %v5342_v22 = vld [vmem:[#allocation2 + $0x3c0] sm:$0xff]  ;;  %8546 = vmatprep.subr.bf16.mxu0 %v9676_v31  ;;  %v9803_v23 = vcombine.low %v5350_v16, %v5354_v46 }
 0xf78   :  { %v5346_v63 = vld [vmem:[#allocation2 + $0x3e0] sm:$0xff]  ;;  %8547 = vmatpush1.bf16.msra.mxu0 %v9675_v33 }
 0xf79   :  { %v5470_v62 = vld [vmem:[#allocation2 + $0x7c0] sm:$0xff]  ;;  %v9796_v39 = vcombine.high %v5342_v22, %v5346_v63  ;;  %8587 = vmatprep.subr.bf16.mxu1 %v9804_v47  ;;  %v9795_v17 = vcombine.low %v5342_v22, %v5346_v63 }
 0xf7a   :  { %v5474_v50 = vld [vmem:[#allocation2 + $0x7e0] sm:$0xff]  ;;  %8588 = vmatpush1.bf16.msra.mxu1 %v9803_v23 }
 0xf7b   :  { %v9924_v53 = vcombine.high %v5470_v62, %v5474_v50  ;;  %v5334_v20 = vld [vmem:[#allocation2 + $0x380] sm:$0xff]  ;;  %8548 = vmatprep.subr.bf16.mxu0 %v9796_v39  ;;  %v9923_v6 = vcombine.low %v5470_v62, %v5474_v50  ;;  %v5180_v50 = vcombine.high %v5158_v49, %v5158_v49 }
 0xf7c   :  { %v5338_v38 = vld [vmem:[#allocation2 + $0x3a0] sm:$0xff]  ;;  %8549 = vmatpush2.bf16.msra.mxu0 %v9795_v17 }
 0xf7d   :  { %v5462_v36 = vld [vmem:[#allocation2 + $0x780] sm:$0xff]  ;;  %v9788_v48 = vcombine.high %v5334_v20, %v5338_v38  ;;  %8589 = vmatprep.subr.bf16.mxu1 %v9924_v53  ;;  %v9787_v15 = vcombine.low %v5334_v20, %v5338_v38 }
 0xf7e   :  { %v5466_v58 = vld [vmem:[#allocation2 + $0x7a0] sm:$0xff]  ;;  %8590 = vmatpush2.bf16.msra.mxu1 %v9923_v6  ;;  %v13680_v6 = vrot.slane %v5180_v50, %v13658_v43 }
 0xf7f   :  { %v9916_v30 = vcombine.high %v5462_v36, %v5466_v58  ;;  %v5326_v37 = vld [vmem:[#allocation2 + $0x340] sm:$0xff]  ;;  %8550 = vmatprep.subr.bf16.mxu0 %v9788_v48  ;;  %v9915_v8 = vcombine.low %v5462_v36, %v5466_v58  ;;  %v13677_v36 = vrot.slane %v5158_v49, %v13658_v43 }
 0xf80   :  { %v5330_v54 = vld [vmem:[#allocation2 + $0x360] sm:$0xff]  ;;  %8551 = vmatpush2.bf16.msra.mxu0 %v9787_v15 }
 0xf81   :  { %v5454_v35 = vld [vmem:[#allocation2 + $0x740] sm:$0xff]  ;;  %v9780_v44 = vcombine.high %v5326_v37, %v5330_v54  ;;  %8591 = vmatprep.subr.bf16.mxu1 %v9916_v30  ;;  %v9779_v40 = vcombine.low %v5326_v37, %v5330_v54  ;;  %v5195_v15 = vcombine.high %v13677_v36, %v13677_v36 }
 0xf82   :  { %v5458_v24 = vld [vmem:[#allocation2 + $0x760] sm:$0xff]  ;;  %8592 = vmatpush2.bf16.msra.mxu1 %v9915_v8  ;;  %v13686_v8 = vpack.c.bf16 %v13661_v12, %v13661_v12 }
 0xf83   :  { %v9908_v11 = vcombine.high %v5454_v35, %v5458_v24  ;;  %v5318_v34 = vld [vmem:[#allocation2 + $0x300] sm:$0xff]  ;;  %8552 = vmatprep.subr.bf16.mxu0 %v9780_v44  ;;  %v9907_v14 = vcombine.low %v5454_v35, %v5458_v24 }
 0xf84   :  { %v5322_v0 = vld [vmem:[#allocation2 + $0x320] sm:$0xff]  ;;  %8553 = vmatpush2.bf16.msra.mxu0 %v9779_v40 }
 0xf85   :  { %v5446_v27 = vld [vmem:[#allocation2 + $0x700] sm:$0xff]  ;;  %v9772_v52 = vcombine.high %v5318_v34, %v5322_v0  ;;  %8593 = vmatprep.subr.bf16.mxu1 %v9908_v11  ;;  %v9771_v57 = vcombine.low %v5318_v34, %v5322_v0  ;;  %v5196_v34 = vcombine.high %v13680_v6, %v13680_v6  ;;  %v13692_v0 = vpack.c.bf16 %v13666_v55, %v13666_v55 }
 0xf86   :  { %v5450_v41 = vld [vmem:[#allocation2 + $0x720] sm:$0xff]  ;;  %8594 = vmatpush2.bf16.msra.mxu1 %v9907_v14 }
 0xf87   :  { %v9900_v3 = vcombine.high %v5446_v27, %v5450_v41  ;;  %v5310_v28 = vld [vmem:[#allocation2 + $0x2c0] sm:$0xff]  ;;  %8554 = vmatprep.subr.bf16.mxu0 %v9772_v52  ;;  %v9899_v59 = vcombine.low %v5446_v27, %v5450_v41 }
 0xf88   :  { %v5314_v1 = vld [vmem:[#allocation2 + $0x2e0] sm:$0xff]  ;;  %8555 = vmatpush2.bf16.msra.mxu0 %v9771_v57 }
 0xf89   :  { %v5438_v2 = vld [vmem:[#allocation2 + $0x6c0] sm:$0xff]  ;;  %v9764_v7 = vcombine.high %v5310_v28, %v5314_v1  ;;  %8595 = vmatprep.subr.bf16.mxu1 %v9900_v3  ;;  %v9763_v32 = vcombine.low %v5310_v28, %v5314_v1  ;;  %v13694_v3 = vpack.c.bf16 %v5195_v15, %v5195_v15 }
 0xf8a   :  { %v5442_v56 = vld [vmem:[#allocation2 + $0x6e0] sm:$0xff]  ;;  %8596 = vmatpush2.bf16.msra.mxu1 %v9899_v59 }
 0xf8b   :  { %v9892_v29 = vcombine.high %v5438_v2, %v5442_v56  ;;  %v5302_v42 = vld [vmem:[#allocation2 + $0x280] sm:$0xff]  ;;  %8556 = vmatprep.subr.bf16.mxu0 %v9764_v7  ;;  %v9891_v51 = vcombine.low %v5438_v2, %v5442_v56  ;;  %v13697_v2 = vpack.c.bf16 %v5196_v34, %v5196_v34 }
 0xf8c   :  { %v5306_v10 = vld [vmem:[#allocation2 + $0x2a0] sm:$0xff]  ;;  %8557 = vmatpush2.bf16.msra.mxu0 %v9763_v32 }
 0xf8d   :  { %v5430_v4 = vld [vmem:[#allocation2 + $0x680] sm:$0xff]  ;;  %v9756_v9 = vcombine.high %v5302_v42, %v5306_v10  ;;  %8597 = vmatprep.subr.bf16.mxu1 %v9892_v29  ;;  %v9755_v13 = vcombine.low %v5302_v42, %v5306_v10 }
 0xf8e   :  { %v5434_v18 = vld [vmem:[#allocation2 + $0x6a0] sm:$0xff]  ;;  %8598 = vmatpush2.bf16.msra.mxu1 %v9891_v51 }
 0xf8f   :  { %v9884_v19 = vcombine.high %v5430_v4, %v5434_v18  ;;  %v5294_v25 = vld [vmem:[#allocation2 + $0x240] sm:$0xff]  ;;  %8558 = vmatprep.subr.bf16.mxu0 %v9756_v9  ;;  %v9883_v5 = vcombine.low %v5430_v4, %v5434_v18 }
 0xf90   :  { %v5298_v45 = vld [vmem:[#allocation2 + $0x260] sm:$0xff]  ;;  %8559 = vmatpush2.bf16.msra.mxu0 %v9755_v13 }
 0xf91   :  { %v5422_v16 = vld [vmem:[#allocation2 + $0x640] sm:$0xff]  ;;  %v9748_v31 = vcombine.high %v5294_v25, %v5298_v45  ;;  %8599 = vmatprep.subr.bf16.mxu1 %v9884_v19  ;;  %v9747_v33 = vcombine.low %v5294_v25, %v5298_v45 }
 0xf92   :  { %v5426_v46 = vld [vmem:[#allocation2 + $0x660] sm:$0xff]  ;;  %8600 = vmatpush2.bf16.msra.mxu1 %v9883_v5 }
 0xf93   :  { %v9876_v47 = vcombine.high %v5422_v16, %v5426_v46  ;;  %v5286_v22 = vld [vmem:[#allocation2 + $0x200] sm:$0xff]  ;;  %8560 = vmatprep.subr.bf16.mxu0 %v9748_v31  ;;  %v9875_v23 = vcombine.low %v5422_v16, %v5426_v46 }
 0xf94   :  { %v5290_v63 = vld [vmem:[#allocation2 + $0x220] sm:$0xff]  ;;  %8561 = vmatpush2.bf16.msra.mxu0 %v9747_v33 }
 0xf95   :  { %v5414_v61 = vld [vmem:[#allocation2 + $0x600] sm:$0xff]  ;;  %v9740_v39 = vcombine.high %v5286_v22, %v5290_v63  ;;  %8601 = vmatprep.subr.bf16.mxu1 %v9876_v47  ;;  %v9739_v48 = vcombine.low %v5286_v22, %v5290_v63 }
 0xf96   :  { %v5418_v62 = vld [vmem:[#allocation2 + $0x620] sm:$0xff]  ;;  %8602 = vmatpush2.bf16.msra.mxu1 %v9875_v23 }
 0xf97   :  { %v9868_v53 = vcombine.high %v5414_v61, %v5418_v62  ;;  %v5534_v20 = vld [vmem:[#allocation2 + $0x9c0] sm:$0xff]  ;;  %8562 = vmatprep.subr.bf16.mxu0 %v9740_v39  ;;  %v9867_v30 = vcombine.low %v5414_v61, %v5418_v62 }
 0xf98   :  { %v5538_v38 = vld [vmem:[#allocation2 + $0x9e0] sm:$0xff]  ;;  %8563 = vmatpush2.bf16.msra.mxu0 %v9739_v48 }
 0xf99   :  { %v5662_v58 = vld [vmem:[#allocation2 + $0xdc0] sm:$0xff]  ;;  %v9988_v37 = vcombine.high %v5534_v20, %v5538_v38  ;;  %8603 = vmatprep.subr.bf16.mxu1 %v9868_v53  ;;  %v9987_v27 = vcombine.low %v5534_v20, %v5538_v38 }
 0xf9a   :  { %v5666_v17 = vld [vmem:[#allocation2 + $0xde0] sm:$0xff]  ;;  %8604 = vmatpush2.bf16.msra.mxu1 %v9867_v30 }
 0xf9b   :  { %v10116_v54 = vcombine.high %v5662_v58, %v5666_v17  ;;  %v5526_v35 = vld [vmem:[#allocation2 + $0x980] sm:$0xff]  ;;  %8614 = vmatprep.subr.bf16.mxu0 %v9988_v37  ;;  %v10115_v41 = vcombine.low %v5662_v58, %v5666_v17  ;;  %8565 = vmatmul.mubr.bf16.vlgmr.msra.gmra.mxu0 %v13686_v8 }
 0xf9c   :  { %v5530_v24 = vld [vmem:[#allocation2 + $0x9a0] sm:$0xff]  ;;  %8615 = vmatpush1.bf16.msra.mxu0 %v9987_v27  ;;  %8646 = vmatprep.mubr.bf16.mxu0 %v13694_v3 }
 0xf9d   :  { %v5654_v44 = vld [vmem:[#allocation2 + $0xd80] sm:$0xff]  ;;  %v9980_v40 = vcombine.high %v5526_v35, %v5530_v24  ;;  %8655 = vmatprep.subr.bf16.mxu1 %v10116_v54  ;;  %8606 = vmatmul.mubr.bf16.vlgmr.msra.gmra.mxu1 %v13692_v0  ;;  %v9979_v55 = vcombine.low %v5526_v35, %v5530_v24 }
 0xf9e   :  { %v5658_v11 = vld [vmem:[#allocation2 + $0xda0] sm:$0xff]  ;;  %8656 = vmatpush1.bf16.msra.mxu1 %v10115_v41  ;;  %8687 = vmatprep.mubr.bf16.mxu1 %v13697_v2 }
 0xf9f   :  { %v10108_v14 = vcombine.high %v5654_v44, %v5658_v11  ;;  %v5518_v52 = vld [vmem:[#allocation2 + $0x940] sm:$0xff]  ;;  %8616 = vmatprep.subr.bf16.mxu0 %v9980_v40  ;;  %v10107_v56 = vcombine.low %v5654_v44, %v5658_v11 }
 0xfa0   :  { %v5522_v12 = vld [vmem:[#allocation2 + $0x960] sm:$0xff]  ;;  %8617 = vmatpush1.bf16.msra.mxu0 %v9979_v55 }
 0xfa1   :  { %v5646_v28 = vld [vmem:[#allocation2 + $0xd40] sm:$0xff]  ;;  %v9972_v57 = vcombine.high %v5518_v52, %v5522_v12  ;;  %8657 = vmatprep.subr.bf16.mxu1 %v10108_v14  ;;  %v9971_v4 = vcombine.low %v5518_v52, %v5522_v12 }
 0xfa2   :  { %v5650_v1 = vld [vmem:[#allocation2 + $0xd60] sm:$0xff]  ;;  %8658 = vmatpush1.bf16.msra.mxu1 %v10107_v56 }
 0xfa3   :  { %v10100_v59 = vcombine.high %v5646_v28, %v5650_v1  ;;  %v5510_v7 = vld [vmem:[#allocation2 + $0x900] sm:$0xff]  ;;  %8618 = vmatprep.subr.bf16.mxu0 %v9972_v57  ;;  %v10099_v18 = vcombine.low %v5646_v28, %v5650_v1 }
 0xfa4   :  { %v5514_v29 = vld [vmem:[#allocation2 + $0x920] sm:$0xff]  ;;  %8619 = vmatpush1.bf16.msra.mxu0 %v9971_v4 }
 0xfa5   :  { %v5638_v42 = vld [vmem:[#allocation2 + $0xd00] sm:$0xff]  ;;  %v9964_v32 = vcombine.high %v5510_v7, %v5514_v29  ;;  %8659 = vmatprep.subr.bf16.mxu1 %v10100_v59  ;;  %v9963_v16 = vcombine.low %v5510_v7, %v5514_v29 }
 0xfa6   :  { %v5642_v10 = vld [vmem:[#allocation2 + $0xd20] sm:$0xff]  ;;  %8660 = vmatpush1.bf16.msra.mxu1 %v10099_v18 }
 0xfa7   :  { %v10092_v51 = vcombine.high %v5638_v42, %v5642_v10  ;;  %v5502_v9 = vld [vmem:[#allocation2 + $0x8c0] sm:$0xff]  ;;  %8620 = vmatprep.subr.bf16.mxu0 %v9964_v32  ;;  %v10091_v46 = vcombine.low %v5638_v42, %v5642_v10 }
 0xfa8   :  { %v5506_v19 = vld [vmem:[#allocation2 + $0x8e0] sm:$0xff]  ;;  %8621 = vmatpush1.bf16.msra.mxu0 %v9963_v16 }
 0xfa9   :  { %v5630_v25 = vld [vmem:[#allocation2 + $0xcc0] sm:$0xff]  ;;  %v9956_v13 = vcombine.high %v5502_v9, %v5506_v19  ;;  %8661 = vmatprep.subr.bf16.mxu1 %v10092_v51  ;;  %v9955_v63 = vcombine.low %v5502_v9, %v5506_v19 }
 0xfaa   :  { %v5634_v45 = vld [vmem:[#allocation2 + $0xce0] sm:$0xff]  ;;  %8662 = vmatpush1.bf16.msra.mxu1 %v10091_v46 }
 0xfab   :  { %v10084_v49 = vcombine.high %v5630_v25, %v5634_v45  ;;  %v5494_v5 = vld [vmem:[#allocation2 + $0x880] sm:$0xff]  ;;  %8622 = vmatprep.subr.bf16.mxu0 %v9956_v13  ;;  %v10083_v61 = vcombine.low %v5630_v25, %v5634_v45 }
 0xfac   :  { %v5498_v31 = vld [vmem:[#allocation2 + $0x8a0] sm:$0xff]  ;;  %8623 = vmatpush1.bf16.msra.mxu0 %v9955_v63 }
 0xfad   :  { %v5622_v47 = vld [vmem:[#allocation2 + $0xc80] sm:$0xff]  ;;  %v9948_v62 = vcombine.high %v5494_v5, %v5498_v31  ;;  %8663 = vmatprep.subr.bf16.mxu1 %v10084_v49  ;;  %v9947_v20 = vcombine.low %v5494_v5, %v5498_v31 }
 0xfae   :  { %v5626_v22 = vld [vmem:[#allocation2 + $0xca0] sm:$0xff]  ;;  %8664 = vmatpush1.bf16.msra.mxu1 %v10083_v61 }
 0xfaf   :  { %v10076_v50 = vcombine.high %v5622_v47, %v5626_v22  ;;  %v5486_v33 = vld [vmem:[#allocation2 + $0x840] sm:$0xff]  ;;  %8624 = vmatprep.subr.bf16.mxu0 %v9948_v62  ;;  %v10075_v38 = vcombine.low %v5622_v47, %v5626_v22 }
 0xfb0   :  { %v5490_v23 = vld [vmem:[#allocation2 + $0x860] sm:$0xff]  ;;  %8625 = vmatpush1.bf16.msra.mxu0 %v9947_v20 }
 0xfb1   :  { %v5614_v39 = vld [vmem:[#allocation2 + $0xc40] sm:$0xff]  ;;  %v9940_v58 = vcombine.high %v5486_v33, %v5490_v23  ;;  %8665 = vmatprep.subr.bf16.mxu1 %v10076_v50  ;;  %v9939_v35 = vcombine.low %v5486_v33, %v5490_v23 }
 0xfb2   :  { %v5618_v53 = vld [vmem:[#allocation2 + $0xc60] sm:$0xff]  ;;  %8666 = vmatpush1.bf16.msra.mxu1 %v10075_v38 }
 0xfb3   :  { %v10068_v17 = vcombine.high %v5614_v39, %v5618_v53  ;;  %v5478_v48 = vld [vmem:[#allocation2 + $0x800] sm:$0xff]  ;;  %8626 = vmatprep.subr.bf16.mxu0 %v9940_v58  ;;  %v10067_v24 = vcombine.low %v5614_v39, %v5618_v53 }
 0xfb4   :  { %v5482_v30 = vld [vmem:[#allocation2 + $0x820] sm:$0xff]  ;;  %8627 = vmatpush1.bf16.msra.mxu0 %v9939_v35 }
 0xfb5   :  { %v5606_v37 = vld [vmem:[#allocation2 + $0xc00] sm:$0xff]  ;;  %v9932_v15 = vcombine.high %v5478_v48, %v5482_v30  ;;  %8667 = vmatprep.subr.bf16.mxu1 %v10068_v17  ;;  %v9931_v40 = vcombine.low %v5478_v48, %v5482_v30 }
 0xfb6   :  { %v5610_v54 = vld [vmem:[#allocation2 + $0xc20] sm:$0xff]  ;;  %8668 = vmatpush1.bf16.msra.mxu1 %v10067_v24 }
 0xfb7   :  { %v10060_v44 = vcombine.high %v5606_v37, %v5610_v54  ;;  %v5598_v11 = vld [vmem:[#allocation2 + $0xbc0] sm:$0xff]  ;;  %8628 = vmatprep.subr.bf16.mxu0 %v9932_v15  ;;  %v10059_v14 = vcombine.low %v5606_v37, %v5610_v54 }
 0xfb8   :  { %v5602_v34 = vld [vmem:[#allocation2 + $0xbe0] sm:$0xff]  ;;  %8629 = vmatpush1.bf16.msra.mxu0 %v9931_v40 }
 0xfb9   :  { %v5726_v27 = vld [vmem:[#allocation2 + $0xfc0] sm:$0xff]  ;;  %v10052_v52 = vcombine.high %v5598_v11, %v5602_v34  ;;  %8669 = vmatprep.subr.bf16.mxu1 %v10060_v44  ;;  %v10051_v57 = vcombine.low %v5598_v11, %v5602_v34 }
 0xfba   :  { %v5730_v41 = vld [vmem:[#allocation2 + $0xfe0] sm:$0xff]  ;;  %8670 = vmatpush1.bf16.msra.mxu1 %v10059_v14 }
 0xfbb   :  { %v10180_v12 = vcombine.high %v5726_v27, %v5730_v41  ;;  %v5590_v28 = vld [vmem:[#allocation2 + $0xb80] sm:$0xff]  ;;  %8630 = vmatprep.subr.bf16.mxu0 %v10052_v52  ;;  %v10179_v59 = vcombine.low %v5726_v27, %v5730_v41 }
 0xfbc   :  { %v5594_v1 = vld [vmem:[#allocation2 + $0xba0] sm:$0xff]  ;;  %8631 = vmatpush2.bf16.msra.mxu0 %v10051_v57  ;;  %v5279_v57 = vld [vmem:[#allocation2 + $0x1c8] sm:$0xff] }
 0xfbd   :  { %v5718_v55 = vld [vmem:[#allocation2 + $0xf80] sm:$0xff]  ;;  %v10044_v7 = vcombine.high %v5590_v28, %v5594_v1  ;;  %8671 = vmatprep.subr.bf16.mxu1 %v10180_v12  ;;  %v10043_v32 = vcombine.low %v5590_v28, %v5594_v1 }
 0xfbe   :  { %v5722_v56 = vld [vmem:[#allocation2 + $0xfa0] sm:$0xff]  ;;  %8672 = vmatpush2.bf16.msra.mxu1 %v10179_v59  ;;  %v5283_v59 = vld [vmem:[#allocation2 + $0x1e8] sm:$0xff] }
 0xfbf   :  { %v10172_v29 = vcombine.high %v5718_v55, %v5722_v56  ;;  %v5582_v42 = vld [vmem:[#allocation2 + $0xb40] sm:$0xff]  ;;  %8632 = vmatprep.subr.bf16.mxu0 %v10044_v7  ;;  %v10171_v51 = vcombine.low %v5718_v55, %v5722_v56 }
 0xfc0   :  { %v5586_v10 = vld [vmem:[#allocation2 + $0xb60] sm:$0xff]  ;;  %8633 = vmatpush2.bf16.msra.mxu0 %v10043_v32  ;;  %v13704_v32 = vpack.c.bf16 %v13677_v36, %v13677_v36  ;;  %v5263_v36 = vld [vmem:[#allocation2 + $0x148] sm:$0xff] }
 0xfc1   :  { %v5710_v4 = vld [vmem:[#allocation2 + $0xf40] sm:$0xff]  ;;  %v10036_v9 = vcombine.high %v5582_v42, %v5586_v10  ;;  %8673 = vmatprep.subr.bf16.mxu1 %v10172_v29  ;;  %v10035_v13 = vcombine.low %v5582_v42, %v5586_v10  ;;  %v9734_v10 = vcombine.high %v5279_v57, %v5283_v59 }
 0xfc2   :  { %v5714_v18 = vld [vmem:[#allocation2 + $0xf60] sm:$0xff]  ;;  %8674 = vmatpush2.bf16.msra.mxu1 %v10171_v51  ;;  %v5271_v51 = vld [vmem:[#allocation2 + $0x188] sm:$0xff] }
 0xfc3   :  { %v10164_v19 = vcombine.high %v5710_v4, %v5714_v18  ;;  %v5574_v25 = vld [vmem:[#allocation2 + $0xb00] sm:$0xff]  ;;  %8634 = vmatprep.subr.bf16.mxu0 %v10036_v9  ;;  %v10163_v49 = vcombine.low %v5710_v4, %v5714_v18  ;;  %v5275_v9 = vld [vmem:[#allocation2 + $0x1a8] sm:$0xff] }
 0xfc4   :  { %v5578_v45 = vld [vmem:[#allocation2 + $0xb20] sm:$0xff]  ;;  %8635 = vmatpush2.bf16.msra.mxu0 %v10035_v13 }
 0xfc5   :  { %v5702_v16 = vld [vmem:[#allocation2 + $0xf00] sm:$0xff]  ;;  %v10028_v5 = vcombine.high %v5574_v25, %v5578_v45  ;;  %8675 = vmatprep.subr.bf16.mxu1 %v10164_v19  ;;  %v10027_v62 = vcombine.low %v5574_v25, %v5578_v45  ;;  %v13708_v19 = vpack.c.bf16 %v13680_v6, %v13680_v6  ;;  %v9733_v45 = vcombine.low %v5279_v57, %v5283_v59 }
 0xfc6   :  { %v5706_v46 = vld [vmem:[#allocation2 + $0xf20] sm:$0xff]  ;;  %8676 = vmatpush2.bf16.msra.mxu1 %v10163_v49  ;;  %v9725_v6 = vcombine.low %v5271_v51, %v5275_v9 }
 0xfc7   :  { %v10156_v31 = vcombine.high %v5702_v16, %v5706_v46  ;;  %v5566_v47 = vld [vmem:[#allocation2 + $0xac0] sm:$0xff]  ;;  %8636 = vmatprep.subr.bf16.mxu0 %v10028_v5  ;;  %v10155_v50 = vcombine.low %v5702_v16, %v5706_v46  ;;  %v9726_v46 = vcombine.high %v5271_v51, %v5275_v9  ;;  %v5267_v5 = vld [vmem:[#allocation2 + $0x168] sm:$0xff] }
 0xfc8   :  { %v5570_v22 = vld [vmem:[#allocation2 + $0xae0] sm:$0xff]  ;;  %8637 = vmatpush2.bf16.msra.mxu0 %v10027_v62  ;;  %v11637_v62 = vmov 0  }
 0xfc9   :  { %v5694_v63 = vld [vmem:[#allocation2 + $0xec0] sm:$0xff]  ;;  %v10020_v33 = vcombine.high %v5566_v47, %v5570_v22  ;;  %8677 = vmatprep.subr.bf16.mxu1 %v10156_v31  ;;  %v10019_v58 = vcombine.low %v5566_v47, %v5570_v22  ;;  %v9718_v22 = vcombine.high %v5263_v36, %v5267_v5 }
 0xfca   :  { %v5698_v61 = vld [vmem:[#allocation2 + $0xee0] sm:$0xff]  ;;  %8678 = vmatpush2.bf16.msra.mxu1 %v10155_v50  ;;  %v5255_v50 = vld [vmem:[#allocation2 + $0x108] sm:$0xff] }
 0xfcb   :  { %v10148_v23 = vcombine.high %v5694_v63, %v5698_v61  ;;  %v5558_v39 = vld [vmem:[#allocation2 + $0xa80] sm:$0xff]  ;;  %8638 = vmatprep.subr.bf16.mxu0 %v10020_v33  ;;  %v10147_v17 = vcombine.low %v5694_v63, %v5698_v61  ;;  %v5259_v33 = vld [vmem:[#allocation2 + $0x128] sm:$0xff] }
 0xfcc   :  { %v5562_v53 = vld [vmem:[#allocation2 + $0xaa0] sm:$0xff]  ;;  %8639 = vmatpush2.bf16.msra.mxu0 %v10019_v58  ;;  %v5411_v58 = vld [vmem:[#allocation2 + $0x5e8] sm:$0xff] }
 0xfcd   :  { %v5686_v20 = vld [vmem:[#allocation2 + $0xe80] sm:$0xff]  ;;  %v10012_v48 = vcombine.high %v5558_v39, %v5562_v53  ;;  %8679 = vmatprep.subr.bf16.mxu1 %v10148_v23  ;;  %v10011_v15 = vcombine.low %v5558_v39, %v5562_v53  ;;  %v9717_v39 = vcombine.low %v5263_v36, %v5267_v5 }
 0xfce   :  { %v5690_v38 = vld [vmem:[#allocation2 + $0xea0] sm:$0xff]  ;;  %8680 = vmatpush2.bf16.msra.mxu1 %v10147_v17  ;;  %v5247_v17 = vld [vmem:[#allocation2 + $0xc8] sm:$0xff] }
 0xfcf   :  { %v10140_v30 = vcombine.high %v5686_v20, %v5690_v38  ;;  %v5550_v37 = vld [vmem:[#allocation2 + $0xa40] sm:$0xff]  ;;  %8640 = vmatprep.subr.bf16.mxu0 %v10012_v48  ;;  %v10139_v44 = vcombine.low %v5686_v20, %v5690_v38  ;;  %v9710_v20 = vcombine.high %v5255_v50, %v5259_v33  ;;  %v5407_v38 = vld [vmem:[#allocation2 + $0x5c8] sm:$0xff] }
 0xfd0   :  { %v5554_v54 = vld [vmem:[#allocation2 + $0xa60] sm:$0xff]  ;;  %8641 = vmatpush2.bf16.msra.mxu0 %v10011_v15  ;;  %v5251_v48 = vld [vmem:[#allocation2 + $0xe8] sm:$0xff] }
 0xfd1   :  { %v5678_v35 = vld [vmem:[#allocation2 + $0xe40] sm:$0xff]  ;;  %v10004_v11 = vcombine.high %v5550_v37, %v5554_v54  ;;  %8681 = vmatprep.subr.bf16.mxu1 %v10140_v30  ;;  %v10003_v52 = vcombine.low %v5550_v37, %v5554_v54  ;;  %v9674_v37 = vld.sshfl [vmem:[#allocation5 + $0x10] sm:$0x3 pattern:$0x76325410]  ;;  %v9709_v54 = vcombine.low %v5255_v50, %v5259_v33  ;;  %v5399_v15 = vld [vmem:[#allocation2 + $0x588] sm:$0xff] }
 0xfd2   :  { %v5682_v24 = vld [vmem:[#allocation2 + $0xe60] sm:$0xff]  ;;  %8682 = vmatpush2.bf16.msra.mxu1 %v10139_v44  ;;  %v5403_v44 = vld [vmem:[#allocation2 + $0x5a8] sm:$0xff] }
 0xfd3   :  { %v10132_v34 = vcombine.high %v5678_v35, %v5682_v24  ;;  %v5542_v27 = vld [vmem:[#allocation2 + $0xa00] sm:$0xff]  ;;  %8642 = vmatprep.subr.bf16.mxu0 %v10004_v11  ;;  %v10131_v12 = vcombine.low %v5678_v35, %v5682_v24  ;;  %v9862_v35 = vcombine.high %v5407_v38, %v5411_v58  ;;  %v9702_v24 = vcombine.high %v5247_v17, %v5251_v48 }
 0xfd4   :  { %v5546_v41 = vld [vmem:[#allocation2 + $0xa20] sm:$0xff]  ;;  %8643 = vmatpush2.bf16.msra.mxu0 %v10003_v52  ;;  %v13714_v11 = vpack.c.bf16 %v9674_v37, %v9674_v37  ;;  %v5351_v37 = vld [vmem:[#allocation2 + $0x408] sm:$0xff] }
 0xfd5   :  { %v5670_v40 = vld [vmem:[#allocation2 + $0xe00] sm:$0xff]  ;;  %v9996_v28 = vcombine.high %v5542_v27, %v5546_v41  ;;  %8683 = vmatprep.subr.bf16.mxu1 %v10132_v34  ;;  %v9995_v7 = vcombine.low %v5542_v27, %v5546_v41  ;;  %v5239_v34 = vld [vmem:[#allocation2 + $0x88] sm:$0xff]  ;;  %v9861_v41 = vcombine.low %v5407_v38, %v5411_v58 }
 0xfd6   :  { %v5674_v14 = vld [vmem:[#allocation2 + $0xe20] sm:$0xff]  ;;  %8684 = vmatpush2.bf16.msra.mxu1 %v10131_v12  ;;  %v5243_v27 = vld [vmem:[#allocation2 + $0xa8] sm:$0xff] }
 0xfd7   :  { %v10124_v1 = vcombine.high %v5670_v40, %v5674_v14  ;;  %v5758_v55 = vld [vmem:[#allocation2 + $0x10c0] sm:$0xff]  ;;  %8644 = vmatprep.subr.bf16.mxu0 %v9996_v28  ;;  %v10123_v29 = vcombine.low %v5670_v40, %v5674_v14  ;;  %v9701_v40 = vcombine.low %v5247_v17, %v5251_v48  ;;  %v9854_v14 = vcombine.high %v5399_v15, %v5403_v44  ;;  %v5391_v12 = vld [vmem:[#allocation2 + $0x548] sm:$0xff] }
 0xfd8   :  { %v5762_v56 = vld [vmem:[#allocation2 + $0x10e0] sm:$0xff]  ;;  %8645 = vmatpush2.bf16.msra.mxu0 %v9995_v7  ;;  %v9694_v52 = vcombine.high %v5239_v34, %v5243_v27  ;;  %v5395_v28 = vld [vmem:[#allocation2 + $0x568] sm:$0xff]  ;;  %v9693_v57 = vcombine.low %v5239_v34, %v5243_v27 }
 0xfd9   :  { %v10212_v42 = vcombine.high %v5758_v55, %v5762_v56  ;;  %8685 = vmatprep.subr.bf16.mxu1 %v10124_v1  ;;  %v5750_v4 = vld [vmem:[#allocation2 + $0x1080] sm:$0xff]  ;;  %v10211_v25 = vcombine.low %v5758_v55, %v5762_v56  ;;  %v5231_v1 = vld [vmem:[#allocation2 + $0x48] sm:$0xff]  ;;  %v9853_v56 = vcombine.low %v5399_v15, %v5403_v44  ;;  %v9846_v59 = vcombine.high %v5391_v12, %v5395_v28 }
 0xfda   :  { %v5754_v18 = vld [vmem:[#allocation2 + $0x10a0] sm:$0xff]  ;;  %8686 = vmatpush2.bf16.msra.mxu1 %v10123_v29  ;;  %v5235_v55 = vld [vmem:[#allocation2 + $0x68] sm:$0xff] }
 0xfdb   :  { %8704 = vmatprep.subr.bf16.mxu0 %v10212_v42  ;;  %v10204_v16 = vcombine.high %v5750_v4, %v5754_v18  ;;  %8737 = vmatprep.subr.bf16.mxu1 %v9734_v10  ;;  %v5742_v13 = vld [vmem:[#allocation2 + $0x1040] sm:$0xff]  ;;  %v10203_v31 = vcombine.low %v5750_v4, %v5754_v18  ;;  %v9686_v7 = vcombine.high %v5231_v1, %v5235_v55  ;;  %v5383_v29 = vld [vmem:[#allocation2 + $0x508] sm:$0xff] }
 0xfdc   :  { %v5746_v49 = vld [vmem:[#allocation2 + $0x1060] sm:$0xff]  ;;  %8647 = vmatmul.mubr.bf16.vlgmr.msra.gmra.mxu0 %v13704_v32  ;;  %v5387_v42 = vld [vmem:[#allocation2 + $0x528] sm:$0xff]  ;;  %v9845_v18 = vcombine.low %v5391_v12, %v5395_v28  ;;  %v9685_v51 = vcombine.low %v5231_v1, %v5235_v55 }
 0xfdd   :  { %8688 = vmatmul.mubr.bf16.vlgmr.msra.gmra.mxu1 %v13708_v19  ;;  %8705 = vmatpush1.bf16.msra.mxu0 %v10211_v25  ;;  %v10196_v47 = vcombine.high %v5742_v13, %v5746_v49  ;;  %v5734_v63 = vld [vmem:[#allocation2 + $0x1000] sm:$0xff]  ;;  %v10195_v23 = vcombine.low %v5742_v13, %v5746_v49  ;;  %v5223_v10 = vld [vmem:[#allocation2 + $0x8] sm:$0xff]  ;;  %v9838_v9 = vcombine.high %v5383_v29, %v5387_v42 }
 0xfde   :  { %8738 = vmatpush1.bf16.msra.mxu1 %v9733_v45  ;;  %8706 = vmatprep.subr.bf16.mxu0 %v10204_v16  ;;  %v5738_v61 = vld [vmem:[#allocation2 + $0x1020] sm:$0xff]  ;;  %v5227_v4 = vld [vmem:[#allocation2 + $0x28] sm:$0xff]  ;;  %v9837_v49 = vcombine.low %v5383_v29, %v5387_v42 }
 0xfdf   :  { %8739 = vmatprep.subr.bf16.mxu1 %v9726_v46  ;;  %8728 = vmatprep.mubr.bf16.mxu0 %v11637_v62  ;;  %v10188_v53 = vcombine.high %v5734_v63, %v5738_v61  ;;  %v10187_v30 = vcombine.low %v5734_v63, %v5738_v61  ;;  %v9678_v25 = vcombine.high %v5223_v10, %v5227_v4  ;;  %v5375_v45 = vld [vmem:[#allocation2 + $0x4c8] sm:$0xff] }
 0xfe0   :  { %8769 = vmatprep.mubr.bf16.mxu1 %v13668_v60  ;;  %v5379_v16 = vld [vmem:[#allocation2 + $0x4e8] sm:$0xff]  ;;  %v9677_v36 = vcombine.low %v5223_v10, %v5227_v4 }
 0xfe1   :  { %8707 = vmatpush1.bf16.msra.mxu0 %v10203_v31  ;;  %v5343_v46 = vld [vmem:[#allocation2 + $0x3c8] sm:$0xff]  ;;  %v9830_v5 = vcombine.high %v5375_v45, %v5379_v16  ;;  %v9829_v61 = vcombine.low %v5375_v45, %v5379_v16 }
 0xfe2   :  { %8740 = vmatpush1.bf16.msra.mxu1 %v9725_v6  ;;  %8708 = vmatprep.subr.bf16.mxu0 %v10196_v47  ;;  %v5347_v13 = vld [vmem:[#allocation2 + $0x3e8] sm:$0xff] }
 0xfe3   :  { %8741 = vmatprep.subr.bf16.mxu1 %v9718_v22  ;;  %v9798_v31 = vcombine.high %v5343_v46, %v5347_v13  ;;  %v5367_v6 = vld [vmem:[#allocation2 + $0x488] sm:$0xff]  ;;  %v9797_v50 = vcombine.low %v5343_v46, %v5347_v13 }
 0xfe4   :  { %v5371_v47 = vld [vmem:[#allocation2 + $0x4a8] sm:$0xff] }
 0xfe5   :  { %8709 = vmatpush1.bf16.msra.mxu0 %v10195_v23  ;;  %v5335_v22 = vld [vmem:[#allocation2 + $0x388] sm:$0xff]  ;;  %v9822_v33 = vcombine.high %v5367_v6, %v5371_v47  ;;  %v9821_v58 = vcombine.low %v5367_v6, %v5371_v47 }
 0xfe6   :  { %8742 = vmatpush1.bf16.msra.mxu1 %v9717_v39  ;;  %8710 = vmatprep.subr.bf16.mxu0 %v10188_v53  ;;  %v5339_v63 = vld [vmem:[#allocation2 + $0x3a8] sm:$0xff] }
 0xfe7   :  { %8743 = vmatprep.subr.bf16.mxu1 %v9710_v20  ;;  %v9790_v23 = vcombine.high %v5335_v22, %v5339_v63  ;;  %v5359_v39 = vld [vmem:[#allocation2 + $0x448] sm:$0xff]  ;;  %v9789_v17 = vcombine.low %v5335_v22, %v5339_v63 }
 0xfe8   :  { %v5363_v53 = vld [vmem:[#allocation2 + $0x468] sm:$0xff] }
 0xfe9   :  { %8711 = vmatpush1.bf16.msra.mxu0 %v10187_v30  ;;  %v5327_v20 = vld [vmem:[#allocation2 + $0x348] sm:$0xff]  ;;  %v9814_v48 = vcombine.high %v5359_v39, %v5363_v53  ;;  %v9813_v15 = vcombine.low %v5359_v39, %v5363_v53 }
 0xfea   :  { %8744 = vmatpush1.bf16.msra.mxu1 %v9709_v54  ;;  %8778 = vmatprep.subr.bf16.mxu0 %v9862_v35  ;;  %v5331_v38 = vld [vmem:[#allocation2 + $0x368] sm:$0xff] }
 0xfeb   :  { %8745 = vmatprep.subr.bf16.mxu1 %v9702_v24  ;;  %v9782_v30 = vcombine.high %v5327_v20, %v5331_v38  ;;  %v5355_v54 = vld [vmem:[#allocation2 + $0x428] sm:$0xff]  ;;  %v9781_v44 = vcombine.low %v5327_v20, %v5331_v38 }
 0xfec   :  { %10219 = vmatmul.mubr.msk.bf16.vlgmr.msra.gmra.mxu0 %vm8528_vm8, %v13714_v11  ;;  %v5319_v35 = vld [vmem:[#allocation2 + $0x308] sm:$0xff]  ;;  %v9806_v34 = vcombine.high %v5351_v37, %v5355_v54  ;;  %v9805_v12 = vcombine.low %v5351_v37, %v5355_v54 }
 0xfed   :  { %8779 = vmatpush1.bf16.msra.mxu0 %v9861_v41  ;;  %8810 = vmatprep.mubr.bf16.mxu0 %v13673_v21  ;;  %v5323_v24 = vld [vmem:[#allocation2 + $0x328] sm:$0xff] }
 0xfee   :  { %8746 = vmatpush1.bf16.msra.mxu1 %v9701_v40  ;;  %8780 = vmatprep.subr.bf16.mxu0 %v9854_v14  ;;  %v9774_v27 = vcombine.high %v5319_v35, %v5323_v24  ;;  %v5471_v41 = vld [vmem:[#allocation2 + $0x7c8] sm:$0xff]  ;;  %v9773_v28 = vcombine.low %v5319_v35, %v5323_v24 }
 0xfef   :  { %8747 = vmatprep.subr.bf16.mxu1 %v9694_v52  ;;  %v5475_v40 = vld [vmem:[#allocation2 + $0x7e8] sm:$0xff] }
 0xff0   :  { %v5311_v14 = vld [vmem:[#allocation2 + $0x2c8] sm:$0xff]  ;;  %v9926_v1 = vcombine.high %v5471_v41, %v5475_v40  ;;  %v9925_v29 = vcombine.low %v5471_v41, %v5475_v40 }
 0xff1   :  { %8781 = vmatpush1.bf16.msra.mxu0 %v9853_v56  ;;  %v5315_v52 = vld [vmem:[#allocation2 + $0x2e8] sm:$0xff] }
 0xff2   :  { %8748 = vmatpush1.bf16.msra.mxu1 %v9693_v57  ;;  %8782 = vmatprep.subr.bf16.mxu0 %v9846_v59  ;;  %v9766_v55 = vcombine.high %v5311_v14, %v5315_v52  ;;  %v5463_v56 = vld [vmem:[#allocation2 + $0x788] sm:$0xff]  ;;  %v9765_v42 = vcombine.low %v5311_v14, %v5315_v52 }
 0xff3   :  { %8749 = vmatprep.subr.bf16.mxu1 %v9686_v7  ;;  %v5467_v57 = vld [vmem:[#allocation2 + $0x7a8] sm:$0xff] }
 0xff4   :  { %v5303_v59 = vld [vmem:[#allocation2 + $0x288] sm:$0xff]  ;;  %v9918_v10 = vcombine.high %v5463_v56, %v5467_v57  ;;  %v9917_v45 = vcombine.low %v5463_v56, %v5467_v57 }
 0xff5   :  { %8783 = vmatpush1.bf16.msra.mxu0 %v9845_v18  ;;  %v5307_v7 = vld [vmem:[#allocation2 + $0x2a8] sm:$0xff] }
 0xff6   :  { %8750 = vmatpush1.bf16.msra.mxu1 %v9685_v51  ;;  %8784 = vmatprep.subr.bf16.mxu0 %v9838_v9  ;;  %v9758_v4 = vcombine.high %v5303_v59, %v5307_v7  ;;  %v5455_v18 = vld [vmem:[#allocation2 + $0x748] sm:$0xff]  ;;  %v9757_v16 = vcombine.low %v5303_v59, %v5307_v7 }
 0xff7   :  { %8751 = vmatprep.subr.bf16.mxu1 %v9678_v25  ;;  %v5459_v51 = vld [vmem:[#allocation2 + $0x768] sm:$0xff] }
 0xff8   :  { %v5295_v9 = vld [vmem:[#allocation2 + $0x248] sm:$0xff]  ;;  %v9910_v46 = vcombine.high %v5455_v18, %v5459_v51  ;;  %v9909_v6 = vcombine.low %v5455_v18, %v5459_v51 }
 0xff9   :  { %8785 = vmatpush1.bf16.msra.mxu0 %v9837_v49  ;;  %v5299_v25 = vld [vmem:[#allocation2 + $0x268] sm:$0xff] }
 0xffa   :  { %8752 = vmatpush1.bf16.msra.mxu1 %v9677_v36  ;;  %8786 = vmatprep.subr.bf16.mxu0 %v9830_v5  ;;  %v9750_v13 = vcombine.high %v5295_v9, %v5299_v25  ;;  %v5447_v49 = vld [vmem:[#allocation2 + $0x708] sm:$0xff]  ;;  %v9749_v47 = vcombine.low %v5295_v9, %v5299_v25 }
 0xffb   :  { %8753 = vmatprep.subr.bf16.mxu1 %v9798_v31  ;;  %v5451_v36 = vld [vmem:[#allocation2 + $0x728] sm:$0xff] }
 0xffc   :  { %v5287_v5 = vld [vmem:[#allocation2 + $0x208] sm:$0xff]  ;;  %v9902_v22 = vcombine.high %v5447_v49, %v5451_v36  ;;  %v9901_v39 = vcombine.low %v5447_v49, %v5451_v36 }
 0xffd   :  { %8787 = vmatpush1.bf16.msra.mxu0 %v9829_v61  ;;  %v5291_v31 = vld [vmem:[#allocation2 + $0x228] sm:$0xff] }
 0xffe   :  { %8754 = vmatpush2.bf16.msra.mxu1 %v9797_v50  ;;  %8788 = vmatprep.subr.bf16.mxu0 %v9822_v33  ;;  %v9742_v63 = vcombine.high %v5287_v5, %v5291_v31  ;;  %v5439_v61 = vld [vmem:[#allocation2 + $0x6c8] sm:$0xff]  ;;  %v9741_v53 = vcombine.low %v5287_v5, %v5291_v31 }
 0xfff   :  { %8755 = vmatprep.subr.bf16.mxu1 %v9790_v23  ;;  %v5443_v50 = vld [vmem:[#allocation2 + $0x6e8] sm:$0xff] }
0x1000   :  { %v5535_v33 = vld [vmem:[#allocation2 + $0x9c8] sm:$0xff]  ;;  %v9894_v20 = vcombine.high %v5439_v61, %v5443_v50  ;;  %v9893_v37 = vcombine.low %v5439_v61, %v5443_v50 }
0x1001   :  { %8789 = vmatpush1.bf16.msra.mxu0 %v9821_v58  ;;  %v5539_v23 = vld [vmem:[#allocation2 + $0x9e8] sm:$0xff] }
0x1002   :  { %8756 = vmatpush2.bf16.msra.mxu1 %v9789_v17  ;;  %8790 = vmatprep.subr.bf16.mxu0 %v9814_v48  ;;  %v9990_v38 = vcombine.high %v5535_v33, %v5539_v23  ;;  %v5431_v58 = vld [vmem:[#allocation2 + $0x688] sm:$0xff]  ;;  %v9989_v54 = vcombine.low %v5535_v33, %v5539_v23 }
0x1003   :  { %8757 = vmatprep.subr.bf16.mxu1 %v9782_v30  ;;  %v5435_v17 = vld [vmem:[#allocation2 + $0x6a8] sm:$0xff] }
0x1004   :  { %v5527_v48 = vld [vmem:[#allocation2 + $0x988] sm:$0xff]  ;;  %v9886_v35 = vcombine.high %v5431_v58, %v5435_v17  ;;  %v9885_v41 = vcombine.low %v5431_v58, %v5435_v17 }
0x1005   :  { %8791 = vmatpush1.bf16.msra.mxu0 %v9813_v15  ;;  %v5531_v30 = vld [vmem:[#allocation2 + $0x9a8] sm:$0xff] }
0x1006   :  { %8758 = vmatpush2.bf16.msra.mxu1 %v9781_v44  ;;  %8792 = vmatprep.subr.bf16.mxu0 %v9806_v34  ;;  %v9982_v24 = vcombine.high %v5527_v48, %v5531_v30  ;;  %v5423_v15 = vld [vmem:[#allocation2 + $0x648] sm:$0xff]  ;;  %v9981_v40 = vcombine.low %v5527_v48, %v5531_v30 }
0x1007   :  { %8759 = vmatprep.subr.bf16.mxu1 %v9774_v27  ;;  %v5427_v44 = vld [vmem:[#allocation2 + $0x668] sm:$0xff] }
0x1008   :  { %v5519_v34 = vld [vmem:[#allocation2 + $0x948] sm:$0xff]  ;;  %v9878_v14 = vcombine.high %v5423_v15, %v5427_v44  ;;  %v9877_v56 = vcombine.low %v5423_v15, %v5427_v44 }
0x1009   :  { %8793 = vmatpush1.bf16.msra.mxu0 %v9805_v12  ;;  %v5523_v27 = vld [vmem:[#allocation2 + $0x968] sm:$0xff] }
0x100a   :  { %8760 = vmatpush2.bf16.msra.mxu1 %v9773_v28  ;;  %8794 = vmatprep.subr.bf16.mxu0 %v9926_v1  ;;  %v9974_v52 = vcombine.high %v5519_v34, %v5523_v27  ;;  %v5415_v12 = vld [vmem:[#allocation2 + $0x608] sm:$0xff]  ;;  %v9973_v57 = vcombine.low %v5519_v34, %v5523_v27 }
0x100b   :  { %8761 = vmatprep.subr.bf16.mxu1 %v9766_v55  ;;  %v5419_v28 = vld [vmem:[#allocation2 + $0x628] sm:$0xff] }
0x100c   :  { %v5511_v1 = vld [vmem:[#allocation2 + $0x908] sm:$0xff]  ;;  %v9870_v59 = vcombine.high %v5415_v12, %v5419_v28  ;;  %v9869_v18 = vcombine.low %v5415_v12, %v5419_v28 }
0x100d   :  { %8795 = vmatpush2.bf16.msra.mxu0 %v9925_v29  ;;  %v5515_v55 = vld [vmem:[#allocation2 + $0x928] sm:$0xff] }
0x100e   :  { %8762 = vmatpush2.bf16.msra.mxu1 %v9765_v42  ;;  %8796 = vmatprep.subr.bf16.mxu0 %v9918_v10  ;;  %v9966_v7 = vcombine.high %v5511_v1, %v5515_v55  ;;  %v5663_v29 = vld [vmem:[#allocation2 + $0xdc8] sm:$0xff]  ;;  %v9965_v51 = vcombine.low %v5511_v1, %v5515_v55 }
0x100f   :  { %8763 = vmatprep.subr.bf16.mxu1 %v9758_v4  ;;  %v5667_v42 = vld [vmem:[#allocation2 + $0xde8] sm:$0xff] }
0x1010   :  { %v5503_v10 = vld [vmem:[#allocation2 + $0x8c8] sm:$0xff]  ;;  %v10118_v9 = vcombine.high %v5663_v29, %v5667_v42  ;;  %v10117_v49 = vcombine.low %v5663_v29, %v5667_v42 }
0x1011   :  { %8797 = vmatpush2.bf16.msra.mxu0 %v9917_v45  ;;  %v5507_v4 = vld [vmem:[#allocation2 + $0x8e8] sm:$0xff] }
0x1012   :  { %8764 = vmatpush2.bf16.msra.mxu1 %v9757_v16  ;;  %8798 = vmatprep.subr.bf16.mxu0 %v9910_v46  ;;  %v9958_v25 = vcombine.high %v5503_v10, %v5507_v4  ;;  %v5655_v45 = vld [vmem:[#allocation2 + $0xd88] sm:$0xff]  ;;  %v9957_v36 = vcombine.low %v5503_v10, %v5507_v4 }
0x1013   :  { %8765 = vmatprep.subr.bf16.mxu1 %v9750_v13  ;;  %v5659_v16 = vld [vmem:[#allocation2 + $0xda8] sm:$0xff] }
0x1014   :  { %v5495_v46 = vld [vmem:[#allocation2 + $0x888] sm:$0xff]  ;;  %v10110_v5 = vcombine.high %v5655_v45, %v5659_v16  ;;  %v10109_v61 = vcombine.low %v5655_v45, %v5659_v16 }
0x1015   :  { %8799 = vmatpush2.bf16.msra.mxu0 %v9909_v6  ;;  %v5499_v13 = vld [vmem:[#allocation2 + $0x8a8] sm:$0xff] }
0x1016   :  { %8766 = vmatpush2.bf16.msra.mxu1 %v9749_v47  ;;  %8800 = vmatprep.subr.bf16.mxu0 %v9902_v22  ;;  %v9950_v31 = vcombine.high %v5495_v46, %v5499_v13  ;;  %v5647_v6 = vld [vmem:[#allocation2 + $0xd48] sm:$0xff]  ;;  %v9949_v50 = vcombine.low %v5495_v46, %v5499_v13 }
0x1017   :  { %8767 = vmatprep.subr.bf16.mxu1 %v9742_v63  ;;  %v5651_v47 = vld [vmem:[#allocation2 + $0xd68] sm:$0xff] }
0x1018   :  { %v5487_v22 = vld [vmem:[#allocation2 + $0x848] sm:$0xff]  ;;  %v10102_v33 = vcombine.high %v5647_v6, %v5651_v47  ;;  %v10101_v58 = vcombine.low %v5647_v6, %v5651_v47 }
0x1019   :  { %8801 = vmatpush2.bf16.msra.mxu0 %v9901_v39  ;;  %v5491_v63 = vld [vmem:[#allocation2 + $0x868] sm:$0xff] }
0x101a   :  { %8768 = vmatpush2.bf16.msra.mxu1 %v9741_v53  ;;  %8802 = vmatprep.subr.bf16.mxu0 %v9894_v20  ;;  %v9942_v23 = vcombine.high %v5487_v22, %v5491_v63  ;;  %v5639_v39 = vld [vmem:[#allocation2 + $0xd08] sm:$0xff]  ;;  %v9941_v17 = vcombine.low %v5487_v22, %v5491_v63 }
0x101b   :  { %8819 = vmatprep.subr.bf16.mxu1 %v9990_v38  ;;  %v5643_v53 = vld [vmem:[#allocation2 + $0xd28] sm:$0xff] }
0x101c   :  { %v5479_v20 = vld [vmem:[#allocation2 + $0x808] sm:$0xff]  ;;  %v10094_v48 = vcombine.high %v5639_v39, %v5643_v53  ;;  %v10093_v15 = vcombine.low %v5639_v39, %v5643_v53 }
0x101d   :  { %8770 = vmatmul.mubr.bf16.vlgmr.msra.gmra.mxu1 %v13686_v8  ;;  %8803 = vmatpush2.bf16.msra.mxu0 %v9893_v37  ;;  %v5483_v38 = vld [vmem:[#allocation2 + $0x828] sm:$0xff] }
0x101e   :  { %8820 = vmatpush1.bf16.msra.mxu1 %v9989_v54  ;;  %8804 = vmatprep.subr.bf16.mxu0 %v9886_v35  ;;  %v9934_v30 = vcombine.high %v5479_v20, %v5483_v38  ;;  %v5631_v37 = vld [vmem:[#allocation2 + $0xcc8] sm:$0xff]  ;;  %v9933_v44 = vcombine.low %v5479_v20, %v5483_v38 }
0x101f   :  { %8821 = vmatprep.subr.bf16.mxu1 %v9982_v24  ;;  %8851 = vmatprep.mubr.bf16.mxu1 %v13694_v3  ;;  %v5635_v54 = vld [vmem:[#allocation2 + $0xce8] sm:$0xff] }
0x1020   :  { %v5599_v35 = vld [vmem:[#allocation2 + $0xbc8] sm:$0xff]  ;;  %v10086_v34 = vcombine.high %v5631_v37, %v5635_v54  ;;  %v10085_v12 = vcombine.low %v5631_v37, %v5635_v54 }
0x1021   :  { %8805 = vmatpush2.bf16.msra.mxu0 %v9885_v41  ;;  %v5603_v24 = vld [vmem:[#allocation2 + $0xbe8] sm:$0xff] }
0x1022   :  { %8822 = vmatpush1.bf16.msra.mxu1 %v9981_v40  ;;  %8806 = vmatprep.subr.bf16.mxu0 %v9878_v14  ;;  %v10054_v27 = vcombine.high %v5599_v35, %v5603_v24  ;;  %v5623_v41 = vld [vmem:[#allocation2 + $0xc88] sm:$0xff]  ;;  %v10053_v28 = vcombine.low %v5599_v35, %v5603_v24 }
0x1023   :  { %8823 = vmatprep.subr.bf16.mxu1 %v9974_v52  ;;  %v5627_v40 = vld [vmem:[#allocation2 + $0xca8] sm:$0xff] }
0x1024   :  { %v5591_v14 = vld [vmem:[#allocation2 + $0xb88] sm:$0xff]  ;;  %v10078_v1 = vcombine.high %v5623_v41, %v5627_v40  ;;  %v10077_v29 = vcombine.low %v5623_v41, %v5627_v40 }
0x1025   :  { %8807 = vmatpush2.bf16.msra.mxu0 %v9877_v56  ;;  %v5595_v52 = vld [vmem:[#allocation2 + $0xba8] sm:$0xff] }
0x1026   :  { %8824 = vmatpush1.bf16.msra.mxu1 %v9973_v57  ;;  %8808 = vmatprep.subr.bf16.mxu0 %v9870_v59  ;;  %v10046_v55 = vcombine.high %v5591_v14, %v5595_v52  ;;  %v5615_v56 = vld [vmem:[#allocation2 + $0xc48] sm:$0xff]  ;;  %v10045_v42 = vcombine.low %v5591_v14, %v5595_v52 }
0x1027   :  { %8825 = vmatprep.subr.bf16.mxu1 %v9966_v7  ;;  %v5619_v57 = vld [vmem:[#allocation2 + $0xc68] sm:$0xff] }
0x1028   :  { %v5583_v59 = vld [vmem:[#allocation2 + $0xb48] sm:$0xff]  ;;  %v10070_v10 = vcombine.high %v5615_v56, %v5619_v57  ;;  %v10069_v45 = vcombine.low %v5615_v56, %v5619_v57  ;;  %v5770_v57 = vsub.s32 0, %v14077_v26 }
0x1029   :  { %8809 = vmatpush2.bf16.msra.mxu0 %v9869_v18  ;;  %v5587_v7 = vld [vmem:[#allocation2 + $0xb68] sm:$0xff] }
0x102a   :  { %8826 = vmatpush1.bf16.msra.mxu1 %v9965_v51  ;;  %8860 = vmatprep.subr.bf16.mxu0 %v10118_v9  ;;  %v10038_v4 = vcombine.high %v5583_v59, %v5587_v7  ;;  %v5607_v18 = vld [vmem:[#allocation2 + $0xc08] sm:$0xff]  ;;  %v10037_v16 = vcombine.low %v5583_v59, %v5587_v7 }
0x102b   :  { %8827 = vmatprep.subr.bf16.mxu1 %v9958_v25  ;;  %v5611_v51 = vld [vmem:[#allocation2 + $0xc28] sm:$0xff] }
0x102c   :  { %8811 = vmatmul.mubr.bf16.vlgmr.msra.gmra.mxu0 %v13692_v0  ;;  %v5575_v9 = vld [vmem:[#allocation2 + $0xb08] sm:$0xff]  ;;  %v10062_v46 = vcombine.high %v5607_v18, %v5611_v51  ;;  %v10061_v6 = vcombine.low %v5607_v18, %v5611_v51 }
0x102d   :  { %8861 = vmatpush1.bf16.msra.mxu0 %v10117_v49  ;;  %8892 = vmatprep.mubr.bf16.mxu0 %v13697_v2  ;;  %v5579_v25 = vld [vmem:[#allocation2 + $0xb28] sm:$0xff] }
0x102e   :  { %8828 = vmatpush1.bf16.msra.mxu1 %v9957_v36  ;;  %8862 = vmatprep.subr.bf16.mxu0 %v10110_v5  ;;  %v10030_v13 = vcombine.high %v5575_v9, %v5579_v25  ;;  %v5727_v49 = vld [vmem:[#allocation2 + $0xfc8] sm:$0xff]  ;;  %v10029_v47 = vcombine.low %v5575_v9, %v5579_v25 }
0x102f   :  { %8829 = vmatprep.subr.bf16.mxu1 %v9950_v31  ;;  %v5731_v36 = vld [vmem:[#allocation2 + $0xfe8] sm:$0xff] }
0x1030   :  { %v5567_v5 = vld [vmem:[#allocation2 + $0xac8] sm:$0xff]  ;;  %v10182_v22 = vcombine.high %v5727_v49, %v5731_v36  ;;  %v10181_v39 = vcombine.low %v5727_v49, %v5731_v36 }
0x1031   :  { %8863 = vmatpush1.bf16.msra.mxu0 %v10109_v61  ;;  %v5571_v31 = vld [vmem:[#allocation2 + $0xae8] sm:$0xff] }
0x1032   :  { %8830 = vmatpush1.bf16.msra.mxu1 %v9949_v50  ;;  %8864 = vmatprep.subr.bf16.mxu0 %v10102_v33  ;;  %v10022_v63 = vcombine.high %v5567_v5, %v5571_v31  ;;  %v5719_v61 = vld [vmem:[#allocation2 + $0xf88] sm:$0xff]  ;;  %v10021_v53 = vcombine.low %v5567_v5, %v5571_v31 }
0x1033   :  { %8831 = vmatprep.subr.bf16.mxu1 %v9942_v23  ;;  %v5723_v50 = vld [vmem:[#allocation2 + $0xfa8] sm:$0xff] }
0x1034   :  { %v5559_v33 = vld [vmem:[#allocation2 + $0xa88] sm:$0xff]  ;;  %v10174_v20 = vcombine.high %v5719_v61, %v5723_v50  ;;  %v10173_v37 = vcombine.low %v5719_v61, %v5723_v50 }
0x1035   :  { %8865 = vmatpush1.bf16.msra.mxu0 %v10101_v58  ;;  %v5563_v23 = vld [vmem:[#allocation2 + $0xaa8] sm:$0xff] }
0x1036   :  { %8832 = vmatpush1.bf16.msra.mxu1 %v9941_v17  ;;  %8866 = vmatprep.subr.bf16.mxu0 %v10094_v48  ;;  %v10014_v38 = vcombine.high %v5559_v33, %v5563_v23  ;;  %v5711_v58 = vld [vmem:[#allocation2 + $0xf48] sm:$0xff]  ;;  %v10013_v54 = vcombine.low %v5559_v33, %v5563_v23 }
0x1037   :  { %8833 = vmatprep.subr.bf16.mxu1 %v9934_v30  ;;  %v5715_v17 = vld [vmem:[#allocation2 + $0xf68] sm:$0xff] }
0x1038   :  { %v5551_v48 = vld [vmem:[#allocation2 + $0xa48] sm:$0xff]  ;;  %v10166_v35 = vcombine.high %v5711_v58, %v5715_v17  ;;  %v10165_v41 = vcombine.low %v5711_v58, %v5715_v17 }
0x1039   :  { %8867 = vmatpush1.bf16.msra.mxu0 %v10093_v15  ;;  %v5555_v30 = vld [vmem:[#allocation2 + $0xa68] sm:$0xff] }
0x103a   :  { %8834 = vmatpush1.bf16.msra.mxu1 %v9933_v44  ;;  %8868 = vmatprep.subr.bf16.mxu0 %v10086_v34  ;;  %v10006_v24 = vcombine.high %v5551_v48, %v5555_v30  ;;  %v5703_v15 = vld [vmem:[#allocation2 + $0xf08] sm:$0xff]  ;;  %v10005_v40 = vcombine.low %v5551_v48, %v5555_v30 }
0x103b   :  { %8835 = vmatprep.subr.bf16.mxu1 %v10054_v27  ;;  %v5707_v44 = vld [vmem:[#allocation2 + $0xf28] sm:$0xff] }
0x103c   :  { %v5543_v34 = vld [vmem:[#allocation2 + $0xa08] sm:$0xff]  ;;  %v10158_v14 = vcombine.high %v5703_v15, %v5707_v44  ;;  %v10157_v56 = vcombine.low %v5703_v15, %v5707_v44 }
0x103d   :  { %8869 = vmatpush1.bf16.msra.mxu0 %v10085_v12  ;;  %v5547_v27 = vld [vmem:[#allocation2 + $0xa28] sm:$0xff] }
0x103e   :  { %8836 = vmatpush2.bf16.msra.mxu1 %v10053_v28  ;;  %8870 = vmatprep.subr.bf16.mxu0 %v10078_v1  ;;  %v9998_v52 = vcombine.high %v5543_v34, %v5547_v27  ;;  %v5695_v12 = vld [vmem:[#allocation2 + $0xec8] sm:$0xff]  ;;  %v9997_v59 = vcombine.low %v5543_v34, %v5547_v27 }
0x103f   :  { %8837 = vmatprep.subr.bf16.mxu1 %v10046_v55  ;;  %v5699_v28 = vld [vmem:[#allocation2 + $0xee8] sm:$0xff] }
0x1040   :  { %v5759_v1 = vld [vmem:[#allocation2 + $0x10c8] sm:$0xff] }
0x1041   :  { %8871 = vmatpush1.bf16.msra.mxu0 %v10077_v29  ;;  %v5763_v55 = vld [vmem:[#allocation2 + $0x10e8] sm:$0xff]  ;;  %v10150_v29 = vcombine.high %v5695_v12, %v5699_v28 }
0x1042   :  { %8838 = vmatpush2.bf16.msra.mxu1 %v10045_v42  ;;  %8872 = vmatprep.subr.bf16.mxu0 %v10070_v10  ;;  %v5766_v7 = vld [vmem:[#allocation27] sm:$0xff]  ;;  %v10214_v42 = vcombine.high %v5759_v1, %v5763_v55  ;;  %v5774_v10 = vsub.s32 1, %v14077_v26 }
0x1043   :  { %8839 = vmatprep.subr.bf16.mxu1 %v10038_v4  ;;  %v5687_v4 = vld [vmem:[#allocation2 + $0xe88] sm:$0xff]  ;;  %v5771_v25 = vrot.slane %v5766_v7, %v5770_v57  ;;  %v5272_v57 = vld [vmem:[#allocation2 + $0x190] sm:$0xff] }
0x1044   :  { %v5691_v18 = vld [vmem:[#allocation2 + $0xea8] sm:$0xff] }
0x1045   :  { %8873 = vmatpush1.bf16.msra.mxu0 %v10069_v45  ;;  %v5751_v51 = vld [vmem:[#allocation2 + $0x1088] sm:$0xff]  ;;  %v10149_v45 = vcombine.low %v5695_v12, %v5699_v28  ;;  %v10141_v61 = vcombine.low %v5687_v4, %v5691_v18  ;;  %v5412_v12 = vld [vmem:[#allocation2 + $0x5f0] sm:$0xff] }
0x1046   :  { %8840 = vmatpush2.bf16.msra.mxu1 %v10037_v16  ;;  %8874 = vmatprep.subr.bf16.mxu0 %v10062_v46  ;;  %v5755_v9 = vld [vmem:[#allocation2 + $0x10a8] sm:$0xff]  ;;  %v10213_v16 = vcombine.low %v5759_v1, %v5763_v55  ;;  %v10142_v46 = vcombine.high %v5687_v4, %v5691_v18 }
0x1047   :  { %8841 = vmatprep.subr.bf16.mxu1 %v10030_v13  ;;  %v5775_v13 = vrot.slane %v5766_v7, %v5774_v10  ;;  %v10206_v49 = vcombine.high %v5751_v51, %v5755_v9  ;;  %v5679_v36 = vld [vmem:[#allocation2 + $0xe48] sm:$0xff]  ;;  %v10205_v33 = vcombine.low %v5751_v51, %v5755_v9  ;;  %v5400_v7 = vld [vmem:[#allocation2 + $0x590] sm:$0xff] }
0x1048   :  { %v5683_v5 = vld [vmem:[#allocation2 + $0xe68] sm:$0xff]  ;;  %v5264_v51 = vld [vmem:[#allocation2 + $0x150] sm:$0xff] }
0x1049   :  { %8875 = vmatpush1.bf16.msra.mxu0 %v10061_v6  ;;  %v5743_v6 = vld [vmem:[#allocation2 + $0x1048] sm:$0xff]  ;;  %v10134_v23 = vcombine.high %v5679_v36, %v5683_v5  ;;  %v5268_v9 = vld [vmem:[#allocation2 + $0x170] sm:$0xff] }
0x104a   :  { %8842 = vmatpush2.bf16.msra.mxu1 %v10029_v47  ;;  %8876 = vmatprep.subr.bf16.mxu0 %v10182_v22  ;;  %v5747_v47 = vld [vmem:[#allocation2 + $0x1068] sm:$0xff] }
0x104b   :  { %8843 = vmatprep.subr.bf16.mxu1 %v10022_v63  ;;  %v5671_v58 = vld [vmem:[#allocation2 + $0xe08] sm:$0xff]  ;;  %v10197_v44 = vcombine.low %v5743_v6, %v5747_v47 }
0x104c   :  { %v5675_v17 = vld [vmem:[#allocation2 + $0xe28] sm:$0xff] }
0x104d   :  { %8877 = vmatpush2.bf16.msra.mxu0 %v10181_v39  ;;  %v5735_v30 = vld [vmem:[#allocation2 + $0x1008] sm:$0xff]  ;;  %v10126_v34 = vcombine.high %v5671_v58, %v5675_v17  ;;  %v10125_v28 = vcombine.low %v5671_v58, %v5675_v17 }
0x104e   :  { %8844 = vmatpush2.bf16.msra.mxu1 %v10021_v53  ;;  %8878 = vmatprep.subr.bf16.mxu0 %v10174_v20 }
0x104f   :  { %8845 = vmatprep.subr.bf16.mxu1 %v10014_v38  ;;  %v10198_v38 = vcombine.high %v5743_v6, %v5747_v47  ;;  %v5388_v6 = vld [vmem:[#allocation2 + $0x530] sm:$0xff]  ;;  %v9719_v47 = vcombine.low %v5264_v51, %v5268_v9 }
0x1051   :  { %8879 = vmatpush2.bf16.msra.mxu0 %v10173_v37  ;;  %v5739_v37 = vld [vmem:[#allocation2 + $0x1028] sm:$0xff] }
0x1052   :  { %8846 = vmatpush2.bf16.msra.mxu1 %v10013_v54  ;;  %8880 = vmatprep.subr.bf16.mxu0 %v10166_v35  ;;  %v10189_v1 = vcombine.low %v5735_v30, %v5739_v37 }
0x1053   :  { %8847 = vmatprep.subr.bf16.mxu1 %v10006_v24  ;;  %v10133_v24 = vcombine.low %v5679_v36, %v5683_v5  ;;  %v5256_v36 = vld [vmem:[#allocation2 + $0x110] sm:$0xff] }
0x1054   :  { %v5260_v5 = vld [vmem:[#allocation2 + $0x130] sm:$0xff] }
0x1055   :  { %8881 = vmatpush2.bf16.msra.mxu0 %v10165_v41  ;;  %v10190_v41 = vcombine.high %v5735_v30, %v5739_v37  ;;  %v5244_v30 = vld [vmem:[#allocation2 + $0xb0] sm:$0xff] }
0x1056   :  { %8848 = vmatpush2.bf16.msra.mxu1 %v10005_v40  ;;  %8882 = vmatprep.subr.bf16.mxu0 %v10158_v14  ;;  %v5280_v40 = vld [vmem:[#allocation2 + $0x1d0] sm:$0xff] }
0x1057   :  { %8849 = vmatprep.subr.bf16.mxu1 %v9998_v52  ;;  %v5284_v14 = vld [vmem:[#allocation2 + $0x1f0] sm:$0xff] }
0x1058   :  { %v5408_v52 = vld [vmem:[#allocation2 + $0x5d0] sm:$0xff]  ;;  %v9736_v55 = vcombine.high %v5280_v40, %v5284_v14 }
0x1059   :  { %8883 = vmatpush2.bf16.msra.mxu0 %v10157_v56  ;;  %v9864_v56 = vcombine.high %v5408_v52, %v5412_v12  ;;  %v9863_v10 = vcombine.low %v5408_v52, %v5412_v12  ;;  %v5368_v37 = vld [vmem:[#allocation2 + $0x490] sm:$0xff] }
0x105a   :  { %8850 = vmatpush2.bf16.msra.mxu1 %v9997_v59  ;;  %8884 = vmatprep.subr.bf16.mxu0 %v10150_v29  ;;  %v5276_v59 = vld [vmem:[#allocation2 + $0x1b0] sm:$0xff] }
0x105b   :  { %8909 = vmatprep.subr.bf16.mxu1 %v10214_v42  ;;  %v8566_v31 = vpop.f32.mrf.mxu0  ;;  %v5404_v29 = vld [vmem:[#allocation2 + $0x5b0] sm:$0xff]  ;;  %v9735_v42 = vcombine.low %v5280_v40, %v5284_v14  ;;  %v9728_v4 = vcombine.high %v5272_v57, %v5276_v59 }
0x105c   :  { %v8567_v22 = vadd.f32 %v8566_v31, %v5771_v25  ;;  %v9856_v18 = vcombine.high %v5400_v7, %v5404_v29  ;;  %v5392_v25 = vld [vmem:[#allocation2 + $0x550] sm:$0xff] }
0x105d   :  { %v8607_v63 = vpop.f32.mrf.mxu1  ;;  %8852 = vmatmul.mubr.bf16.vlgmr.msra.gmra.mxu1 %v13704_v32  ;;  %8885 = vmatpush2.bf16.msra.mxu0 %v10149_v45  ;;  %v8568_v50 = vpop.f32.mrf.mxu0  ;;  %v5396_v45 = vld [vmem:[#allocation2 + $0x570] sm:$0xff] }
0x105e   :  { %8910 = vmatpush1.bf16.msra.mxu1 %v10213_v16  ;;  %8886 = vmatprep.subr.bf16.mxu0 %v10142_v46  ;;  %v13726_v39 = vadd.f32 %v8607_v63, %v8567_v22  ;;  %v8569_v53 = vadd.f32 %v8568_v50, %v5775_v13  ;;  %v9727_v16 = vcombine.low %v5272_v57, %v5276_v59  ;;  %v5384_v31 = vld [vmem:[#allocation2 + $0x510] sm:$0xff] }
0x105f   :  { %v8609_v20 = vpop.f32.mrf.mxu1  ;;  %8911 = vmatprep.subr.bf16.mxu1 %v10206_v49  ;;  %8933 = vmatprep.mubr.bf16.mxu1 %v11637_v62  ;;  %v8570_v48 = vpop.f32.mrf.mxu0  ;;  %v9855_v46 = vcombine.low %v5400_v7, %v5404_v29  ;;  %v9720_v13 = vcombine.high %v5264_v51, %v5268_v9  ;;  %v9848_v49 = vcombine.high %v5392_v25, %v5396_v45  ;;  %v5248_v50 = vld [vmem:[#allocation2 + $0xd0] sm:$0xff] }
0x1060   :  { %v13729_v54 = vadd.f32 %v8609_v20, %v8569_v53  ;;  %v9847_v22 = vcombine.low %v5392_v25, %v5396_v45  ;;  %v9712_v63 = vcombine.high %v5256_v36, %v5260_v5  ;;  %v5380_v53 = vld [vmem:[#allocation2 + $0x4f0] sm:$0xff]  ;;  %v9711_v20 = vcombine.low %v5256_v36, %v5260_v5 }
0x1061   :  { %v8611_v35 = vpop.f32.mrf.mxu1  ;;  %8887 = vmatpush2.bf16.msra.mxu0 %v10141_v61  ;;  %v8571_v15 = vpop.f32.mrf.mxu0  ;;  %v9840_v61 = vcombine.high %v5384_v31, %v5388_v6  ;;  %v5240_v48 = vld [vmem:[#allocation2 + $0x90] sm:$0xff] }
0x1062   :  { %8912 = vmatpush1.bf16.msra.mxu1 %v10205_v33  ;;  %8888 = vmatprep.subr.bf16.mxu0 %v10134_v23  ;;  %v5252_v33 = vld [vmem:[#allocation2 + $0xf0] sm:$0xff]  ;;  %v9695_v52 = vcombine.low %v5240_v48, %v5244_v30 }
0x1063   :  { %v8612_v27 = vpop.f32.mrf.mxu1  ;;  %8913 = vmatprep.subr.bf16.mxu1 %v10198_v38  ;;  %v5376_v23 = vld [vmem:[#allocation2 + $0x4d0] sm:$0xff]  ;;  %v9839_v38 = vcombine.low %v5384_v31, %v5388_v6  ;;  %v9704_v58 = vcombine.high %v5248_v50, %v5252_v33 }
0x1064   :  { %v9832_v17 = vcombine.high %v5376_v23, %v5380_v53  ;;  %v5372_v35 = vld [vmem:[#allocation2 + $0x4b0] sm:$0xff]  ;;  %v9831_v15 = vcombine.low %v5376_v23, %v5380_v53 }
0x1065   :  { %8889 = vmatpush2.bf16.msra.mxu0 %v10133_v24  ;;  %v9703_v24 = vcombine.low %v5248_v50, %v5252_v33  ;;  %v5232_v27 = vld [vmem:[#allocation2 + $0x50] sm:$0xff]  ;;  %v9823_v12 = vcombine.low %v5368_v37, %v5372_v35 }
0x1066   :  { %8914 = vmatpush1.bf16.msra.mxu1 %v10197_v44  ;;  %8890 = vmatprep.subr.bf16.mxu0 %v10126_v34  ;;  %v9696_v44 = vcombine.high %v5240_v48, %v5244_v30  ;;  %v9824_v34 = vcombine.high %v5368_v37, %v5372_v35  ;;  %v5360_v40 = vld [vmem:[#allocation2 + $0x450] sm:$0xff] }
0x1067   :  { %8915 = vmatprep.subr.bf16.mxu1 %v10190_v41  ;;  %v5236_v41 = vld [vmem:[#allocation2 + $0x70] sm:$0xff] }
0x1068   :  { %v5364_v14 = vld [vmem:[#allocation2 + $0x470] sm:$0xff]  ;;  %v9687_v7 = vcombine.low %v5232_v27, %v5236_v41 }
0x1069   :  { %8891 = vmatpush2.bf16.msra.mxu0 %v10125_v28  ;;  %v9688_v28 = vcombine.high %v5232_v27, %v5236_v41  ;;  %v5352_v57 = vld [vmem:[#allocation2 + $0x410] sm:$0xff]  ;;  %v9815_v29 = vcombine.low %v5360_v40, %v5364_v14 }
0x106a   :  { %8916 = vmatpush1.bf16.msra.mxu1 %v10189_v1  ;;  %8942 = vmatprep.subr.bf16.mxu0 %v9736_v55  ;;  %v9816_v1 = vcombine.high %v5360_v40, %v5364_v14  ;;  %v5224_v55 = vld [vmem:[#allocation2 + $0x10] sm:$0xff] }
0x106b   :  { %8983 = vmatprep.subr.bf16.mxu1 %v9864_v56  ;;  %v5228_v56 = vld [vmem:[#allocation2 + $0x30] sm:$0xff] }
0x106c   :  { %8893 = vmatmul.mubr.bf16.vlgmr.msra.gmra.mxu0 %v13708_v19  ;;  %v5356_v59 = vld [vmem:[#allocation2 + $0x430] sm:$0xff]  ;;  %v9679_v25 = vcombine.low %v5224_v55, %v5228_v56 }
0x106d   :  { %10220 = vmatmul.mubr.msk.bf16.vlgmr.msra.gmra.mxu1 %vm8528_vm8, %v13714_v11  ;;  %8943 = vmatpush1.bf16.msra.mxu0 %v9735_v42  ;;  %v9680_v42 = vcombine.high %v5224_v55, %v5228_v56  ;;  %v5472_v51 = vld [vmem:[#allocation2 + $0x7d0] sm:$0xff]  ;;  %v9807_v45 = vcombine.low %v5352_v57, %v5356_v59 }
0x106e   :  { %8984 = vmatpush1.bf16.msra.mxu1 %v9863_v10  ;;  %8944 = vmatprep.subr.bf16.mxu0 %v9728_v4  ;;  %v9808_v10 = vcombine.high %v5352_v57, %v5356_v59  ;;  %v5344_v4 = vld [vmem:[#allocation2 + $0x3d0] sm:$0xff] }
0x106f   :  { %8985 = vmatprep.subr.bf16.mxu1 %v9856_v18  ;;  %8974 = vmatprep.mubr.bf16.mxu0 %v13668_v60  ;;  %v5348_v18 = vld [vmem:[#allocation2 + $0x3f0] sm:$0xff] }
0x1070   :  { %9015 = vmatprep.mubr.bf16.mxu1 %v13673_v21  ;;  %v5476_v9 = vld [vmem:[#allocation2 + $0x7f0] sm:$0xff]  ;;  %v9799_v31 = vcombine.low %v5344_v4, %v5348_v18 }
0x1071   :  { %8945 = vmatpush1.bf16.msra.mxu0 %v9727_v16  ;;  %v9800_v16 = vcombine.high %v5344_v4, %v5348_v18  ;;  %v5464_v36 = vld [vmem:[#allocation2 + $0x790] sm:$0xff]  ;;  %v9927_v6 = vcombine.low %v5472_v51, %v5476_v9 }
0x1072   :  { %8986 = vmatpush1.bf16.msra.mxu1 %v9855_v46  ;;  %8946 = vmatprep.subr.bf16.mxu0 %v9720_v13  ;;  %v9928_v46 = vcombine.high %v5472_v51, %v5476_v9  ;;  %v5336_v13 = vld [vmem:[#allocation2 + $0x390] sm:$0xff] }
0x1073   :  { %8987 = vmatprep.subr.bf16.mxu1 %v9848_v49  ;;  %v5340_v49 = vld [vmem:[#allocation2 + $0x3b0] sm:$0xff] }
0x1074   :  { %v5468_v5 = vld [vmem:[#allocation2 + $0x7b0] sm:$0xff]  ;;  %v9791_v23 = vcombine.low %v5336_v13, %v5340_v49 }
0x1075   :  { %8947 = vmatpush1.bf16.msra.mxu0 %v9719_v47  ;;  %v9792_v47 = vcombine.high %v5336_v13, %v5340_v49  ;;  %v5456_v50 = vld [vmem:[#allocation2 + $0x750] sm:$0xff]  ;;  %v9919_v53 = vcombine.low %v5464_v36, %v5468_v5 }
0x1076   :  { %8988 = vmatpush1.bf16.msra.mxu1 %v9847_v22  ;;  %8948 = vmatprep.subr.bf16.mxu0 %v9712_v63  ;;  %v9920_v22 = vcombine.high %v5464_v36, %v5468_v5  ;;  %v5328_v63 = vld [vmem:[#allocation2 + $0x350] sm:$0xff] }
0x1077   :  { %8989 = vmatprep.subr.bf16.mxu1 %v9840_v61  ;;  %v5332_v61 = vld [vmem:[#allocation2 + $0x370] sm:$0xff] }
0x1078   :  { %v5460_v33 = vld [vmem:[#allocation2 + $0x770] sm:$0xff]  ;;  %v9783_v37 = vcombine.low %v5328_v63, %v5332_v61 }
0x1079   :  { %8949 = vmatpush1.bf16.msra.mxu0 %v9711_v20  ;;  %v9784_v20 = vcombine.high %v5328_v63, %v5332_v61  ;;  %v5448_v48 = vld [vmem:[#allocation2 + $0x710] sm:$0xff]  ;;  %v9911_v35 = vcombine.low %v5456_v50, %v5460_v33 }
0x107a   :  { %8990 = vmatpush1.bf16.msra.mxu1 %v9839_v38  ;;  %8950 = vmatprep.subr.bf16.mxu0 %v9704_v58  ;;  %v9912_v38 = vcombine.high %v5456_v50, %v5460_v33  ;;  %v5320_v58 = vld [vmem:[#allocation2 + $0x310] sm:$0xff] }
0x107b   :  { %8991 = vmatprep.subr.bf16.mxu1 %v9832_v17  ;;  %v5324_v17 = vld [vmem:[#allocation2 + $0x330] sm:$0xff] }
0x107c   :  { %v5452_v30 = vld [vmem:[#allocation2 + $0x730] sm:$0xff]  ;;  %v9775_v40 = vcombine.low %v5320_v58, %v5324_v17 }
0x107d   :  { %8951 = vmatpush1.bf16.msra.mxu0 %v9703_v24  ;;  %v9776_v24 = vcombine.high %v5320_v58, %v5324_v17  ;;  %v5440_v27 = vld [vmem:[#allocation2 + $0x6d0] sm:$0xff]  ;;  %v9903_v14 = vcombine.low %v5448_v48, %v5452_v30 }
0x107e   :  { %8992 = vmatpush1.bf16.msra.mxu1 %v9831_v15  ;;  %8952 = vmatprep.subr.bf16.mxu0 %v9696_v44  ;;  %v9904_v15 = vcombine.high %v5448_v48, %v5452_v30  ;;  %v5312_v44 = vld [vmem:[#allocation2 + $0x2d0] sm:$0xff] }
0x107f   :  { %8993 = vmatprep.subr.bf16.mxu1 %v9824_v34  ;;  %v5316_v34 = vld [vmem:[#allocation2 + $0x2f0] sm:$0xff] }
0x1080   :  { %v5444_v41 = vld [vmem:[#allocation2 + $0x6f0] sm:$0xff]  ;;  %v9767_v57 = vcombine.low %v5312_v44, %v5316_v34 }
0x1081   :  { %8953 = vmatpush1.bf16.msra.mxu0 %v9695_v52  ;;  %v9768_v52 = vcombine.high %v5312_v44, %v5316_v34  ;;  %v5432_v55 = vld [vmem:[#allocation2 + $0x690] sm:$0xff]  ;;  %v9895_v59 = vcombine.low %v5440_v27, %v5444_v41 }
0x1082   :  { %8994 = vmatpush1.bf16.msra.mxu1 %v9823_v12  ;;  %8954 = vmatprep.subr.bf16.mxu0 %v9688_v28  ;;  %v9896_v12 = vcombine.high %v5440_v27, %v5444_v41  ;;  %v5304_v28 = vld [vmem:[#allocation2 + $0x290] sm:$0xff] }
0x1083   :  { %8995 = vmatprep.subr.bf16.mxu1 %v9816_v1  ;;  %v5308_v1 = vld [vmem:[#allocation2 + $0x2b0] sm:$0xff] }
0x1084   :  { %v5436_v56 = vld [vmem:[#allocation2 + $0x6b0] sm:$0xff] }
0x1085   :  { %8955 = vmatpush1.bf16.msra.mxu0 %v9687_v7  ;;  %v9760_v7 = vcombine.high %v5304_v28, %v5308_v1  ;;  %v5424_v18 = vld [vmem:[#allocation2 + $0x650] sm:$0xff] }
0x1086   :  { %8996 = vmatpush1.bf16.msra.mxu1 %v9815_v29  ;;  %8956 = vmatprep.subr.bf16.mxu0 %v9680_v42  ;;  %v9888_v29 = vcombine.high %v5432_v55, %v5436_v56  ;;  %v5296_v42 = vld [vmem:[#allocation2 + $0x250] sm:$0xff] }
0x1087   :  { %8997 = vmatprep.subr.bf16.mxu1 %v9808_v10  ;;  %v5300_v10 = vld [vmem:[#allocation2 + $0x270] sm:$0xff] }
0x1088   :  { %v5428_v51 = vld [vmem:[#allocation2 + $0x670] sm:$0xff]  ;;  %v9752_v13 = vcombine.high %v5296_v42, %v5300_v10  ;;  %v9751_v33 = vcombine.low %v5296_v42, %v5300_v10 }
0x1089   :  { %8957 = vmatpush1.bf16.msra.mxu0 %v9679_v25  ;;  %v5416_v63 = vld [vmem:[#allocation2 + $0x610] sm:$0xff] }
0x108a   :  { %8998 = vmatpush1.bf16.msra.mxu1 %v9807_v45  ;;  %8958 = vmatprep.subr.bf16.mxu0 %v9800_v16  ;;  %v9759_v45 = vcombine.low %v5304_v28, %v5308_v1  ;;  %v5420_v61 = vld [vmem:[#allocation2 + $0x630] sm:$0xff] }
0x108b   :  { %8999 = vmatprep.subr.bf16.mxu1 %v9928_v46  ;;  %v9887_v46 = vcombine.low %v5432_v55, %v5436_v56  ;;  %v5536_v58 = vld [vmem:[#allocation2 + $0x9d0] sm:$0xff] }
0x108c   :  { %v5540_v17 = vld [vmem:[#allocation2 + $0x9f0] sm:$0xff] }
0x108d   :  { %8959 = vmatpush2.bf16.msra.mxu0 %v9799_v31  ;;  %v9880_v31 = vcombine.high %v5424_v18, %v5428_v51  ;;  %v5664_v48 = vld [vmem:[#allocation2 + $0xdd0] sm:$0xff] }
0x108e   :  { %9000 = vmatpush2.bf16.msra.mxu1 %v9927_v6  ;;  %8960 = vmatprep.subr.bf16.mxu0 %v9792_v47  ;;  %v5288_v6 = vld [vmem:[#allocation2 + $0x210] sm:$0xff] }
0x108f   :  { %9001 = vmatprep.subr.bf16.mxu1 %v9920_v22  ;;  %v5292_v47 = vld [vmem:[#allocation2 + $0x230] sm:$0xff] }
0x1090   :  { %v5668_v30 = vld [vmem:[#allocation2 + $0xdf0] sm:$0xff] }
0x1091   :  { %8961 = vmatpush2.bf16.msra.mxu0 %v9791_v23  ;;  %v5528_v44 = vld [vmem:[#allocation2 + $0x990] sm:$0xff] }
0x1092   :  { %9002 = vmatpush2.bf16.msra.mxu1 %v9919_v53  ;;  %8962 = vmatprep.subr.bf16.mxu0 %v9784_v20  ;;  %v9879_v53 = vcombine.low %v5424_v18, %v5428_v51  ;;  %v9744_v20 = vcombine.high %v5288_v6, %v5292_v47  ;;  %v5532_v34 = vld [vmem:[#allocation2 + $0x9b0] sm:$0xff] }
0x1093   :  { %9003 = vmatprep.subr.bf16.mxu1 %v9912_v38  ;;  %v5656_v27 = vld [vmem:[#allocation2 + $0xd90] sm:$0xff] }
0x1094   :  { %v5660_v41 = vld [vmem:[#allocation2 + $0xdb0] sm:$0xff] }
0x1095   :  { %8963 = vmatpush2.bf16.msra.mxu0 %v9783_v37  ;;  %v9743_v37 = vcombine.low %v5288_v6, %v5292_v47  ;;  %v5520_v28 = vld [vmem:[#allocation2 + $0x950] sm:$0xff]  ;;  %v10111_v42 = vcombine.low %v5656_v27, %v5660_v41 }
0x1096   :  { %9004 = vmatpush2.bf16.msra.mxu1 %v9911_v35  ;;  %8964 = vmatprep.subr.bf16.mxu0 %v9776_v24  ;;  %v9871_v35 = vcombine.low %v5416_v63, %v5420_v61  ;;  %v9992_v24 = vcombine.high %v5536_v58, %v5540_v17  ;;  %v5524_v1 = vld [vmem:[#allocation2 + $0x970] sm:$0xff] }
0x1097   :  { %9005 = vmatprep.subr.bf16.mxu1 %v9904_v15  ;;  %v10120_v15 = vcombine.high %v5664_v48, %v5668_v30  ;;  %v5648_v56 = vld [vmem:[#allocation2 + $0xd50] sm:$0xff]  ;;  %v9976_v10 = vcombine.high %v5520_v28, %v5524_v1 }
0x1098   :  { %v5512_v51 = vld [vmem:[#allocation2 + $0x910] sm:$0xff] }
0x1099   :  { %8965 = vmatpush2.bf16.msra.mxu0 %v9775_v40  ;;  %v9991_v40 = vcombine.low %v5536_v58, %v5540_v17  ;;  %v5504_v6 = vld [vmem:[#allocation2 + $0x8d0] sm:$0xff] }
0x109a   :  { %9006 = vmatpush2.bf16.msra.mxu1 %v9903_v14  ;;  %8966 = vmatprep.subr.bf16.mxu0 %v9768_v52  ;;  %v10119_v14 = vcombine.low %v5664_v48, %v5668_v30  ;;  %v9984_v52 = vcombine.high %v5528_v44, %v5532_v34  ;;  %v5508_v47 = vld [vmem:[#allocation2 + $0x8f0] sm:$0xff] }
0x109b   :  { %9007 = vmatprep.subr.bf16.mxu1 %v9896_v12  ;;  %v10112_v12 = vcombine.high %v5656_v27, %v5660_v41  ;;  %v5488_v30 = vld [vmem:[#allocation2 + $0x850] sm:$0xff] }
0x109c   :  { %v8648_v4 = vpop.f32.mrf.mxu0  ;;  %v5480_v41 = vld [vmem:[#allocation2 + $0x810] sm:$0xff] }
0x109d   :  { %v8649_v9 = vadd.f32 %v8648_v4, %v13726_v39  ;;  %v8689_v25 = vpop.f32.mrf.mxu1  ;;  %8967 = vmatpush2.bf16.msra.mxu0 %v9767_v57  ;;  %v5652_v57 = vld [vmem:[#allocation2 + $0xd70] sm:$0xff] }
0x109e   :  { %9008 = vmatpush2.bf16.msra.mxu1 %v9895_v59  ;;  %v8650_v16 = vpop.f32.mrf.mxu0  ;;  %8968 = vmatprep.subr.bf16.mxu0 %v9760_v7  ;;  %v9983_v7 = vcombine.low %v5528_v44, %v5532_v34  ;;  %v10104_v18 = vcombine.high %v5648_v56, %v5652_v57 }
0x109f   :  { %v8690_v49 = vadd.f32 %v8689_v25, %v8649_v9  ;;  %v8651_v36 = vadd.f32 %v8650_v16, %v13729_v54  ;;  %v8691_v5 = vpop.f32.mrf.mxu1  ;;  %9009 = vmatprep.subr.bf16.mxu1 %v9888_v29  ;;  %v9872_v54 = vcombine.high %v5416_v63, %v5420_v61  ;;  %v5516_v9 = vld [vmem:[#allocation2 + $0x930] sm:$0xff] }
0x10a0   :  { %v8652_v22 = vpop.f32.mrf.mxu0  ;;  %v5644_v16 = vld [vmem:[#allocation2 + $0xd30] sm:$0xff]  ;;  %v9967_v61 = vcombine.low %v5512_v51, %v5516_v9 }
0x10a1   :  { %v8692_v39 = vadd.f32 %v8691_v5, %v8651_v36  ;;  %v8693_v50 = vpop.f32.mrf.mxu1  ;;  %8969 = vmatpush2.bf16.msra.mxu0 %v9759_v45  ;;  %v5640_v45 = vld [vmem:[#allocation2 + $0xd10] sm:$0xff]  ;;  %v10103_v36 = vcombine.low %v5648_v56, %v5652_v57  ;;  %v9968_v5 = vcombine.high %v5512_v51, %v5516_v9 }
0x10a2   :  { %9010 = vmatpush2.bf16.msra.mxu1 %v9887_v46  ;;  %v8653_v23 = vpop.f32.mrf.mxu0  ;;  %8970 = vmatprep.subr.bf16.mxu0 %v9752_v13  ;;  %v9975_v13 = vcombine.low %v5520_v28, %v5524_v1  ;;  %v5632_v22 = vld [vmem:[#allocation2 + $0xcd0] sm:$0xff]  ;;  %v9960_v50 = vcombine.high %v5504_v6, %v5508_v47 }
0x10a3   :  { %v8694_v38 = vpop.f32.mrf.mxu1  ;;  %9011 = vmatprep.subr.bf16.mxu1 %v9880_v31  ;;  %v10096_v31 = vcombine.high %v5640_v45, %v5644_v16  ;;  %v5636_v63 = vld [vmem:[#allocation2 + $0xcf0] sm:$0xff] }
0x10a4   :  { %v5496_v23 = vld [vmem:[#allocation2 + $0x890] sm:$0xff]  ;;  %v10087_v58 = vcombine.low %v5632_v22, %v5636_v63 }
0x10a5   :  { %8971 = vmatpush2.bf16.msra.mxu0 %v9751_v33  ;;  %v10088_v33 = vcombine.high %v5632_v22, %v5636_v63  ;;  %v5628_v38 = vld [vmem:[#allocation2 + $0xcb0] sm:$0xff] }
0x10a6   :  { %9012 = vmatpush2.bf16.msra.mxu1 %v9879_v53  ;;  %8972 = vmatprep.subr.bf16.mxu0 %v9744_v20  ;;  %v5500_v53 = vld [vmem:[#allocation2 + $0x8b0] sm:$0xff] }
0x10a7   :  { %9013 = vmatprep.subr.bf16.mxu1 %v9872_v54  ;;  %v5624_v20 = vld [vmem:[#allocation2 + $0xc90] sm:$0xff]  ;;  %v9959_v54 = vcombine.low %v5504_v6, %v5508_v47  ;;  %v9952_v17 = vcombine.high %v5496_v23, %v5500_v53 }
0x10a8   :  { %v10080_v48 = vcombine.high %v5624_v20, %v5628_v38  ;;  %v10079_v44 = vcombine.low %v5624_v20, %v5628_v38  ;;  %v5600_v56 = vld [vmem:[#allocation2 + $0xbd0] sm:$0xff] }
0x10a9   :  { %8973 = vmatpush2.bf16.msra.mxu0 %v9743_v37  ;;  %v5492_v37 = vld [vmem:[#allocation2 + $0x870] sm:$0xff] }
0x10aa   :  { %9014 = vmatpush2.bf16.msra.mxu1 %v9871_v35  ;;  %9024 = vmatprep.subr.bf16.mxu0 %v9992_v24  ;;  %v5616_v35 = vld [vmem:[#allocation2 + $0xc50] sm:$0xff]  ;;  %v9944_v34 = vcombine.high %v5488_v30, %v5492_v37 }
0x10ab   :  { %9065 = vmatprep.subr.bf16.mxu1 %v10120_v15  ;;  %v5620_v24 = vld [vmem:[#allocation2 + $0xc70] sm:$0xff]  ;;  %v9951_v15 = vcombine.low %v5496_v23, %v5500_v53 }
0x10ac   :  { %v8730_v55 = vpop.f32.mrf.mxu0  ;;  %8975 = vmatmul.mubr.bf16.vlgmr.msra.gmra.mxu0 %v13686_v8  ;;  %v10072_v27 = vcombine.high %v5616_v35, %v5620_v24  ;;  %v10071_v28 = vcombine.low %v5616_v35, %v5620_v24  ;;  %v5604_v57 = vld [vmem:[#allocation2 + $0xbf0] sm:$0xff] }
0x10ad   :  { %v13739_v59 = vadd.f32 %v8730_v55, %v8690_v49  ;;  %9016 = vmatmul.mubr.bf16.vlgmr.msra.gmra.mxu1 %v13692_v0  ;;  %9025 = vmatpush1.bf16.msra.mxu0 %v9991_v40  ;;  %v5484_v40 = vld [vmem:[#allocation2 + $0x830] sm:$0xff] }
0x10ae   :  { %9066 = vmatpush1.bf16.msra.mxu1 %v10119_v14  ;;  %v8732_v29 = vpop.f32.mrf.mxu0  ;;  %9026 = vmatprep.subr.bf16.mxu0 %v9984_v52  ;;  %v5608_v14 = vld [vmem:[#allocation2 + $0xc10] sm:$0xff]  ;;  %v9936_v1 = vcombine.high %v5480_v41, %v5484_v40 }
0x10af   :  { %v13742_v4 = vadd.f32 %v8732_v29, %v8692_v39  ;;  %9067 = vmatprep.subr.bf16.mxu1 %v10112_v12  ;;  %9056 = vmatprep.mubr.bf16.mxu0 %v13694_v3  ;;  %v10095_v39 = vcombine.low %v5640_v45, %v5644_v16  ;;  %v5612_v52 = vld [vmem:[#allocation2 + $0xc30] sm:$0xff]  ;;  %v9943_v12 = vcombine.low %v5488_v30, %v5492_v37 }
0x10b0   :  { %v8734_v25 = vpop.f32.mrf.mxu0  ;;  %9097 = vmatprep.mubr.bf16.mxu1 %v13697_v2  ;;  %v10064_v55 = vcombine.high %v5608_v14, %v5612_v52  ;;  %v5732_v29 = vld [vmem:[#allocation2 + $0xff0] sm:$0xff] }
0x10b1   :  { %v9360_v46 = vcombine.low %v13739_v59, %v13742_v4  ;;  %9027 = vmatpush1.bf16.msra.mxu0 %v9983_v7  ;;  %v5728_v7 = vld [vmem:[#allocation2 + $0xfd0] sm:$0xff] }
0x10b2   :  { %9068 = vmatpush1.bf16.msra.mxu1 %v10111_v42  ;;  %v8735_v49 = vpop.f32.mrf.mxu0  ;;  %9028 = vmatprep.subr.bf16.mxu0 %v9976_v10  ;;  %v9935_v42 = vcombine.low %v5480_v41, %v5484_v40  ;;  %v10063_v10 = vcombine.low %v5608_v14, %v5612_v52  ;;  %v10184_v51 = vcombine.high %v5728_v7, %v5732_v29  ;;  %v5592_v9 = vld [vmem:[#allocation2 + $0xb90] sm:$0xff] }
0x10b3   :  { %9069 = vmatprep.subr.bf16.mxu1 %v10104_v18  ;;  %v10056_v18 = vcombine.high %v5600_v56, %v5604_v57  ;;  %v5596_v25 = vld [vmem:[#allocation2 + $0xbb0] sm:$0xff]  ;;  %v10183_v49 = vcombine.low %v5728_v7, %v5732_v29 }
0x10b4   :  { %v5720_v45 = vld [vmem:[#allocation2 + $0xf90] sm:$0xff]  ;;  %v10047_v63 = vcombine.low %v5592_v9, %v5596_v25 }
0x10b5   :  { %9029 = vmatpush1.bf16.msra.mxu0 %v9975_v13  ;;  %v5724_v16 = vld [vmem:[#allocation2 + $0xfb0] sm:$0xff]  ;;  %v10055_v13 = vcombine.low %v5600_v56, %v5604_v57 }
0x10b6   :  { %9070 = vmatpush1.bf16.msra.mxu1 %v10103_v36  ;;  %9030 = vmatprep.subr.bf16.mxu0 %v9968_v5  ;;  %v10048_v36 = vcombine.high %v5592_v9, %v5596_v25  ;;  %v10176_v5 = vcombine.high %v5720_v45, %v5724_v16  ;;  %v5588_v6 = vld [vmem:[#allocation2 + $0xb70] sm:$0xff] }
0x10b7   :  { %9071 = vmatprep.subr.bf16.mxu1 %v10096_v31  ;;  %v5584_v31 = vld [vmem:[#allocation2 + $0xb50] sm:$0xff] }
0x10b8   :  { %v5712_v47 = vld [vmem:[#allocation2 + $0xf50] sm:$0xff]  ;;  %v10039_v38 = vcombine.low %v5584_v31, %v5588_v6 }
0x10b9   :  { %9031 = vmatpush1.bf16.msra.mxu0 %v9967_v61  ;;  %v5716_v22 = vld [vmem:[#allocation2 + $0xf70] sm:$0xff]  ;;  %v10175_v61 = vcombine.low %v5720_v45, %v5724_v16 }
0x10ba   :  { %9072 = vmatpush1.bf16.msra.mxu1 %v10095_v39  ;;  %9032 = vmatprep.subr.bf16.mxu0 %v9960_v50  ;;  %v10040_v39 = vcombine.high %v5584_v31, %v5588_v6  ;;  %v10168_v50 = vcombine.high %v5712_v47, %v5716_v22  ;;  %v5580_v23 = vld [vmem:[#allocation2 + $0xb30] sm:$0xff] }
0x10bb   :  { %9073 = vmatprep.subr.bf16.mxu1 %v10088_v33  ;;  %v5576_v33 = vld [vmem:[#allocation2 + $0xb10] sm:$0xff] }
0x10bc   :  { %v5704_v53 = vld [vmem:[#allocation2 + $0xf10] sm:$0xff]  ;;  %v10031_v24 = vcombine.low %v5576_v33, %v5580_v23 }
0x10bd   :  { %9033 = vmatpush1.bf16.msra.mxu0 %v9959_v54  ;;  %v5708_v20 = vld [vmem:[#allocation2 + $0xf30] sm:$0xff]  ;;  %v10167_v54 = vcombine.low %v5712_v47, %v5716_v22 }
0x10be   :  { %9074 = vmatpush1.bf16.msra.mxu1 %v10087_v58  ;;  %9034 = vmatprep.subr.bf16.mxu0 %v9952_v17  ;;  %v10032_v58 = vcombine.high %v5576_v33, %v5580_v23  ;;  %v10160_v17 = vcombine.high %v5704_v53, %v5708_v20  ;;  %v5572_v30 = vld [vmem:[#allocation2 + $0xaf0] sm:$0xff] }
0x10bf   :  { %9075 = vmatprep.subr.bf16.mxu1 %v10080_v48  ;;  %v5568_v48 = vld [vmem:[#allocation2 + $0xad0] sm:$0xff] }
0x10c0   :  { %v5696_v37 = vld [vmem:[#allocation2 + $0xed0] sm:$0xff]  ;;  %v10023_v52 = vcombine.low %v5568_v48, %v5572_v30 }
0x10c1   :  { %9035 = vmatpush1.bf16.msra.mxu0 %v9951_v15  ;;  %v5700_v35 = vld [vmem:[#allocation2 + $0xef0] sm:$0xff]  ;;  %v10159_v15 = vcombine.low %v5704_v53, %v5708_v20 }
0x10c2   :  { %9076 = vmatpush1.bf16.msra.mxu1 %v10079_v44  ;;  %9036 = vmatprep.subr.bf16.mxu0 %v9944_v34  ;;  %v10024_v44 = vcombine.high %v5568_v48, %v5572_v30  ;;  %v10152_v34 = vcombine.high %v5696_v37, %v5700_v35  ;;  %v5564_v41 = vld [vmem:[#allocation2 + $0xab0] sm:$0xff] }
0x10c3   :  { %9077 = vmatprep.subr.bf16.mxu1 %v10072_v27  ;;  %v5560_v27 = vld [vmem:[#allocation2 + $0xa90] sm:$0xff] }
0x10c4   :  { %v5688_v40 = vld [vmem:[#allocation2 + $0xe90] sm:$0xff] }
0x10c5   :  { %9037 = vmatpush1.bf16.msra.mxu0 %v9943_v12  ;;  %v5692_v14 = vld [vmem:[#allocation2 + $0xeb0] sm:$0xff]  ;;  %v10151_v12 = vcombine.low %v5696_v37, %v5700_v35 }
0x10c6   :  { %9078 = vmatpush1.bf16.msra.mxu1 %v10071_v28  ;;  %9038 = vmatprep.subr.bf16.mxu0 %v9936_v1  ;;  %v10016_v28 = vcombine.high %v5560_v27, %v5564_v41  ;;  %v10144_v1 = vcombine.high %v5688_v40, %v5692_v14  ;;  %v5556_v56 = vld [vmem:[#allocation2 + $0xa70] sm:$0xff] }
0x10c7   :  { %9079 = vmatprep.subr.bf16.mxu1 %v10064_v55  ;;  %v5552_v55 = vld [vmem:[#allocation2 + $0xa50] sm:$0xff] }
0x10c8   :  { %v5680_v57 = vld [vmem:[#allocation2 + $0xe50] sm:$0xff] }
0x10c9   :  { %9039 = vmatpush1.bf16.msra.mxu0 %v9935_v42  ;;  %v5684_v7 = vld [vmem:[#allocation2 + $0xe70] sm:$0xff]  ;;  %v10015_v42 = vcombine.low %v5560_v27, %v5564_v41 }
0x10ca   :  { %9080 = vmatpush1.bf16.msra.mxu1 %v10063_v10  ;;  %9040 = vmatprep.subr.bf16.mxu0 %v10056_v18  ;;  %v10143_v10 = vcombine.low %v5688_v40, %v5692_v14  ;;  %v10008_v18 = vcombine.high %v5552_v55, %v5556_v56  ;;  %v10136_v9 = vcombine.high %v5680_v57, %v5684_v7  ;;  %v5544_v25 = vld [vmem:[#allocation2 + $0xa10] sm:$0xff] }
0x10cb   :  { %9081 = vmatprep.subr.bf16.mxu1 %v10184_v51  ;;  %v5548_v45 = vld [vmem:[#allocation2 + $0xa30] sm:$0xff] }
0x10cc   :  { %v5672_v16 = vld [vmem:[#allocation2 + $0xe10] sm:$0xff]  ;;  %v10000_v31 = vcombine.high %v5544_v25, %v5548_v45 }
0x10cd   :  { %9041 = vmatpush2.bf16.msra.mxu0 %v10055_v13  ;;  %v5676_v13 = vld [vmem:[#allocation2 + $0xe30] sm:$0xff] }
0x10ce   :  { %9082 = vmatpush2.bf16.msra.mxu1 %v10183_v49  ;;  %9042 = vmatprep.subr.bf16.mxu0 %v10048_v36  ;;  %v10007_v36 = vcombine.low %v5552_v55, %v5556_v56  ;;  %v10128_v47 = vcombine.high %v5672_v16, %v5676_v13  ;;  %v5760_v22 = vld [vmem:[#allocation2 + $0x10d0] sm:$0xff]  ;;  %v10127_v33 = vcombine.low %v5672_v16, %v5676_v13  ;;  %v5257_v55 = vld [vmem:[#allocation2 + $0x118] sm:$0xff] }
0x10cf   :  { %9083 = vmatprep.subr.bf16.mxu1 %v10176_v5  ;;  %v10135_v5 = vcombine.low %v5680_v57, %v5684_v7  ;;  %v5752_v20 = vld [vmem:[#allocation2 + $0x1090] sm:$0xff]  ;;  %v5261_v56 = vld [vmem:[#allocation2 + $0x138] sm:$0xff] }
0x10d0   :  { %v5744_v35 = vld [vmem:[#allocation2 + $0x1050] sm:$0xff]  ;;  %v5253_v16 = vld [vmem:[#allocation2 + $0xf8] sm:$0xff] }
0x10d1   :  { %9043 = vmatpush2.bf16.msra.mxu0 %v10047_v63  ;;  %v5764_v63 = vld [vmem:[#allocation2 + $0x10f0] sm:$0xff] }
0x10d2   :  { %9084 = vmatpush2.bf16.msra.mxu1 %v10175_v61  ;;  %9044 = vmatprep.subr.bf16.mxu0 %v10040_v39  ;;  %v5281_v61 = vld [vmem:[#allocation2 + $0x1d8] sm:$0xff]  ;;  %v10216_v23 = vcombine.high %v5760_v22, %v5764_v63 }
0x10d3   :  { %9085 = vmatprep.subr.bf16.mxu1 %v10168_v50  ;;  %v5285_v39 = vld [vmem:[#allocation2 + $0x1f8] sm:$0xff]  ;;  %v9999_v50 = vcombine.low %v5544_v25, %v5548_v45 }
0x10d4   :  { %v9738_v53 = vcombine.high %v5281_v61, %v5285_v39  ;;  %v9737_v48 = vcombine.low %v5281_v61, %v5285_v39  ;;  %v5413_v25 = vld [vmem:[#allocation2 + $0x5f8] sm:$0xff] }
0x10d5   :  { %9045 = vmatpush2.bf16.msra.mxu0 %v10039_v38  ;;  %v5756_v38 = vld [vmem:[#allocation2 + $0x10b0] sm:$0xff]  ;;  %v5249_v45 = vld [vmem:[#allocation2 + $0xd8] sm:$0xff] }
0x10d6   :  { %9086 = vmatpush2.bf16.msra.mxu1 %v10167_v54  ;;  %9046 = vmatprep.subr.bf16.mxu0 %v10032_v58  ;;  %v5273_v54 = vld [vmem:[#allocation2 + $0x198] sm:$0xff]  ;;  %v10208_v30 = vcombine.high %v5752_v20, %v5756_v38  ;;  %v10207_v27 = vcombine.low %v5752_v20, %v5756_v38 }
0x10d7   :  { %9087 = vmatprep.subr.bf16.mxu1 %v10160_v17  ;;  %v5277_v58 = vld [vmem:[#allocation2 + $0x1b8] sm:$0xff]  ;;  %v10215_v17 = vcombine.low %v5760_v22, %v5764_v63  ;;  %v9705_v63 = vcombine.low %v5249_v45, %v5253_v16 }
0x10d8   :  { %v9730_v37 = vcombine.high %v5273_v54, %v5277_v58  ;;  %v9729_v40 = vcombine.low %v5273_v54, %v5277_v58 }
0x10d9   :  { %9047 = vmatpush2.bf16.msra.mxu0 %v10031_v24  ;;  %v5748_v24 = vld [vmem:[#allocation2 + $0x1070] sm:$0xff] }
0x10da   :  { %9088 = vmatpush2.bf16.msra.mxu1 %v10159_v15  ;;  %9048 = vmatprep.subr.bf16.mxu0 %v10024_v44  ;;  %v5265_v44 = vld [vmem:[#allocation2 + $0x158] sm:$0xff]  ;;  %v10200_v14 = vcombine.high %v5744_v35, %v5748_v24  ;;  %v10199_v57 = vcombine.low %v5744_v35, %v5748_v24 }
0x10db   :  { %9089 = vmatprep.subr.bf16.mxu1 %v10152_v34  ;;  %v5269_v34 = vld [vmem:[#allocation2 + $0x178] sm:$0xff] }
0x10dd   :  { %v13748_v29 = vpop.f32.mrf.mxu1  ;;  %9049 = vmatpush2.bf16.msra.mxu0 %v10023_v52  ;;  %v9722_v52 = vcombine.high %v5265_v44, %v5269_v34 }
0x10de   :  { %9090 = vmatpush2.bf16.msra.mxu1 %v10151_v12  ;;  %9050 = vmatprep.subr.bf16.mxu0 %v10016_v28  ;;  %v5736_v12 = vld [vmem:[#allocation2 + $0x1010] sm:$0xff] }
0x10df   :  { %v13750_v51 = vpop.f32.mrf.mxu1  ;;  %9091 = vmatprep.subr.bf16.mxu1 %v10144_v1  ;;  %v5740_v28 = vld [vmem:[#allocation2 + $0x1030] sm:$0xff] }
0x10e0   :  { %v10191_v13 = vcombine.low %v5736_v12, %v5740_v28 }
0x10e1   :  { %v8775_v49 = vpop.f32.mrf.mxu1  ;;  %9051 = vmatpush2.bf16.msra.mxu0 %v10015_v42  ;;  %v9721_v42 = vcombine.low %v5265_v44, %v5269_v34 }
0x10e2   :  { %9092 = vmatpush2.bf16.msra.mxu1 %v10143_v10  ;;  %9052 = vmatprep.subr.bf16.mxu0 %v10008_v18  ;;  %v10192_v10 = vcombine.high %v5736_v12, %v5740_v28  ;;  %v9714_v18 = vcombine.high %v5257_v55, %v5261_v56  ;;  %v9713_v49 = vcombine.low %v5257_v55, %v5261_v56  ;;  %v5369_v55 = vld [vmem:[#allocation2 + $0x498] sm:$0xff] }
0x10e3   :  { %v8776_v6 = vpop.f32.mrf.mxu1  ;;  %9093 = vmatprep.subr.bf16.mxu1 %v10136_v9  ;;  %v5409_v9 = vld [vmem:[#allocation2 + $0x5d8] sm:$0xff] }
0x10e4   :  { %v5241_v6 = vld [vmem:[#allocation2 + $0x98] sm:$0xff]  ;;  %v9865_v22 = vcombine.low %v5409_v9, %v5413_v25 }
0x10e5   :  { %9053 = vmatpush2.bf16.msra.mxu0 %v10007_v36  ;;  %v9866_v36 = vcombine.high %v5409_v9, %v5413_v25  ;;  %v5373_v56 = vld [vmem:[#allocation2 + $0x4b8] sm:$0xff] }
0x10e6   :  { %9094 = vmatpush2.bf16.msra.mxu1 %v10135_v5  ;;  %9054 = vmatprep.subr.bf16.mxu0 %v10000_v31  ;;  %v5401_v5 = vld [vmem:[#allocation2 + $0x598] sm:$0xff] }
0x10e7   :  { %9095 = vmatprep.subr.bf16.mxu1 %v10128_v47  ;;  %v5405_v31 = vld [vmem:[#allocation2 + $0x5b8] sm:$0xff] }
0x10e8   :  { %v5245_v47 = vld [vmem:[#allocation2 + $0xb8] sm:$0xff]  ;;  %v9858_v61 = vcombine.high %v5401_v5, %v5405_v31  ;;  %v9857_v20 = vcombine.low %v5401_v5, %v5405_v31 }
0x10e9   :  { %9055 = vmatpush2.bf16.msra.mxu0 %v9999_v50  ;;  %v9698_v39 = vcombine.high %v5241_v6, %v5245_v47  ;;  %v5393_v50 = vld [vmem:[#allocation2 + $0x558] sm:$0xff]  ;;  %v9697_v38 = vcombine.low %v5241_v6, %v5245_v47 }
0x10ea   :  { %9096 = vmatpush2.bf16.msra.mxu1 %v10127_v33  ;;  %9114 = vmatprep.subr.bf16.mxu0 %v10216_v23  ;;  %v5397_v33 = vld [vmem:[#allocation2 + $0x578] sm:$0xff] }
0x10eb   :  { %9147 = vmatprep.subr.bf16.mxu1 %v9738_v53  ;;  %v5233_v23 = vld [vmem:[#allocation2 + $0x58] sm:$0xff]  ;;  %v9850_v54 = vcombine.high %v5393_v50, %v5397_v33  ;;  %v9849_v35 = vcombine.low %v5393_v50, %v5397_v33 }
0x10ec   :  { %v13752_v15 = vpop.f32.mrf.mxu0  ;;  %9057 = vmatmul.mubr.bf16.vlgmr.msra.gmra.mxu0 %v13704_v32  ;;  %v5237_v53 = vld [vmem:[#allocation2 + $0x78] sm:$0xff] }
0x10ed   :  { %9098 = vmatmul.mubr.bf16.vlgmr.msra.gmra.mxu1 %v13708_v19  ;;  %9115 = vmatpush1.bf16.msra.mxu0 %v10215_v17  ;;  %v9690_v58 = vcombine.high %v5233_v23, %v5237_v53  ;;  %v5385_v17 = vld [vmem:[#allocation2 + $0x518] sm:$0xff]  ;;  %v9689_v24 = vcombine.low %v5233_v23, %v5237_v53 }
0x10ee   :  { %9148 = vmatpush1.bf16.msra.mxu1 %v9737_v48  ;;  %v13756_v41 = vpop.f32.mrf.mxu0  ;;  %9116 = vmatprep.subr.bf16.mxu0 %v10208_v30  ;;  %v5389_v48 = vld [vmem:[#allocation2 + $0x538] sm:$0xff] }
0x10ef   :  { %9149 = vmatprep.subr.bf16.mxu1 %v9730_v37  ;;  %9138 = vmatprep.mubr.bf16.mxu0 %v11637_v62  ;;  %v5225_v30 = vld [vmem:[#allocation2 + $0x18] sm:$0xff]  ;;  %v9842_v44 = vcombine.high %v5385_v17, %v5389_v48 }
0x10f0   :  { %v8816_v1 = vpop.f32.mrf.mxu0  ;;  %9179 = vmatprep.mubr.bf16.mxu1 %v13668_v60  ;;  %v9706_v60 = vcombine.high %v5249_v45, %v5253_v16  ;;  %v5229_v37 = vld [vmem:[#allocation2 + $0x38] sm:$0xff] }
0x10f1   :  { %9117 = vmatpush1.bf16.msra.mxu0 %v10207_v27  ;;  %v9682_v34 = vcombine.high %v5225_v30, %v5229_v37  ;;  %v5377_v27 = vld [vmem:[#allocation2 + $0x4d8] sm:$0xff]  ;;  %v9681_v12 = vcombine.low %v5225_v30, %v5229_v37 }
0x10f2   :  { %9150 = vmatpush1.bf16.msra.mxu1 %v9729_v40  ;;  %v8817_v7 = vpop.f32.mrf.mxu0  ;;  %9118 = vmatprep.subr.bf16.mxu0 %v10200_v14  ;;  %v5345_v40 = vld [vmem:[#allocation2 + $0x3d8] sm:$0xff] }
0x10f3   :  { %9151 = vmatprep.subr.bf16.mxu1 %v9722_v52  ;;  %v5349_v14 = vld [vmem:[#allocation2 + $0x3f8] sm:$0xff]  ;;  %v9841_v52 = vcombine.low %v5385_v17, %v5389_v48 }
0x10f4   :  { %v9802_v1 = vcombine.high %v5345_v40, %v5349_v14  ;;  %v5341_v7 = vld [vmem:[#allocation2 + $0x3b8] sm:$0xff] }
0x10f5   :  { %9119 = vmatpush1.bf16.msra.mxu0 %v10199_v57  ;;  %v5337_v57 = vld [vmem:[#allocation2 + $0x398] sm:$0xff] }
0x10f6   :  { %9152 = vmatpush1.bf16.msra.mxu1 %v9721_v42  ;;  %9120 = vmatprep.subr.bf16.mxu0 %v10192_v10  ;;  %v9801_v10 = vcombine.low %v5345_v40, %v5349_v14  ;;  %v9794_v9 = vcombine.high %v5337_v57, %v5341_v7  ;;  %v5361_v25 = vld [vmem:[#allocation2 + $0x458] sm:$0xff] }
0x10f7   :  { %9153 = vmatprep.subr.bf16.mxu1 %v9714_v18  ;;  %v9826_v18 = vcombine.high %v5369_v55, %v5373_v56  ;;  %v5365_v45 = vld [vmem:[#allocation2 + $0x478] sm:$0xff] }
0x10f8   :  { %v5329_v16 = vld [vmem:[#allocation2 + $0x358] sm:$0xff] }
0x10f9   :  { %9121 = vmatpush1.bf16.msra.mxu0 %v10191_v13  ;;  %v5333_v13 = vld [vmem:[#allocation2 + $0x378] sm:$0xff] }
0x10fa   :  { %9154 = vmatpush1.bf16.msra.mxu1 %v9713_v49  ;;  %9188 = vmatprep.subr.bf16.mxu0 %v9866_v36  ;;  %v9825_v49 = vcombine.low %v5369_v55, %v5373_v56  ;;  %v9793_v36 = vcombine.low %v5337_v57, %v5341_v7  ;;  %v9786_v5 = vcombine.high %v5329_v16, %v5333_v13  ;;  %v5353_v31 = vld [vmem:[#allocation2 + $0x418] sm:$0xff]  ;;  %v5778_v56 = vsub.s32 2, %v14077_v26 }
0x10fb   :  { %9155 = vmatprep.subr.bf16.mxu1 %v9706_v60  ;;  %v9818_v60 = vcombine.high %v5361_v25, %v5365_v45  ;;  %v5357_v6 = vld [vmem:[#allocation2 + $0x438] sm:$0xff] }
0x10fc   :  { %10221 = vmatmul.mubr.msk.bf16.vlgmr.msra.gmra.mxu0 %vm8528_vm8, %v13714_v11  ;;  %v5321_v47 = vld [vmem:[#allocation2 + $0x318] sm:$0xff] }
0x10fd   :  { %9189 = vmatpush1.bf16.msra.mxu0 %v9865_v22  ;;  %9220 = vmatprep.mubr.bf16.mxu0 %v13673_v21  ;;  %v5381_v21 = vld [vmem:[#allocation2 + $0x4f8] sm:$0xff] }
0x10fe   :  { %9156 = vmatpush1.bf16.msra.mxu1 %v9705_v63  ;;  %9190 = vmatprep.subr.bf16.mxu0 %v9858_v61  ;;  %v9834_v28 = vcombine.high %v5377_v27, %v5381_v21  ;;  %v9833_v42 = vcombine.low %v5377_v27, %v5381_v21  ;;  %v5325_v22 = vld [vmem:[#allocation2 + $0x338] sm:$0xff]  ;;  %v9817_v63 = vcombine.low %v5361_v25, %v5365_v45  ;;  %v5782_v25 = vsub.s32 3, %v14077_v26 }
0x10ff   :  { %9157 = vmatprep.subr.bf16.mxu1 %v9698_v39  ;;  %v9785_v61 = vcombine.low %v5329_v16, %v5333_v13  ;;  %v9810_v39 = vcombine.high %v5353_v31, %v5357_v6  ;;  %v9778_v50 = vcombine.high %v5321_v47, %v5325_v22  ;;  %v5473_v33 = vld [vmem:[#allocation2 + $0x7d8] sm:$0xff] }
0x1100   :  { %v5477_v23 = vld [vmem:[#allocation2 + $0x7f8] sm:$0xff] }
0x1101   :  { %9191 = vmatpush1.bf16.msra.mxu0 %v9857_v20  ;;  %v5313_v53 = vld [vmem:[#allocation2 + $0x2d8] sm:$0xff] }
0x1102   :  { %9158 = vmatpush1.bf16.msra.mxu1 %v9697_v38  ;;  %9192 = vmatprep.subr.bf16.mxu0 %v9850_v54  ;;  %v5317_v20 = vld [vmem:[#allocation2 + $0x2f8] sm:$0xff]  ;;  %v9809_v38 = vcombine.low %v5353_v31, %v5357_v6  ;;  %v9777_v54 = vcombine.low %v5321_v47, %v5325_v22 }
0x1103   :  { %9159 = vmatprep.subr.bf16.mxu1 %v9690_v58  ;;  %v9930_v58 = vcombine.high %v5473_v33, %v5477_v23  ;;  %v9770_v17 = vcombine.high %v5313_v53, %v5317_v20  ;;  %v5465_v48 = vld [vmem:[#allocation2 + $0x798] sm:$0xff] }
0x1104   :  { %v5469_v30 = vld [vmem:[#allocation2 + $0x7b8] sm:$0xff] }
0x1105   :  { %9193 = vmatpush1.bf16.msra.mxu0 %v9849_v35  ;;  %v5305_v37 = vld [vmem:[#allocation2 + $0x298] sm:$0xff] }
0x1106   :  { %9160 = vmatpush1.bf16.msra.mxu1 %v9689_v24  ;;  %9194 = vmatprep.subr.bf16.mxu0 %v9842_v44  ;;  %v5309_v35 = vld [vmem:[#allocation2 + $0x2b8] sm:$0xff]  ;;  %v9929_v24 = vcombine.low %v5473_v33, %v5477_v23  ;;  %v9769_v44 = vcombine.low %v5313_v53, %v5317_v20 }
0x1107   :  { %9161 = vmatprep.subr.bf16.mxu1 %v9682_v34  ;;  %v9922_v34 = vcombine.high %v5465_v48, %v5469_v30  ;;  %v9762_v27 = vcombine.high %v5305_v37, %v5309_v35  ;;  %v5457_v21 = vld [vmem:[#allocation2 + $0x758] sm:$0xff] }
0x1108   :  { %v5461_v40 = vld [vmem:[#allocation2 + $0x778] sm:$0xff] }
0x1109   :  { %9195 = vmatpush1.bf16.msra.mxu0 %v9841_v52  ;;  %v5297_v14 = vld [vmem:[#allocation2 + $0x258] sm:$0xff]  ;;  %v9914_v55 = vcombine.high %v5457_v21, %v5461_v40  ;;  %v9913_v16 = vcombine.low %v5457_v21, %v5461_v40 }
0x110a   :  { %9162 = vmatpush1.bf16.msra.mxu1 %v9681_v12  ;;  %9196 = vmatprep.subr.bf16.mxu0 %v9834_v28  ;;  %v5301_v52 = vld [vmem:[#allocation2 + $0x278] sm:$0xff]  ;;  %v9921_v28 = vcombine.low %v5465_v48, %v5469_v30 }
0x110b   :  { %9163 = vmatprep.subr.bf16.mxu1 %v9802_v1  ;;  %v9761_v1 = vcombine.low %v5305_v37, %v5309_v35  ;;  %v9754_v7 = vcombine.high %v5297_v14, %v5301_v52  ;;  %v9753_v13 = vcombine.low %v5297_v14, %v5301_v52  ;;  %v5441_v6 = vld [vmem:[#allocation2 + $0x6d8] sm:$0xff] }
0x110c   :  { %v5445_v47 = vld [vmem:[#allocation2 + $0x6f8] sm:$0xff] }
0x110d   :  { %9197 = vmatpush1.bf16.msra.mxu0 %v9833_v42  ;;  %v5449_v42 = vld [vmem:[#allocation2 + $0x718] sm:$0xff]  ;;  %v9898_v33 = vcombine.high %v5441_v6, %v5445_v47  ;;  %v9897_v30 = vcombine.low %v5441_v6, %v5445_v47 }
0x110e   :  { %9164 = vmatpush2.bf16.msra.mxu1 %v9801_v10  ;;  %9198 = vmatprep.subr.bf16.mxu0 %v9826_v18  ;;  %v5453_v10 = vld [vmem:[#allocation2 + $0x738] sm:$0xff] }
0x110f   :  { %9165 = vmatprep.subr.bf16.mxu1 %v9794_v9  ;;  %v5289_v18 = vld [vmem:[#allocation2 + $0x218] sm:$0xff] }
0x1110   :  { %v5293_v9 = vld [vmem:[#allocation2 + $0x238] sm:$0xff] }
0x1111   :  { %9199 = vmatpush1.bf16.msra.mxu0 %v9825_v49  ;;  %v9906_v49 = vcombine.high %v5449_v42, %v5453_v10  ;;  %v9746_v31 = vcombine.high %v5289_v18, %v5293_v9  ;;  %v5537_v22 = vld [vmem:[#allocation2 + $0x9d8] sm:$0xff] }
0x1112   :  { %9166 = vmatpush2.bf16.msra.mxu1 %v9793_v36  ;;  %9200 = vmatprep.subr.bf16.mxu0 %v9818_v60  ;;  %v13765_v36 = vld [vmem:[#allocation27] sm:$0xff]  ;;  %v5433_v20 = vld [vmem:[#allocation2 + $0x698] sm:$0xff] }
0x1113   :  { %9167 = vmatprep.subr.bf16.mxu1 %v9786_v5  ;;  %v5779_v60 = vrot.slane %v13765_v36, %v5778_v56  ;;  %v5521_v40 = vld [vmem:[#allocation2 + $0x958] sm:$0xff] }
0x1114   :  { %v5525_v14 = vld [vmem:[#allocation2 + $0x978] sm:$0xff] }
0x1115   :  { %9201 = vmatpush1.bf16.msra.mxu0 %v9817_v63  ;;  %v5541_v63 = vld [vmem:[#allocation2 + $0x9f8] sm:$0xff]  ;;  %v8772_v23 = vadd.f32 %v13748_v29, %v5779_v60 }
0x1116   :  { %9168 = vmatpush2.bf16.msra.mxu1 %v9785_v61  ;;  %9202 = vmatprep.subr.bf16.mxu0 %v9810_v39  ;;  %v5783_v61 = vrot.slane %v13765_v36, %v5782_v25  ;;  %v9905_v39 = vcombine.low %v5449_v42, %v5453_v10  ;;  %v9994_v53 = vcombine.high %v5537_v22, %v5541_v63  ;;  %v5417_v42 = vld [vmem:[#allocation2 + $0x618] sm:$0xff] }
0x1117   :  { %9169 = vmatprep.subr.bf16.mxu1 %v9778_v50  ;;  %v9745_v50 = vcombine.low %v5289_v18, %v5293_v9  ;;  %v8813_v48 = vadd.f32 %v13752_v15, %v8772_v23  ;;  %v9993_v37 = vcombine.low %v5537_v22, %v5541_v63  ;;  %v5421_v10 = vld [vmem:[#allocation2 + $0x638] sm:$0xff] }
0x1118   :  { %v5513_v18 = vld [vmem:[#allocation2 + $0x918] sm:$0xff]  ;;  %v9874_v60 = vcombine.high %v5417_v42, %v5421_v10 }
0x1119   :  { %9203 = vmatpush1.bf16.msra.mxu0 %v9809_v38  ;;  %v5437_v38 = vld [vmem:[#allocation2 + $0x6b8] sm:$0xff] }
0x111a   :  { %9170 = vmatpush2.bf16.msra.mxu1 %v9777_v54  ;;  %9204 = vmatprep.subr.bf16.mxu0 %v9930_v58  ;;  %v5529_v54 = vld [vmem:[#allocation2 + $0x998] sm:$0xff]  ;;  %v9890_v35 = vcombine.high %v5433_v20, %v5437_v38  ;;  %v9889_v15 = vcombine.low %v5433_v20, %v5437_v38 }
0x111b   :  { %9171 = vmatprep.subr.bf16.mxu1 %v9770_v17  ;;  %v5533_v58 = vld [vmem:[#allocation2 + $0x9b8] sm:$0xff]  ;;  %v8774_v17 = vadd.f32 %v13750_v51, %v5783_v61  ;;  %v9368_v61 = vrot.slane %v9360_v46, %v13658_v43 }
0x111c   :  { %v9986_v29 = vcombine.high %v5529_v54, %v5533_v58  ;;  %v5517_v9 = vld [vmem:[#allocation2 + $0x938] sm:$0xff] }
0x111d   :  { %v8853_v12 = vpop.f32.mrf.mxu1  ;;  %9205 = vmatpush2.bf16.msra.mxu0 %v9929_v24  ;;  %v8815_v24 = vadd.f32 %v13756_v41, %v8774_v17  ;;  %v9970_v6 = vcombine.high %v5513_v18, %v5517_v9  ;;  %v5665_v47 = vld [vmem:[#allocation2 + $0xdd8] sm:$0xff] }
0x111e   :  { %9172 = vmatpush2.bf16.msra.mxu1 %v9769_v44  ;;  %9206 = vmatprep.subr.bf16.mxu0 %v9922_v34  ;;  %v8854_v44 = vadd.f32 %v8853_v12, %v8813_v48  ;;  %v5425_v34 = vld [vmem:[#allocation2 + $0x658] sm:$0xff] }
0x111f   :  { %v8855_v57 = vpop.f32.mrf.mxu1  ;;  %9173 = vmatprep.subr.bf16.mxu1 %v9762_v27  ;;  %v5429_v27 = vld [vmem:[#allocation2 + $0x678] sm:$0xff] }
0x1120   :  { %v8856_v52 = vadd.f32 %v8855_v57, %v8815_v24  ;;  %v9882_v41 = vcombine.high %v5425_v34, %v5429_v27  ;;  %v5669_v22 = vld [vmem:[#allocation2 + $0xdf8] sm:$0xff] }
0x1121   :  { %v8857_v45 = vpop.f32.mrf.mxu1  ;;  %9207 = vmatpush2.bf16.msra.mxu0 %v9921_v28  ;;  %v5509_v63 = vld [vmem:[#allocation2 + $0x8f8] sm:$0xff]  ;;  %v10122_v23 = vcombine.high %v5665_v47, %v5669_v22  ;;  %v10121_v48 = vcombine.low %v5665_v47, %v5669_v22 }
0x1122   :  { %9174 = vmatpush2.bf16.msra.mxu1 %v9761_v1  ;;  %9208 = vmatprep.subr.bf16.mxu0 %v9914_v55  ;;  %v9985_v55 = vcombine.low %v5529_v54, %v5533_v58  ;;  %v5657_v20 = vld [vmem:[#allocation2 + $0xd98] sm:$0xff] }
0x1123   :  { %v8858_v5 = vpop.f32.mrf.mxu1  ;;  %9175 = vmatprep.subr.bf16.mxu1 %v9754_v7  ;;  %v9978_v7 = vcombine.high %v5521_v40, %v5525_v14  ;;  %v5661_v38 = vld [vmem:[#allocation2 + $0xdb8] sm:$0xff] }
0x1124   :  { %v5497_v58 = vld [vmem:[#allocation2 + $0x898] sm:$0xff]  ;;  %v10114_v4 = vcombine.high %v5657_v20, %v5661_v38 }
0x1125   :  { %9209 = vmatpush2.bf16.msra.mxu0 %v9913_v16  ;;  %v9881_v16 = vcombine.low %v5425_v34, %v5429_v27  ;;  %v5501_v17 = vld [vmem:[#allocation2 + $0x8b8] sm:$0xff] }
0x1126   :  { %9176 = vmatpush2.bf16.msra.mxu1 %v9753_v13  ;;  %9210 = vmatprep.subr.bf16.mxu0 %v9906_v49  ;;  %v9977_v49 = vcombine.low %v5521_v40, %v5525_v14  ;;  %v9954_v46 = vcombine.high %v5497_v58, %v5501_v17  ;;  %v5493_v24 = vld [vmem:[#allocation2 + $0x878] sm:$0xff] }
0x1127   :  { %9177 = vmatprep.subr.bf16.mxu1 %v9746_v31  ;;  %v5645_v40 = vld [vmem:[#allocation2 + $0xd38] sm:$0xff] }
0x1128   :  { %v5481_v14 = vld [vmem:[#allocation2 + $0x818] sm:$0xff] }
0x1129   :  { %9211 = vmatpush2.bf16.msra.mxu0 %v9905_v39 }
0x112a   :  { %9178 = vmatpush2.bf16.msra.mxu1 %v9745_v50  ;;  %9212 = vmatprep.subr.bf16.mxu0 %v9898_v33  ;;  %v9873_v50 = vcombine.low %v5417_v42, %v5421_v10  ;;  %v9969_v33 = vcombine.low %v5513_v18, %v5517_v9  ;;  %v5625_v10 = vld [vmem:[#allocation2 + $0xc98] sm:$0xff] }
0x112b   :  { %9229 = vmatprep.subr.bf16.mxu1 %v9994_v53  ;;  %v5593_v18 = vld [vmem:[#allocation2 + $0xb98] sm:$0xff] }
0x112c   :  { %v8894_v21 = vpop.f32.mrf.mxu0  ;;  %v5597_v9 = vld [vmem:[#allocation2 + $0xbb8] sm:$0xff] }
0x112d   :  { %v8895_v51 = vadd.f32 %v8894_v21, %v8854_v44  ;;  %v8935_v28 = vpop.f32.mrf.mxu1  ;;  %9180 = vmatmul.mubr.bf16.vlgmr.msra.gmra.mxu1 %v13686_v8  ;;  %9213 = vmatpush2.bf16.msra.mxu0 %v9897_v30  ;;  %v5649_v30 = vld [vmem:[#allocation2 + $0xd58] sm:$0xff]  ;;  %v10113_v44 = vcombine.low %v5657_v20, %v5661_v38 }
0x112e   :  { %9230 = vmatpush1.bf16.msra.mxu1 %v9993_v37  ;;  %v8896_v1 = vpop.f32.mrf.mxu0  ;;  %9214 = vmatprep.subr.bf16.mxu0 %v9890_v35  ;;  %v5653_v37 = vld [vmem:[#allocation2 + $0xd78] sm:$0xff] }
0x112f   :  { %v8897_v12 = vadd.f32 %v8896_v1, %v8856_v52  ;;  %v8937_v56 = vpop.f32.mrf.mxu1  ;;  %9231 = vmatprep.subr.bf16.mxu1 %v9986_v29  ;;  %9261 = vmatprep.mubr.bf16.mxu1 %v13694_v3  ;;  %v8936_v25 = vadd.f32 %v8935_v28, %v8895_v51  ;;  %v5505_v3 = vld [vmem:[#allocation2 + $0x8d8] sm:$0xff]  ;;  %v9953_v29 = vcombine.low %v5497_v58, %v5501_v17 }
0x1130   :  { %v8898_v57 = vpop.f32.mrf.mxu0  ;;  %v9962_v53 = vcombine.high %v5505_v3, %v5509_v63  ;;  %v9961_v59 = vcombine.low %v5505_v3, %v5509_v63  ;;  %v5489_v35 = vld [vmem:[#allocation2 + $0x858] sm:$0xff]  ;;  %v10106_v34 = vcombine.high %v5649_v30, %v5653_v37  ;;  %v10105_v51 = vcombine.low %v5649_v30, %v5653_v37 }
0x1131   :  { %v8938_v8 = vadd.f32 %v8937_v56, %v8897_v12  ;;  %v8939_v45 = vpop.f32.mrf.mxu1  ;;  %9215 = vmatpush2.bf16.msra.mxu0 %v9889_v15  ;;  %v9946_v27 = vcombine.high %v5489_v35, %v5493_v24  ;;  %v5641_v21 = vld [vmem:[#allocation2 + $0xd18] sm:$0xff] }
0x1132   :  { %9232 = vmatpush1.bf16.msra.mxu1 %v9985_v55  ;;  %v8899_v13 = vpop.f32.mrf.mxu0  ;;  %9216 = vmatprep.subr.bf16.mxu0 %v9882_v41  ;;  %v5485_v52 = vld [vmem:[#allocation2 + $0x838] sm:$0xff]  ;;  %v10098_v28 = vcombine.high %v5641_v21, %v5645_v40  ;;  %v10097_v12 = vcombine.low %v5641_v21, %v5645_v40 }
0x1133   :  { %v9361_v5 = vcombine.low %v8936_v25, %v8938_v8  ;;  %v8940_v31 = vpop.f32.mrf.mxu1  ;;  %9233 = vmatprep.subr.bf16.mxu1 %v9978_v7  ;;  %v9938_v15 = vcombine.high %v5481_v14, %v5485_v52  ;;  %v5633_v1 = vld [vmem:[#allocation2 + $0xcd8] sm:$0xff]  ;;  %v9937_v56 = vcombine.low %v5481_v14, %v5485_v52 }
0x1134   :  { %v5601_v55 = vld [vmem:[#allocation2 + $0xbd8] sm:$0xff] }
0x1135   :  { %v9375_v39 = vrot.slane %v9361_v5, %v13658_v43  ;;  %9217 = vmatpush2.bf16.msra.mxu0 %v9881_v16  ;;  %v5605_v41 = vld [vmem:[#allocation2 + $0xbf8] sm:$0xff]  ;;  %v10050_v16 = vcombine.high %v5593_v18, %v5597_v9 }
0x1136   :  { %9234 = vmatpush1.bf16.msra.mxu1 %v9977_v49  ;;  %9218 = vmatprep.subr.bf16.mxu0 %v9874_v60  ;;  %v10058_v42 = vcombine.high %v5601_v55, %v5605_v41  ;;  %v5629_v57 = vld [vmem:[#allocation2 + $0xcb8] sm:$0xff]  ;;  %v10057_v8 = vcombine.low %v5601_v55, %v5605_v41 }
0x1137   :  { %9235 = vmatprep.subr.bf16.mxu1 %v9970_v6  ;;  %v9376_v54 = vcombine.low %v9368_v61, %v9375_v39  ;;  %v10082_v45 = vcombine.high %v5625_v10, %v5629_v57  ;;  %v5617_v13 = vld [vmem:[#allocation2 + $0xc58] sm:$0xff]  ;;  %v10081_v31 = vcombine.low %v5625_v10, %v5629_v57  ;;  %v10049_v6 = vcombine.low %v5593_v18, %v5597_v9 }
0x1138   :  { %v5621_v49 = vld [vmem:[#allocation2 + $0xc78] sm:$0xff] }
0x1139   :  { %9219 = vmatpush2.bf16.msra.mxu0 %v9873_v50  ;;  %9396 = vst [vmem:[#allocation29] sm:$0xff] %v9376_v54  ;;  %v5585_v60 = vld [vmem:[#allocation2 + $0xb58] sm:$0xff]  ;;  %v10074_v47 = vcombine.high %v5617_v13, %v5621_v49  ;;  %v10073_v50 = vcombine.low %v5617_v13, %v5621_v49  ;;  %v5790_v13 = vsub.s32 5, %v14077_v26 }
0x113a   :  { %9236 = vmatpush1.bf16.msra.mxu1 %v9969_v33  ;;  %9270 = vmatprep.subr.bf16.mxu0 %v10122_v23  ;;  %v5589_v5 = vld [vmem:[#allocation2 + $0xb78] sm:$0xff] }
0x113b   :  { %9237 = vmatprep.subr.bf16.mxu1 %v9962_v53  ;;  %v10042_v22 = vcombine.high %v5585_v60, %v5589_v5  ;;  %v5609_v3 = vld [vmem:[#allocation2 + $0xc18] sm:$0xff]  ;;  %v10041_v33 = vcombine.low %v5585_v60, %v5589_v5 }
0x113c   :  { %9221 = vmatmul.mubr.bf16.vlgmr.msra.gmra.mxu0 %v13692_v0  ;;  %v9945_v0 = vcombine.low %v5489_v35, %v5493_v24  ;;  %v5613_v63 = vld [vmem:[#allocation2 + $0xc38] sm:$0xff] }
0x113d   :  { %9271 = vmatpush1.bf16.msra.mxu0 %v10121_v48  ;;  %9302 = vmatprep.mubr.bf16.mxu0 %v13697_v2  ;;  %v5637_v2 = vld [vmem:[#allocation2 + $0xcf8] sm:$0xff]  ;;  %v10066_v23 = vcombine.high %v5609_v3, %v5613_v63  ;;  %v10065_v17 = vcombine.low %v5609_v3, %v5613_v63  ;;  %v5791_v63 = vrot.slane %v13765_v36, %v5790_v13 }
0x113e   :  { %9238 = vmatpush1.bf16.msra.mxu1 %v9961_v59  ;;  %9272 = vmatprep.subr.bf16.mxu0 %v10114_v4  ;;  %v10090_v7 = vcombine.high %v5633_v1, %v5637_v2  ;;  %v10089_v25 = vcombine.low %v5633_v1, %v5637_v2  ;;  %v5577_v61 = vld [vmem:[#allocation2 + $0xb18] sm:$0xff] }
0x113f   :  { %9239 = vmatprep.subr.bf16.mxu1 %v9954_v46  ;;  %v5581_v39 = vld [vmem:[#allocation2 + $0xb38] sm:$0xff] }
0x1140   :  { %v10034_v53 = vcombine.high %v5577_v61, %v5581_v39  ;;  %v5729_v20 = vld [vmem:[#allocation2 + $0xfd8] sm:$0xff]  ;;  %v10033_v48 = vcombine.low %v5577_v61, %v5581_v39 }
0x1141   :  { %9273 = vmatpush1.bf16.msra.mxu0 %v10113_v44  ;;  %v5733_v38 = vld [vmem:[#allocation2 + $0xff8] sm:$0xff] }
0x1142   :  { %9240 = vmatpush1.bf16.msra.mxu1 %v9953_v29  ;;  %9274 = vmatprep.subr.bf16.mxu0 %v10106_v34  ;;  %v5569_v54 = vld [vmem:[#allocation2 + $0xad8] sm:$0xff]  ;;  %v10186_v59 = vcombine.high %v5729_v20, %v5733_v38  ;;  %v10185_v24 = vcombine.low %v5729_v20, %v5733_v38 }
0x1143   :  { %9241 = vmatprep.subr.bf16.mxu1 %v9946_v27  ;;  %v5573_v58 = vld [vmem:[#allocation2 + $0xaf8] sm:$0xff] }
0x1144   :  { %v10026_v4 = vcombine.high %v5569_v54, %v5573_v58  ;;  %v5721_v46 = vld [vmem:[#allocation2 + $0xf98] sm:$0xff]  ;;  %v10025_v44 = vcombine.low %v5569_v54, %v5573_v58 }
0x1145   :  { %9275 = vmatpush1.bf16.msra.mxu0 %v10105_v51  ;;  %v5725_v30 = vld [vmem:[#allocation2 + $0xfb8] sm:$0xff] }
0x1146   :  { %9242 = vmatpush1.bf16.msra.mxu1 %v9945_v0  ;;  %9276 = vmatprep.subr.bf16.mxu0 %v10098_v28  ;;  %v5561_v37 = vld [vmem:[#allocation2 + $0xa98] sm:$0xff]  ;;  %v10178_v29 = vcombine.high %v5721_v46, %v5725_v30  ;;  %v10177_v52 = vcombine.low %v5721_v46, %v5725_v30 }
0x1147   :  { %9243 = vmatprep.subr.bf16.mxu1 %v9938_v15  ;;  %v5565_v35 = vld [vmem:[#allocation2 + $0xab8] sm:$0xff] }
0x1148   :  { %v10018_v34 = vcombine.high %v5561_v37, %v5565_v35  ;;  %v5713_v27 = vld [vmem:[#allocation2 + $0xf58] sm:$0xff]  ;;  %v10017_v51 = vcombine.low %v5561_v37, %v5565_v35 }
0x1149   :  { %9277 = vmatpush1.bf16.msra.mxu0 %v10097_v12  ;;  %v5717_v21 = vld [vmem:[#allocation2 + $0xf78] sm:$0xff] }
0x114a   :  { %9244 = vmatpush1.bf16.msra.mxu1 %v9937_v56  ;;  %9278 = vmatprep.subr.bf16.mxu0 %v10090_v7  ;;  %v5553_v40 = vld [vmem:[#allocation2 + $0xa58] sm:$0xff]  ;;  %v10170_v0 = vcombine.high %v5713_v27, %v5717_v21  ;;  %v10169_v41 = vcombine.low %v5713_v27, %v5717_v21 }
0x114b   :  { %9245 = vmatprep.subr.bf16.mxu1 %v10058_v42  ;;  %v5557_v14 = vld [vmem:[#allocation2 + $0xa78] sm:$0xff] }
0x114c   :  { %v10010_v28 = vcombine.high %v5553_v40, %v5557_v14  ;;  %v5705_v15 = vld [vmem:[#allocation2 + $0xf18] sm:$0xff]  ;;  %v10009_v12 = vcombine.low %v5553_v40, %v5557_v14 }
0x114d   :  { %9279 = vmatpush1.bf16.msra.mxu0 %v10089_v25  ;;  %v5709_v1 = vld [vmem:[#allocation2 + $0xf38] sm:$0xff]  ;;  %v5786_v25 = vsub.s32 4, %v14077_v26 }
0x114e   :  { %9246 = vmatpush2.bf16.msra.mxu1 %v10057_v8  ;;  %9280 = vmatprep.subr.bf16.mxu0 %v10082_v45  ;;  %v5545_v2 = vld [vmem:[#allocation2 + $0xa18] sm:$0xff]  ;;  %v10162_v56 = vcombine.high %v5705_v15, %v5709_v1  ;;  %v10161_v9 = vcombine.low %v5705_v15, %v5709_v1 }
0x114f   :  { %9247 = vmatprep.subr.bf16.mxu1 %v10050_v16  ;;  %v5549_v55 = vld [vmem:[#allocation2 + $0xa38] sm:$0xff] }
0x1150   :  { %v10002_v7 = vcombine.high %v5545_v2, %v5549_v55  ;;  %v5697_v42 = vld [vmem:[#allocation2 + $0xed8] sm:$0xff]  ;;  %v10001_v8 = vcombine.low %v5545_v2, %v5549_v55 }
0x1151   :  { %9281 = vmatpush1.bf16.msra.mxu0 %v10081_v31  ;;  %v5701_v10 = vld [vmem:[#allocation2 + $0xef8] sm:$0xff] }
0x1152   :  { %9248 = vmatpush2.bf16.msra.mxu1 %v10049_v6  ;;  %9282 = vmatprep.subr.bf16.mxu0 %v10074_v47  ;;  %v5761_v57 = vld [vmem:[#allocation2 + $0x10d8] sm:$0xff]  ;;  %v10154_v45 = vcombine.high %v5697_v42, %v5701_v10  ;;  %v5787_v6 = vrot.slane %v13765_v36, %v5786_v25  ;;  %v10153_v47 = vcombine.low %v5697_v42, %v5701_v10 }
0x1153   :  { %9249 = vmatprep.subr.bf16.mxu1 %v10042_v22  ;;  %v5765_v18 = vld [vmem:[#allocation2 + $0x10f8] sm:$0xff] }
0x1154   :  { %v10218_v16 = vcombine.high %v5761_v57, %v5765_v18  ;;  %v5689_v49 = vld [vmem:[#allocation2 + $0xe98] sm:$0xff]  ;;  %v10217_v22 = vcombine.low %v5761_v57, %v5765_v18 }
0x1155   :  { %9283 = vmatpush1.bf16.msra.mxu0 %v10073_v50  ;;  %v5693_v60 = vld [vmem:[#allocation2 + $0xeb8] sm:$0xff] }
0x1156   :  { %9250 = vmatpush2.bf16.msra.mxu1 %v10041_v33  ;;  %9284 = vmatprep.subr.bf16.mxu0 %v10066_v23  ;;  %v5753_v5 = vld [vmem:[#allocation2 + $0x1098] sm:$0xff]  ;;  %v10146_v3 = vcombine.high %v5689_v49, %v5693_v60  ;;  %v10145_v54 = vcombine.low %v5689_v49, %v5693_v60 }
0x1157   :  { %9251 = vmatprep.subr.bf16.mxu1 %v10034_v53  ;;  %v5757_v31 = vld [vmem:[#allocation2 + $0x10b8] sm:$0xff] }
0x1158   :  { %v10210_v61 = vcombine.high %v5753_v5, %v5757_v31  ;;  %v5681_v39 = vld [vmem:[#allocation2 + $0xe58] sm:$0xff] }
0x1159   :  { %9285 = vmatpush1.bf16.msra.mxu0 %v10065_v17  ;;  %v5685_v50 = vld [vmem:[#allocation2 + $0xe78] sm:$0xff]  ;;  %v10209_v17 = vcombine.low %v5753_v5, %v5757_v31 }
0x115a   :  { %9252 = vmatpush2.bf16.msra.mxu1 %v10033_v48  ;;  %9286 = vmatprep.subr.bf16.mxu0 %v10186_v59  ;;  %v5745_v23 = vld [vmem:[#allocation2 + $0x1058] sm:$0xff]  ;;  %v10138_v48 = vcombine.high %v5681_v39, %v5685_v50  ;;  %v10137_v27 = vcombine.low %v5681_v39, %v5685_v50 }
0x115b   :  { %9253 = vmatprep.subr.bf16.mxu1 %v10026_v4  ;;  %v5749_v53 = vld [vmem:[#allocation2 + $0x1078] sm:$0xff] }
0x115c   :  { %v10202_v30 = vcombine.high %v5745_v23, %v5749_v53  ;;  %v5673_v37 = vld [vmem:[#allocation2 + $0xe18] sm:$0xff]  ;;  %v10201_v40 = vcombine.low %v5745_v23, %v5749_v53 }
0x115d   :  { %9287 = vmatpush2.bf16.msra.mxu0 %v10185_v24  ;;  %v5677_v35 = vld [vmem:[#allocation2 + $0xe38] sm:$0xff] }
0x115e   :  { %9254 = vmatpush2.bf16.msra.mxu1 %v10025_v44  ;;  %9288 = vmatprep.subr.bf16.mxu0 %v10178_v29  ;;  %v5737_v44 = vld [vmem:[#allocation2 + $0x1018] sm:$0xff]  ;;  %v10130_v14 = vcombine.high %v5673_v37, %v5677_v35 }
0x115f   :  { %9255 = vmatprep.subr.bf16.mxu1 %v10018_v34  ;;  %v5741_v29 = vld [vmem:[#allocation2 + $0x1038] sm:$0xff] }
0x1161   :  { %9289 = vmatpush2.bf16.msra.mxu0 %v10177_v52 }
0x1162   :  { %9256 = vmatpush2.bf16.msra.mxu1 %v10017_v51  ;;  %9290 = vmatprep.subr.bf16.mxu0 %v10170_v0  ;;  %v10194_v51 = vcombine.high %v5737_v44, %v5741_v29  ;;  %v10129_v0 = vcombine.low %v5673_v37, %v5677_v35 }
0x1163   :  { %9257 = vmatprep.subr.bf16.mxu1 %v10010_v28 }
0x1165   :  { %9291 = vmatpush2.bf16.msra.mxu0 %v10169_v41 }
0x1166   :  { %9258 = vmatpush2.bf16.msra.mxu1 %v10009_v12  ;;  %9292 = vmatprep.subr.bf16.mxu0 %v10162_v56 }
0x1167   :  { %9259 = vmatprep.subr.bf16.mxu1 %v10002_v7 }
0x1169   :  { %9293 = vmatpush2.bf16.msra.mxu0 %v10161_v9 }
0x116a   :  { %9260 = vmatpush2.bf16.msra.mxu1 %v10001_v8  ;;  %9294 = vmatprep.subr.bf16.mxu0 %v10154_v45 }
0x116b   :  { %9319 = vmatprep.subr.bf16.mxu1 %v10218_v16 }
0x116c   :  { %v8976_v33 = vpop.f32.mrf.mxu0 }
0x116d   :  { %v8977_v20 = vadd.f32 %v8976_v33, %v5787_v6  ;;  %v9017_v38 = vpop.f32.mrf.mxu1  ;;  %9262 = vmatmul.mubr.bf16.vlgmr.msra.gmra.mxu1 %v13704_v32  ;;  %9295 = vmatpush2.bf16.msra.mxu0 %v10153_v47 }
0x116e   :  { %9320 = vmatpush1.bf16.msra.mxu1 %v10217_v22  ;;  %v8978_v58 = vpop.f32.mrf.mxu0  ;;  %9296 = vmatprep.subr.bf16.mxu0 %v10146_v3  ;;  %v5794_v3 = vsub.s32 6, %v14077_v26 }
0x116f   :  { %v9018_v59 = vadd.f32 %v9017_v38, %v8977_v20  ;;  %v8979_v4 = vadd.f32 %v8978_v58, %v5791_v63  ;;  %v9019_v46 = vpop.f32.mrf.mxu1  ;;  %9321 = vmatprep.subr.bf16.mxu1 %v10210_v61  ;;  %9343 = vmatprep.mubr.bf16.mxu1 %v11637_v62  ;;  %v10193_v62 = vcombine.low %v5737_v44, %v5741_v29  ;;  %v5798_v61 = vsub.s32 7, %v14077_v26 }
0x1170   :  { %v8980_v24 = vpop.f32.mrf.mxu0  ;;  %v5795_v50 = vrot.slane %v13765_v36, %v5794_v3 }
0x1171   :  { %v9020_v32 = vadd.f32 %v9019_v46, %v8979_v4  ;;  %v9021_v34 = vpop.f32.mrf.mxu1  ;;  %9297 = vmatpush2.bf16.msra.mxu0 %v10145_v54  ;;  %v5799_v23 = vrot.slane %v13765_v36, %v5798_v61 }
0x1172   :  { %9322 = vmatpush1.bf16.msra.mxu1 %v10209_v17  ;;  %v8981_v21 = vpop.f32.mrf.mxu0  ;;  %9298 = vmatprep.subr.bf16.mxu0 %v10138_v48 }
0x1173   :  { %v9022_v52 = vpop.f32.mrf.mxu1  ;;  %9323 = vmatprep.subr.bf16.mxu1 %v10202_v30 }
0x1175   :  { %9299 = vmatpush2.bf16.msra.mxu0 %v10137_v27 }
0x1176   :  { %9324 = vmatpush1.bf16.msra.mxu1 %v10201_v40  ;;  %9300 = vmatprep.subr.bf16.mxu0 %v10130_v14 }
0x1177   :  { %9325 = vmatprep.subr.bf16.mxu1 %v10194_v51 }
0x1179   :  { %9301 = vmatpush2.bf16.msra.mxu0 %v10129_v0 }
0x117a   :  { %9326 = vmatpush1.bf16.msra.mxu1 %v10193_v62 }
0x117c   :  { %9303 = vmatmul.mubr.bf16.vlgmr.msra.gmra.mxu0 %v13708_v19 }
0x117d   :  { %10222 = vmatmul.mubr.msk.bf16.vlgmr.msra.gmra.mxu1 %vm8528_vm8, %v13714_v11 }
0x11ac   :  { %v9058_v28 = vpop.f32.mrf.mxu0 }
0x11ad   :  { %v9059_v15 = vadd.f32 %v9058_v28, %v9018_v59  ;;  %v9099_v1 = vpop.f32.mrf.mxu1 }
0x11ae   :  { %v9060_v2 = vpop.f32.mrf.mxu0 }
0x11af   :  { %v9100_v55 = vadd.f32 %v9099_v1, %v9059_v15  ;;  %v9061_v41 = vadd.f32 %v9060_v2, %v9020_v32  ;;  %v9101_v12 = vpop.f32.mrf.mxu1 }
0x11b0   :  { %v9062_v56 = vpop.f32.mrf.mxu0 }
0x11b1   :  { %v9102_v7 = vadd.f32 %v9101_v12, %v9061_v41  ;;  %v9103_v42 = vpop.f32.mrf.mxu1 }
0x11b2   :  { %v9063_v10 = vpop.f32.mrf.mxu0 }
0x11b3   :  { %v9104_v57 = vpop.f32.mrf.mxu1 }
0x11bc   :  { %v9140_v18 = vpop.f32.mrf.mxu0 }
0x11bd   :  { %v9141_v9 = vadd.f32 %v9140_v18, %v9100_v55 }
0x11be   :  { %v9142_v25 = vpop.f32.mrf.mxu0 }
0x11bf   :  { %v9143_v8 = vadd.f32 %v9142_v25, %v9102_v7 }
0x11c0   :  { %v9144_v19 = vpop.f32.mrf.mxu0 }
0x11c1   :  { %v9377_v45 = vcombine.low %v9141_v9, %v9143_v8 }
0x11c2   :  { %v9145_v16 = vpop.f32.mrf.mxu0 }
0x11c3   :  { %v9385_v36 = vrot.slane %v9377_v45, %v13658_v43 }
0x11ed   :  { %v9181_v11 = vpop.f32.mrf.mxu1 }
0x11ee   :  { %v9182_v53 = vadd.f32 %v9181_v11, %v5795_v50 }
0x11ef   :  { %v9183_v13 = vpop.f32.mrf.mxu1 }
0x11f0   :  { %v9184_v20 = vadd.f32 %v9183_v13, %v5799_v23 }
0x11f1   :  { %v9185_v49 = vpop.f32.mrf.mxu1 }
0x11f3   :  { %v9186_v60 = vpop.f32.mrf.mxu1 }
0x11fc   :  { %v9222_v5 = vpop.f32.mrf.mxu0 }
0x11fd   :  { %v9223_v38 = vadd.f32 %v9222_v5, %v9182_v53 }
0x11fe   :  { %v9224_v31 = vpop.f32.mrf.mxu0 }
0x11ff   :  { %v9225_v54 = vadd.f32 %v9224_v31, %v9184_v20 }
0x1200   :  { %v9226_v6 = vpop.f32.mrf.mxu0 }
0x1202   :  { %v9227_v47 = vpop.f32.mrf.mxu0 }
0x122d   :  { %v9263_v22 = vpop.f32.mrf.mxu1 }
0x122e   :  { %v9264_v58 = vadd.f32 %v9263_v22, %v9223_v38 }
0x122f   :  { %v9265_v63 = vpop.f32.mrf.mxu1 }
0x1230   :  { %v9266_v48 = vadd.f32 %v9265_v63, %v9225_v54 }
0x1231   :  { %v9267_v39 = vpop.f32.mrf.mxu1 }
0x1233   :  { %v9268_v33 = vpop.f32.mrf.mxu1 }
0x123c   :  { %v9304_v17 = vpop.f32.mrf.mxu0 }
0x123d   :  { %v9305_v59 = vadd.f32 %v9304_v17, %v9264_v58  ;;  %v9345_v4 = vpop.f32.mrf.mxu1 }
0x123e   :  { %v9306_v46 = vpop.f32.mrf.mxu0 }
0x123f   :  { %v9307_v30 = vadd.f32 %v9306_v46, %v9266_v48  ;;  %v9347_v37 = vpop.f32.mrf.mxu1  ;;  %v9346_v26 = vadd.f32 %v9345_v4, %v9305_v59 }
0x1240   :  { %v9308_v35 = vpop.f32.mrf.mxu0 }
0x1241   :  { %v9348_v24 = vadd.f32 %v9347_v37, %v9307_v30  ;;  %v9349_v44 = vpop.f32.mrf.mxu1 }
0x1242   :  { %v9309_v29 = vpop.f32.mrf.mxu0 }
0x1243   :  { %v9378_v32 = vcombine.low %v9346_v26, %v9348_v24  ;;  %v9350_v34 = vpop.f32.mrf.mxu1 }
0x1245   :  { %v9392_v27 = vrot.slane %v9378_v32, %v13658_v43 }
0x1247   :  { %v9393_v21 = vcombine.low %v9385_v36, %v9392_v27 }
0x1249   :  { %9397 = vst [vmem:[#allocation29 + $0x8] sm:$0xff] %v9393_v21 }
0x124a   :  { %11585 = shalt.err (!%p11582_p9)
}
0x124b   :  { %9407 = dma.vmem_to_hbm [thread:$0]  %s9405_s19, 256, %s13818_s18, [#allocation8]  }
0x124c   :  { %11612 = dma.done.wait [#allocation8], 256  }
0x124d   :  { %11613 = vsyncadd [#allocation8], 4294967040 }
0x124e   :  { %9411 = vsyncpa [#allocation7], 1 }
0x124f   :  { %9412 = vsyncpa [#allocation10], 1 }
0x1250   :  { %9413 = vsyncpa [#allocation13], 1 }
0x1251   :  { %9414 = vsyncpa [#allocation16], 1 }
0x1252   :  { %9415 = vsyncpa [#allocation19], 1 }
0x1253   :  { %9416 = vsyncpa [#allocation22], 1 }
0x1254   :  { %9417 = vsyncpa [#allocation25], 1 }
0x1255   :  { %9418 = vsyncpa [#allocation28], 1 }
0x1256   :  { %9419 = vsyncpa [#allocation8], 1 }
0x1257   :  { %9420 = vsyncmov [#allocation3] }
0x125a   :  { %s9421_s7 = vpop.sfrf %9420 }
0x125b   :  { %p10223_p10 = scmp.ne.s32.totalorder %s9421_s7, 0 }
0x125d   :  { %9425 = shalt.err (%p10223_p10)  }

</bundles_post_ra>
